<compile_context>
chip_gen: v7x
topology: tpu7x:2x2x1
jax: 0.10.0
libtpu: 0.0.40
codegen_flags: <defaults>
</compile_context>

<pallas_src>
import functools
import math

import jax
import jax.numpy as jnp
from jax.experimental import pallas as pl
from jax.experimental.pallas import tpu as pltpu

LN_EPS = 1e-5  # PyTorch nn.LayerNorm default eps


# ------------------------------ kernel bodies ------------------------------ #

def _layernorm_f32(x_f32, gamma, beta):
    mu = jnp.mean(x_f32, axis=-1, keepdims=True)
    var = jnp.mean(jnp.square(x_f32 - mu), axis=-1, keepdims=True)
    return (x_f32 - mu) * jax.lax.rsqrt(var + LN_EPS) * gamma + beta


def _ln_qkv_kernel(x_ref, g_ref, b_ref, w_ref, bias_ref, o_ref):
    # x_ref: (TM, D) f32 row tile; w_ref: (D, 3D) bf16; out: (TM, 3D) bf16
    xn = _layernorm_f32(x_ref[...].astype(jnp.float32), g_ref[...], b_ref[...])
    qkv = jnp.dot(xn.astype(jnp.bfloat16), w_ref[...],
                  preferred_element_type=jnp.float32) + bias_ref[...]
    o_ref[...] = qkv.astype(o_ref.dtype)


def _attn_kernel(q_ref, k_ref, v_ref, o_ref, *, scale):
    # One (batch, head): q/k/v refs are (S, dh) bf16. Scores & softmax in f32.
    s = jax.lax.dot_general(q_ref[...], k_ref[...],
                            (((1,), (1,)), ((), ())),
                            preferred_element_type=jnp.float32) * scale
    s = s - jnp.max(s, axis=-1, keepdims=True)
    p = jnp.exp(s)
    p = p / jnp.sum(p, axis=-1, keepdims=True)
    o = jnp.dot(p.astype(jnp.bfloat16), v_ref[...],
                preferred_element_type=jnp.float32)
    o_ref[...] = o.astype(o_ref.dtype)


def _proj_mlp_kernel(a_ref, x_ref, wo_ref, bo_ref, g2_ref, be2_ref,
                     w1_ref, b1_ref, w2_ref, b2_ref, o_ref):
    # Fused: attention out-projection + residual + LayerNorm2 + MLP + residual.
    # a_ref: (TM, D) bf16 attention output; x_ref: (TM, D) f32 block input.
    y = jnp.dot(a_ref[...], wo_ref[...],
                preferred_element_type=jnp.float32) + bo_ref[...]
    x1 = x_ref[...].astype(jnp.float32) + y                    # residual 1
    xn = _layernorm_f32(x1, g2_ref[...], be2_ref[...])
    h = jnp.dot(xn.astype(jnp.bfloat16), w1_ref[...],
                preferred_element_type=jnp.float32) + b1_ref[...]
    # tanh-approx GELU (see TODO above); EUP tanh, VPU elementwise.
    h = 0.5 * h * (1.0 + jnp.tanh(0.7978845608028654 * (h + 0.044715 * h * h * h)))
    y2 = jnp.dot(h.astype(jnp.bfloat16), w2_ref[...],
                 preferred_element_type=jnp.float32) + b2_ref[...]
    o_ref[...] = (x1 + y2).astype(o_ref.dtype)                 # residual 2


# --------------------------------- wrapper --------------------------------- #

def transformer_block(params, x, *, num_heads, row_tile=256):
    """Forward pass of TransformerBlock.  x: (B, S, D) float32."""
    B, S, D = x.shape
    H = num_heads
    assert D % H == 0
    dh = D // H
    M = B * S
    # TODO(synk): pad/mask ragged row tails for arbitrary B*S (here B*S % 8 == 0).
    assert M % 8 == 0
    tm = min(row_tile, M)
    while M % tm:
        tm -= 8
    grid_rows = M // tm

    x2d = x.reshape(M, D)
    Dh = params["w_fc1"].shape[1]

    # bf16 copies of the matmul weights (f32 masters kept in params).
    w_qkv = params["w_qkv"].astype(jnp.bfloat16)   # (D, 3D) == in_proj_weight.T
    w_out = params["w_out"].astype(jnp.bfloat16)   # (D, D)  == out_proj.weight.T
    w_fc1 = params["w_fc1"].astype(jnp.bfloat16)   # (D, Dh)
    w_fc2 = params["w_fc2"].astype(jnp.bfloat16)   # (Dh, D)

    def row_spec(width):
        return pl.BlockSpec((tm, width), lambda i: (i, 0))

    def full_spec(shape):
        return pl.BlockSpec(shape, lambda i: (0, 0))

    parallel_1d = pltpu.CompilerParams(dimension_semantics=("parallel",))

    # ---- kernel 1: LayerNorm1 + QKV projection (row-tiled grid) ----
    qkv = pl.pallas_call(
        _ln_qkv_kernel,
        out_shape=jax.ShapeDtypeStruct((M, 3 * D), jnp.bfloat16),
        grid=(grid_rows,),
        in_specs=[row_spec(D),
                  full_spec((1, D)), full_spec((1, D)),
                  full_spec((D, 3 * D)), full_spec((1, 3 * D))],
        out_specs=row_spec(3 * D),
        compiler_params=parallel_1d,
    )(x2d, params["ln1_g"].reshape(1, D), params["ln1_b"].reshape(1, D),
      w_qkv, params["b_qkv"].reshape(1, 3 * D))

    # head split: (M, 3D) -> q/k/v each (B, H, S, dh)   (wrapper-side layout plumbing)
    qkv4 = qkv.reshape(B, S, 3, H, dh)
    q = qkv4[:, :, 0].transpose(0, 2, 1, 3)
    k = qkv4[:, :, 1].transpose(0, 2, 1, 3)
    v = qkv4[:, :, 2].transpose(0, 2, 1, 3)

    # ---- kernel 2: scaled-dot-product attention, grid over (batch, head) ----
    def head_spec():
        return pl.BlockSpec((None, None, S, dh), lambda b, h: (b, h, 0, 0))

    attn = pl.pallas_call(
        functools.partial(_attn_kernel, scale=1.0 / math.sqrt(dh)),
        out_shape=jax.ShapeDtypeStruct((B, H, S, dh), jnp.bfloat16),
        grid=(B, H),
        in_specs=[head_spec(), head_spec(), head_spec()],
        out_specs=head_spec(),
        compiler_params=pltpu.CompilerParams(
            dimension_semantics=("parallel", "parallel")),
    )(q, k, v)

    a2d = attn.transpose(0, 2, 1, 3).reshape(M, D)   # concat heads -> (M, D)

    # ---- kernel 3: out_proj + residual + LayerNorm2 + MLP + residual ----
    out = pl.pallas_call(
        _proj_mlp_kernel,
        out_shape=jax.ShapeDtypeStruct((M, D), x.dtype),
        grid=(grid_rows,),
        in_specs=[row_spec(D), row_spec(D),
                  full_spec((D, D)), full_spec((1, D)),
                  full_spec((1, D)), full_spec((1, D)),
                  full_spec((D, Dh)), full_spec((1, Dh)),
                  full_spec((Dh, D)), full_spec((1, D))],
        out_specs=row_spec(D),
        compiler_params=parallel_1d,
    )(a2d, x2d,
      w_out, params["b_out"].reshape(1, D),
      params["ln2_g"].reshape(1, D), params["ln2_b"].reshape(1, D),
      w_fc1, params["b_fc1"].reshape(1, Dh),
      w_fc2, params["b_fc2"].reshape(1, D))

    return out.reshape(B, S, D)


# --------------------------- deterministic params --------------------------- #

def init_params(key, dim, mlp_ratio=4.0):
    hid = int(dim * mlp_ratio)
    ks = jax.random.split(key, 4)

    def lin(k, fan_in, shape):
        return jax.random.normal(k, shape, jnp.float32) * (1.0 / math.sqrt(fan_in))

    return {
        "ln1_g": jnp.ones((dim,), jnp.float32),
        "ln1_b": jnp.zeros((dim,), jnp.float32),
        "w_qkv": lin(ks[0], dim, (dim, 3 * dim)),   # in_proj_weight (transposed)
        "b_qkv": jnp.zeros((3 * dim,), jnp.float32),
        "w_out": lin(ks[1], dim, (dim, dim)),       # out_proj.weight (transposed)
        "b_out": jnp.zeros((dim,), jnp.float32),
        "ln2_g": jnp.ones((dim,), jnp.float32),
        "ln2_b": jnp.zeros((dim,), jnp.float32),
        "w_fc1": lin(ks[2], dim, (dim, hid)),
        "b_fc1": jnp.zeros((hid,), jnp.float32),
        "w_fc2": lin(ks[3], hid, (hid, dim)),
        "b_fc2": jnp.zeros((dim,), jnp.float32),
    }


if __name__ == "__main__":
    B, S, D, H = 2, 256, 128, 4   # small but lane/sublane-aligned (D multiple of 128)
    key = jax.random.PRNGKey(0)
    pkey, xkey = jax.random.split(key)
    params = init_params(pkey, D)
    x = jax.random.normal(xkey, (B, S, D), jnp.float32)

    fwd = jax.jit(functools.partial(transformer_block, num_heads=H))
    out = jax.block_until_ready(fwd(params, x))

    assert out.shape == (B, S, D), out.shape
    assert bool(jnp.all(jnp.isfinite(out)))
    print("KERNEL_OK")
</pallas_src>

<mosaic_0001>
module attributes {stable_mosaic.version = 11 : i64} {
  func.func @_ln_qkv_kernel(%arg0: i32, %arg1: memref<256x128xf32, #tpu.memory_space<vmem>>, %arg2: memref<1x128xf32, #tpu.memory_space<vmem>>, %arg3: memref<1x128xf32, #tpu.memory_space<vmem>>, %arg4: memref<128x384xbf16, #tpu.memory_space<vmem>>, %arg5: memref<1x384xf32, #tpu.memory_space<vmem>>, %arg6: memref<256x384xbf16, #tpu.memory_space<vmem>>) attributes {dimension_semantics = [#tpu.dimension_semantics<parallel>], iteration_bounds = array<i64: 2>, scalar_prefetch = 0 : i64, scratch_operands = 0 : i64, tpu.core_type = #tpu.core_type<tc>, window_params = [{transform_indices = @transform_0, window_bounds = array<i64: 256, 128>}, {pipeline_mode = #tpu.pipeline_mode<synchronous>, transform_indices = @transform_1, window_bounds = array<i64: 1, 128>}, {pipeline_mode = #tpu.pipeline_mode<synchronous>, transform_indices = @transform_2, window_bounds = array<i64: 1, 128>}, {pipeline_mode = #tpu.pipeline_mode<synchronous>, transform_indices = @transform_3, window_bounds = array<i64: 128, 384>}, {pipeline_mode = #tpu.pipeline_mode<synchronous>, transform_indices = @transform_4, window_bounds = array<i64: 1, 384>}, {transform_indices = @transform_5, window_bounds = array<i64: 256, 384>}]} {
    %c0 = arith.constant 0 : index
    %c0_0 = arith.constant 0 : index
    %0 = vector.load %arg1[%c0, %c0_0] : memref<256x128xf32, #tpu.memory_space<vmem>>, vector<256x128xf32>
    %c0_1 = arith.constant 0 : index
    %c0_2 = arith.constant 0 : index
    %1 = vector.load %arg2[%c0_1, %c0_2] : memref<1x128xf32, #tpu.memory_space<vmem>>, vector<1x128xf32>
    %c0_3 = arith.constant 0 : index
    %c0_4 = arith.constant 0 : index
    %2 = vector.load %arg3[%c0_3, %c0_4] : memref<1x128xf32, #tpu.memory_space<vmem>>, vector<1x128xf32>
    %cst = arith.constant dense<0.000000e+00> : vector<256xf32>
    %3 = vector.multi_reduction <add>, %0, %cst [1] : vector<256x128xf32> to vector<256xf32>
    %4 = vector.shape_cast %3 : vector<256xf32> to vector<256x1xf32>
    %cst_5 = arith.constant 1.280000e+02 : f32
    %5 = vector.broadcast %cst_5 : f32 to vector<256x1xf32>
    %6 = arith.divf %4, %5 : vector<256x1xf32>
    %7 = vector.broadcast %6 : vector<256x1xf32> to vector<256x128xf32>
    %8 = arith.subf %0, %7 : vector<256x128xf32>
    %9 = arith.mulf %8, %8 : vector<256x128xf32>
    %cst_6 = arith.constant dense<0.000000e+00> : vector<256xf32>
    %10 = vector.multi_reduction <add>, %9, %cst_6 [1] : vector<256x128xf32> to vector<256xf32>
    %11 = vector.shape_cast %10 : vector<256xf32> to vector<256x1xf32>
    %cst_7 = arith.constant 1.280000e+02 : f32
    %12 = vector.broadcast %cst_7 : f32 to vector<256x1xf32>
    %13 = arith.divf %11, %12 : vector<256x1xf32>
    %14 = vector.broadcast %6 : vector<256x1xf32> to vector<256x128xf32>
    %15 = arith.subf %0, %14 : vector<256x128xf32>
    %cst_8 = arith.constant 9.99999974E-6 : f32
    %16 = vector.broadcast %cst_8 : f32 to vector<256x1xf32>
    %17 = arith.addf %13, %16 : vector<256x1xf32>
    %18 = math.rsqrt %17 : vector<256x1xf32>
    %19 = vector.broadcast %18 : vector<256x1xf32> to vector<256x128xf32>
    %20 = arith.mulf %15, %19 : vector<256x128xf32>
    %21 = vector.broadcast %1 : vector<1x128xf32> to vector<256x128xf32>
    %22 = arith.mulf %20, %21 : vector<256x128xf32>
    %23 = vector.broadcast %2 : vector<1x128xf32> to vector<256x128xf32>
    %24 = arith.addf %22, %23 : vector<256x128xf32>
    %25 = arith.truncf %24 : vector<256x128xf32> to vector<256x128xbf16>
    %c0_9 = arith.constant 0 : index
    %c0_10 = arith.constant 0 : index
    %26 = vector.load %arg4[%c0_9, %c0_10] : memref<128x384xbf16, #tpu.memory_space<vmem>>, vector<128x384xbf16>
    %cst_11 = arith.constant dense<0.000000e+00> : vector<256x384xf32>
    %27 = tpu.matmul %25, %26, %cst_11 {dimension_numbers = #tpu.dot_dimension_numbers<[1], [0], [0], [1], [0, 0, 1, 1], [], []>} : vector<256x128xbf16>, vector<128x384xbf16>, vector<256x384xf32> -> vector<256x384xf32>
    %c0_12 = arith.constant 0 : index
    %c0_13 = arith.constant 0 : index
    %28 = vector.load %arg5[%c0_12, %c0_13] : memref<1x384xf32, #tpu.memory_space<vmem>>, vector<1x384xf32>
    %29 = vector.broadcast %28 : vector<1x384xf32> to vector<256x384xf32>
    %30 = arith.addf %27, %29 : vector<256x384xf32>
    %31 = arith.truncf %30 : vector<256x384xf32> to vector<256x384xbf16>
    %c0_14 = arith.constant 0 : index
    %c0_15 = arith.constant 0 : index
    %32 = vector.load %arg6[%c0_14, %c0_15] : memref<256x384xbf16, #tpu.memory_space<vmem>>, vector<256x384xbf16>
    tpu.vector_store %arg6[%c0_14, %c0_15], %31 {strides = array<i32>} : memref<256x384xbf16, #tpu.memory_space<vmem>>, vector<256x384xbf16>,
    return
  }
  func.func @transform_0(%arg0: i32) -> (i32, i32) {
    %c0_i32 = arith.constant 0 : i32
    %c0_i32_0 = arith.constant 0 : i32
    return %arg0, %c0_i32 : i32, i32
  }
  func.func @transform_1(%arg0: i32) -> (i32, i32) {
    %c0_i32 = arith.constant 0 : i32
    %c0_i32_0 = arith.constant 0 : i32
    %c0_i32_1 = arith.constant 0 : i32
    return %c0_i32, %c0_i32_0 : i32, i32
  }
  func.func @transform_2(%arg0: i32) -> (i32, i32) {
    %c0_i32 = arith.constant 0 : i32
    %c0_i32_0 = arith.constant 0 : i32
    %c0_i32_1 = arith.constant 0 : i32
    return %c0_i32, %c0_i32_0 : i32, i32
  }
  func.func @transform_3(%arg0: i32) -> (i32, i32) {
    %c0_i32 = arith.constant 0 : i32
    %c0_i32_0 = arith.constant 0 : i32
    %c0_i32_1 = arith.constant 0 : i32
    return %c0_i32, %c0_i32_0 : i32, i32
  }
  func.func @transform_4(%arg0: i32) -> (i32, i32) {
    %c0_i32 = arith.constant 0 : i32
    %c0_i32_0 = arith.constant 0 : i32
    %c0_i32_1 = arith.constant 0 : i32
    return %c0_i32, %c0_i32_0 : i32, i32
  }
  func.func @transform_5(%arg0: i32) -> (i32, i32) {
    %c0_i32 = arith.constant 0 : i32
    %c0_i32_0 = arith.constant 0 : i32
    return %arg0, %c0_i32 : i32, i32
  }
}

module attributes {stable_mosaic.version = 11 : i64} {
  func.func @_attn_kernel(%arg0: i32, %arg1: i32, %arg2: memref<1x1x256x32xbf16, #tpu.memory_space<vmem>>, %arg3: memref<1x1x256x32xbf16, #tpu.memory_space<vmem>>, %arg4: memref<1x1x256x32xbf16, #tpu.memory_space<vmem>>, %arg5: memref<1x1x256x32xbf16, #tpu.memory_space<vmem>>) attributes {dimension_semantics = [#tpu.dimension_semantics<parallel>, #tpu.dimension_semantics<parallel>], iteration_bounds = array<i64: 2, 4>, scalar_prefetch = 0 : i64, scratch_operands = 0 : i64, tpu.core_type = #tpu.core_type<tc>, window_params = [{transform_indices = @transform_0, window_bounds = array<i64: 1, 1, 256, 32>}, {transform_indices = @transform_1, window_bounds = array<i64: 1, 1, 256, 32>}, {transform_indices = @transform_2, window_bounds = array<i64: 1, 1, 256, 32>}, {transform_indices = @transform_3, window_bounds = array<i64: 1, 1, 256, 32>}]} {
    %c0 = arith.constant 0 : index
    %c0_0 = arith.constant 0 : index
    %c0_1 = arith.constant 0 : index
    %c0_2 = arith.constant 0 : index
    %0 = vector.load %arg2[%c0, %c0_0, %c0_1, %c0_2] : memref<1x1x256x32xbf16, #tpu.memory_space<vmem>>, vector<1x1x256x32xbf16>
    %1 = vector.shape_cast %0 : vector<1x1x256x32xbf16> to vector<256x32xbf16>
    %c0_3 = arith.constant 0 : index
    %c0_4 = arith.constant 0 : index
    %c0_5 = arith.constant 0 : index
    %c0_6 = arith.constant 0 : index
    %2 = vector.load %arg3[%c0_3, %c0_4, %c0_5, %c0_6] : memref<1x1x256x32xbf16, #tpu.memory_space<vmem>>, vector<1x1x256x32xbf16>
    %3 = vector.shape_cast %2 : vector<1x1x256x32xbf16> to vector<256x32xbf16>
    %cst = arith.constant dense<0.000000e+00> : vector<256x256xf32>
    %4 = tpu.matmul %1, %3, %cst {dimension_numbers = #tpu.dot_dimension_numbers<[1], [1], [0], [0], [0, 0, 1, 0], [], []>} : vector<256x32xbf16>, vector<256x32xbf16>, vector<256x256xf32> -> vector<256x256xf32>
    %cst_7 = arith.constant 0.176776692 : f32
    %5 = vector.broadcast %cst_7 : f32 to vector<256x256xf32>
    %6 = arith.mulf %4, %5 : vector<256x256xf32>
    %cst_8 = arith.constant dense<0xFF800000> : vector<256xf32>
    %7 = vector.multi_reduction <maximumf>, %6, %cst_8 [1] : vector<256x256xf32> to vector<256xf32>
    %8 = vector.shape_cast %7 : vector<256xf32> to vector<256x1xf32>
    %9 = vector.broadcast %8 : vector<256x1xf32> to vector<256x256xf32>
    %10 = arith.subf %6, %9 : vector<256x256xf32>
    %11 = math.exp %10 : vector<256x256xf32>
    %cst_9 = arith.constant dense<0.000000e+00> : vector<256xf32>
    %12 = vector.multi_reduction <add>, %11, %cst_9 [1] : vector<256x256xf32> to vector<256xf32>
    %13 = vector.shape_cast %12 : vector<256xf32> to vector<256x1xf32>
    %14 = vector.broadcast %13 : vector<256x1xf32> to vector<256x256xf32>
    %15 = arith.divf %11, %14 : vector<256x256xf32>
    %16 = arith.truncf %15 : vector<256x256xf32> to vector<256x256xbf16>
    %c0_10 = arith.constant 0 : index
    %c0_11 = arith.constant 0 : index
    %c0_12 = arith.constant 0 : index
    %c0_13 = arith.constant 0 : index
    %17 = vector.load %arg4[%c0_10, %c0_11, %c0_12, %c0_13] : memref<1x1x256x32xbf16, #tpu.memory_space<vmem>>, vector<1x1x256x32xbf16>
    %18 = vector.shape_cast %17 : vector<1x1x256x32xbf16> to vector<256x32xbf16>
    %cst_14 = arith.constant dense<0.000000e+00> : vector<256x32xf32>
    %19 = tpu.matmul %16, %18, %cst_14 {dimension_numbers = #tpu.dot_dimension_numbers<[1], [0], [0], [1], [0, 0, 1, 1], [], []>} : vector<256x256xbf16>, vector<256x32xbf16>, vector<256x32xf32> -> vector<256x32xf32>
    %20 = arith.truncf %19 : vector<256x32xf32> to vector<256x32xbf16>
    %c0_15 = arith.constant 0 : index
    %c0_16 = arith.constant 0 : index
    %c0_17 = arith.constant 0 : index
    %c0_18 = arith.constant 0 : index
    %21 = vector.load %arg5[%c0_15, %c0_16, %c0_17, %c0_18] : memref<1x1x256x32xbf16, #tpu.memory_space<vmem>>, vector<1x1x256x32xbf16>
    %22 = vector.shape_cast %21 : vector<1x1x256x32xbf16> to vector<256x32xbf16>
    %23 = vector.shape_cast %20 : vector<256x32xbf16> to vector<1x1x256x32xbf16>
    tpu.vector_store %arg5[%c0_15, %c0_16, %c0_17, %c0_18], %23 {strides = array<i32>} : memref<1x1x256x32xbf16, #tpu.memory_space<vmem>>, vector<1x1x256x32xbf16>,
    return
  }
  func.func @transform_0(%arg0: i32, %arg1: i32) -> (i32, i32, i32, i32) {
    %c0_i32 = arith.constant 0 : i32
    %c0_i32_0 = arith.constant 0 : i32
    %c0_i32_1 = arith.constant 0 : i32
    return %arg0, %arg1, %c0_i32, %c0_i32_0 : i32, i32, i32, i32
  }
  func.func @transform_1(%arg0: i32, %arg1: i32) -> (i32, i32, i32, i32) {
    %c0_i32 = arith.constant 0 : i32
    %c0_i32_0 = arith.constant 0 : i32
    %c0_i32_1 = arith.constant 0 : i32
    return %arg0, %arg1, %c0_i32, %c0_i32_0 : i32, i32, i32, i32
  }
  func.func @transform_2(%arg0: i32, %arg1: i32) -> (i32, i32, i32, i32) {
    %c0_i32 = arith.constant 0 : i32
    %c0_i32_0 = arith.constant 0 : i32
    %c0_i32_1 = arith.constant 0 : i32
    return %arg0, %arg1, %c0_i32, %c0_i32_0 : i32, i32, i32, i32
  }
  func.func @transform_3(%arg0: i32, %arg1: i32) -> (i32, i32, i32, i32) {
    %c0_i32 = arith.constant 0 : i32
    %c0_i32_0 = arith.constant 0 : i32
    %c0_i32_1 = arith.constant 0 : i32
    return %arg0, %arg1, %c0_i32, %c0_i32_0 : i32, i32, i32, i32
  }
}

module attributes {stable_mosaic.version = 11 : i64} {
  func.func @_proj_mlp_kernel(%arg0: i32, %arg1: memref<256x128xbf16, #tpu.memory_space<vmem>>, %arg2: memref<256x128xf32, #tpu.memory_space<vmem>>, %arg3: memref<128x128xbf16, #tpu.memory_space<vmem>>, %arg4: memref<1x128xf32, #tpu.memory_space<vmem>>, %arg5: memref<1x128xf32, #tpu.memory_space<vmem>>, %arg6: memref<1x128xf32, #tpu.memory_space<vmem>>, %arg7: memref<128x512xbf16, #tpu.memory_space<vmem>>, %arg8: memref<1x512xf32, #tpu.memory_space<vmem>>, %arg9: memref<512x128xbf16, #tpu.memory_space<vmem>>, %arg10: memref<1x128xf32, #tpu.memory_space<vmem>>, %arg11: memref<256x128xf32, #tpu.memory_space<vmem>>) attributes {dimension_semantics = [#tpu.dimension_semantics<parallel>], iteration_bounds = array<i64: 2>, scalar_prefetch = 0 : i64, scratch_operands = 0 : i64, tpu.core_type = #tpu.core_type<tc>, window_params = [{transform_indices = @transform_0, window_bounds = array<i64: 256, 128>}, {transform_indices = @transform_1, window_bounds = array<i64: 256, 128>}, {pipeline_mode = #tpu.pipeline_mode<synchronous>, transform_indices = @transform_2, window_bounds = array<i64: 128, 128>}, {pipeline_mode = #tpu.pipeline_mode<synchronous>, transform_indices = @transform_3, window_bounds = array<i64: 1, 128>}, {pipeline_mode = #tpu.pipeline_mode<synchronous>, transform_indices = @transform_4, window_bounds = array<i64: 1, 128>}, {pipeline_mode = #tpu.pipeline_mode<synchronous>, transform_indices = @transform_5, window_bounds = array<i64: 1, 128>}, {pipeline_mode = #tpu.pipeline_mode<synchronous>, transform_indices = @transform_6, window_bounds = array<i64: 128, 512>}, {pipeline_mode = #tpu.pipeline_mode<synchronous>, transform_indices = @transform_7, window_bounds = array<i64: 1, 512>}, {pipeline_mode = #tpu.pipeline_mode<synchronous>, transform_indices = @transform_8, window_bounds = array<i64: 512, 128>}, {pipeline_mode = #tpu.pipeline_mode<synchronous>, transform_indices = @transform_9, window_bounds = array<i64: 1, 128>}, {transform_indices = @transform_10, window_bounds = array<i64: 256, 128>}]} {
    %c0 = arith.constant 0 : index
    %c0_0 = arith.constant 0 : index
    %0 = vector.load %arg1[%c0, %c0_0] : memref<256x128xbf16, #tpu.memory_space<vmem>>, vector<256x128xbf16>
    %c0_1 = arith.constant 0 : index
    %c0_2 = arith.constant 0 : index
    %1 = vector.load %arg3[%c0_1, %c0_2] : memref<128x128xbf16, #tpu.memory_space<vmem>>, vector<128x128xbf16>
    %cst = arith.constant dense<0.000000e+00> : vector<256x128xf32>
    %2 = tpu.matmul %0, %1, %cst {dimension_numbers = #tpu.dot_dimension_numbers<[1], [0], [0], [1], [0, 0, 1, 1], [], []>} : vector<256x128xbf16>, vector<128x128xbf16>, vector<256x128xf32> -> vector<256x128xf32>
    %c0_3 = arith.constant 0 : index
    %c0_4 = arith.constant 0 : index
    %3 = vector.load %arg4[%c0_3, %c0_4] : memref<1x128xf32, #tpu.memory_space<vmem>>, vector<1x128xf32>
    %4 = vector.broadcast %3 : vector<1x128xf32> to vector<256x128xf32>
    %5 = arith.addf %2, %4 : vector<256x128xf32>
    %c0_5 = arith.constant 0 : index
    %c0_6 = arith.constant 0 : index
    %6 = vector.load %arg2[%c0_5, %c0_6] : memref<256x128xf32, #tpu.memory_space<vmem>>, vector<256x128xf32>
    %7 = arith.addf %6, %5 : vector<256x128xf32>
    %c0_7 = arith.constant 0 : index
    %c0_8 = arith.constant 0 : index
    %8 = vector.load %arg5[%c0_7, %c0_8] : memref<1x128xf32, #tpu.memory_space<vmem>>, vector<1x128xf32>
    %c0_9 = arith.constant 0 : index
    %c0_10 = arith.constant 0 : index
    %9 = vector.load %arg6[%c0_9, %c0_10] : memref<1x128xf32, #tpu.memory_space<vmem>>, vector<1x128xf32>
    %cst_11 = arith.constant dense<0.000000e+00> : vector<256xf32>
    %10 = vector.multi_reduction <add>, %7, %cst_11 [1] : vector<256x128xf32> to vector<256xf32>
    %11 = vector.shape_cast %10 : vector<256xf32> to vector<256x1xf32>
    %cst_12 = arith.constant 1.280000e+02 : f32
    %12 = vector.broadcast %cst_12 : f32 to vector<256x1xf32>
    %13 = arith.divf %11, %12 : vector<256x1xf32>
    %14 = vector.broadcast %13 : vector<256x1xf32> to vector<256x128xf32>
    %15 = arith.subf %7, %14 : vector<256x128xf32>
    %16 = arith.mulf %15, %15 : vector<256x128xf32>
    %cst_13 = arith.constant dense<0.000000e+00> : vector<256xf32>
    %17 = vector.multi_reduction <add>, %16, %cst_13 [1] : vector<256x128xf32> to vector<256xf32>
    %18 = vector.shape_cast %17 : vector<256xf32> to vector<256x1xf32>
    %cst_14 = arith.constant 1.280000e+02 : f32
    %19 = vector.broadcast %cst_14 : f32 to vector<256x1xf32>
    %20 = arith.divf %18, %19 : vector<256x1xf32>
    %21 = vector.broadcast %13 : vector<256x1xf32> to vector<256x128xf32>
    %22 = arith.subf %7, %21 : vector<256x128xf32>
    %cst_15 = arith.constant 9.99999974E-6 : f32
    %23 = vector.broadcast %cst_15 : f32 to vector<256x1xf32>
    %24 = arith.addf %20, %23 : vector<256x1xf32>
    %25 = math.rsqrt %24 : vector<256x1xf32>
    %26 = vector.broadcast %25 : vector<256x1xf32> to vector<256x128xf32>
    %27 = arith.mulf %22, %26 : vector<256x128xf32>
    %28 = vector.broadcast %8 : vector<1x128xf32> to vector<256x128xf32>
    %29 = arith.mulf %27, %28 : vector<256x128xf32>
    %30 = vector.broadcast %9 : vector<1x128xf32> to vector<256x128xf32>
    %31 = arith.addf %29, %30 : vector<256x128xf32>
    %32 = arith.truncf %31 : vector<256x128xf32> to vector<256x128xbf16>
    %c0_16 = arith.constant 0 : index
    %c0_17 = arith.constant 0 : index
    %33 = vector.load %arg7[%c0_16, %c0_17] : memref<128x512xbf16, #tpu.memory_space<vmem>>, vector<128x512xbf16>
    %cst_18 = arith.constant dense<0.000000e+00> : vector<256x512xf32>
    %34 = tpu.matmul %32, %33, %cst_18 {dimension_numbers = #tpu.dot_dimension_numbers<[1], [0], [0], [1], [0, 0, 1, 1], [], []>} : vector<256x128xbf16>, vector<128x512xbf16>, vector<256x512xf32> -> vector<256x512xf32>
    %c0_19 = arith.constant 0 : index
    %c0_20 = arith.constant 0 : index
    %35 = vector.load %arg8[%c0_19, %c0_20] : memref<1x512xf32, #tpu.memory_space<vmem>>, vector<1x512xf32>
    %36 = vector.broadcast %35 : vector<1x512xf32> to vector<256x512xf32>
    %37 = arith.addf %34, %36 : vector<256x512xf32>
    %cst_21 = arith.constant 5.000000e-01 : f32
    %38 = vector.broadcast %cst_21 : f32 to vector<256x512xf32>
    %39 = arith.mulf %38, %37 : vector<256x512xf32>
    %cst_22 = arith.constant 4.471500e-02 : f32
    %40 = vector.broadcast %cst_22 : f32 to vector<256x512xf32>
    %41 = arith.mulf %40, %37 : vector<256x512xf32>
    %42 = arith.mulf %41, %37 : vector<256x512xf32>
    %43 = arith.mulf %42, %37 : vector<256x512xf32>
    %44 = arith.addf %37, %43 : vector<256x512xf32>
    %cst_23 = arith.constant 0.797884583 : f32
    %45 = vector.broadcast %cst_23 : f32 to vector<256x512xf32>
    %46 = arith.mulf %45, %44 : vector<256x512xf32>
    %47 = math.tanh %46 : vector<256x512xf32>
    %cst_24 = arith.constant 1.000000e+00 : f32
    %48 = vector.broadcast %cst_24 : f32 to vector<256x512xf32>
    %49 = arith.addf %48, %47 : vector<256x512xf32>
    %50 = arith.mulf %39, %49 : vector<256x512xf32>
    %51 = arith.truncf %50 : vector<256x512xf32> to vector<256x512xbf16>
    %c0_25 = arith.constant 0 : index
    %c0_26 = arith.constant 0 : index
    %52 = vector.load %arg9[%c0_25, %c0_26] : memref<512x128xbf16, #tpu.memory_space<vmem>>, vector<512x128xbf16>
    %cst_27 = arith.constant dense<0.000000e+00> : vector<256x128xf32>
    %53 = tpu.matmul %51, %52, %cst_27 {dimension_numbers = #tpu.dot_dimension_numbers<[1], [0], [0], [1], [0, 0, 1, 1], [], []>} : vector<256x512xbf16>, vector<512x128xbf16>, vector<256x128xf32> -> vector<256x128xf32>
    %c0_28 = arith.constant 0 : index
    %c0_29 = arith.constant 0 : index
    %54 = vector.load %arg10[%c0_28, %c0_29] : memref<1x128xf32, #tpu.memory_space<vmem>>, vector<1x128xf32>
    %55 = vector.broadcast %54 : vector<1x128xf32> to vector<256x128xf32>
    %56 = arith.addf %53, %55 : vector<256x128xf32>
    %57 = arith.addf %7, %56 : vector<256x128xf32>
    %c0_30 = arith.constant 0 : index
    %c0_31 = arith.constant 0 : index
    %58 = vector.load %arg11[%c0_30, %c0_31] : memref<256x128xf32, #tpu.memory_space<vmem>>, vector<256x128xf32>
    tpu.vector_store %arg11[%c0_30, %c0_31], %57 {strides = array<i32>} : memref<256x128xf32, #tpu.memory_space<vmem>>, vector<256x128xf32>,
    return
  }
  func.func @transform_0(%arg0: i32) -> (i32, i32) {
    %c0_i32 = arith.constant 0 : i32
    %c0_i32_0 = arith.constant 0 : i32
    return %arg0, %c0_i32 : i32, i32
  }
  func.func @transform_1(%arg0: i32) -> (i32, i32) {
    %c0_i32 = arith.constant 0 : i32
    %c0_i32_0 = arith.constant 0 : i32
    return %arg0, %c0_i32 : i32, i32
  }
  func.func @transform_2(%arg0: i32) -> (i32, i32) {
    %c0_i32 = arith.constant 0 : i32
    %c0_i32_0 = arith.constant 0 : i32
    %c0_i32_1 = arith.constant 0 : i32
    return %c0_i32, %c0_i32_0 : i32, i32
  }
  func.func @transform_3(%arg0: i32) -> (i32, i32) {
    %c0_i32 = arith.constant 0 : i32
    %c0_i32_0 = arith.constant 0 : i32
    %c0_i32_1 = arith.constant 0 : i32
    return %c0_i32, %c0_i32_0 : i32, i32
  }
  func.func @transform_4(%arg0: i32) -> (i32, i32) {
    %c0_i32 = arith.constant 0 : i32
    %c0_i32_0 = arith.constant 0 : i32
    %c0_i32_1 = arith.constant 0 : i32
    return %c0_i32, %c0_i32_0 : i32, i32
  }
  func.func @transform_5(%arg0: i32) -> (i32, i32) {
    %c0_i32 = arith.constant 0 : i32
    %c0_i32_0 = arith.constant 0 : i32
    %c0_i32_1 = arith.constant 0 : i32
    return %c0_i32, %c0_i32_0 : i32, i32
  }
  func.func @transform_6(%arg0: i32) -> (i32, i32) {
    %c0_i32 = arith.constant 0 : i32
    %c0_i32_0 = arith.constant 0 : i32
    %c0_i32_1 = arith.constant 0 : i32
    return %c0_i32, %c0_i32_0 : i32, i32
  }
  func.func @transform_7(%arg0: i32) -> (i32, i32) {
    %c0_i32 = arith.constant 0 : i32
    %c0_i32_0 = arith.constant 0 : i32
    %c0_i32_1 = arith.constant 0 : i32
    return %c0_i32, %c0_i32_0 : i32, i32
  }
  func.func @transform_8(%arg0: i32) -> (i32, i32) {
    %c0_i32 = arith.constant 0 : i32
    %c0_i32_0 = arith.constant 0 : i32
    %c0_i32_1 = arith.constant 0 : i32
    return %c0_i32, %c0_i32_0 : i32, i32
  }
  func.func @transform_9(%arg0: i32) -> (i32, i32) {
    %c0_i32 = arith.constant 0 : i32
    %c0_i32_0 = arith.constant 0 : i32
    %c0_i32_1 = arith.constant 0 : i32
    return %c0_i32, %c0_i32_0 : i32, i32
  }
  func.func @transform_10(%arg0: i32) -> (i32, i32) {
    %c0_i32 = arith.constant 0 : i32
    %c0_i32_0 = arith.constant 0 : i32
    return %arg0, %c0_i32 : i32, i32
  }
}

</mosaic_0001>

<bundles_post_ra>
// kernel: transformer_block.3
= control target key start
LH: loop header
LB: loop body
LE: loop exit
PB: predicated region body
PF: predicated region fallthrough
CT: control target
= control target key end

     0   :  { %s2081_s18 = smov 0   ;;  %s2803_s0 = inlined_call_operand.vmem [shape: f32[512,128], index: 0, kind: input, shape index: {}]   ;;  %s2804_s1 = inlined_call_operand.vmem [shape: f32[1,128], index: 1, kind: input, shape index: {}]   ;;  %s2805_s2 = inlined_call_operand.vmem [shape: f32[1,128], index: 2, kind: input, shape index: {}]   ;;  %s2806_s3 = inlined_call_operand.vmem [shape: bf16[128,384], index: 3, kind: input, shape index: {}]   ;;  %s2807_s4 = inlined_call_operand.vmem [shape: f32[1,384], index: 4, kind: input, shape index: {}]   ;;  %s2808_s5 = inlined_call_operand.vmem [shape: bf16[512,384], index: 5, kind: output, shape index: {}]  }
   0x1 LB: > { %s1683_s19 = sadd.s32 4294967295, %s2048_s18   ;;  %p1687_p0 = scmp.ge.s32.totalorder %s2048_s18, 1  ;;  %s2048_s18 = sphi %s2081_s18, %s15_s18  }
   0x2   : > { %p188_p1 = scmp.lt.s32.totalorder %s2048_s18, 3 }
   0x4   : > { %p189_p2 = pnand %p1687_p0, %p188_p1 }
   0x5   : > { %s1688_s20 = sshll.u32 (!%p189_p2), %s1683_s19, 5  ;;  %v1946_v32 = vld [vmem:[%s2806_s3 + $0x4] ss:$12 sps:$4 sm:$0xff] (!%p189_p2)   ;;  %v1948_v33 = vld [vmem:[%s2806_s3] ss:$12 sps:$4 sm:$0xff] (!%p189_p2)  }
   0x6   : > { %192 = sbr.rel (%p189_p2) target bundleno = 646 (0x286), region = 40  ;;  %p218_p3 = scmp.lt.s32.totalorder (!%p189_p2), %s1688_s20, 63  ;;  %v1949_v34 = vld [vmem:[%s2806_s3 + $0x1c] ss:$12 sps:$4 sm:$0xff] (!%p189_p2)   ;;  %887 = vmatprep.subr.bf16.mxu0 (!%p189_p2), %v1946_v32  ;;  %1920 = vmatprep.subr.bf16.mxu1 (!%p189_p2), %v1946_v32 }
   0x7   : > { %888 = vmatpush1.bf16.msra.mxu0 (!%p189_p2), %v1948_v33  ;;  %1928 = vmatpush1.bf16.msra.mxu1 (!%p189_p2), %v1948_v33  ;;  %v1951_v33 = vld [vmem:[%s2806_s3 + $0x18] ss:$12 sps:$4 sm:$0xff] (!%p189_p2)  }
   0x8   : > { %889 = vmatprep.subr.bf16.mxu0 (!%p189_p2), %v1949_v34  ;;  %1921 = vmatprep.subr.bf16.mxu1 (!%p189_p2), %v1949_v34 }
   0xb   : > { %890 = vmatpush1.bf16.msra.mxu0 (!%p189_p2), %v1951_v33  ;;  %1929 = vmatpush1.bf16.msra.mxu1 (!%p189_p2), %v1951_v33 }
   0xd   : > { %s2810_s20 = smov (!%p218_p3, %s1688_s20), 63 }
   0xe   : > { %s1689_s21 = sshll.u32 %s2810_s20, 3  ;;  %s1936_s8 = smul.u32 12, %s2810_s20 }
   0xf   : > { %s2095_s24 = scalar_lea.vmem %s2803_s0, %s1689_s21 }
  0x10   : > { %v2098_v0 = vld [vmem:[%s2095_s24] sm:$0xff]  ;;  %v2106_v2 = vld [vmem:[%s2095_s24 + $0x8] sm:$0xff]  ;;  %v2114_v4 = vld [vmem:[%s2095_s24 + $0x10] sm:$0xff]  ;;  %s2636_s11 = scalar_lea.vmem %s2808_s5, %s1936_s8 }
  0x11   : > { %v2101_v1 = vld [vmem:[%s2095_s24 + $0xc0] sm:$0xff]  ;;  %265 = vadd.xlane.f32.xlu0 %v2098_v0  ;;  %v2109_v3 = vld [vmem:[%s2095_s24 + $0xc8] sm:$0xff]  ;;  %v2117_v5 = vld [vmem:[%s2095_s24 + $0x18] sm:$0xff] }
  0x12   : > { %313 = vadd.xlane.f32.xlu1 %v2101_v1  ;;  %v2122_v6 = vld [vmem:[%s2095_s24 + $0xd0] sm:$0xff]  ;;  %v2125_v7 = vld [vmem:[%s2095_s24 + $0xd8] sm:$0xff]  ;;  %v2128_v8 = vld [vmem:[%s2095_s24 + $0x20] sm:$0xff] }
  0x13   : > { %v2133_v9 = vld [vmem:[%s2095_s24 + $0x28] sm:$0xff]  ;;  %v2138_v10 = vld [vmem:[%s2095_s24 + $0xe0] sm:$0xff]  ;;  %v2146_v12 = vld [vmem:[%s2095_s24 + $0x30] sm:$0xff] }
  0x14   : > { %v2141_v11 = vld [vmem:[%s2095_s24 + $0xe8] sm:$0xff]  ;;  %v2149_v13 = vld [vmem:[%s2095_s24 + $0x38] sm:$0xff]  ;;  %v2154_v14 = vld [vmem:[%s2095_s24 + $0xf0] sm:$0xff] }
  0x15   : > { %267 = vadd.xlane.f32.xlu0 %v2106_v2  ;;  %v2157_v15 = vld [vmem:[%s2095_s24 + $0xf8] sm:$0xff]  ;;  %v2162_v16 = vld [vmem:[%s2095_s24 + $0x40] sm:$0xff]  ;;  %v2165_v17 = vld [vmem:[%s2095_s24 + $0x48] sm:$0xff] }
  0x16   : > { %315 = vadd.xlane.f32.xlu1 %v2109_v3  ;;  %v2170_v18 = vld [vmem:[%s2095_s24 + $0x50] sm:$0xff]  ;;  %v2173_v19 = vld [vmem:[%s2095_s24 + $0x58] sm:$0xff]  ;;  %v2178_v20 = vld [vmem:[%s2095_s24 + $0x60] sm:$0xff] }
  0x17   : > { %v2181_v21 = vld [vmem:[%s2095_s24 + $0x68] sm:$0xff]  ;;  %v2186_v22 = vld [vmem:[%s2095_s24 + $0x70] sm:$0xff]  ;;  %v2189_v23 = vld [vmem:[%s2095_s24 + $0x78] sm:$0xff] }
  0x18   : > { %v2194_v24 = vld [vmem:[%s2095_s24 + $0x80] sm:$0xff]  ;;  %v2197_v25 = vld [vmem:[%s2095_s24 + $0x88] sm:$0xff]  ;;  %v2202_v26 = vld [vmem:[%s2095_s24 + $0x90] sm:$0xff] }
  0x19   : > { %269 = vadd.xlane.f32.xlu0 %v2114_v4  ;;  %v2205_v27 = vld [vmem:[%s2095_s24 + $0x98] sm:$0xff]  ;;  %v2210_v28 = vld [vmem:[%s2095_s24 + $0xa0] sm:$0xff]  ;;  %v2213_v29 = vld [vmem:[%s2095_s24 + $0xa8] sm:$0xff] }
  0x1a   : > { %271 = vadd.xlane.f32.xlu1 %v2117_v5  ;;  %v2218_v30 = vld [vmem:[%s2095_s24 + $0xb0] sm:$0xff]  ;;  %v2221_v31 = vld [vmem:[%s2095_s24 + $0xb8] sm:$0xff] }
  0x1d   : > { %317 = vadd.xlane.f32.xlu0 %v2122_v6 }
  0x1e   : > { %319 = vadd.xlane.f32.xlu1 %v2125_v7 }
  0x21   : > { %273 = vadd.xlane.f32.xlu0 %v2128_v8 }
  0x22   : > { %275 = vadd.xlane.f32.xlu1 %v2133_v9 }
  0x25   : > { %321 = vadd.xlane.f32.xlu0 %v2138_v10 }
  0x26   : > { %323 = vadd.xlane.f32.xlu1 %v2141_v11 }
  0x29   : > { %277 = vadd.xlane.f32.xlu0 %v2146_v12 }
  0x2a   : > { %279 = vadd.xlane.f32.xlu1 %v2149_v13 }
  0x2d   : > { %325 = vadd.xlane.f32.xlu0 %v2154_v14 }
  0x2e   : > { %327 = vadd.xlane.f32.xlu1 %v2157_v15 }
  0x31   : > { %281 = vadd.xlane.f32.xlu0 %v2162_v16 }
  0x32   : > { %283 = vadd.xlane.f32.xlu1 %v2165_v17 }
  0x35   : > { %285 = vadd.xlane.f32.xlu0 %v2170_v18 }
  0x36   : > { %287 = vadd.xlane.f32.xlu1 %v2173_v19 }
  0x39   : > { %289 = vadd.xlane.f32.xlu0 %v2178_v20 }
  0x3a   : > { %291 = vadd.xlane.f32.xlu1 %v2181_v21 }
  0x3d   : > { %293 = vadd.xlane.f32.xlu0 %v2186_v22 }
  0x3e   : > { %295 = vadd.xlane.f32.xlu1 %v2189_v23 }
  0x41   : > { %297 = vadd.xlane.f32.xlu0 %v2194_v24 }
  0x42   : > { %299 = vadd.xlane.f32.xlu1 %v2197_v25 }
  0x45   : > { %301 = vadd.xlane.f32.xlu0 %v2202_v26 }
  0x46   : > { %303 = vadd.xlane.f32.xlu1 %v2205_v27 }
  0x49   : > { %305 = vadd.xlane.f32.xlu0 %v2210_v28 }
  0x4a   : > { %307 = vadd.xlane.f32.xlu1 %v2213_v29 }
  0x4d   : > { %309 = vadd.xlane.f32.xlu0 %v2218_v30 }
  0x4e   : > { %311 = vadd.xlane.f32.xlu1 %v2221_v31 }
  0x9e   : > { %v266_v35 = vpop.xlane.xlu0 %265 }
  0x9f   : > { %v314_v36 = vpop.xlane.xlu1 %313  ;;  %v330_v37 = vmul.f32 0.0078125, %v266_v35 }
  0xa0   : > { %v354_v38 = vmul.f32 0.0078125, %v314_v36 }
  0xa1   : > { %v2235_v39 = vsub.f32 %v2098_v0, %v330_v37 }
  0xa2   : > { %v2238_v40 = vsub.f32 %v2101_v1, %v354_v38  ;;  %v268_v41 = vpop.xlane.xlu0 %267 }
  0xa3   : > { %v316_v42 = vpop.xlane.xlu1 %315  ;;  %v331_v43 = vmul.f32 0.0078125, %v268_v41  ;;  %v394_v44 = vmul.f32 %v2235_v39, %v2235_v39 }
  0xa4   : > { %v355_v45 = vmul.f32 0.0078125, %v316_v42  ;;  %v418_v48 = vmul.f32 %v2238_v40, %v2238_v40 }
  0xa5   : > { %v2243_v46 = vsub.f32 %v2106_v2, %v331_v43  ;;  %426 = vadd.xlane.f32.xlu0 %v394_v44 }
  0xa6   : > { %v2246_v47 = vsub.f32 %v2109_v3, %v355_v45  ;;  %v270_v49 = vpop.xlane.xlu0 %269  ;;  %v1954_v45 = vld [vmem:[%s2806_s3 + $0x30] ss:$12 sps:$4 sm:$0xff]  }
  0xa7   : > { %v272_v50 = vpop.xlane.xlu1 %271  ;;  %v332_v51 = vmul.f32 0.0078125, %v270_v49  ;;  %v395_v52 = vmul.f32 %v2243_v46, %v2243_v46 }
  0xa8   : > { %v333_v53 = vmul.f32 0.0078125, %v272_v50  ;;  %v419_v56 = vmul.f32 %v2246_v47, %v2246_v47 }
  0xa9   : > { %v2253_v54 = vsub.f32 %v2114_v4, %v332_v51  ;;  %474 = vadd.xlane.f32.xlu0 %v418_v48  ;;  %428 = vadd.xlane.f32.xlu1 %v395_v52  ;;  %v1955_v52 = vld [vmem:[%s2806_s3 + $0x4c] ss:$12 sps:$4 sm:$0xff]  }
  0xaa   : > { %v2256_v55 = vsub.f32 %v2117_v5, %v333_v53  ;;  %v318_v57 = vpop.xlane.xlu0 %317 }
  0xab   : > { %v320_v58 = vpop.xlane.xlu1 %319  ;;  %v356_v59 = vmul.f32 0.0078125, %v318_v57  ;;  %v396_v60 = vmul.f32 %v2253_v54, %v2253_v54  ;;  %v1957_v57 = vld [vmem:[%s2806_s3 + $0x48] ss:$12 sps:$4 sm:$0xff]  }
  0xac   : > { %v357_v61 = vmul.f32 0.0078125, %v320_v58  ;;  %v397_v0 = vmul.f32 %v2256_v55, %v2256_v55 }
  0xad   : > { %v2263_v62 = vsub.f32 %v2122_v6, %v356_v59  ;;  %476 = vadd.xlane.f32.xlu1 %v419_v56  ;;  %430 = vadd.xlane.f32.xlu0 %v396_v60 }
  0xae   : > { %v2266_v63 = vsub.f32 %v2125_v7, %v357_v61  ;;  %v274_v1 = vpop.xlane.xlu0 %273 }
  0xaf   : > { %v276_v2 = vpop.xlane.xlu1 %275  ;;  %v334_v3 = vmul.f32 0.0078125, %v274_v1  ;;  %v420_v4 = vmul.f32 %v2263_v62, %v2263_v62 }
  0xb0   : > { %v335_v5 = vmul.f32 0.0078125, %v276_v2  ;;  %v421_v7 = vmul.f32 %v2266_v63, %v2266_v63 }
  0xb1   : > { %v2273_v32 = vsub.f32 %v2128_v8, %v334_v3  ;;  %432 = vadd.xlane.f32.xlu1 %v397_v0  ;;  %478 = vadd.xlane.f32.xlu0 %v420_v4  ;;  %v1958_v0 = vld [vmem:[%s2806_s3 + $0x64] ss:$12 sps:$4 sm:$0xff]   ;;  %v1960_v3 = vld [vmem:[%s2806_s3 + $0x60] ss:$12 sps:$4 sm:$0xff]  }
  0xb2   : > { %v2276_v6 = vsub.f32 %v2133_v9, %v335_v5  ;;  %v322_v34 = vpop.xlane.xlu0 %321  ;;  %v1952_v9 = vld [vmem:[%s2806_s3 + $0x34] ss:$12 sps:$4 sm:$0xff]  }
  0xb3   : > { %v324_v35 = vpop.xlane.xlu1 %323  ;;  %v358_v36 = vmul.f32 0.0078125, %v322_v34  ;;  %v398_v37 = vmul.f32 %v2273_v32, %v2273_v32  ;;  %891 = vmatprep.subr.bf16.mxu0 %v1952_v9  ;;  %1922 = vmatprep.subr.bf16.mxu1 %v1952_v9  ;;  %v1961_v34 = vld [vmem:[%s2806_s3 + $0x7c] ss:$12 sps:$4 sm:$0xff]  }
  0xb4   : > { %v359_v8 = vmul.f32 0.0078125, %v324_v35  ;;  %v399_v42 = vmul.f32 %v2276_v6, %v2276_v6  ;;  %892 = vmatpush1.bf16.msra.mxu0 %v1954_v45  ;;  %1930 = vmatpush1.bf16.msra.mxu1 %v1954_v45 }
  0xb5   : > { %v2289_v38 = vsub.f32 %v2138_v10, %v358_v36  ;;  %480 = vadd.xlane.f32.xlu1 %v421_v7  ;;  %434 = vadd.xlane.f32.xlu0 %v398_v37  ;;  %v1963_v37 = vld [vmem:[%s2806_s3 + $0x78] ss:$12 sps:$4 sm:$0xff]  }
  0xb6   : > { %v2292_v41 = vsub.f32 %v2141_v11, %v359_v8  ;;  %v278_v43 = vpop.xlane.xlu0 %277  ;;  %893 = vmatprep.subr.bf16.mxu0 %v1955_v52  ;;  %1923 = vmatprep.subr.bf16.mxu1 %v1955_v52 }
  0xb7   : > { %v280_v44 = vpop.xlane.xlu1 %279  ;;  %v336_v48 = vmul.f32 0.0078125, %v278_v43  ;;  %v422_v10 = vmul.f32 %v2289_v38, %v2289_v38 }
  0xb8   : > { %v337_v49 = vmul.f32 0.0078125, %v280_v44  ;;  %v423_v51 = vmul.f32 %v2292_v41, %v2292_v41  ;;  %894 = vmatpush1.bf16.msra.mxu0 %v1957_v57  ;;  %1931 = vmatpush1.bf16.msra.mxu1 %v1957_v57  ;;  %v1964_v44 = vld [vmem:[%s2806_s3 + $0x94] ss:$12 sps:$4 sm:$0xff]  }
  0xb9   : > { %v2302_v11 = vsub.f32 %v2146_v12, %v336_v48  ;;  %436 = vadd.xlane.f32.xlu1 %v399_v42  ;;  %482 = vadd.xlane.f32.xlu0 %v422_v10  ;;  %v1966_v10 = vld [vmem:[%s2806_s3 + $0x90] ss:$12 sps:$4 sm:$0xff]  }
  0xba   : > { %v2305_v50 = vsub.f32 %v2149_v13, %v337_v49  ;;  %v326_v53 = vpop.xlane.xlu0 %325  ;;  %895 = vmatprep.subr.bf16.mxu0 %v1958_v0  ;;  %1924 = vmatprep.subr.bf16.mxu1 %v1958_v0 }
  0xbb   : > { %v328_v56 = vpop.xlane.xlu1 %327  ;;  %v360_v12 = vmul.f32 0.0078125, %v326_v53  ;;  %v400_v58 = vmul.f32 %v2302_v11, %v2302_v11 }
  0xbc   : > { %v361_v59 = vmul.f32 0.0078125, %v328_v56  ;;  %v401_v61 = vmul.f32 %v2305_v50, %v2305_v50  ;;  %896 = vmatpush1.bf16.msra.mxu0 %v1960_v3  ;;  %1932 = vmatpush1.bf16.msra.mxu1 %v1960_v3  ;;  %v1967_v56 = vld [vmem:[%s2806_s3 + $0xac] ss:$12 sps:$4 sm:$0xff]  }
  0xbd   : > { %v2318_v13 = vsub.f32 %v2154_v14, %v360_v12  ;;  %484 = vadd.xlane.f32.xlu1 %v423_v51  ;;  %438 = vadd.xlane.f32.xlu0 %v400_v58  ;;  %v1969_v58 = vld [vmem:[%s2806_s3 + $0xa8] ss:$12 sps:$4 sm:$0xff]  }
  0xbe   : > { %v2321_v60 = vsub.f32 %v2157_v15, %v361_v59  ;;  %v282_v1 = vpop.xlane.xlu0 %281  ;;  %897 = vmatprep.subr.bf16.mxu0 %v1961_v34  ;;  %1925 = vmatprep.subr.bf16.mxu1 %v1961_v34 }
  0xbf   : > { %v284_v2 = vpop.xlane.xlu1 %283  ;;  %v338_v14 = vmul.f32 0.0078125, %v282_v1  ;;  %v424_v4 = vmul.f32 %v2318_v13, %v2318_v13 }
  0xc0   : > { %v339_v5 = vmul.f32 0.0078125, %v284_v2  ;;  %v425_v33 = vmul.f32 %v2321_v60, %v2321_v60  ;;  %898 = vmatpush1.bf16.msra.mxu0 %v1963_v37  ;;  %1933 = vmatpush1.bf16.msra.mxu1 %v1963_v37 }
  0xc1   : > { %v2334_v15 = vsub.f32 %v2162_v16, %v338_v14  ;;  %440 = vadd.xlane.f32.xlu1 %v401_v61  ;;  %486 = vadd.xlane.f32.xlu0 %v424_v4  ;;  %v2050_v14 = vmov 0  }
  0xc2   : > { %v2337_v7 = vsub.f32 %v2165_v17, %v339_v5  ;;  %v286_v35 = vpop.xlane.xlu0 %285  ;;  %899 = vmatprep.subr.bf16.mxu0 %v1964_v44  ;;  %1926 = vmatprep.subr.bf16.mxu1 %v1964_v44 }
  0xc3   : > { %v288_v36 = vpop.xlane.xlu1 %287  ;;  %v340_v16 = vmul.f32 0.0078125, %v286_v35  ;;  %v402_v8 = vmul.f32 %v2334_v15, %v2334_v15  ;;  %919 = vmatprep.mubr.bf16.mxu0 %v2050_v14  ;;  %1039 = vmatprep.mubr.bf16.mxu1 %v2050_v14  ;;  %v2404_v35 = vld [vmem:[%s2806_s3 + $0x8] ss:$12 sps:$4 sm:$0xff]  }
  0xc4   : > { %v341_v9 = vmul.f32 0.0078125, %v288_v36  ;;  %v403_v43 = vmul.f32 %v2337_v7, %v2337_v7  ;;  %900 = vmatpush1.bf16.msra.mxu0 %v1966_v10  ;;  %1934 = vmatpush1.bf16.msra.mxu1 %v1966_v10 }
  0xc5   : > { %v2350_v17 = vsub.f32 %v2170_v18, %v340_v16  ;;  %488 = vadd.xlane.f32.xlu1 %v425_v33  ;;  %442 = vadd.xlane.f32.xlu0 %v402_v8 }
  0xc6   : > { %v2353_v42 = vsub.f32 %v2173_v19, %v341_v9  ;;  %v290_v45 = vpop.xlane.xlu0 %289  ;;  %901 = vmatprep.subr.bf16.mxu0 %v1967_v56  ;;  %1927 = vmatprep.subr.bf16.mxu1 %v1967_v56 }
  0xc7   : > { %v292_v48 = vpop.xlane.xlu1 %291  ;;  %v342_v18 = vmul.f32 0.0078125, %v290_v45  ;;  %v404_v49 = vmul.f32 %v2350_v17, %v2350_v17 }
  0xc8   : > { %v343_v51 = vmul.f32 0.0078125, %v292_v48  ;;  %v405_v53 = vmul.f32 %v2353_v42, %v2353_v42  ;;  %902 = vmatpush1.bf16.msra.mxu0 %v1969_v58  ;;  %1935 = vmatpush1.bf16.msra.mxu1 %v1969_v58 }
  0xc9   : > { %v2366_v19 = vsub.f32 %v2178_v20, %v342_v18  ;;  %444 = vadd.xlane.f32.xlu1 %v403_v43  ;;  %446 = vadd.xlane.f32.xlu0 %v404_v49 }
  0xca   : > { %v2369_v52 = vsub.f32 %v2181_v21, %v343_v51  ;;  %v294_v57 = vpop.xlane.xlu0 %293  ;;  %1872 = vmatprep.subr.bf16.mxu1 %v2404_v35 }
  0xcb   : > { %v296_v12 = vpop.xlane.xlu1 %295  ;;  %v344_v20 = vmul.f32 0.0078125, %v294_v57  ;;  %v406_v59 = vmul.f32 %v2366_v19, %v2366_v19 }
  0xcc   : > { %v345_v61 = vmul.f32 0.0078125, %v296_v12  ;;  %v407_v1 = vmul.f32 %v2369_v52, %v2369_v52 }
  0xcd   : > { %v2382_v21 = vsub.f32 %v2186_v22, %v344_v20  ;;  %448 = vadd.xlane.f32.xlu1 %v405_v53  ;;  %450 = vadd.xlane.f32.xlu0 %v406_v59 }
  0xce   : > { %v2385_v0 = vsub.f32 %v2189_v23, %v345_v61  ;;  %v298_v2 = vpop.xlane.xlu0 %297 }
  0xcf   : > { %v300_v3 = vpop.xlane.xlu1 %299  ;;  %v346_v4 = vmul.f32 0.0078125, %v298_v2  ;;  %v408_v22 = vmul.f32 %v2382_v21, %v2382_v21 }
  0xd0   : > { %v347_v5 = vmul.f32 0.0078125, %v300_v3  ;;  %v409_v34 = vmul.f32 %v2385_v0, %v2385_v0 }
  0xd1   : > { %v2394_v33 = vsub.f32 %v2194_v24, %v346_v4  ;;  %452 = vadd.xlane.f32.xlu1 %v407_v1  ;;  %454 = vadd.xlane.f32.xlu0 %v408_v22 }
  0xd2   : > { %v2397_v23 = vsub.f32 %v2197_v25, %v347_v5  ;;  %v302_v36 = vpop.xlane.xlu0 %301 }
  0xd3   : > { %v304_v37 = vpop.xlane.xlu1 %303  ;;  %v348_v16 = vmul.f32 0.0078125, %v302_v36  ;;  %v410_v24 = vmul.f32 %v2394_v33, %v2394_v33 }
  0xd4   : > { %v349_v8 = vmul.f32 0.0078125, %v304_v37  ;;  %v411_v43 = vmul.f32 %v2397_v23, %v2397_v23 }
  0xd5   : > { %v2410_v25 = vsub.f32 %v2202_v26, %v348_v16  ;;  %456 = vadd.xlane.f32.xlu1 %v409_v34  ;;  %458 = vadd.xlane.f32.xlu0 %v410_v24 }
  0xd6   : > { %v2413_v9 = vsub.f32 %v2205_v27, %v349_v8  ;;  %v306_v44 = vpop.xlane.xlu0 %305 }
  0xd7   : > { %v308_v45 = vpop.xlane.xlu1 %307  ;;  %v350_v48 = vmul.f32 0.0078125, %v306_v44  ;;  %v412_v10 = vmul.f32 %v2410_v25, %v2410_v25 }
  0xd8   : > { %v351_v18 = vmul.f32 0.0078125, %v308_v45  ;;  %v413_v27 = vmul.f32 %v2413_v9, %v2413_v9 }
  0xd9   : > { %v2420_v49 = vsub.f32 %v2210_v28, %v350_v48  ;;  %460 = vadd.xlane.f32.xlu1 %v411_v43  ;;  %462 = vadd.xlane.f32.xlu0 %v412_v10 }
  0xda   : > { %v2423_v26 = vsub.f32 %v2213_v29, %v351_v18  ;;  %v310_v51 = vpop.xlane.xlu0 %309 }
  0xdb   : > { %v312_v53 = vpop.xlane.xlu1 %311  ;;  %v352_v56 = vmul.f32 0.0078125, %v310_v51  ;;  %v414_v57 = vmul.f32 %v2420_v49, %v2420_v49 }
  0xdc   : > { %v353_v12 = vmul.f32 0.0078125, %v312_v53  ;;  %v415_v29 = vmul.f32 %v2423_v26, %v2423_v26 }
  0xdd   : > { %v2430_v58 = vsub.f32 %v2218_v30, %v352_v56  ;;  %464 = vadd.xlane.f32.xlu1 %v413_v27  ;;  %466 = vadd.xlane.f32.xlu0 %v414_v57 }
  0xde   : > { %v2433_v28 = vsub.f32 %v2221_v31, %v353_v12 }
  0xdf   : > { %v416_v20 = vmul.f32 %v2430_v58, %v2430_v58 }
  0xe0   : > { %v417_v59 = vmul.f32 %v2433_v28, %v2433_v28 }
  0xe1   : > { %468 = vadd.xlane.f32.xlu1 %v415_v29  ;;  %470 = vadd.xlane.f32.xlu0 %v416_v20  ;;  %v2445_v29 = vld [vmem:[%s2804_s1] ss:$0 sm:$0xff] }
  0xe5   : > { %472 = vadd.xlane.f32.xlu1 %v417_v59 }
 0x132   : > { %v427_v61 = vpop.xlane.xlu0 %426 }
 0x133   : > { %v490_v30 = vmul.f32 0.0078125, %v427_v61 }
 0x135   : > { %v522_v1 = vadd.f32 1e-05, %v490_v30 }
 0x136   : > { %v429_v2 = vpop.xlane.xlu1 %428  ;;  %v475_v3 = vpop.xlane.xlu0 %474 }
 0x137   : > { %1978 = vrsqrt.f32 %v522_v1  ;;  %v491_v31 = vmul.f32 0.0078125, %v429_v2  ;;  %v514_v4 = vmul.f32 0.0078125, %v475_v3 }
 0x139   : > { %v523_v22 = vadd.f32 1e-05, %v491_v31  ;;  %v546_v5 = vadd.f32 1e-05, %v514_v4 }
 0x13a   : > { %v477_v34 = vpop.xlane.xlu1 %476  ;;  %v431_v36 = vpop.xlane.xlu0 %430 }
 0x13b   : > { %1980 = vrsqrt.f32 %v523_v22  ;;  %v515_v37 = vmul.f32 0.0078125, %v477_v34  ;;  %v492_v16 = vmul.f32 0.0078125, %v431_v36  ;;  %v2452_v22 = vld [vmem:[%s2805_s2] ss:$0 sm:$0xff] }
 0x13c   : > { %1982 = vrsqrt.f32 %v546_v5 }
 0x13d   : > { %v547_v24 = vadd.f32 1e-05, %v515_v37  ;;  %v524_v8 = vadd.f32 1e-05, %v492_v16 }
 0x13e   : > { %v433_v43 = vpop.xlane.xlu1 %432  ;;  %v479_v44 = vpop.xlane.xlu0 %478 }
 0x13f   : > { %1984 = vrsqrt.f32 %v547_v24  ;;  %v493_v45 = vmul.f32 0.0078125, %v433_v43  ;;  %v516_v48 = vmul.f32 0.0078125, %v479_v44 }
 0x140   : > { %1986 = vrsqrt.f32 %v524_v8 }
 0x141   : > { %v1979_v10 = vpop.eup %1978  ;;  %v525_v18 = vadd.f32 1e-05, %v493_v45  ;;  %v548_v27 = vadd.f32 1e-05, %v516_v48 }
 0x142   : > { %v481_v51 = vpop.xlane.xlu1 %480  ;;  %v435_v53 = vpop.xlane.xlu0 %434  ;;  %v586_v56 = vmul.f32 %v1979_v10, %v2235_v39 }
 0x143   : > { %1988 = vrsqrt.f32 %v525_v18  ;;  %v517_v57 = vmul.f32 0.0078125, %v481_v51  ;;  %v494_v12 = vmul.f32 0.0078125, %v435_v53 }
 0x144   : > { %1990 = vrsqrt.f32 %v548_v27  ;;  %v624_v31 = vmul.f32 %v2445_v29, %v586_v56 }
 0x145   : > { %v1981_v20 = vpop.eup %1980  ;;  %v549_v59 = vadd.f32 1e-05, %v517_v57  ;;  %v526_v61 = vadd.f32 1e-05, %v494_v12 }
 0x146   : > { %v1983_v30 = vpop.eup %1982  ;;  %v437_v1 = vpop.xlane.xlu1 %436  ;;  %v587_v3 = vmul.f32 %v1981_v20, %v2243_v46  ;;  %v662_v43 = vadd.f32 %v2452_v22, %v624_v31 }
 0x147   : > { %v483_v2 = vpop.xlane.xlu0 %482  ;;  %1992 = vrsqrt.f32 %v549_v59  ;;  %v495_v39 = vmul.f32 0.0078125, %v437_v1  ;;  %v610_v5 = vmul.f32 %v1983_v30, %v2238_v40 }
 0x148   : > { %v518_v4 = vmul.f32 0.0078125, %v483_v2  ;;  %1994 = vrsqrt.f32 %v526_v61  ;;  %v625_v34 = vmul.f32 %v2445_v29, %v587_v3 }
 0x149   : > { %v1985_v36 = vpop.eup %1984  ;;  %v527_v37 = vadd.f32 1e-05, %v495_v39  ;;  %v648_v48 = vmul.f32 %v2445_v29, %v610_v5  ;;  %v1971_v39 = vld [vmem:[%s2806_s3 + $0x20] ss:$12 sps:$4 sm:$0xff]  }
 0x14a   : > { %v550_v16 = vadd.f32 1e-05, %v518_v4  ;;  %v1987_v24 = vpop.eup %1986  ;;  %v485_v46 = vpop.xlane.xlu1 %484  ;;  %v663_v44 = vadd.f32 %v2452_v22, %v625_v34  ;;  %v611_v45 = vmul.f32 %v1985_v36, %v2246_v47 }
 0x14b   : > { %v439_v8 = vpop.xlane.xlu0 %438  ;;  %1996 = vrsqrt.f32 %v527_v37  ;;  %v519_v10 = vmul.f32 0.0078125, %v485_v46  ;;  %v588_v51 = vmul.f32 %v1987_v24, %v2253_v54  ;;  %v686_v59 = vadd.f32 %v2452_v22, %v648_v48  ;;  %v1972_v48 = vld [vmem:[%s2806_s3 + $0x38] ss:$12 sps:$4 sm:$0xff]  }
 0x14c   : > { %v496_v40 = vmul.f32 0.0078125, %v439_v8  ;;  %1998 = vrsqrt.f32 %v550_v16  ;;  %v2460_v18 = vpack.c.bf16 %v663_v44, %v662_v43  ;;  %v649_v27 = vmul.f32 %v2445_v29, %v611_v45 }
 0x14d   : > { %v1989_v53 = vpop.eup %1988  ;;  %v551_v56 = vadd.f32 1e-05, %v519_v10  ;;  %v626_v1 = vmul.f32 %v2445_v29, %v588_v51 }
 0x14e   : > { %v528_v57 = vadd.f32 1e-05, %v496_v40  ;;  %v1991_v12 = vpop.eup %1990  ;;  %v441_v20 = vpop.xlane.xlu1 %440  ;;  %920 = vmatmul.mubr.bf16.vlgmr.msra.gmra.mrb[0].mxu0 %v2460_v18  ;;  %v687_v61 = vadd.f32 %v2452_v22, %v649_v27  ;;  %v589_v30 = vmul.f32 %v1989_v53, %v2256_v55 }
 0x14f   : > { %v487_v47 = vpop.xlane.xlu0 %486  ;;  %2000 = vrsqrt.f32 %v551_v56  ;;  %v497_v2 = vmul.f32 0.0078125, %v441_v20  ;;  %929 = vmatprep.mubr.bf16.mxu0 %v2050_v14  ;;  %v612_v54 = vmul.f32 %v1991_v12, %v2263_v62  ;;  %v664_v24 = vadd.f32 %v2452_v22, %v626_v1  ;;  %v1973_v1 = vld [vmem:[%s2806_s3 + $0x50] ss:$12 sps:$4 sm:$0xff]  }
 0x150   : > { %v520_v3 = vmul.f32 0.0078125, %v487_v47  ;;  %2002 = vrsqrt.f32 %v528_v57  ;;  %v2471_v31 = vpack.c.bf16 %v687_v61, %v686_v59  ;;  %v627_v4 = vmul.f32 %v2445_v29, %v589_v30 }
 0x151   : > { %v1993_v5 = vpop.eup %1992  ;;  %v529_v55 = vadd.f32 1e-05, %v497_v2  ;;  %v650_v8 = vmul.f32 %v2445_v29, %v612_v54 }
 0x152   : > { %v552_v34 = vadd.f32 1e-05, %v520_v3  ;;  %v1995_v36 = vpop.eup %1994  ;;  %v489_v37 = vpop.xlane.xlu1 %488  ;;  %1040 = vmatmul.mubr.bf16.vlgmr.msra.gmra.mrb[0].mxu1 %v2471_v31  ;;  %v665_v62 = vadd.f32 %v2452_v22, %v627_v4  ;;  %v613_v46 = vmul.f32 %v1993_v5, %v2266_v63 }
 0x153   : > { %v443_v16 = vpop.xlane.xlu0 %442  ;;  %2004 = vrsqrt.f32 %v529_v55  ;;  %v521_v43 = vmul.f32 0.0078125, %v489_v37  ;;  %1873 = vmatpush3.bf16.msra.mxu1 %v2404_v35  ;;  %1049 = vmatprep.mubr.bf16.mxu1 %v2050_v14  ;;  %v590_v63 = vmul.f32 %v1995_v36, %v2273_v32  ;;  %v688_v57 = vadd.f32 %v2452_v22, %v650_v8 }
 0x154   : > { %v498_v44 = vmul.f32 0.0078125, %v443_v16  ;;  %2006 = vrsqrt.f32 %v552_v34  ;;  %1874 = vmatprep.subr.bf16.mxu1 %v1971_v39  ;;  %v2484_v45 = vpack.c.bf16 %v665_v62, %v664_v24  ;;  %v651_v10 = vmul.f32 %v2445_v29, %v613_v46  ;;  %v1974_v24 = vld [vmem:[%s2806_s3 + $0x68] ss:$12 sps:$4 sm:$0xff]  }
 0x155   : > { %v1997_v40 = vpop.eup %1996  ;;  %v553_v27 = vadd.f32 1e-05, %v521_v43  ;;  %v628_v47 = vmul.f32 %v2445_v29, %v590_v63 }
 0x156   : > { %v530_v51 = vadd.f32 1e-05, %v498_v44  ;;  %v1999_v53 = vpop.eup %1998  ;;  %v445_v35 = vpop.xlane.xlu1 %444  ;;  %930 = vmatmul.mubr.bf16.gmra.mrb[4].mxu0 %v2484_v45  ;;  %v689_v12 = vadd.f32 %v2452_v22, %v651_v10  ;;  %v591_v20 = vmul.f32 %v1997_v40, %v2276_v6 }
 0x157   : > { %v447_v56 = vpop.xlane.xlu0 %446  ;;  %2008 = vrsqrt.f32 %v553_v27  ;;  %v499_v59 = vmul.f32 0.0078125, %v445_v35  ;;  %1875 = vmatpush3.bf16.msra.mxu1 %v1971_v39  ;;  %939 = vmatprep.mubr.bf16.mxu0 %v2050_v14  ;;  %v614_v61 = vmul.f32 %v1999_v53, %v2289_v38  ;;  %v666_v38 = vadd.f32 %v2452_v22, %v628_v47 }
 0x158   : > { %v500_v32 = vmul.f32 0.0078125, %v447_v56  ;;  %2010 = vrsqrt.f32 %v530_v51  ;;  %1876 = vmatprep.subr.bf16.mxu1 %v1972_v48  ;;  %v2498_v30 = vpack.c.bf16 %v689_v12, %v688_v57  ;;  %v629_v6 = vmul.f32 %v2445_v29, %v591_v20  ;;  %v1975_v56 = vld [vmem:[%s2806_s3 + $0x80] ss:$12 sps:$4 sm:$0xff]  }
 0x159   : > { %v2001_v2 = vpop.eup %2000  ;;  %v531_v3 = vadd.f32 1e-05, %v499_v59  ;;  %v652_v36 = vmul.f32 %v2445_v29, %v614_v61 }
 0x15a   : > { %v532_v54 = vadd.f32 1e-05, %v500_v32  ;;  %v2003_v4 = vpop.eup %2002  ;;  %v449_v39 = vpop.xlane.xlu1 %448  ;;  %1050 = vmatmul.mubr.bf16.gmra.mrb[4].mxu1 %v2498_v30  ;;  %v667_v55 = vadd.f32 %v2452_v22, %v629_v6  ;;  %v615_v34 = vmul.f32 %v2001_v2, %v2292_v41 }
 0x15b   : > { %v451_v5 = vpop.xlane.xlu0 %450  ;;  %2012 = vrsqrt.f32 %v531_v3  ;;  %v501_v37 = vmul.f32 0.0078125, %v449_v39  ;;  %1877 = vmatpush3.bf16.msra.mxu1 %v1972_v48  ;;  %1059 = vmatprep.mubr.bf16.mxu1 %v2050_v14  ;;  %v592_v46 = vmul.f32 %v2003_v4, %v2302_v11  ;;  %v690_v63 = vadd.f32 %v2452_v22, %v652_v36 }
 0x15c   : > { %2014 = vrsqrt.f32 %v532_v54  ;;  %1878 = vmatprep.subr.bf16.mxu1 %v1973_v1  ;;  %v2510_v16 = vpack.c.bf16 %v667_v55, %v666_v38  ;;  %v653_v62 = vmul.f32 %v2445_v29, %v615_v34  ;;  %v502_v43 = vmul.f32 0.0078125, %v451_v5  ;;  %v1976_v54 = vld [vmem:[%s2806_s3 + $0x98] ss:$12 sps:$4 sm:$0xff]  }
 0x15d   : > { %v2005_v41 = vpop.eup %2004  ;;  %v533_v8 = vadd.f32 1e-05, %v501_v37  ;;  %v630_v51 = vmul.f32 %v2445_v29, %v592_v46 }
 0x15e   : > { %v2007_v44 = vpop.eup %2006  ;;  %v453_v10 = vpop.xlane.xlu1 %452  ;;  %940 = vmatmul.mubr.bf16.gmra.mrb[8].mxu0 %v2510_v16  ;;  %v691_v40 = vadd.f32 %v2452_v22, %v653_v62  ;;  %v593_v27 = vmul.f32 %v2005_v41, %v2305_v50  ;;  %v534_v50 = vadd.f32 1e-05, %v502_v43  ;;  %v1977_v43 = vld [vmem:[%s2806_s3 + $0xb0] ss:$12 sps:$4 sm:$0xff]  }
 0x15f   : > { %v455_v48 = vpop.xlane.xlu0 %454  ;;  %2016 = vrsqrt.f32 %v533_v8  ;;  %v503_v53 = vmul.f32 0.0078125, %v453_v10  ;;  %1879 = vmatpush3.bf16.msra.mxu1 %v1973_v1  ;;  %949 = vmatprep.mubr.bf16.mxu0 %v2050_v14  ;;  %v616_v11 = vmul.f32 %v2007_v44, %v2318_v13  ;;  %v668_v61 = vadd.f32 %v2452_v22, %v630_v51 }
 0x160   : > { %1880 = vmatprep.subr.bf16.mxu1 %v1974_v24  ;;  %v2524_v35 = vpack.c.bf16 %v691_v40, %v690_v63  ;;  %v631_v57 = vmul.f32 %v2445_v29, %v593_v27 }
 0x161   : > { %v2009_v12 = vpop.eup %2008  ;;  %v535_v20 = vadd.f32 1e-05, %v503_v53  ;;  %v654_v6 = vmul.f32 %v2445_v29, %v616_v11 }
 0x162   : > { %v2011_v47 = vpop.eup %2010  ;;  %v457_v59 = vpop.xlane.xlu1 %456  ;;  %1060 = vmatmul.mubr.bf16.gmra.mrb[8].mxu1 %v2524_v35  ;;  %v669_v13 = vadd.f32 %v2452_v22, %v631_v57  ;;  %v617_v1 = vmul.f32 %v2009_v12, %v2321_v60  ;;  %v504_v60 = vmul.f32 0.0078125, %v455_v48 }
 0x163   : > { %v459_v32 = vpop.xlane.xlu0 %458  ;;  %2018 = vrsqrt.f32 %v535_v20  ;;  %v505_v2 = vmul.f32 0.0078125, %v457_v59  ;;  %1881 = vmatpush3.bf16.msra.mxu1 %v1974_v24  ;;  %1069 = vmatprep.mubr.bf16.mxu1 %v2050_v14  ;;  %v594_v39 = vmul.f32 %v2011_v47, %v2334_v15  ;;  %v692_v36 = vadd.f32 %v2452_v22, %v654_v6 }
 0x164   : > { %1882 = vmatprep.subr.bf16.mxu1 %v1975_v56  ;;  %v2536_v3 = vpack.c.bf16 %v669_v13, %v668_v61  ;;  %v655_v4 = vmul.f32 %v2445_v29, %v617_v1  ;;  %2020 = vrsqrt.f32 %v534_v50  ;;  %v536_v48 = vadd.f32 1e-05, %v504_v60 }
 0x165   : > { %v2013_v5 = vpop.eup %2012  ;;  %v632_v62 = vmul.f32 %v2445_v29, %v594_v39  ;;  %v537_v46 = vadd.f32 1e-05, %v505_v2 }
 0x166   : > { %v2015_v38 = vpop.eup %2014  ;;  %v461_v55 = vpop.xlane.xlu1 %460  ;;  %950 = vmatmul.mubr.bf16.gmra.mrb[12].mxu0 %v2536_v3  ;;  %v693_v37 = vadd.f32 %v2452_v22, %v655_v4  ;;  %v595_v24 = vmul.f32 %v2013_v5, %v2337_v7  ;;  %v506_v7 = vmul.f32 0.0078125, %v459_v32 }
 0x167   : > { %v463_v34 = vpop.xlane.xlu0 %462  ;;  %v507_v41 = vmul.f32 0.0078125, %v461_v55  ;;  %1883 = vmatpush3.bf16.msra.mxu1 %v1975_v56  ;;  %959 = vmatprep.mubr.bf16.mxu0 %v2050_v14  ;;  %v596_v40 = vmul.f32 %v2015_v38, %v2350_v17  ;;  %v670_v11 = vadd.f32 %v2452_v22, %v632_v62  ;;  %2022 = vrsqrt.f32 %v537_v46 }
 0x168   : > { %v508_v15 = vmul.f32 0.0078125, %v463_v34  ;;  %1884 = vmatprep.subr.bf16.mxu1 %v1976_v54  ;;  %v2549_v8 = vpack.c.bf16 %v693_v37, %v692_v36  ;;  %v633_v44 = vmul.f32 %v2445_v29, %v595_v24  ;;  %v538_v61 = vadd.f32 1e-05, %v506_v7 }
 0x169   : > { %v2017_v10 = vpop.eup %2016  ;;  %v539_v27 = vadd.f32 1e-05, %v507_v41  ;;  %v634_v1 = vmul.f32 %v2445_v29, %v596_v40 }
 0x16a   : > { %v540_v63 = vadd.f32 1e-05, %v508_v15  ;;  %v465_v51 = vpop.xlane.xlu1 %464  ;;  %1070 = vmatmul.mubr.bf16.gmra.mrb[12].mxu1 %v2549_v8  ;;  %v671_v56 = vadd.f32 %v2452_v22, %v633_v44  ;;  %v597_v57 = vmul.f32 %v2017_v10, %v2353_v42 }
 0x16b   : > { %v467_v53 = vpop.xlane.xlu0 %466  ;;  %v509_v12 = vmul.f32 0.0078125, %v465_v51  ;;  %1885 = vmatpush3.bf16.msra.mxu1 %v1976_v54  ;;  %1888 = vmatprep.mubr.bf16.mxu1 %v2460_v18  ;;  %v672_v38 = vadd.f32 %v2452_v22, %v634_v1 }
 0x16c   : > { %v510_v50 = vmul.f32 0.0078125, %v467_v53  ;;  %2024 = vrsqrt.f32 %v540_v63  ;;  %1886 = vmatprep.subr.bf16.mxu1 %v1977_v43  ;;  %v698_v17 = vpack.c.bf16 %v671_v56, %v670_v11  ;;  %v635_v20 = vmul.f32 %v2445_v29, %v597_v57 }
 0x16d   : > { %v2019_v47 = vpop.eup %2018  ;;  %2026 = vrsqrt.f32 %v536_v48  ;;  %v541_v59 = vadd.f32 1e-05, %v509_v12 }
 0x16e   : > { %v542_v32 = vadd.f32 1e-05, %v510_v50  ;;  %2028 = vrsqrt.f32 %v539_v27  ;;  %v469_v13 = vpop.xlane.xlu1 %468  ;;  %960 = vmatmul.mubr.bf16.gmra.mrb[16].mxu0 %v698_v17  ;;  %v2021_v6 = vpop.eup %2020  ;;  %v673_v54 = vadd.f32 %v2452_v22, %v635_v20  ;;  %v599_v4 = vmul.f32 %v2019_v47, %v2369_v52 }
 0x16f   : > { %v471_v42 = vpop.xlane.xlu0 %470  ;;  %2030 = vrsqrt.f32 %v541_v59  ;;  %v511_v2 = vmul.f32 0.0078125, %v469_v13  ;;  %1887 = vmatpush3.bf16.msra.mxu1 %v1977_v43  ;;  %969 = vmatprep.mubr.bf16.mxu0 %v2050_v14  ;;  %v598_v55 = vmul.f32 %v2021_v6, %v2366_v19 }
 0x170   : > { %v512_v18 = vmul.f32 0.0078125, %v471_v42  ;;  %2032 = vrsqrt.f32 %v542_v32  ;;  %v699_v36 = vpack.c.bf16 %v673_v54, %v672_v38  ;;  %v637_v37 = vmul.f32 %v2445_v29, %v599_v4 }
 0x171   : > { %v543_v39 = vadd.f32 1e-05, %v511_v2  ;;  %2034 = vrsqrt.f32 %v538_v61  ;;  %v2023_v24 = vpop.eup %2022  ;;  %v636_v46 = vmul.f32 %v2445_v29, %v598_v55 }
 0x172   : > { %v544_v5 = vadd.f32 1e-05, %v512_v18  ;;  %v473_v60 = vpop.xlane.xlu1 %472  ;;  %1889 = vmatmul.mubr.bf16.vlgmr.msra.gmra.mrb[16].mxu1 %v2484_v45  ;;  %v675_v15 = vadd.f32 %v2452_v22, %v637_v37 }
 0x173   : > { %2036 = vrsqrt.f32 %v543_v39  ;;  %v513_v34 = vmul.f32 0.0078125, %v473_v60  ;;  %1892 = vmatprep.mubr.bf16.mxu1 %v2510_v16  ;;  %v601_v16 = vmul.f32 %v2023_v24, %v2385_v0  ;;  %v674_v48 = vadd.f32 %v2452_v22, %v636_v46  ;;  %v2621_v60 = vld [vmem:[%s2807_s4] sm:$0x7] }
 0x174   : > { %2038 = vrsqrt.f32 %v544_v5 }
 0x175   : > { %v545_v52 = vadd.f32 1e-05, %v513_v34  ;;  %v700_v51 = vpack.c.bf16 %v675_v15, %v674_v48  ;;  %v639_v0 = vmul.f32 %v2445_v29, %v601_v16 }
 0x176   : > { %v2025_v62 = vpop.eup %2024  ;;  %970 = vmatmul.mubr.bf16.gmra.mrb[20].mxu0 %v699_v36 }
 0x177   : > { %v2027_v41 = vpop.eup %2026  ;;  %2040 = vrsqrt.f32 %v545_v52  ;;  %979 = vmatprep.mubr.bf16.mxu0 %v2050_v14  ;;  %v604_v19 = vmul.f32 %v2025_v62, %v2410_v25 }
 0x178   : > { %v2029_v45 = vpop.eup %2028  ;;  %v600_v7 = vmul.f32 %v2027_v41, %v2382_v21 }
 0x179   : > { %v2031_v43 = vpop.eup %2030  ;;  %v642_v44 = vmul.f32 %v2445_v29, %v604_v19 }
 0x17a   : > { %v2033_v10 = vpop.eup %2032  ;;  %1893 = vmatmul.mubr.bf16.gmra.mrb[20].mxu1 %v2536_v3  ;;  %v605_v63 = vmul.f32 %v2031_v43, %v2413_v9  ;;  %v603_v3 = vmul.f32 %v2029_v45, %v2397_v23  ;;  %v638_v21 = vmul.f32 %v2445_v29, %v600_v7  ;;  %v677_v23 = vadd.f32 %v2452_v22, %v639_v0 }
 0x17b   : > { %1896 = vmatprep.mubr.bf16.mxu1 %v698_v17  ;;  %v680_v25 = vadd.f32 %v2452_v22, %v642_v44  ;;  %v606_v40 = vmul.f32 %v2033_v10, %v2420_v49  ;;  %v2035_v27 = vpop.eup %2034 }
 0x17c   : > { %v643_v53 = vmul.f32 %v2445_v29, %v605_v63  ;;  %v602_v49 = vmul.f32 %v2035_v27, %v2394_v33  ;;  %v641_v32 = vmul.f32 %v2445_v29, %v603_v3 }
 0x17d   : > { %v2037_v11 = vpop.eup %2036  ;;  %v644_v56 = vmul.f32 %v2445_v29, %v606_v40 }
 0x17e   : > { %v2039_v57 = vpop.eup %2038  ;;  %980 = vmatmul.mubr.bf16.gmra.mrb[24].mxu0 %v700_v51  ;;  %v681_v9 = vadd.f32 %v2452_v22, %v643_v53  ;;  %v607_v12 = vmul.f32 %v2037_v11, %v2423_v26  ;;  %v676_v26 = vadd.f32 %v2452_v22, %v638_v21  ;;  %v679_v18 = vadd.f32 %v2452_v22, %v641_v32 }
 0x17f   : > { %989 = vmatprep.mubr.bf16.mxu0 %v2050_v14  ;;  %v682_v50 = vadd.f32 %v2452_v22, %v644_v56  ;;  %v608_v17 = vmul.f32 %v2039_v57, %v2430_v58  ;;  %v640_v58 = vmul.f32 %v2445_v29, %v602_v49 }
 0x180   : > { %v703_v20 = vpack.c.bf16 %v681_v9, %v680_v25  ;;  %v645_v47 = vmul.f32 %v2445_v29, %v607_v12  ;;  %v701_v1 = vpack.c.bf16 %v677_v23, %v676_v26 }
 0x181   : > { %v2041_v59 = vpop.eup %2040  ;;  %v646_v61 = vmul.f32 %v2445_v29, %v608_v17  ;;  %v678_v4 = vadd.f32 %v2452_v22, %v640_v58 }
 0x182   : > { %1897 = vmatmul.mubr.bf16.gmra.mrb[24].mxu1 %v699_v36  ;;  %v683_v13 = vadd.f32 %v2452_v22, %v645_v47  ;;  %v609_v33 = vmul.f32 %v2041_v59, %v2433_v28 }
 0x183   : > { %1900 = vmatprep.mubr.bf16.mxu1 %v700_v51  ;;  %v684_v42 = vadd.f32 %v2452_v22, %v646_v61  ;;  %v702_v28 = vpack.c.bf16 %v679_v18, %v678_v4 }
 0x184   : > { %v704_v6 = vpack.c.bf16 %v683_v13, %v682_v50  ;;  %v647_v2 = vmul.f32 %v2445_v29, %v609_v33  ;;  %v744_v29 = vlaneseq }
 0x186   : > { %990 = vmatmul.mubr.bf16.gmra.mrb[28].mxu0 %v701_v1  ;;  %v685_v54 = vadd.f32 %v2452_v22, %v647_v2  ;;  %v2615_v22 = vshrl.u32 %v744_v29, 7 }
 0x187   : > { %999 = vmatprep.mubr.bf16.mxu0 %v2050_v14 }
 0x188   : > { %v705_v39 = vpack.c.bf16 %v685_v54, %v684_v42  ;;  %v746_v5 = vsub.s32 0, %v2615_v22 }
 0x18a   : > { %1901 = vmatmul.mubr.bf16.gmra.mrb[28].mxu1 %v701_v1 }
 0x18b   : > { %1904 = vmatprep.mubr.bf16.mxu1 %v702_v28 }
 0x18e   : > { %1000 = vmatmul.mubr.bf16.gmra.mrb[32].mxu0 %v702_v28 }
 0x18f   : > { %1009 = vmatprep.mubr.bf16.mxu0 %v2050_v14 }
 0x192   : > { %1905 = vmatmul.mubr.bf16.gmra.mrb[32].mxu1 %v703_v20 }
 0x193   : > { %1908 = vmatprep.mubr.bf16.mxu1 %v704_v6 }
 0x196   : > { %1010 = vmatmul.mubr.bf16.gmra.mrb[36].mxu0 %v703_v20 }
 0x197   : > { %1019 = vmatprep.mubr.bf16.mxu0 %v2050_v14 }
 0x19a   : > { %1909 = vmatmul.mubr.bf16.gmra.mrb[36].mxu1 %v705_v39 }
 0x19b   : > { %1912 = vmatprep.mubr.bf16.mxu1 %v2471_v31  ;;  %v750_v31 = vsub.s32 1, %v2615_v22 }
 0x19e   : > { %1020 = vmatmul.mubr.bf16.gmra.mrb[40].mxu0 %v704_v6 }
 0x19f   : > { %1029 = vmatprep.mubr.bf16.mxu0 %v2050_v14  ;;  %v2625_v14 = vrot.slane %v2621_v60, %v746_v5 }
 0x1a2   : > { %1913 = vmatmul.mubr.bf16.gmra.mrb[40].mxu1 %v2498_v30  ;;  %v2628_v30 = vrot.slane %v2621_v60, %v750_v31 }
 0x1a3   : > { %1916 = vmatprep.mubr.bf16.mxu1 %v2524_v35 }
 0x1a6   : > { %1030 = vmatmul.mubr.bf16.gmra.mrb[44].mxu0 %v705_v39 }
 0x1aa   : > { %1917 = vmatmul.mubr.bf16.gmra.mrb[44].mxu1 %v2549_v8 }
 0x221   : > { %v921_v35 = vpop.f32.mrb[0].mxu0 }
 0x222   : > { %v922_v8 = vadd.f32 %v921_v35, %v2625_v14  ;;  %v923_v38 = vpop.f32.mrb[1].mxu0 }
 0x223   : > { %v924_v55 = vadd.f32 %v923_v38, %v2628_v30  ;;  %v925_v34 = vpop.f32.mrb[2].mxu0 }
 0x224   : > { %v926_v36 = vadd.f32 %v925_v34, %v2625_v14  ;;  %v927_v37 = vpop.f32.mrb[3].mxu0 }
 0x225   : > { %v1784_v24 = vpack.c.bf16 %v924_v55, %v922_v8  ;;  %v928_v52 = vadd.f32 %v927_v37, %v2628_v30  ;;  %v1041_v62 = vpop.f32.mrb[0].mxu1 }
 0x226   : > { %v1042_v46 = vadd.f32 %v1041_v62, %v2625_v14  ;;  %v1043_v41 = vpop.f32.mrb[1].mxu1 }
 0x227   : > { %1561 = vst [vmem:[%s2636_s11] sm:$0xff] %v1784_v24  ;;  %v1786_v19 = vpack.c.bf16 %v928_v52, %v926_v36  ;;  %v1044_v45 = vadd.f32 %v1043_v41, %v2628_v30  ;;  %v1045_v15 = vpop.f32.mrb[2].mxu1 }
 0x228   : > { %v1046_v16 = vadd.f32 %v1045_v15, %v2625_v14  ;;  %v1047_v43 = vpop.f32.mrb[3].mxu1 }
 0x229   : > { %1563 = vst [vmem:[%s2636_s11 + $0xc] sm:$0xff] %v1786_v19  ;;  %v1832_v44 = vpack.c.bf16 %v1044_v45, %v1042_v46  ;;  %v1048_v10 = vadd.f32 %v1047_v43, %v2628_v30  ;;  %v931_v48 = vpop.f32.mrb[4].mxu0  ;;  %v754_v19 = vsub.s32 2, %v2615_v22 }
 0x22a   : > { %v932_v7 = vadd.f32 %v931_v48, %v2625_v14  ;;  %v933_v63 = vpop.f32.mrb[5].mxu0 }
 0x22b   : > { %1609 = vst [vmem:[%s2636_s11 + $0x120] sm:$0xff] %v1832_v44  ;;  %v1834_v25 = vpack.c.bf16 %v1048_v10, %v1046_v16  ;;  %v934_v40 = vadd.f32 %v933_v63, %v2628_v30  ;;  %v935_v27 = vpop.f32.mrb[6].mxu0  ;;  %v2685_v22 = vrot.slane %v2621_v60, %v754_v19 }
 0x22c   : > { %v936_v51 = vadd.f32 %v935_v27, %v2625_v14  ;;  %v937_v0 = vpop.f32.mrb[7].mxu0 }
 0x22d   : > { %1611 = vst [vmem:[%s2636_s11 + $0x12c] sm:$0xff] %v1834_v25  ;;  %v1788_v53 = vpack.c.bf16 %v934_v40, %v932_v7  ;;  %v938_v11 = vadd.f32 %v937_v0, %v2628_v30  ;;  %v1051_v3 = vpop.f32.mrb[4].mxu1 }
 0x22e   : > { %v1052_v56 = vadd.f32 %v1051_v3, %v2625_v14  ;;  %v1053_v57 = vpop.f32.mrb[5].mxu1 }
 0x22f   : > { %1565 = vst [vmem:[%s2636_s11 + $0x18] sm:$0xff] %v1788_v53  ;;  %v1790_v21 = vpack.c.bf16 %v938_v11, %v936_v51  ;;  %v1054_v9 = vadd.f32 %v1053_v57, %v2628_v30  ;;  %v1055_v12 = vpop.f32.mrb[6].mxu1 }
 0x230   : > { %v1056_v49 = vadd.f32 %v1055_v12, %v2625_v14  ;;  %v1057_v50 = vpop.f32.mrb[7].mxu1 }
 0x231   : > { %1567 = vst [vmem:[%s2636_s11 + $0x24] sm:$0xff] %v1790_v21  ;;  %v1836_v17 = vpack.c.bf16 %v1054_v9, %v1052_v56  ;;  %v1058_v23 = vadd.f32 %v1057_v50, %v2628_v30  ;;  %v941_v20 = vpop.f32.mrb[8].mxu0 }
 0x232   : > { %v942_v47 = vadd.f32 %v941_v20, %v2625_v14  ;;  %v943_v59 = vpop.f32.mrb[9].mxu0 }
 0x233   : > { %1613 = vst [vmem:[%s2636_s11 + $0x138] sm:$0xff] %v1836_v17  ;;  %v1838_v32 = vpack.c.bf16 %v1058_v23, %v1056_v49  ;;  %v944_v61 = vadd.f32 %v943_v59, %v2628_v30  ;;  %v945_v26 = vpop.f32.mrb[10].mxu0 }
 0x234   : > { %v946_v13 = vadd.f32 %v945_v26, %v2625_v14  ;;  %v947_v33 = vpop.f32.mrb[11].mxu0 }
 0x235   : > { %1615 = vst [vmem:[%s2636_s11 + $0x144] sm:$0xff] %v1838_v32  ;;  %v1792_v58 = vpack.c.bf16 %v944_v61, %v942_v47  ;;  %v948_v42 = vadd.f32 %v947_v33, %v2628_v30  ;;  %v1061_v1 = vpop.f32.mrb[8].mxu1 }
 0x236   : > { %v1062_v6 = vadd.f32 %v1061_v1, %v2625_v14  ;;  %v1063_v2 = vpop.f32.mrb[9].mxu1 }
 0x237   : > { %1569 = vst [vmem:[%s2636_s11 + $0x30] sm:$0xff] %v1792_v58  ;;  %v1794_v18 = vpack.c.bf16 %v948_v42, %v946_v13  ;;  %v1064_v54 = vadd.f32 %v1063_v2, %v2628_v30  ;;  %v1065_v4 = vpop.f32.mrb[10].mxu1 }
 0x238   : > { %v1066_v39 = vadd.f32 %v1065_v4, %v2625_v14  ;;  %v1067_v28 = vpop.f32.mrb[11].mxu1 }
 0x239   : > { %1571 = vst [vmem:[%s2636_s11 + $0x3c] sm:$0xff] %v1794_v18  ;;  %v1840_v29 = vpack.c.bf16 %v1064_v54, %v1062_v6  ;;  %v1068_v5 = vadd.f32 %v1067_v28, %v2628_v30  ;;  %v951_v31 = vpop.f32.mrb[12].mxu0 }
 0x23a   : > { %v952_v35 = vadd.f32 %v951_v31, %v2625_v14  ;;  %v953_v8 = vpop.f32.mrb[13].mxu0 }
 0x23b   : > { %1617 = vst [vmem:[%s2636_s11 + $0x150] sm:$0xff] %v1840_v29  ;;  %v1842_v38 = vpack.c.bf16 %v1068_v5, %v1066_v39  ;;  %v954_v55 = vadd.f32 %v953_v8, %v2628_v30  ;;  %v955_v34 = vpop.f32.mrb[14].mxu0 }
 0x23c   : > { %v956_v36 = vadd.f32 %v955_v34, %v2625_v14  ;;  %v957_v37 = vpop.f32.mrb[15].mxu0 }
 0x23d   : > { %1619 = vst [vmem:[%s2636_s11 + $0x15c] sm:$0xff] %v1842_v38  ;;  %v1796_v24 = vpack.c.bf16 %v954_v55, %v952_v35  ;;  %v958_v52 = vadd.f32 %v957_v37, %v2628_v30  ;;  %v1071_v62 = vpop.f32.mrb[12].mxu1 }
 0x23e   : > { %v1072_v46 = vadd.f32 %v1071_v62, %v2625_v14  ;;  %v1073_v41 = vpop.f32.mrb[13].mxu1 }
 0x23f   : > { %1573 = vst [vmem:[%s2636_s11 + $0x48] sm:$0xff] %v1796_v24  ;;  %v1798_v45 = vpack.c.bf16 %v958_v52, %v956_v36  ;;  %v1074_v15 = vadd.f32 %v1073_v41, %v2628_v30  ;;  %v1075_v16 = vpop.f32.mrb[14].mxu1 }
 0x240   : > { %v1076_v43 = vadd.f32 %v1075_v16, %v2625_v14  ;;  %v1077_v44 = vpop.f32.mrb[15].mxu1 }
 0x241   : > { %1575 = vst [vmem:[%s2636_s11 + $0x54] sm:$0xff] %v1798_v45  ;;  %v1844_v10 = vpack.c.bf16 %v1074_v15, %v1072_v46  ;;  %v1078_v48 = vadd.f32 %v1077_v44, %v2628_v30  ;;  %v961_v7 = vpop.f32.mrb[16].mxu0 }
 0x242   : > { %v962_v63 = vadd.f32 %v961_v7, %v2625_v14  ;;  %v963_v25 = vpop.f32.mrb[17].mxu0 }
 0x243   : > { %1621 = vst [vmem:[%s2636_s11 + $0x168] sm:$0xff] %v1844_v10  ;;  %v1846_v40 = vpack.c.bf16 %v1078_v48, %v1076_v43  ;;  %v964_v27 = vadd.f32 %v963_v25, %v2628_v30  ;;  %v965_v51 = vpop.f32.mrb[18].mxu0 }
 0x244   : > { %v966_v0 = vadd.f32 %v965_v51, %v2625_v14  ;;  %v967_v53 = vpop.f32.mrb[19].mxu0 }
 0x245   : > { %1623 = vst [vmem:[%s2636_s11 + $0x174] sm:$0xff] %v1846_v40  ;;  %v1800_v11 = vpack.c.bf16 %v964_v27, %v962_v63  ;;  %v968_v3 = vadd.f32 %v967_v53, %v2628_v30  ;;  %v1890_v56 = vpop.f32.mrb[16].mxu1 }
 0x246   : > { %v1123_v57 = vadd.f32 %v1890_v56, %v2685_v22  ;;  %v1114_v21 = vpop.f32.mrb[17].mxu1 }
 0x247   : > { %1577 = vst [vmem:[%s2636_s11 + $0x60] sm:$0xff] %v1800_v11  ;;  %v1802_v60 = vpack.c.bf16 %v968_v3, %v966_v0  ;;  %v1115_v9 = vadd.f32 %v1114_v21, %v2685_v22  ;;  %v1891_v12 = vpop.f32.mrb[18].mxu1 }
 0x248   : > { %v1789_v49 = vpack.c.bf16 %v1123_v57, %v1123_v57  ;;  %v1126_v50 = vadd.f32 %v1891_v12, %v2685_v22  ;;  %v1117_v17 = vpop.f32.mrb[19].mxu1 }
 0x249   : > { %1579 = vst [vmem:[%s2636_s11 + $0x6c] sm:$0xff] %v1802_v60  ;;  %v1785_v23 = vpack.c.bf16 %v1115_v9, %v1115_v9  ;;  %v1118_v20 = vadd.f32 %v1117_v17, %v2685_v22  ;;  %v971_v47 = vpop.f32.mrb[20].mxu0 }
 0x24a   : > { %1566 = vst [vmem:[%s2636_s11 + $0x20] sm:$0xf] %v1789_v49  ;;  %v1791_v59 = vpack.c.bf16 %v1126_v50, %v1126_v50  ;;  %v972_v32 = vadd.f32 %v971_v47, %v2625_v14  ;;  %v973_v61 = vpop.f32.mrb[21].mxu0 }
 0x24b   : > { %1562 = vst [vmem:[%s2636_s11 + $0x8] sm:$0xf] %v1785_v23  ;;  %v1787_v26 = vpack.c.bf16 %v1118_v20, %v1118_v20  ;;  %v974_v13 = vadd.f32 %v973_v61, %v2628_v30  ;;  %v975_v33 = vpop.f32.mrb[22].mxu0 }
 0x24c   : > { %1568 = vst [vmem:[%s2636_s11 + $0x2c] sm:$0xf] %v1791_v59  ;;  %v976_v58 = vadd.f32 %v975_v33, %v2625_v14  ;;  %v977_v42 = vpop.f32.mrb[23].mxu0 }
 0x24d   : > { %1564 = vst [vmem:[%s2636_s11 + $0x14] sm:$0xf] %v1787_v26  ;;  %v1804_v1 = vpack.c.bf16 %v974_v13, %v972_v32  ;;  %v978_v6 = vadd.f32 %v977_v42, %v2628_v30  ;;  %v1894_v2 = vpop.f32.mrb[20].mxu1 }
 0x24e   : > { %v1139_v18 = vadd.f32 %v1894_v2, %v2685_v22  ;;  %v1130_v54 = vpop.f32.mrb[21].mxu1 }
 0x24f   : > { %1581 = vst [vmem:[%s2636_s11 + $0x78] sm:$0xff] %v1804_v1  ;;  %v1806_v4 = vpack.c.bf16 %v978_v6, %v976_v58  ;;  %v1131_v39 = vadd.f32 %v1130_v54, %v2685_v22  ;;  %v1895_v28 = vpop.f32.mrb[22].mxu1 }
 0x250   : > { %v1797_v29 = vpack.c.bf16 %v1139_v18, %v1139_v18  ;;  %v1142_v5 = vadd.f32 %v1895_v28, %v2685_v22  ;;  %v1133_v31 = vpop.f32.mrb[23].mxu1 }
 0x251   : > { %1583 = vst [vmem:[%s2636_s11 + $0x84] sm:$0xff] %v1806_v4  ;;  %v1793_v35 = vpack.c.bf16 %v1131_v39, %v1131_v39  ;;  %v1134_v8 = vadd.f32 %v1133_v31, %v2685_v22  ;;  %v981_v38 = vpop.f32.mrb[24].mxu0 }
 0x252   : > { %1574 = vst [vmem:[%s2636_s11 + $0x50] sm:$0xf] %v1797_v29  ;;  %v1799_v55 = vpack.c.bf16 %v1142_v5, %v1142_v5  ;;  %v982_v34 = vadd.f32 %v981_v38, %v2625_v14  ;;  %v983_v36 = vpop.f32.mrb[25].mxu0 }
 0x253   : > { %1570 = vst [vmem:[%s2636_s11 + $0x38] sm:$0xf] %v1793_v35  ;;  %v1795_v37 = vpack.c.bf16 %v1134_v8, %v1134_v8  ;;  %v984_v24 = vadd.f32 %v983_v36, %v2628_v30  ;;  %v985_v52 = vpop.f32.mrb[26].mxu0 }
 0x254   : > { %1576 = vst [vmem:[%s2636_s11 + $0x5c] sm:$0xf] %v1799_v55  ;;  %v986_v62 = vadd.f32 %v985_v52, %v2625_v14  ;;  %v987_v46 = vpop.f32.mrb[27].mxu0 }
 0x255   : > { %1572 = vst [vmem:[%s2636_s11 + $0x44] sm:$0xf] %v1795_v37  ;;  %v1808_v41 = vpack.c.bf16 %v984_v24, %v982_v34  ;;  %v988_v19 = vadd.f32 %v987_v46, %v2628_v30  ;;  %v1898_v45 = vpop.f32.mrb[24].mxu1 }
 0x256   : > { %v1155_v15 = vadd.f32 %v1898_v45, %v2685_v22  ;;  %v1146_v16 = vpop.f32.mrb[25].mxu1 }
 0x257   : > { %1585 = vst [vmem:[%s2636_s11 + $0x90] sm:$0xff] %v1808_v41  ;;  %v1810_v43 = vpack.c.bf16 %v988_v19, %v986_v62  ;;  %v1147_v44 = vadd.f32 %v1146_v16, %v2685_v22  ;;  %v1899_v10 = vpop.f32.mrb[26].mxu1 }
 0x258   : > { %v1805_v48 = vpack.c.bf16 %v1155_v15, %v1155_v15  ;;  %v1158_v7 = vadd.f32 %v1899_v10, %v2685_v22  ;;  %v1149_v63 = vpop.f32.mrb[27].mxu1 }
 0x259   : > { %1587 = vst [vmem:[%s2636_s11 + $0x9c] sm:$0xff] %v1810_v43  ;;  %v1801_v25 = vpack.c.bf16 %v1147_v44, %v1147_v44  ;;  %v1150_v40 = vadd.f32 %v1149_v63, %v2685_v22  ;;  %v991_v27 = vpop.f32.mrb[28].mxu0 }
 0x25a   : > { %1582 = vst [vmem:[%s2636_s11 + $0x80] sm:$0xf] %v1805_v48  ;;  %v1807_v51 = vpack.c.bf16 %v1158_v7, %v1158_v7  ;;  %v992_v0 = vadd.f32 %v991_v27, %v2625_v14  ;;  %v993_v53 = vpop.f32.mrb[29].mxu0 }
 0x25b   : > { %1578 = vst [vmem:[%s2636_s11 + $0x68] sm:$0xf] %v1801_v25  ;;  %v1803_v11 = vpack.c.bf16 %v1150_v40, %v1150_v40  ;;  %v994_v3 = vadd.f32 %v993_v53, %v2628_v30  ;;  %v995_v56 = vpop.f32.mrb[30].mxu0 }
 0x25c   : > { %1584 = vst [vmem:[%s2636_s11 + $0x8c] sm:$0xf] %v1807_v51  ;;  %v996_v57 = vadd.f32 %v995_v56, %v2625_v14  ;;  %v997_v21 = vpop.f32.mrb[31].mxu0 }
 0x25d   : > { %1580 = vst [vmem:[%s2636_s11 + $0x74] sm:$0xf] %v1803_v11  ;;  %v1812_v60 = vpack.c.bf16 %v994_v3, %v992_v0  ;;  %v998_v9 = vadd.f32 %v997_v21, %v2628_v30  ;;  %v1902_v12 = vpop.f32.mrb[28].mxu1 }
 0x25e   : > { %v1171_v49 = vadd.f32 %v1902_v12, %v2685_v22  ;;  %v1162_v50 = vpop.f32.mrb[29].mxu1 }
 0x25f   : > { %1589 = vst [vmem:[%s2636_s11 + $0xa8] sm:$0xff] %v1812_v60  ;;  %v1814_v17 = vpack.c.bf16 %v998_v9, %v996_v57  ;;  %v1163_v23 = vadd.f32 %v1162_v50, %v2685_v22  ;;  %v1903_v20 = vpop.f32.mrb[30].mxu1 }
 0x260   : > { %v1813_v47 = vpack.c.bf16 %v1171_v49, %v1171_v49  ;;  %v1174_v59 = vadd.f32 %v1903_v20, %v2685_v22  ;;  %v1165_v32 = vpop.f32.mrb[31].mxu1 }
 0x261   : > { %1591 = vst [vmem:[%s2636_s11 + $0xb4] sm:$0xff] %v1814_v17  ;;  %v1809_v61 = vpack.c.bf16 %v1163_v23, %v1163_v23  ;;  %v1166_v26 = vadd.f32 %v1165_v32, %v2685_v22  ;;  %v1001_v13 = vpop.f32.mrb[32].mxu0 }
 0x262   : > { %1590 = vst [vmem:[%s2636_s11 + $0xb0] sm:$0xf] %v1813_v47  ;;  %v1815_v33 = vpack.c.bf16 %v1174_v59, %v1174_v59  ;;  %v1002_v58 = vadd.f32 %v1001_v13, %v2625_v14  ;;  %v1003_v42 = vpop.f32.mrb[33].mxu0 }
 0x263   : > { %1586 = vst [vmem:[%s2636_s11 + $0x98] sm:$0xf] %v1809_v61  ;;  %v1811_v1 = vpack.c.bf16 %v1166_v26, %v1166_v26  ;;  %v1004_v6 = vadd.f32 %v1003_v42, %v2628_v30  ;;  %v1005_v2 = vpop.f32.mrb[34].mxu0 }
 0x264   : > { %1592 = vst [vmem:[%s2636_s11 + $0xbc] sm:$0xf] %v1815_v33  ;;  %v1006_v18 = vadd.f32 %v1005_v2, %v2625_v14  ;;  %v1007_v54 = vpop.f32.mrb[35].mxu0 }
 0x265   : > { %1588 = vst [vmem:[%s2636_s11 + $0xa4] sm:$0xf] %v1811_v1  ;;  %v1816_v4 = vpack.c.bf16 %v1004_v6, %v1002_v58  ;;  %v1008_v39 = vadd.f32 %v1007_v54, %v2628_v30  ;;  %v1906_v28 = vpop.f32.mrb[32].mxu1 }
 0x266   : > { %v1187_v29 = vadd.f32 %v1906_v28, %v2685_v22  ;;  %v1178_v5 = vpop.f32.mrb[33].mxu1 }
 0x267   : > { %1593 = vst [vmem:[%s2636_s11 + $0xc0] sm:$0xff] %v1816_v4  ;;  %v1818_v31 = vpack.c.bf16 %v1008_v39, %v1006_v18  ;;  %v1179_v35 = vadd.f32 %v1178_v5, %v2685_v22  ;;  %v1907_v8 = vpop.f32.mrb[34].mxu1 }
 0x268   : > { %v1821_v38 = vpack.c.bf16 %v1187_v29, %v1187_v29  ;;  %v1190_v55 = vadd.f32 %v1907_v8, %v2685_v22  ;;  %v1181_v34 = vpop.f32.mrb[35].mxu1 }
 0x269   : > { %1595 = vst [vmem:[%s2636_s11 + $0xcc] sm:$0xff] %v1818_v31  ;;  %v1817_v36 = vpack.c.bf16 %v1179_v35, %v1179_v35  ;;  %v1182_v37 = vadd.f32 %v1181_v34, %v2685_v22  ;;  %v1011_v24 = vpop.f32.mrb[36].mxu0 }
 0x26a   : > { %1598 = vst [vmem:[%s2636_s11 + $0xe0] sm:$0xf] %v1821_v38  ;;  %v1823_v52 = vpack.c.bf16 %v1190_v55, %v1190_v55  ;;  %v1012_v62 = vadd.f32 %v1011_v24, %v2625_v14  ;;  %v1013_v46 = vpop.f32.mrb[37].mxu0 }
 0x26b   : > { %1594 = vst [vmem:[%s2636_s11 + $0xc8] sm:$0xf] %v1817_v36  ;;  %v1819_v41 = vpack.c.bf16 %v1182_v37, %v1182_v37  ;;  %v1014_v19 = vadd.f32 %v1013_v46, %v2628_v30  ;;  %v1015_v45 = vpop.f32.mrb[38].mxu0 }
 0x26c   : > { %1600 = vst [vmem:[%s2636_s11 + $0xec] sm:$0xf] %v1823_v52  ;;  %v1016_v15 = vadd.f32 %v1015_v45, %v2625_v14  ;;  %v1017_v16 = vpop.f32.mrb[39].mxu0 }
 0x26d   : > { %1596 = vst [vmem:[%s2636_s11 + $0xd4] sm:$0xf] %v1819_v41  ;;  %v1820_v43 = vpack.c.bf16 %v1014_v19, %v1012_v62  ;;  %v1018_v44 = vadd.f32 %v1017_v16, %v2628_v30  ;;  %v1910_v10 = vpop.f32.mrb[36].mxu1 }
 0x26e   : > { %v1203_v48 = vadd.f32 %v1910_v10, %v2685_v22  ;;  %v1194_v7 = vpop.f32.mrb[37].mxu1 }
 0x26f   : > { %1597 = vst [vmem:[%s2636_s11 + $0xd8] sm:$0xff] %v1820_v43  ;;  %v1822_v63 = vpack.c.bf16 %v1018_v44, %v1016_v15  ;;  %v1195_v25 = vadd.f32 %v1194_v7, %v2685_v22  ;;  %v1911_v40 = vpop.f32.mrb[38].mxu1 }
 0x270   : > { %v1829_v27 = vpack.c.bf16 %v1203_v48, %v1203_v48  ;;  %v1206_v51 = vadd.f32 %v1911_v40, %v2685_v22  ;;  %v1197_v0 = vpop.f32.mrb[39].mxu1 }
 0x271   : > { %1599 = vst [vmem:[%s2636_s11 + $0xe4] sm:$0xff] %v1822_v63  ;;  %v1825_v53 = vpack.c.bf16 %v1195_v25, %v1195_v25  ;;  %v1198_v11 = vadd.f32 %v1197_v0, %v2685_v22  ;;  %v1021_v3 = vpop.f32.mrb[40].mxu0 }
 0x272   : > { %1606 = vst [vmem:[%s2636_s11 + $0x110] sm:$0xf] %v1829_v27  ;;  %v1831_v56 = vpack.c.bf16 %v1206_v51, %v1206_v51  ;;  %v1022_v57 = vadd.f32 %v1021_v3, %v2625_v14  ;;  %v1023_v21 = vpop.f32.mrb[41].mxu0 }
 0x273   : > { %1602 = vst [vmem:[%s2636_s11 + $0xf8] sm:$0xf] %v1825_v53  ;;  %v1827_v60 = vpack.c.bf16 %v1198_v11, %v1198_v11  ;;  %v1024_v9 = vadd.f32 %v1023_v21, %v2628_v30  ;;  %v1025_v12 = vpop.f32.mrb[42].mxu0 }
 0x274   : > { %1608 = vst [vmem:[%s2636_s11 + $0x11c] sm:$0xf] %v1831_v56  ;;  %v1026_v49 = vadd.f32 %v1025_v12, %v2625_v14  ;;  %v1027_v50 = vpop.f32.mrb[43].mxu0 }
 0x275   : > { %1604 = vst [vmem:[%s2636_s11 + $0x104] sm:$0xf] %v1827_v60  ;;  %v1824_v17 = vpack.c.bf16 %v1024_v9, %v1022_v57  ;;  %v1028_v23 = vadd.f32 %v1027_v50, %v2628_v30  ;;  %v1914_v20 = vpop.f32.mrb[40].mxu1 }
 0x276   : > { %v1219_v47 = vadd.f32 %v1914_v20, %v2685_v22  ;;  %v1210_v59 = vpop.f32.mrb[41].mxu1 }
 0x277   : > { %1601 = vst [vmem:[%s2636_s11 + $0xf0] sm:$0xff] %v1824_v17  ;;  %v1826_v32 = vpack.c.bf16 %v1028_v23, %v1026_v49  ;;  %v1211_v61 = vadd.f32 %v1210_v59, %v2685_v22  ;;  %v1915_v26 = vpop.f32.mrb[42].mxu1 }
 0x278   : > { %v1837_v13 = vpack.c.bf16 %v1219_v47, %v1219_v47  ;;  %v1222_v33 = vadd.f32 %v1915_v26, %v2685_v22  ;;  %v1213_v58 = vpop.f32.mrb[43].mxu1 }
 0x279   : > { %1603 = vst [vmem:[%s2636_s11 + $0xfc] sm:$0xff] %v1826_v32  ;;  %v1833_v42 = vpack.c.bf16 %v1211_v61, %v1211_v61  ;;  %v1214_v1 = vadd.f32 %v1213_v58, %v2685_v22  ;;  %v1031_v6 = vpop.f32.mrb[44].mxu0 }
 0x27a   : > { %1614 = vst [vmem:[%s2636_s11 + $0x140] sm:$0xf] %v1837_v13  ;;  %v1839_v2 = vpack.c.bf16 %v1222_v33, %v1222_v33  ;;  %v1032_v18 = vadd.f32 %v1031_v6, %v2625_v14  ;;  %v1033_v54 = vpop.f32.mrb[45].mxu0 }
 0x27b   : > { %1610 = vst [vmem:[%s2636_s11 + $0x128] sm:$0xf] %v1833_v42  ;;  %v1835_v4 = vpack.c.bf16 %v1214_v1, %v1214_v1  ;;  %v1034_v39 = vadd.f32 %v1033_v54, %v2628_v30  ;;  %v1035_v28 = vpop.f32.mrb[46].mxu0 }
 0x27c   : > { %1616 = vst [vmem:[%s2636_s11 + $0x14c] sm:$0xf] %v1839_v2  ;;  %v1036_v29 = vadd.f32 %v1035_v28, %v2625_v14  ;;  %v1037_v5 = vpop.f32.mrb[47].mxu0 }
 0x27d   : > { %1612 = vst [vmem:[%s2636_s11 + $0x134] sm:$0xf] %v1835_v4  ;;  %v1828_v31 = vpack.c.bf16 %v1034_v39, %v1032_v18  ;;  %v1038_v35 = vadd.f32 %v1037_v5, %v2628_v30  ;;  %v1918_v8 = vpop.f32.mrb[44].mxu1 }
 0x27e   : > { %v1235_v38 = vadd.f32 %v1918_v8, %v2685_v22  ;;  %v1226_v55 = vpop.f32.mrb[45].mxu1 }
 0x27f   : > { %1605 = vst [vmem:[%s2636_s11 + $0x108] sm:$0xff] %v1828_v31  ;;  %v1830_v34 = vpack.c.bf16 %v1038_v35, %v1036_v29  ;;  %v1227_v36 = vadd.f32 %v1226_v55, %v2685_v22  ;;  %v1919_v37 = vpop.f32.mrb[46].mxu1 }
 0x280   : > { %v1845_v24 = vpack.c.bf16 %v1235_v38, %v1235_v38  ;;  %v1238_v14 = vadd.f32 %v1919_v37, %v2685_v22  ;;  %v1229_v52 = vpop.f32.mrb[47].mxu1 }
 0x281   : > { %1607 = vst [vmem:[%s2636_s11 + $0x114] sm:$0xff] %v1830_v34  ;;  %v1841_v62 = vpack.c.bf16 %v1227_v36, %v1227_v36  ;;  %v1230_v30 = vadd.f32 %v1229_v52, %v2685_v22 }
 0x282   : > { %1622 = vst [vmem:[%s2636_s11 + $0x170] sm:$0xf] %v1845_v24  ;;  %v1847_v46 = vpack.c.bf16 %v1238_v14, %v1238_v14 }
 0x283   : > { %1618 = vst [vmem:[%s2636_s11 + $0x158] sm:$0xf] %v1841_v62  ;;  %v1843_v41 = vpack.c.bf16 %v1230_v30, %v1230_v30 }
 0x284   : > { %1624 = vst [vmem:[%s2636_s11 + $0x17c] sm:$0xf] %v1847_v46 }
 0x285   : > { %1620 = vst [vmem:[%s2636_s11 + $0x164] sm:$0xf] %v1843_v41 }
 0x286 PF: > { %s15_s18 = sadd.s32 1, %s2048_s18  }
 0x287   : > { %p12_p4 = scmp.ge.s32.totalorder %s15_s18, 4  }
 0x289   :  { %14 = sbr.rel (!%p12_p4) target bundleno = 1 (0x1), region = 70 }

// kernel: transformer_block.4
= control target key start
LH: loop header
LB: loop body
LE: loop exit
PB: predicated region body
PF: predicated region fallthrough
CT: control target
= control target key end

     0   :  { %s2608_s12 = smov 0   ;;  %s2610_s13 = smov 0   ;;  %s3393_s0 = inlined_call_operand.vmem [shape: bf16[2,4,256,32], index: 0, kind: input, shape index: {}]   ;;  %s3394_s1 = inlined_call_operand.vmem [shape: bf16[2,4,256,32], index: 1, kind: input, shape index: {}]   ;;  %s3395_s2 = inlined_call_operand.vmem [shape: bf16[2,4,256,32], index: 2, kind: input, shape index: {}]   ;;  %s3396_s3 = inlined_call_operand.vmem [shape: bf16[2,4,256,32], index: 3, kind: output, shape index: {}]  }
   0x1   :  { %s2612_s14 = smov 0   ;;  %s2614_s15 = smov 0  }
   0x2   :  { %s2616_s16 = smov 0  }
   0x3 LB: > { %s22_s17 = sadd.s32 1, %s2578_s14  ;;  %s25_s18 = sadd.s32 1, %s2582_s15  ;;  %s2586_s16 = sphi %s2616_s16, %s13_s16   ;;  %s2582_s15 = sphi %s2614_s15, %s3484_s15   ;;  %s2578_s14 = sphi %s2612_s14, %s3483_s14   ;;  %s2574_s13 = sphi %s2610_s13, %s3482_s13   ;;  %s2570_s12 = sphi %s2608_s12, %s3481_s12  }
   0x4   : > { %p23_p0 = scmp.ge.s32.totalorder %s22_s17, 4  ;;  %p1957_p1 = scmp.ge.s32.totalorder %s2586_s16, 1 }
   0x5   : > { %p189_p2 = scmp.lt.s32.totalorder %s2586_s16, 9 }
   0x6   : > { %s3486_s17 = smov (%p23_p0, %s22_s17), 0  ;;  %s3488_s18 = smov (!%p23_p0, %s25_s18), %s2582_s15 }
   0x7   : > { %p190_p3 = pnand %p1957_p1, %p189_p2  ;;  %p27_p4 = scmp.ge.s32.totalorder %s3488_s18, 2 }
   0x9   : > { %s3490_s18 = smov (%p27_p4, %s3488_s18), 0  ;;  %193 = sbr.rel (%p190_p3) target bundleno = 1036 (0x40c), region = 32 }
  0x10   : > { %p239_p5 = scmp.lt.s32.totalorder %s2574_s13, 1  ;;  %p241_p6 = scmp.lt.s32.totalorder %s2570_s12, 3  ;;  %vm500_vm0 = vcmask 261120   ;;  %vm1783_vm1 = vcmask 257024  }
  0x12   : > { %s3492_s13 = smov (!%p239_p5, %s2574_s13), 1  ;;  %s3494_s12 = smov (!%p241_p6, %s2570_s12), 3 }
  0x13   : > { %s1959_s19 = sshll.u32 %s3492_s13, 7  ;;  %s1958_s20 = sshll.u32 %s3494_s12, 5 }
  0x14   : > { %s245_s21 = sadd.s32 %s1959_s19, %s1958_s20 }
  0x15   : > { %s2638_s22 = sshll.u32 %s245_s21, 2 }
  0x16   : > { %s2644_s25 = scalar_lea.vmem %s3394_s1, %s2638_s22  ;;  %s2661_s28 = scalar_lea.vmem %s3393_s0, %s2638_s22 }
  0x17   : > { %v2308_v0 = vld [vmem:[%s2644_s25 + $0x40] sm:$0xff]   ;;  %v2310_v2 = vld [vmem:[%s2644_s25 + $0x48] sm:$0xff]   ;;  %v2312_v6 = vld [vmem:[%s2644_s25 + $0x50] sm:$0xff]   ;;  %s2908_s4 = scalar_lea.vmem %s3395_s2, %s2638_s22  ;;  %s3312_s7 = scalar_lea.vmem %s3396_s3, %s2638_s22 }
  0x18   : > { %v2309_v1 = vld [vmem:[%s2644_s25] sm:$0xff]   ;;  %2260 = vmatprep.subr.msk.bf16.mxu0 %vm500_vm0, %v2308_v0  ;;  %v2311_v4 = vld [vmem:[%s2644_s25 + $0x8] sm:$0xff]   ;;  %v2313_v7 = vld [vmem:[%s2644_s25 + $0x10] sm:$0xff]  }
  0x19   : > { %v550_v3 = vsel %vm500_vm0, %v2309_v1, 0  ;;  %v553_v5 = vsel %vm500_vm0, %v2311_v4, 0  ;;  %v2324_v8 = vld [vmem:[%s2661_s28] sm:$0xff]   ;;  %v556_v9 = vsel %vm500_vm0, %v2313_v7, 0  ;;  %v2314_v10 = vld [vmem:[%s2644_s25 + $0x58] sm:$0xff]   ;;  %v2318_v16 = vld [vmem:[%s2644_s25 + $0x68] sm:$0xff]  }
  0x1a   : > { %2101 = vmatpush3.bf16.xpose.msra.mxu0 %v550_v3  ;;  %2116 = vmatprep.mubr.msk.bf16.mxu0 %vm500_vm0, %v2324_v8  ;;  %v2315_v11 = vld [vmem:[%s2644_s25 + $0x18] sm:$0xff]   ;;  %v2316_v13 = vld [vmem:[%s2644_s25 + $0x60] sm:$0xff]   ;;  %v2319_v17 = vld [vmem:[%s2644_s25 + $0x28] sm:$0xff]  }
  0x1b   : > { %2261 = vmatprep.subr.msk.bf16.mxu0 %vm500_vm0, %v2310_v2  ;;  %v559_v12 = vsel %vm500_vm0, %v2315_v11, 0  ;;  %v2317_v14 = vld [vmem:[%s2644_s25 + $0x20] sm:$0xff]   ;;  %v565_v18 = vsel %vm500_vm0, %v2319_v17, 0  ;;  %v2320_v19 = vld [vmem:[%s2644_s25 + $0x70] sm:$0xff]   ;;  %v2322_v22 = vld [vmem:[%s2644_s25 + $0x78] sm:$0xff]  }
  0x1c   : > { %v562_v15 = vsel %vm500_vm0, %v2317_v14, 0  ;;  %v2321_v20 = vld [vmem:[%s2644_s25 + $0x30] sm:$0xff]   ;;  %v2323_v23 = vld [vmem:[%s2644_s25 + $0x38] sm:$0xff]   ;;  %v2325_v25 = vld [vmem:[%s2661_s28 + $0x8] sm:$0xff]  }
  0x1d   : > { %v568_v21 = vsel %vm500_vm0, %v2321_v20, 0  ;;  %v571_v24 = vsel %vm500_vm0, %v2323_v23, 0  ;;  %v2326_v26 = vld [vmem:[%s2661_s28 + $0x10] sm:$0xff]   ;;  %v2327_v27 = vld [vmem:[%s2661_s28 + $0x18] sm:$0xff]   ;;  %v2328_v28 = vld [vmem:[%s2661_s28 + $0x20] sm:$0xff]  }
  0x1e   : > { %v2329_v29 = vld [vmem:[%s2661_s28 + $0x28] sm:$0xff]   ;;  %v2330_v30 = vld [vmem:[%s2661_s28 + $0x30] sm:$0xff]   ;;  %v2331_v31 = vld [vmem:[%s2661_s28 + $0x38] sm:$0xff]  }
  0x1f   : > { %v2332_v32 = vld [vmem:[%s2661_s28 + $0x40] sm:$0xff]   ;;  %v2333_v33 = vld [vmem:[%s2661_s28 + $0x48] sm:$0xff]   ;;  %v2334_v34 = vld [vmem:[%s2661_s28 + $0x50] sm:$0xff]  }
  0x20   : > { %v2335_v35 = vld [vmem:[%s2661_s28 + $0x58] sm:$0xff]   ;;  %v2336_v36 = vld [vmem:[%s2661_s28 + $0x60] sm:$0xff]   ;;  %v2337_v37 = vld [vmem:[%s2661_s28 + $0x68] sm:$0xff]  }
  0x21   : > { %v2338_v38 = vld [vmem:[%s2661_s28 + $0x70] sm:$0xff]   ;;  %v2339_v39 = vld [vmem:[%s2661_s28 + $0x78] sm:$0xff]  }
  0x22   : > { %2103 = vmatpush3.bf16.xpose.msra.mxu0 %v553_v5 }
  0x23   : > { %2262 = vmatprep.subr.msk.bf16.mxu0 %vm500_vm0, %v2312_v6 }
  0x2a   : > { %2105 = vmatpush3.bf16.xpose.msra.mxu0 %v556_v9 }
  0x2b   : > { %2263 = vmatprep.subr.msk.bf16.mxu0 %vm500_vm0, %v2314_v10 }
  0x32   : > { %2107 = vmatpush3.bf16.xpose.msra.mxu0 %v559_v12 }
  0x33   : > { %2264 = vmatprep.subr.msk.bf16.mxu0 %vm500_vm0, %v2316_v13 }
  0x3a   : > { %2109 = vmatpush3.bf16.xpose.msra.mxu0 %v562_v15 }
  0x3b   : > { %2265 = vmatprep.subr.msk.bf16.mxu0 %vm500_vm0, %v2318_v16 }
  0x42   : > { %2111 = vmatpush3.bf16.xpose.msra.mxu0 %v565_v18 }
  0x43   : > { %2266 = vmatprep.subr.msk.bf16.mxu0 %vm500_vm0, %v2320_v19 }
  0x4a   : > { %2113 = vmatpush3.bf16.xpose.msra.mxu0 %v568_v21 }
  0x4b   : > { %2267 = vmatprep.subr.msk.bf16.mxu0 %vm500_vm0, %v2322_v22 }
  0x52   : > { %2115 = vmatpush3.bf16.xpose.msra.mxu0 %v571_v24 }
  0x59   : > { %2117 = vmatmul.mubr.msk.bf16.vlgmr.msra.gmra.mrb[0].mxu0 %vm500_vm0, %v2324_v8 }
  0x5a   : > { %2118 = vmatprep.mubr.msk.bf16.mxu0 %vm500_vm0, %v2325_v25 }
  0x61   : > { %2119 = vmatmul.mubr.msk.bf16.gmra.mrb[4].mxu0 %vm500_vm0, %v2325_v25 }
  0x62   : > { %2120 = vmatprep.mubr.msk.bf16.mxu0 %vm500_vm0, %v2326_v26 }
  0x69   : > { %2121 = vmatmul.mubr.msk.bf16.gmra.mrb[8].mxu0 %vm500_vm0, %v2326_v26 }
  0x6a   : > { %2122 = vmatprep.mubr.msk.bf16.mxu0 %vm500_vm0, %v2327_v27 }
  0x71   : > { %2123 = vmatmul.mubr.msk.bf16.gmra.mrb[12].mxu0 %vm500_vm0, %v2327_v27 }
  0x72   : > { %2124 = vmatprep.mubr.msk.bf16.mxu0 %vm500_vm0, %v2328_v28 }
  0x79   : > { %2125 = vmatmul.mubr.msk.bf16.gmra.mrb[16].mxu0 %vm500_vm0, %v2328_v28 }
  0x7a   : > { %2126 = vmatprep.mubr.msk.bf16.mxu0 %vm500_vm0, %v2329_v29 }
  0x81   : > { %2127 = vmatmul.mubr.msk.bf16.gmra.mrb[20].mxu0 %vm500_vm0, %v2329_v29 }
  0x82   : > { %2128 = vmatprep.mubr.msk.bf16.mxu0 %vm500_vm0, %v2330_v30 }
  0x89   : > { %2129 = vmatmul.mubr.msk.bf16.gmra.mrb[24].mxu0 %vm500_vm0, %v2330_v30 }
  0x8a   : > { %2130 = vmatprep.mubr.msk.bf16.mxu0 %vm500_vm0, %v2331_v31 }
  0x91   : > { %2131 = vmatmul.mubr.msk.bf16.gmra.mrb[28].mxu0 %vm500_vm0, %v2331_v31 }
  0x92   : > { %2132 = vmatprep.mubr.msk.bf16.mxu0 %vm500_vm0, %v2332_v32 }
  0x99   : > { %2133 = vmatmul.mubr.msk.bf16.gmra.mrb[32].mxu0 %vm500_vm0, %v2332_v32 }
  0x9a   : > { %2134 = vmatprep.mubr.msk.bf16.mxu0 %vm500_vm0, %v2333_v33 }
  0xa1   : > { %2135 = vmatmul.mubr.msk.bf16.gmra.mrb[36].mxu0 %vm500_vm0, %v2333_v33 }
  0xa2   : > { %2136 = vmatprep.mubr.msk.bf16.mxu0 %vm500_vm0, %v2334_v34 }
  0xa9   : > { %2137 = vmatmul.mubr.msk.bf16.gmra.mrb[40].mxu0 %vm500_vm0, %v2334_v34 }
  0xaa   : > { %2138 = vmatprep.mubr.msk.bf16.mxu0 %vm500_vm0, %v2335_v35 }
  0xb1   : > { %2139 = vmatmul.mubr.msk.bf16.gmra.mrb[44].mxu0 %vm500_vm0, %v2335_v35 }
  0xb2   : > { %2140 = vmatprep.mubr.msk.bf16.mxu0 %vm500_vm0, %v2336_v36 }
  0xb9   : > { %2141 = vmatmul.mubr.msk.bf16.gmra.mrb[48].mxu0 %vm500_vm0, %v2336_v36 }
  0xba   : > { %2142 = vmatprep.mubr.msk.bf16.mxu0 %vm500_vm0, %v2337_v37 }
  0xc1   : > { %2143 = vmatmul.mubr.msk.bf16.gmra.mrb[52].mxu0 %vm500_vm0, %v2337_v37 }
  0xc2   : > { %2144 = vmatprep.mubr.msk.bf16.mxu0 %vm500_vm0, %v2338_v38 }
  0xc9   : > { %2145 = vmatmul.mubr.msk.bf16.gmra.mrb[56].mxu0 %vm500_vm0, %v2338_v38 }
  0xca   : > { %2146 = vmatprep.mubr.msk.bf16.mxu0 %vm500_vm0, %v2339_v39 }
  0xd1   : > { %2147 = vmatmul.mubr.msk.bf16.gmra.mrb[60].mxu0 %vm500_vm0, %v2339_v39 }
 0x12c   : > { %v631_v40 = vpop.f32.mrb[0].mxu0 }
 0x12d   : > { %v2732_v41 = vmul.f32 0.17677669, %v631_v40  ;;  %v633_v42 = vpop.f32.mrb[1].mxu0 }
 0x12e   : > { %v2734_v43 = vmul.f32 0.17677669, %v633_v42  ;;  %v635_v44 = vpop.f32.mrb[2].mxu0 }
 0x12f   : > { %v637_v45 = vpop.f32.mrb[3].mxu0  ;;  %v2736_v46 = vmul.f32 0.17677669, %v635_v44 }
 0x130   : > { %v2738_v47 = vmul.f32 0.17677669, %v637_v45  ;;  %v854_v48 = vmax.f32 %v2732_v41, %v2734_v43 }
 0x132   : > { %855 = vmax.xlane.f32.xlu0 %v854_v48  ;;  %v857_v50 = vmax.f32 %v2736_v46, %v2738_v47 }
 0x134   : > { %v641_v49 = vpop.f32.mrb[4].mxu0 }
 0x135   : > { %v2744_v51 = vmul.f32 0.17677669, %v641_v49  ;;  %v643_v52 = vpop.f32.mrb[5].mxu0 }
 0x136   : > { %v2746_v53 = vmul.f32 0.17677669, %v643_v52  ;;  %858 = vmax.xlane.f32.xlu0 %v857_v50  ;;  %v645_v54 = vpop.f32.mrb[6].mxu0 }
 0x137   : > { %v647_v55 = vpop.f32.mrb[7].mxu0  ;;  %v2748_v56 = vmul.f32 0.17677669, %v645_v54 }
 0x138   : > { %v2750_v57 = vmul.f32 0.17677669, %v647_v55  ;;  %v860_v58 = vmax.f32 %v2744_v51, %v2746_v53 }
 0x13a   : > { %861 = vmax.xlane.f32.xlu1 %v860_v58  ;;  %v863_v60 = vmax.f32 %v2748_v56, %v2750_v57 }
 0x13c   : > { %v651_v59 = vpop.f32.mrb[8].mxu0 }
 0x13d   : > { %v2756_v61 = vmul.f32 0.17677669, %v651_v59  ;;  %v653_v62 = vpop.f32.mrb[9].mxu0 }
 0x13e   : > { %v2758_v63 = vmul.f32 0.17677669, %v653_v62  ;;  %864 = vmax.xlane.f32.xlu1 %v863_v60  ;;  %v655_v0 = vpop.f32.mrb[10].mxu0 }
 0x13f   : > { %v2760_v1 = vmul.f32 0.17677669, %v655_v0  ;;  %v657_v2 = vpop.f32.mrb[11].mxu0 }
 0x140   : > { %v2762_v3 = vmul.f32 0.17677669, %v657_v2  ;;  %v866_v4 = vmax.f32 %v2756_v61, %v2758_v63 }
 0x142   : > { %867 = vmax.xlane.f32.xlu0 %v866_v4  ;;  %v869_v5 = vmax.f32 %v2760_v1, %v2762_v3 }
 0x144   : > { %870 = vmax.xlane.f32.xlu1 %v869_v5  ;;  %v661_v6 = vpop.f32.mrb[12].mxu0 }
 0x145   : > { %v2768_v7 = vmul.f32 0.17677669, %v661_v6  ;;  %v663_v8 = vpop.f32.mrb[13].mxu0 }
 0x146   : > { %v2770_v9 = vmul.f32 0.17677669, %v663_v8  ;;  %v665_v10 = vpop.f32.mrb[14].mxu0 }
 0x147   : > { %v2772_v11 = vmul.f32 0.17677669, %v665_v10  ;;  %v667_v12 = vpop.f32.mrb[15].mxu0 }
 0x148   : > { %v2774_v13 = vmul.f32 0.17677669, %v667_v12  ;;  %v872_v14 = vmax.f32 %v2768_v7, %v2770_v9 }
 0x14a   : > { %873 = vmax.xlane.f32.xlu0 %v872_v14  ;;  %v875_v15 = vmax.f32 %v2772_v11, %v2774_v13 }
 0x14c   : > { %876 = vmax.xlane.f32.xlu1 %v875_v15  ;;  %v671_v16 = vpop.f32.mrb[16].mxu0 }
 0x14d   : > { %v2780_v17 = vmul.f32 0.17677669, %v671_v16  ;;  %v673_v18 = vpop.f32.mrb[17].mxu0 }
 0x14e   : > { %v2782_v19 = vmul.f32 0.17677669, %v673_v18  ;;  %v675_v20 = vpop.f32.mrb[18].mxu0 }
 0x14f   : > { %v2784_v21 = vmul.f32 0.17677669, %v675_v20  ;;  %v677_v22 = vpop.f32.mrb[19].mxu0 }
 0x150   : > { %v2786_v23 = vmul.f32 0.17677669, %v677_v22  ;;  %v878_v24 = vmax.f32 %v2780_v17, %v2782_v19 }
 0x152   : > { %879 = vmax.xlane.f32.xlu0 %v878_v24  ;;  %v881_v25 = vmax.f32 %v2784_v21, %v2786_v23 }
 0x154   : > { %882 = vmax.xlane.f32.xlu1 %v881_v25  ;;  %v681_v26 = vpop.f32.mrb[20].mxu0 }
 0x155   : > { %v2792_v27 = vmul.f32 0.17677669, %v681_v26  ;;  %v683_v28 = vpop.f32.mrb[21].mxu0 }
 0x156   : > { %v2794_v29 = vmul.f32 0.17677669, %v683_v28  ;;  %v685_v30 = vpop.f32.mrb[22].mxu0 }
 0x157   : > { %v2796_v31 = vmul.f32 0.17677669, %v685_v30  ;;  %v687_v32 = vpop.f32.mrb[23].mxu0 }
 0x158   : > { %v2798_v33 = vmul.f32 0.17677669, %v687_v32  ;;  %v884_v34 = vmax.f32 %v2792_v27, %v2794_v29 }
 0x15a   : > { %885 = vmax.xlane.f32.xlu0 %v884_v34  ;;  %v887_v35 = vmax.f32 %v2796_v31, %v2798_v33 }
 0x15c   : > { %888 = vmax.xlane.f32.xlu1 %v887_v35  ;;  %v691_v36 = vpop.f32.mrb[24].mxu0 }
 0x15d   : > { %v2804_v37 = vmul.f32 0.17677669, %v691_v36  ;;  %v693_v38 = vpop.f32.mrb[25].mxu0 }
 0x15e   : > { %v2806_v39 = vmul.f32 0.17677669, %v693_v38  ;;  %v695_v40 = vpop.f32.mrb[26].mxu0 }
 0x15f   : > { %v2808_v42 = vmul.f32 0.17677669, %v695_v40  ;;  %v697_v44 = vpop.f32.mrb[27].mxu0 }
 0x160   : > { %v2810_v45 = vmul.f32 0.17677669, %v697_v44  ;;  %v890_v48 = vmax.f32 %v2804_v37, %v2806_v39 }
 0x162   : > { %891 = vmax.xlane.f32.xlu0 %v890_v48  ;;  %v893_v49 = vmax.f32 %v2808_v42, %v2810_v45 }
 0x164   : > { %894 = vmax.xlane.f32.xlu1 %v893_v49  ;;  %v701_v50 = vpop.f32.mrb[28].mxu0 }
 0x165   : > { %v2816_v52 = vmul.f32 0.17677669, %v701_v50  ;;  %v703_v54 = vpop.f32.mrb[29].mxu0 }
 0x166   : > { %v2818_v55 = vmul.f32 0.17677669, %v703_v54  ;;  %v705_v58 = vpop.f32.mrb[30].mxu0 }
 0x167   : > { %v2820_v59 = vmul.f32 0.17677669, %v705_v58  ;;  %v707_v60 = vpop.f32.mrb[31].mxu0 }
 0x168   : > { %v2822_v62 = vmul.f32 0.17677669, %v707_v60  ;;  %v896_v0 = vmax.f32 %v2816_v52, %v2818_v55 }
 0x16a   : > { %897 = vmax.xlane.f32.xlu0 %v896_v0  ;;  %v899_v2 = vmax.f32 %v2820_v59, %v2822_v62 }
 0x16c   : > { %900 = vmax.xlane.f32.xlu1 %v899_v2  ;;  %v711_v4 = vpop.f32.mrb[32].mxu0 }
 0x16d   : > { %v2828_v5 = vmul.f32 0.17677669, %v711_v4  ;;  %v713_v6 = vpop.f32.mrb[33].mxu0 }
 0x16e   : > { %v2830_v8 = vmul.f32 0.17677669, %v713_v6  ;;  %v715_v10 = vpop.f32.mrb[34].mxu0 }
 0x16f   : > { %v2832_v12 = vmul.f32 0.17677669, %v715_v10  ;;  %v717_v14 = vpop.f32.mrb[35].mxu0 }
 0x170   : > { %v2834_v15 = vmul.f32 0.17677669, %v717_v14  ;;  %v902_v16 = vmax.f32 %v2828_v5, %v2830_v8 }
 0x171   : > { %3425 = vst [vmem:[#allocation2_spill] sm:$0xff] %v2832_v12 }
 0x172   : > { %3426 = vst [vmem:[#allocation3_spill] sm:$0xff] %v2834_v15  ;;  %903 = vmax.xlane.f32.xlu0 %v902_v16  ;;  %v905_v18 = vmax.f32 %v2832_v12, %v2834_v15 }
 0x174   : > { %906 = vmax.xlane.f32.xlu1 %v905_v18  ;;  %v721_v20 = vpop.f32.mrb[36].mxu0 }
 0x175   : > { %v2840_v22 = vmul.f32 0.17677669, %v721_v20  ;;  %v723_v24 = vpop.f32.mrb[37].mxu0 }
 0x176   : > { %v2842_v25 = vmul.f32 0.17677669, %v723_v24  ;;  %v725_v26 = vpop.f32.mrb[38].mxu0 }
 0x177   : > { %3427 = vst [vmem:[#allocation4_spill] sm:$0xff] %v2840_v22  ;;  %v2844_v28 = vmul.f32 0.17677669, %v725_v26  ;;  %v727_v30 = vpop.f32.mrb[39].mxu0 }
 0x178   : > { %3428 = vst [vmem:[#allocation5_spill] sm:$0xff] %v2842_v25  ;;  %v2846_v32 = vmul.f32 0.17677669, %v727_v30  ;;  %v908_v34 = vmax.f32 %v2840_v22, %v2842_v25 }
 0x179   : > { %3429 = vst [vmem:[#allocation6_spill] sm:$0xff] %v2844_v28 }
 0x17a   : > { %3430 = vst [vmem:[#allocation7_spill] sm:$0xff] %v2846_v32  ;;  %909 = vmax.xlane.f32.xlu0 %v908_v34  ;;  %v911_v35 = vmax.f32 %v2844_v28, %v2846_v32 }
 0x17c   : > { %912 = vmax.xlane.f32.xlu1 %v911_v35  ;;  %v731_v36 = vpop.f32.mrb[40].mxu0 }
 0x17d   : > { %v2852_v38 = vmul.f32 0.17677669, %v731_v36  ;;  %v733_v40 = vpop.f32.mrb[41].mxu0 }
 0x17e   : > { %v2854_v44 = vmul.f32 0.17677669, %v733_v40  ;;  %v735_v48 = vpop.f32.mrb[42].mxu0 }
 0x17f   : > { %3431 = vst [vmem:[#allocation8_spill] sm:$0xff] %v2852_v38  ;;  %v2856_v49 = vmul.f32 0.17677669, %v735_v48  ;;  %v737_v50 = vpop.f32.mrb[43].mxu0 }
 0x180   : > { %3432 = vst [vmem:[#allocation9_spill] sm:$0xff] %v2854_v44  ;;  %v2858_v54 = vmul.f32 0.17677669, %v737_v50  ;;  %v914_v58 = vmax.f32 %v2852_v38, %v2854_v44 }
 0x181   : > { %3433 = vst [vmem:[#allocation10_spill] sm:$0xff] %v2856_v49 }
 0x182   : > { %3434 = vst [vmem:[#allocation11_spill] sm:$0xff] %v2858_v54  ;;  %915 = vmax.xlane.f32.xlu0 %v914_v58  ;;  %v917_v60 = vmax.f32 %v2856_v49, %v2858_v54  ;;  %v2344_v54 = vld [vmem:[%s2908_s4 + $0x50] sm:$0xff]  }
 0x183   : > { %v2345_v49 = vld [vmem:[%s2908_s4 + $0x10] sm:$0xff]  }
 0x184   : > { %918 = vmax.xlane.f32.xlu1 %v917_v60  ;;  %v741_v0 = vpop.f32.mrb[44].mxu0 }
 0x185   : > { %v2864_v2 = vmul.f32 0.17677669, %v741_v0  ;;  %v743_v4 = vpop.f32.mrb[45].mxu0 }
 0x186   : > { %v2866_v6 = vmul.f32 0.17677669, %v743_v4  ;;  %v745_v10 = vpop.f32.mrb[46].mxu0 }
 0x187   : > { %3435 = vst [vmem:[#allocation12_spill] sm:$0xff] %v2864_v2  ;;  %v2868_v14 = vmul.f32 0.17677669, %v745_v10  ;;  %v747_v16 = vpop.f32.mrb[47].mxu0 }
 0x188   : > { %3436 = vst [vmem:[#allocation13_spill] sm:$0xff] %v2866_v6  ;;  %v2870_v18 = vmul.f32 0.17677669, %v747_v16  ;;  %v920_v20 = vmax.f32 %v2864_v2, %v2866_v6  ;;  %v2342_v6 = vld [vmem:[%s2908_s4 + $0x48] sm:$0xff]  }
 0x189   : > { %3437 = vst [vmem:[#allocation14_spill] sm:$0xff] %v2868_v14  ;;  %v2343_v2 = vld [vmem:[%s2908_s4 + $0x8] sm:$0xff]  }
 0x18a   : > { %3438 = vst [vmem:[#allocation15_spill] sm:$0xff] %v2870_v18  ;;  %921 = vmax.xlane.f32.xlu0 %v920_v20  ;;  %v923_v24 = vmax.f32 %v2868_v14, %v2870_v18  ;;  %v2340_v18 = vld [vmem:[%s2908_s4 + $0x40] sm:$0xff]  }
 0x18b   : > { %v2341_v14 = vld [vmem:[%s2908_s4] sm:$0xff]   ;;  %2148 = vmatprep.subr.bf16.mxu1 %v2340_v18 }
 0x18c   : > { %924 = vmax.xlane.f32.xlu1 %v923_v24  ;;  %v751_v26 = vpop.f32.mrb[48].mxu0  ;;  %2149 = vmatpush3.bf16.msra.mxu1 %v2341_v14 }
 0x18d   : > { %v753_v30 = vpop.f32.mrb[49].mxu0  ;;  %2150 = vmatprep.subr.bf16.mxu1 %v2342_v6 }
 0x18e   : > { %v2876_v34 = vpop.f32.mrb[50].mxu0 }
 0x18f   : > { %v2878_v35 = vpop.f32.mrb[51].mxu0 }
 0x190   : > { %2151 = vmatpush3.bf16.msra.mxu1 %v2343_v2 }
 0x191   : > { %2152 = vmatprep.subr.bf16.mxu1 %v2344_v54 }
 0x194   : > { %v2880_v36 = vpop.f32.mrb[52].mxu0  ;;  %2153 = vmatpush3.bf16.msra.mxu1 %v2345_v49 }
 0x195   : > { %v2882_v40 = vpop.f32.mrb[53].mxu0 }
 0x196   : > { %v2884_v48 = vpop.f32.mrb[54].mxu0 }
 0x197   : > { %v2886_v50 = vpop.f32.mrb[55].mxu0 }
 0x19c   : > { %v2888_v58 = vpop.f32.mrb[56].mxu0 }
 0x19d   : > { %v2890_v60 = vpop.f32.mrb[57].mxu0 }
 0x19e   : > { %v2892_v0 = vpop.f32.mrb[58].mxu0 }
 0x19f   : > { %v2894_v4 = vpop.f32.mrb[59].mxu0 }
 0x1a4   : > { %v2896_v10 = vpop.f32.mrb[60].mxu0 }
 0x1a5   : > { %v2898_v16 = vpop.f32.mrb[61].mxu0 }
 0x1a6   : > { %v2900_v20 = vpop.f32.mrb[62].mxu0 }
 0x1a7   : > { %v2902_v24 = vpop.f32.mrb[63].mxu0 }
 0x1bf   : > { %v856_v44 = vpop.xlane.xlu0 %855 }
 0x1c0   : > { %v950_v38 = vsub.f32 %v2732_v41, %v856_v44  ;;  %v951_v32 = vsub.f32 %v2734_v43, %v856_v44 }
 0x1c2   : > { %v1014_v28 = vmul.f32 1.442695, %v950_v38  ;;  %v1016_v25 = vmul.f32 1.442695, %v951_v32 }
 0x1c3   : > { %v859_v22 = vpop.xlane.xlu0 %858 }
 0x1c4   : > { %2356 = vpow2.f32 %v1014_v28  ;;  %v952_v18 = vsub.f32 %v2736_v46, %v859_v22  ;;  %v953_v14 = vsub.f32 %v2738_v47, %v859_v22  ;;  %v2924_v47 = vmul.f32 0.17677669, %v751_v26 }
 0x1c5   : > { %2358 = vpow2.f32 %v1016_v25  ;;  %v2926_v22 = vmul.f32 0.17677669, %v753_v30 }
 0x1c6   : > { %v1018_v6 = vmul.f32 1.442695, %v952_v18  ;;  %v1020_v15 = vmul.f32 1.442695, %v953_v14 }
 0x1c7   : > { %v862_v12 = vpop.xlane.xlu1 %861  ;;  %v926_v2 = vmax.f32 %v2924_v47, %v2926_v22 }
 0x1c8   : > { %2360 = vpow2.f32 %v1018_v6  ;;  %v954_v49 = vsub.f32 %v2744_v51, %v862_v12  ;;  %v955_v54 = vsub.f32 %v2746_v53, %v862_v12 }
 0x1c9   : > { %2362 = vpow2.f32 %v1020_v15 }
 0x1ca   : > { %v1022_v41 = vmul.f32 1.442695, %v954_v49  ;;  %v1024_v43 = vmul.f32 1.442695, %v955_v54  ;;  %v2948_v49 = vmul.f32 0.17677669, %v2878_v35 }
 0x1cb   : > { %v865_v38 = vpop.xlane.xlu1 %864 }
 0x1cc   : > { %2364 = vpow2.f32 %v1022_v41  ;;  %v956_v28 = vsub.f32 %v2748_v56, %v865_v38  ;;  %v957_v46 = vsub.f32 %v2750_v57, %v865_v38 }
 0x1cd   : > { %2366 = vpow2.f32 %v1024_v43 }
 0x1ce   : > { %v2928_v25 = vpop.eup %2356  ;;  %v1026_v32 = vmul.f32 1.442695, %v956_v28  ;;  %v1028_v51 = vmul.f32 1.442695, %v957_v46 }
 0x1cf   : > { %v2930_v44 = vpop.eup %2358  ;;  %v868_v53 = vpop.xlane.xlu0 %867 }
 0x1d0   : > { %2368 = vpow2.f32 %v1026_v32  ;;  %v958_v12 = vsub.f32 %v2756_v61, %v868_v53  ;;  %v959_v15 = vsub.f32 %v2758_v63, %v868_v53  ;;  %v1142_v56 = vadd.f32 %v2930_v44, %v2928_v25 }
 0x1d1   : > { %2370 = vpow2.f32 %v1028_v51  ;;  %v871_v57 = vpop.xlane.xlu1 %870  ;;  %v2945_v63 = vmul.f32 0.17677669, %v2876_v34 }
 0x1d2   : > { %v2938_v26 = vpop.eup %2360  ;;  %v1030_v30 = vmul.f32 1.442695, %v958_v12  ;;  %v1032_v18 = vmul.f32 1.442695, %v959_v15  ;;  %v960_v14 = vsub.f32 %v2760_v1, %v871_v57  ;;  %v961_v6 = vsub.f32 %v2762_v3, %v871_v57  ;;  %1143 = vadd.xlane.f32.xlu0 %v1142_v56 }
 0x1d3   : > { %v2942_v61 = vpop.eup %2362  ;;  %v2953_v1 = vmul.f32 0.17677669, %v2880_v36  ;;  %v2956_v3 = vmul.f32 0.17677669, %v2882_v40  ;;  %v929_v40 = vmax.f32 %v2945_v63, %v2948_v49  ;;  %v2977_v57 = vmul.f32 0.17677669, %v2884_v48 }
 0x1d4   : > { %2372 = vpow2.f32 %v1030_v30  ;;  %v1034_v54 = vmul.f32 1.442695, %v960_v14  ;;  %v1036_v41 = vmul.f32 1.442695, %v961_v6  ;;  %v1145_v43 = vadd.f32 %v2942_v61, %v2938_v26 }
 0x1d5   : > { %2374 = vpow2.f32 %v1032_v18  ;;  %v932_v51 = vmax.f32 %v2953_v1, %v2956_v3 }
 0x1d6   : > { %v2958_v38 = vpop.eup %2364  ;;  %2376 = vpow2.f32 %v1034_v54  ;;  %1146 = vadd.xlane.f32.xlu1 %v1145_v43  ;;  %927 = vmax.xlane.f32.xlu0 %v926_v2  ;;  %v2980_v2 = vmul.f32 0.17677669, %v2886_v50  ;;  %v2346_v54 = vld [vmem:[%s2908_s4 + $0x58] sm:$0xff]  }
 0x1d7   : > { %v2960_v34 = vpop.eup %2366  ;;  %2378 = vpow2.f32 %v1036_v41  ;;  %v874_v35 = vpop.xlane.xlu0 %873  ;;  %2154 = vmatprep.subr.bf16.mxu1 %v2346_v54 }
 0x1d8   : > { %v962_v28 = vsub.f32 %v2768_v7, %v874_v35  ;;  %v963_v46 = vsub.f32 %v2770_v9, %v874_v35  ;;  %v1148_v36 = vadd.f32 %v2960_v34, %v2958_v38  ;;  %v935_v35 = vmax.f32 %v2977_v57, %v2980_v2 }
 0x1d9   : > { %v877_v32 = vpop.xlane.xlu1 %876 }
 0x1da   : > { %v2970_v53 = vpop.eup %2368  ;;  %v1038_v12 = vmul.f32 1.442695, %v962_v28  ;;  %v1040_v15 = vmul.f32 1.442695, %v963_v46  ;;  %v964_v56 = vsub.f32 %v2772_v11, %v877_v32  ;;  %v965_v7 = vsub.f32 %v2774_v13, %v877_v32  ;;  %1149 = vadd.xlane.f32.xlu0 %v1148_v36  ;;  %930 = vmax.xlane.f32.xlu1 %v929_v40  ;;  %v2347_v28 = vld [vmem:[%s2908_s4 + $0x18] sm:$0xff]  }
 0x1db   : > { %v2974_v9 = vpop.eup %2370  ;;  %v2985_v11 = vmul.f32 0.17677669, %v2888_v58  ;;  %v2988_v13 = vmul.f32 0.17677669, %v2890_v60  ;;  %2155 = vmatpush3.bf16.msra.mxu1 %v2347_v28 }
 0x1dc   : > { %2380 = vpow2.f32 %v1038_v12  ;;  %v1042_v30 = vmul.f32 1.442695, %v964_v56  ;;  %v1044_v18 = vmul.f32 1.442695, %v965_v7  ;;  %v1151_v14 = vadd.f32 %v2974_v9, %v2970_v53  ;;  %v2348_v56 = vld [vmem:[%s2908_s4 + $0x60] sm:$0xff]  }
 0x1dd   : > { %2382 = vpow2.f32 %v1040_v15  ;;  %v938_v40 = vmax.f32 %v2985_v11, %v2988_v13  ;;  %v3011_v12 = vmul.f32 0.17677669, %v2892_v0  ;;  %v3014_v15 = vmul.f32 0.17677669, %v2894_v4  ;;  %2156 = vmatprep.subr.bf16.mxu1 %v2348_v56 }
 0x1de   : > { %v2990_v48 = vpop.eup %2372  ;;  %2384 = vpow2.f32 %v1042_v30  ;;  %1152 = vadd.xlane.f32.xlu1 %v1151_v14  ;;  %933 = vmax.xlane.f32.xlu0 %v932_v51  ;;  %v2349_v14 = vld [vmem:[%s2908_s4 + $0x20] sm:$0xff]  }
 0x1df   : > { %v2992_v50 = vpop.eup %2374  ;;  %2386 = vpow2.f32 %v1044_v18  ;;  %v880_v6 = vpop.xlane.xlu0 %879  ;;  %2157 = vmatpush3.bf16.msra.mxu1 %v2349_v14 }
 0x1e0   : > { %v2995_v41 = vpop.eup %2376  ;;  %v966_v43 = vsub.f32 %v2780_v17, %v880_v6  ;;  %v967_v58 = vsub.f32 %v2782_v19, %v880_v6  ;;  %v1154_v60 = vadd.f32 %v2992_v50, %v2990_v48 }
 0x1e1   : > { %v3004_v46 = vpop.eup %2378  ;;  %v883_v36 = vpop.xlane.xlu1 %882 }
 0x1e2   : > { %v1046_v32 = vmul.f32 1.442695, %v966_v43  ;;  %v1048_v17 = vmul.f32 1.442695, %v967_v58  ;;  %v968_v19 = vsub.f32 %v2784_v21, %v883_v36  ;;  %v969_v51 = vsub.f32 %v2786_v23, %v883_v36  ;;  %1155 = vadd.xlane.f32.xlu0 %v1154_v60  ;;  %936 = vmax.xlane.f32.xlu1 %v935_v35  ;;  %v2350_v60 = vld [vmem:[%s2908_s4 + $0x68] sm:$0xff]  }
 0x1e3   : > { %v1157_v18 = vadd.f32 %v3004_v46, %v2995_v41  ;;  %v3021_v21 = vmul.f32 0.17677669, %v2896_v10  ;;  %v3024_v23 = vmul.f32 0.17677669, %v2898_v16  ;;  %v941_v58 = vmax.f32 %v3011_v12, %v3014_v15  ;;  %2158 = vmatprep.subr.bf16.mxu1 %v2350_v60 }
 0x1e4   : > { %2388 = vpow2.f32 %v1046_v32  ;;  %v1050_v7 = vmul.f32 1.442695, %v968_v19  ;;  %v1052_v30 = vmul.f32 1.442695, %v969_v51  ;;  %v3047_v19 = vmul.f32 0.17677669, %v2900_v20 }
 0x1e5   : > { %2390 = vpow2.f32 %v1048_v17  ;;  %v944_v36 = vmax.f32 %v3021_v21, %v3024_v23  ;;  %v3050_v51 = vmul.f32 0.17677669, %v2902_v24 }
 0x1e6   : > { %v3026_v0 = vpop.eup %2380  ;;  %2392 = vpow2.f32 %v1050_v7  ;;  %1158 = vadd.xlane.f32.xlu1 %v1157_v18  ;;  %939 = vmax.xlane.f32.xlu0 %v938_v40  ;;  %v2351_v40 = vld [vmem:[%s2908_s4 + $0x28] sm:$0xff]   ;;  %v2352_v18 = vld [vmem:[%s2908_s4 + $0x70] sm:$0xff]  }
 0x1e7   : > { %v3028_v4 = vpop.eup %2382  ;;  %2394 = vpow2.f32 %v1052_v30  ;;  %v886_v6 = vpop.xlane.xlu0 %885  ;;  %2159 = vmatpush3.bf16.msra.mxu1 %v2351_v40 }
 0x1e8   : > { %v3030_v54 = vpop.eup %2384  ;;  %v970_v10 = vsub.f32 %v2792_v27, %v886_v6  ;;  %v971_v43 = vsub.f32 %v2794_v29, %v886_v6  ;;  %v1160_v16 = vadd.f32 %v3028_v4, %v3026_v0  ;;  %2160 = vmatprep.subr.bf16.mxu1 %v2352_v18 }
 0x1e9   : > { %v3039_v35 = vpop.eup %2386  ;;  %v889_v28 = vpop.xlane.xlu1 %888 }
 0x1ea   : > { %v1054_v32 = vmul.f32 1.442695, %v970_v10  ;;  %v1056_v27 = vmul.f32 1.442695, %v971_v43  ;;  %v972_v29 = vsub.f32 %v2796_v31, %v889_v28  ;;  %v973_v17 = vsub.f32 %v2798_v33, %v889_v28  ;;  %1161 = vadd.xlane.f32.xlu0 %v1160_v16  ;;  %942 = vmax.xlane.f32.xlu1 %v941_v58  ;;  %v2353_v31 = vld [vmem:[%s2908_s4 + $0x30] sm:$0xff]   ;;  %v2354_v58 = vld [vmem:[%s2908_s4 + $0x78] sm:$0xff]  }
 0x1eb   : > { %v1163_v30 = vadd.f32 %v3039_v35, %v3030_v54  ;;  %v947_v16 = vmax.f32 %v3047_v19, %v3050_v51  ;;  %2161 = vmatpush3.bf16.msra.mxu1 %v2353_v31 }
 0x1ec   : > { %2396 = vpow2.f32 %v1054_v32  ;;  %v1058_v56 = vmul.f32 1.442695, %v972_v29  ;;  %v1060_v7 = vmul.f32 1.442695, %v973_v17  ;;  %2162 = vmatprep.subr.bf16.mxu1 %v2354_v58 }
 0x1ed   : > { %2398 = vpow2.f32 %v1056_v27 }
 0x1ee   : > { %v3056_v33 = vpop.eup %2388  ;;  %2400 = vpow2.f32 %v1058_v56  ;;  %1164 = vadd.xlane.f32.xlu1 %v1163_v30  ;;  %945 = vmax.xlane.f32.xlu0 %v944_v36  ;;  %v2355_v36 = vld [vmem:[%s2908_s4 + $0x38] sm:$0xff]  }
 0x1ef   : > { %v3058_v20 = vpop.eup %2390  ;;  %2402 = vpow2.f32 %v1060_v7  ;;  %v892_v24 = vpop.xlane.xlu0 %891  ;;  %2163 = vmatpush3.bf16.msra.mxu1 %v2355_v36 }
 0x1f0   : > { %v3060_v14 = vpop.eup %2392  ;;  %v974_v6 = vsub.f32 %v2804_v37, %v892_v24  ;;  %v975_v10 = vsub.f32 %v2806_v39, %v892_v24  ;;  %v1166_v43 = vadd.f32 %v3058_v20, %v3056_v33 }
 0x1f1   : > { %v3069_v60 = vpop.eup %2394  ;;  %v895_v28 = vpop.xlane.xlu1 %894 }
 0x1f2   : > { %v1062_v40 = vmul.f32 1.442695, %v974_v6  ;;  %v1064_v32 = vmul.f32 1.442695, %v975_v10  ;;  %v976_v27 = vsub.f32 %v2808_v42, %v895_v28  ;;  %v977_v37 = vsub.f32 %v2810_v45, %v895_v28  ;;  %1167 = vadd.xlane.f32.xlu0 %v1166_v43  ;;  %948 = vmax.xlane.f32.xlu1 %v947_v16 }
 0x1f3   : > { %v1169_v17 = vadd.f32 %v3069_v60, %v3060_v14 }
 0x1f4   : > { %2404 = vpow2.f32 %v1062_v40  ;;  %v1066_v39 = vmul.f32 1.442695, %v976_v27  ;;  %v1068_v29 = vmul.f32 1.442695, %v977_v37 }
 0x1f5   : > { %2406 = vpow2.f32 %v1064_v32 }
 0x1f6   : > { %v3076_v56 = vpop.eup %2396  ;;  %2408 = vpow2.f32 %v1066_v39  ;;  %1170 = vadd.xlane.f32.xlu1 %v1169_v17 }
 0x1f7   : > { %v3078_v7 = vpop.eup %2398  ;;  %2410 = vpow2.f32 %v1068_v29  ;;  %v898_v42 = vpop.xlane.xlu0 %897 }
 0x1f8   : > { %v3080_v45 = vpop.eup %2400  ;;  %v978_v30 = vsub.f32 %v2816_v52, %v898_v42  ;;  %v979_v18 = vsub.f32 %v2818_v55, %v898_v42  ;;  %v1172_v31 = vadd.f32 %v3078_v7, %v3076_v56 }
 0x1f9   : > { %v3086_v24 = vpop.eup %2402  ;;  %v901_v6 = vpop.xlane.xlu1 %900 }
 0x1fa   : > { %v1070_v10 = vmul.f32 1.442695, %v978_v30  ;;  %v1072_v43 = vmul.f32 1.442695, %v979_v18  ;;  %v980_v16 = vsub.f32 %v2820_v59, %v901_v6  ;;  %v981_v58 = vsub.f32 %v2822_v62, %v901_v6  ;;  %1173 = vadd.xlane.f32.xlu0 %v1172_v31  ;;  %v3439_v30 = vld [vmem:[#allocation2_spill] sm:$0xff]  ;;  %v3440_v31 = vld [vmem:[#allocation3_spill] sm:$0xff] }
 0x1fb   : > { %v1175_v28 = vadd.f32 %v3086_v24, %v3080_v45 }
 0x1fc   : > { %2412 = vpow2.f32 %v1070_v10  ;;  %v1074_v52 = vmul.f32 1.442695, %v980_v16  ;;  %v1076_v36 = vmul.f32 1.442695, %v981_v58 }
 0x1fd   : > { %2414 = vpow2.f32 %v1072_v43  ;;  %1176 = vadd.xlane.f32.xlu1 %v1175_v28 }
 0x1fe   : > { %v3092_v55 = vpop.eup %2404  ;;  %2416 = vpow2.f32 %v1074_v52  ;;  %v3443_v52 = vld [vmem:[#allocation4_spill] sm:$0xff] }
 0x1ff   : > { %v3094_v40 = vpop.eup %2406  ;;  %2418 = vpow2.f32 %v1076_v36  ;;  %v904_v32 = vpop.xlane.xlu0 %903 }
 0x200   : > { %v3096_v27 = vpop.eup %2408  ;;  %v982_v59 = vsub.f32 %v2828_v5, %v904_v32  ;;  %v983_v62 = vsub.f32 %v2830_v8, %v904_v32  ;;  %v1178_v37 = vadd.f32 %v3094_v40, %v3092_v55  ;;  %v3444_v32 = vld [vmem:[#allocation5_spill] sm:$0xff] }
 0x201   : > { %v3102_v39 = vpop.eup %2410  ;;  %v907_v29 = vpop.xlane.xlu1 %906 }
 0x202   : > { %v1078_v17 = vmul.f32 1.442695, %v982_v59  ;;  %v1080_v42 = vmul.f32 1.442695, %v983_v62  ;;  %v984_v18 = vsub.f32 %v3439_v30, %v907_v29  ;;  %v985_v6 = vsub.f32 %v3440_v31, %v907_v29  ;;  %1179 = vadd.xlane.f32.xlu0 %v1178_v37  ;;  %v3446_v30 = vld [vmem:[#allocation6_spill] sm:$0xff]  ;;  %v3447_v31 = vld [vmem:[#allocation7_spill] sm:$0xff] }
 0x203   : > { %v1181_v10 = vadd.f32 %v3102_v39, %v3096_v27 }
 0x204   : > { %2420 = vpow2.f32 %v1078_v17  ;;  %v1082_v5 = vmul.f32 1.442695, %v984_v18  ;;  %v1084_v43 = vmul.f32 1.442695, %v985_v6 }
 0x205   : > { %2422 = vpow2.f32 %v1080_v42  ;;  %1182 = vadd.xlane.f32.xlu1 %v1181_v10 }
 0x206   : > { %v3108_v8 = vpop.eup %2412  ;;  %2424 = vpow2.f32 %v1082_v5 }
 0x207   : > { %3441 = vst [vmem:[#allocation2_spill] sm:$0xff] %v3108_v8  ;;  %v3110_v16 = vpop.eup %2414  ;;  %2426 = vpow2.f32 %v1084_v43  ;;  %v910_v58 = vpop.xlane.xlu0 %909 }
 0x208   : > { %v3112_v28 = vpop.eup %2416  ;;  %v986_v36 = vsub.f32 %v3443_v52, %v910_v58  ;;  %v987_v59 = vsub.f32 %v3444_v32, %v910_v58  ;;  %v1184_v62 = vadd.f32 %v3110_v16, %v3108_v8  ;;  %v3455_v8 = vld [vmem:[#allocation11_spill] sm:$0xff] }
 0x209   : > { %3442 = vst [vmem:[#allocation3_spill] sm:$0xff] %v3112_v28  ;;  %v3118_v37 = vpop.eup %2418  ;;  %v913_v29 = vpop.xlane.xlu1 %912 }
 0x20a   : > { %3445 = vst [vmem:[#allocation4_spill] sm:$0xff] %v3118_v37  ;;  %v1086_v17 = vmul.f32 1.442695, %v986_v36  ;;  %v1088_v42 = vmul.f32 1.442695, %v987_v59  ;;  %v988_v18 = vsub.f32 %v3446_v30, %v913_v29  ;;  %v989_v6 = vsub.f32 %v3447_v31, %v913_v29  ;;  %1185 = vadd.xlane.f32.xlu0 %v1184_v62  ;;  %v3451_v59 = vld [vmem:[#allocation8_spill] sm:$0xff] }
 0x20b   : > { %v1187_v10 = vadd.f32 %v3118_v37, %v3112_v28  ;;  %v3452_v62 = vld [vmem:[#allocation9_spill] sm:$0xff] }
 0x20c   : > { %2428 = vpow2.f32 %v1086_v17  ;;  %v1090_v5 = vmul.f32 1.442695, %v988_v18  ;;  %v1092_v43 = vmul.f32 1.442695, %v989_v6 }
 0x20d   : > { %2430 = vpow2.f32 %v1088_v42  ;;  %1188 = vadd.xlane.f32.xlu1 %v1187_v10  ;;  %v3454_v10 = vld [vmem:[#allocation10_spill] sm:$0xff] }
 0x20e   : > { %v3124_v58 = vpop.eup %2420  ;;  %2432 = vpow2.f32 %v1090_v5 }
 0x20f   : > { %3448 = vst [vmem:[#allocation5_spill] sm:$0xff] %v3124_v58  ;;  %v3126_v52 = vpop.eup %2422  ;;  %2434 = vpow2.f32 %v1092_v43  ;;  %v916_v36 = vpop.xlane.xlu0 %915 }
 0x210   : > { %3449 = vst [vmem:[#allocation6_spill] sm:$0xff] %v3126_v52  ;;  %v3128_v32 = vpop.eup %2424  ;;  %v990_v29 = vsub.f32 %v3451_v59, %v916_v36  ;;  %v991_v30 = vsub.f32 %v3452_v62, %v916_v36  ;;  %v1190_v17 = vadd.f32 %v3126_v52, %v3124_v58  ;;  %v3458_v58 = vld [vmem:[#allocation14_spill] sm:$0xff] }
 0x211   : > { %3450 = vst [vmem:[#allocation7_spill] sm:$0xff] %v3128_v32  ;;  %v3134_v18 = vpop.eup %2426  ;;  %v919_v42 = vpop.xlane.xlu1 %918 }
 0x212   : > { %3453 = vst [vmem:[#allocation8_spill] sm:$0xff] %v3134_v18  ;;  %v1094_v31 = vmul.f32 1.442695, %v990_v29  ;;  %v1096_v6 = vmul.f32 1.442695, %v991_v30  ;;  %v992_v5 = vsub.f32 %v3454_v10, %v919_v42  ;;  %v993_v28 = vsub.f32 %v3455_v8, %v919_v42  ;;  %1191 = vadd.xlane.f32.xlu0 %v1190_v17  ;;  %v3456_v10 = vld [vmem:[#allocation12_spill] sm:$0xff] }
 0x213   : > { %v1193_v43 = vadd.f32 %v3134_v18, %v3128_v32  ;;  %v3457_v17 = vld [vmem:[#allocation13_spill] sm:$0xff]  ;;  %v3459_v32 = vld [vmem:[#allocation15_spill] sm:$0xff] }
 0x214   : > { %2436 = vpow2.f32 %v1094_v31  ;;  %v1098_v59 = vmul.f32 1.442695, %v992_v5  ;;  %v1100_v37 = vmul.f32 1.442695, %v993_v28 }
 0x215   : > { %2438 = vpow2.f32 %v1096_v6  ;;  %1194 = vadd.xlane.f32.xlu1 %v1193_v43 }
 0x216   : > { %v3140_v36 = vpop.eup %2428  ;;  %2440 = vpow2.f32 %v1098_v59 }
 0x217   : > { %v3142_v62 = vpop.eup %2430  ;;  %2442 = vpow2.f32 %v1100_v37  ;;  %v922_v29 = vpop.xlane.xlu0 %921 }
 0x218   : > { %v3144_v30 = vpop.eup %2432  ;;  %v994_v8 = vsub.f32 %v3456_v10, %v922_v29  ;;  %v995_v42 = vsub.f32 %v3457_v17, %v922_v29  ;;  %v1196_v31 = vadd.f32 %v3142_v62, %v3140_v36 }
 0x219   : > { %v3150_v5 = vpop.eup %2434  ;;  %v925_v28 = vpop.xlane.xlu1 %924 }
 0x21a   : > { %v1102_v6 = vmul.f32 1.442695, %v994_v8  ;;  %v1104_v43 = vmul.f32 1.442695, %v995_v42  ;;  %v996_v59 = vsub.f32 %v3458_v58, %v925_v28  ;;  %v997_v18 = vsub.f32 %v3459_v32, %v925_v28  ;;  %1197 = vadd.xlane.f32.xlu0 %v1196_v31 }
 0x21b   : > { %v1199_v37 = vadd.f32 %v3150_v5, %v3144_v30 }
 0x21c   : > { %2444 = vpow2.f32 %v1102_v6  ;;  %v1106_v10 = vmul.f32 1.442695, %v996_v59  ;;  %v1108_v52 = vmul.f32 1.442695, %v997_v18 }
 0x21d   : > { %2446 = vpow2.f32 %v1104_v43  ;;  %1200 = vadd.xlane.f32.xlu1 %v1199_v37 }
 0x21e   : > { %v3156_v29 = vpop.eup %2436  ;;  %2448 = vpow2.f32 %v1106_v10 }
 0x21f   : > { %3460 = vst [vmem:[#allocation9_spill] sm:$0xff] %v3156_v29  ;;  %v3158_v17 = vpop.eup %2438  ;;  %2450 = vpow2.f32 %v1108_v52 }
 0x220   : > { %v3160_v8 = vpop.eup %2440  ;;  %v1202_v58 = vadd.f32 %v3158_v17, %v3156_v29 }
 0x221   : > { %3461 = vst [vmem:[#allocation10_spill] sm:$0xff] %v3160_v8  ;;  %v3164_v32 = vpop.eup %2442 }
 0x222   : > { %3462 = vst [vmem:[#allocation11_spill] sm:$0xff] %v3164_v32  ;;  %1203 = vadd.xlane.f32.xlu0 %v1202_v58  ;;  %v1205_v42 = vadd.f32 %v3164_v32, %v3160_v8 }
 0x224   : > { %1206 = vadd.xlane.f32.xlu1 %v1205_v42 }
 0x226   : > { %v3168_v18 = vpop.eup %2444 }
 0x227   : > { %3463 = vst [vmem:[#allocation12_spill] sm:$0xff] %v3168_v18  ;;  %v3170_v31 = vpop.eup %2446 }
 0x228   : > { %3464 = vst [vmem:[#allocation13_spill] sm:$0xff] %v3170_v31  ;;  %v3172_v28 = vpop.eup %2448  ;;  %v1208_v52 = vadd.f32 %v3170_v31, %v3168_v18 }
 0x229   : > { %3465 = vst [vmem:[#allocation14_spill] sm:$0xff] %v3172_v28  ;;  %v3176_v6 = vpop.eup %2450 }
 0x22a   : > { %3466 = vst [vmem:[#allocation15_spill] sm:$0xff] %v3176_v6  ;;  %1209 = vadd.xlane.f32.xlu0 %v1208_v52  ;;  %v1211_v43 = vadd.f32 %v3176_v6, %v3172_v28 }
 0x22c   : > { %1212 = vadd.xlane.f32.xlu1 %v1211_v43 }
 0x25f   : > { %v1144_v59 = vpop.xlane.xlu0 %1143 }
 0x260   : > { %2452 = vrcp.f32 %v1144_v59 }
 0x263   : > { %v1147_v37 = vpop.xlane.xlu1 %1146  ;;  %v928_v10 = vpop.xlane.xlu0 %927 }
 0x264   : > { %2454 = vrcp.f32 %v1147_v37  ;;  %v998_v58 = vsub.f32 %v2924_v47, %v928_v10  ;;  %v999_v42 = vsub.f32 %v2926_v22, %v928_v10 }
 0x266   : > { %v1110_v29 = vmul.f32 1.442695, %v998_v58  ;;  %v1112_v8 = vmul.f32 1.442695, %v999_v42 }
 0x267   : > { %v1150_v32 = vpop.xlane.xlu0 %1149  ;;  %v931_v18 = vpop.xlane.xlu1 %930 }
 0x268   : > { %2456 = vpow2.f32 %v1110_v29  ;;  %v1000_v52 = vsub.f32 %v2945_v63, %v931_v18  ;;  %v1001_v31 = vsub.f32 %v2948_v49, %v931_v18 }
 0x269   : > { %2458 = vpow2.f32 %v1112_v8 }
 0x26a   : > { %2460 = vrcp.f32 %v1150_v32  ;;  %v1114_v43 = vmul.f32 1.442695, %v1000_v52  ;;  %v1116_v59 = vmul.f32 1.442695, %v1001_v31  ;;  %v2453_v37 = vpop.eup %2452 }
 0x26b   : > { %v1153_v28 = vpop.xlane.xlu1 %1152  ;;  %v934_v6 = vpop.xlane.xlu0 %933  ;;  %v1240_v49 = vmul.f32 %v2453_v37, %v2930_v44  ;;  %v1239_v32 = vmul.f32 %v2453_v37, %v2928_v25 }
 0x26c   : > { %2462 = vpow2.f32 %v1114_v43  ;;  %v1002_v47 = vsub.f32 %v2953_v1, %v934_v6  ;;  %v1003_v22 = vsub.f32 %v2956_v3, %v934_v6 }
 0x26d   : > { %2464 = vpow2.f32 %v1116_v59 }
 0x26e   : > { %v2455_v10 = vpop.eup %2454  ;;  %2466 = vrcp.f32 %v1153_v28  ;;  %v1118_v29 = vmul.f32 1.442695, %v1002_v47  ;;  %v1120_v58 = vmul.f32 1.442695, %v1003_v22 }
 0x26f   : > { %v1156_v63 = vpop.xlane.xlu0 %1155  ;;  %v937_v42 = vpop.xlane.xlu1 %936  ;;  %v1243_v8 = vmul.f32 %v2455_v10, %v2942_v61  ;;  %v1242_v18 = vmul.f32 %v2455_v10, %v2938_v26 }
 0x270   : > { %2468 = vpow2.f32 %v1118_v29  ;;  %v1004_v1 = vsub.f32 %v2977_v57, %v937_v42  ;;  %v1005_v3 = vsub.f32 %v2980_v2, %v937_v42 }
 0x271   : > { %2470 = vpow2.f32 %v1120_v58  ;;  %v1335_v31 = vpack.c.bf16 %v1243_v8, %v1240_v49  ;;  %v1334_v28 = vpack.c.bf16 %v1242_v18, %v1239_v32 }
 0x272   : > { %v3192_v6 = vpop.eup %2456  ;;  %2472 = vrcp.f32 %v1156_v63  ;;  %v1122_v52 = vmul.f32 1.442695, %v1004_v1  ;;  %v1124_v43 = vmul.f32 1.442695, %v1005_v3 }
 0x273   : > { %v3194_v44 = vpop.eup %2458  ;;  %1526 = vmatprep.mubr.bf16.mxu1 %v1335_v31  ;;  %v1159_v61 = vpop.xlane.xlu1 %1158 }
 0x274   : > { %v940_v25 = vpop.xlane.xlu0 %939  ;;  %v2461_v59 = vpop.eup %2460  ;;  %2474 = vpow2.f32 %v1122_v52  ;;  %1527 = vmatmul.mubr.bf16.vlgmr.msra.gmra.mrb[0].mxu1 %v1334_v28  ;;  %v1214_v2 = vadd.f32 %v3194_v44, %v3192_v6 }
 0x275   : > { %v1006_v26 = vsub.f32 %v2985_v11, %v940_v25  ;;  %v1007_v57 = vsub.f32 %v2988_v13, %v940_v25  ;;  %2476 = vpow2.f32 %v1124_v43  ;;  %v1246_v63 = vmul.f32 %v2461_v59, %v2960_v34 }
 0x276   : > { %v3200_v37 = vpop.eup %2462  ;;  %2478 = vrcp.f32 %v1159_v61  ;;  %1215 = vadd.xlane.f32.xlu0 %v1214_v2  ;;  %v1245_v32 = vmul.f32 %v2461_v59, %v2958_v38 }
 0x277   : > { %v1126_v47 = vmul.f32 1.442695, %v1006_v26  ;;  %v1128_v22 = vmul.f32 1.442695, %v1007_v57  ;;  %v3202_v10 = vpop.eup %2464  ;;  %v943_v58 = vpop.xlane.xlu1 %942 }
 0x278   : > { %v1162_v29 = vpop.xlane.xlu0 %1161  ;;  %v2467_v11 = vpop.eup %2466  ;;  %v1008_v13 = vsub.f32 %v3011_v12, %v943_v58  ;;  %v1009_v42 = vsub.f32 %v3014_v15, %v943_v58  ;;  %v1217_v49 = vadd.f32 %v3202_v10, %v3200_v37 }
 0x279   : > { %2480 = vpow2.f32 %v1126_v47  ;;  %v1249_v8 = vmul.f32 %v2467_v11, %v2974_v9  ;;  %v1248_v18 = vmul.f32 %v2467_v11, %v2970_v53 }
 0x27a   : > { %2482 = vpow2.f32 %v1128_v22  ;;  %v3212_v1 = vpop.eup %2468  ;;  %v1130_v3 = vmul.f32 1.442695, %v1008_v13  ;;  %v1132_v34 = vmul.f32 1.442695, %v1009_v42  ;;  %1218 = vadd.xlane.f32.xlu1 %v1217_v49 }
 0x27b   : > { %v3214_v31 = vpop.eup %2470  ;;  %2484 = vrcp.f32 %v1162_v29  ;;  %v1337_v12 = vpack.c.bf16 %v1249_v8, %v1246_v63  ;;  %v1165_v15 = vpop.xlane.xlu1 %1164  ;;  %v1336_v52 = vpack.c.bf16 %v1248_v18, %v1245_v32 }
 0x27c   : > { %v946_v28 = vpop.xlane.xlu0 %945  ;;  %v2473_v43 = vpop.eup %2472  ;;  %2486 = vpow2.f32 %v1130_v3  ;;  %v1220_v53 = vadd.f32 %v3214_v31, %v3212_v1 }
 0x27d   : > { %v1010_v9 = vsub.f32 %v3021_v21, %v946_v28  ;;  %v1011_v38 = vsub.f32 %v3024_v23, %v946_v28  ;;  %2488 = vpow2.f32 %v1132_v34  ;;  %1534 = vmatprep.mubr.bf16.mxu1 %v1337_v12  ;;  %v1252_v2 = vmul.f32 %v2473_v43, %v2992_v50 }
 0x27e   : > { %v3220_v61 = vpop.eup %2474  ;;  %2490 = vrcp.f32 %v1165_v15  ;;  %1535 = vmatmul.mubr.bf16.gmra.mrb[4].mxu1 %v1336_v52  ;;  %1221 = vadd.xlane.f32.xlu0 %v1220_v53  ;;  %v1251_v63 = vmul.f32 %v2473_v43, %v2990_v48 }
 0x27f   : > { %v1134_v25 = vmul.f32 1.442695, %v1010_v9  ;;  %v1136_v59 = vmul.f32 1.442695, %v1011_v38  ;;  %v3222_v26 = vpop.eup %2476  ;;  %v949_v57 = vpop.xlane.xlu1 %948 }
 0x280   : > { %v2479_v21 = vpop.eup %2478  ;;  %v1168_v23 = vpop.xlane.xlu0 %1167  ;;  %v1012_v47 = vsub.f32 %v3047_v19, %v949_v57  ;;  %v1013_v22 = vsub.f32 %v3050_v51, %v949_v57  ;;  %v1223_v29 = vadd.f32 %v3222_v26, %v3220_v61 }
 0x281   : > { %2492 = vpow2.f32 %v1134_v25  ;;  %v1255_v58 = vmul.f32 %v2479_v21, %v3004_v46  ;;  %v1254_v11 = vmul.f32 %v2479_v21, %v2995_v41 }
 0x282   : > { %2494 = vpow2.f32 %v1136_v59  ;;  %v1138_v50 = vmul.f32 1.442695, %v1012_v47  ;;  %v1140_v42 = vmul.f32 1.442695, %v1013_v22  ;;  %1224 = vadd.xlane.f32.xlu1 %v1223_v29 }
 0x283   : > { %v3232_v13 = vpop.eup %2480  ;;  %2496 = vrcp.f32 %v1168_v23  ;;  %v1339_v19 = vpack.c.bf16 %v1255_v58, %v1252_v2  ;;  %v1171_v51 = vpop.xlane.xlu1 %1170  ;;  %v1338_v8 = vpack.c.bf16 %v1254_v11, %v1251_v63 }
 0x284   : > { %v3234_v49 = vpop.eup %2482  ;;  %2498 = vpow2.f32 %v1138_v50 }
 0x285   : > { %v1226_v32 = vadd.f32 %v3234_v49, %v3232_v13  ;;  %v2485_v46 = vpop.eup %2484  ;;  %2500 = vpow2.f32 %v1140_v42  ;;  %1542 = vmatprep.mubr.bf16.mxu1 %v1339_v19 }
 0x286   : > { %v3238_v48 = vpop.eup %2486  ;;  %2502 = vrcp.f32 %v1171_v51  ;;  %1543 = vmatmul.mubr.bf16.gmra.mrb[8].mxu1 %v1338_v8  ;;  %v1258_v12 = vmul.f32 %v2485_v46, %v3028_v4  ;;  %v1257_v28 = vmul.f32 %v2485_v46, %v3026_v0 }
 0x287   : > { %1227 = vadd.xlane.f32.xlu0 %v1226_v32  ;;  %v3240_v41 = vpop.eup %2488  ;;  %v1174_v18 = vpop.xlane.xlu0 %1173 }
 0x288   : > { %v2491_v3 = vpop.eup %2490  ;;  %v1229_v34 = vadd.f32 %v3240_v41, %v3238_v48  ;;  %2504 = vrcp.f32 %v1174_v18 }
 0x289   : > { %v1261_v15 = vmul.f32 %v2491_v3, %v3039_v35  ;;  %v1260_v52 = vmul.f32 %v2491_v3, %v3030_v54 }
 0x28a   : > { %1230 = vadd.xlane.f32.xlu1 %v1229_v34  ;;  %v1177_v9 = vpop.xlane.xlu1 %1176 }
 0x28b   : > { %v3248_v43 = vpop.eup %2492  ;;  %2506 = vrcp.f32 %v1177_v9  ;;  %v1341_v53 = vpack.c.bf16 %v1261_v15, %v1258_v12  ;;  %v1340_v25 = vpack.c.bf16 %v1260_v52, %v1257_v28  ;;  %v3467_v9 = vld [vmem:[#allocation4_spill] sm:$0xff] }
 0x28c   : > { %v3250_v38 = vpop.eup %2494 }
 0x28d   : > { %v1232_v59 = vadd.f32 %v3250_v38, %v3248_v43  ;;  %v2497_v4 = vpop.eup %2496  ;;  %1550 = vmatprep.mubr.bf16.mxu1 %v1341_v53 }
 0x28e   : > { %v3254_v57 = vpop.eup %2498  ;;  %1551 = vmatmul.mubr.bf16.gmra.mrb[12].mxu1 %v1340_v25  ;;  %v1264_v21 = vmul.f32 %v2497_v4, %v3058_v20  ;;  %v1263_v47 = vmul.f32 %v2497_v4, %v3056_v33  ;;  %v3468_v25 = vld [vmem:[#allocation3_spill] sm:$0xff]  ;;  %v3469_v4 = vld [vmem:[#allocation2_spill] sm:$0xff] }
 0x28f   : > { %1233 = vadd.xlane.f32.xlu0 %v1232_v59  ;;  %v3256_v0 = vpop.eup %2500  ;;  %v1180_v54 = vpop.xlane.xlu0 %1179 }
 0x290   : > { %v2503_v35 = vpop.eup %2502  ;;  %v1235_v2 = vadd.f32 %v3256_v0, %v3254_v57  ;;  %2508 = vrcp.f32 %v1180_v54 }
 0x291   : > { %v1267_v23 = vmul.f32 %v2503_v35, %v3069_v60  ;;  %v1266_v22 = vmul.f32 %v2503_v35, %v3060_v14 }
 0x292   : > { %1236 = vadd.xlane.f32.xlu1 %v1235_v2  ;;  %v1183_v29 = vpop.xlane.xlu1 %1182  ;;  %v2505_v58 = vpop.eup %2504 }
 0x293   : > { %2510 = vrcp.f32 %v1183_v29  ;;  %v1343_v63 = vpack.c.bf16 %v1267_v23, %v1264_v21  ;;  %v1342_v11 = vpack.c.bf16 %v1266_v22, %v1263_v47  ;;  %v1270_v42 = vmul.f32 %v2505_v58, %v3078_v7  ;;  %v3470_v21 = vld [vmem:[#allocation6_spill] sm:$0xff]  ;;  %v3471_v47 = vld [vmem:[#allocation8_spill] sm:$0xff] }
 0x294   : > { %v1269_v14 = vmul.f32 %v2505_v58, %v3076_v56  ;;  %v3472_v58 = vld [vmem:[#allocation7_spill] sm:$0xff] }
 0x295   : > { %v2507_v50 = vpop.eup %2506  ;;  %1558 = vmatprep.mubr.bf16.mxu1 %v1343_v63 }
 0x296   : > { %1559 = vmatmul.mubr.bf16.gmra.mrb[16].mxu1 %v1342_v11  ;;  %v1273_v20 = vmul.f32 %v2507_v50, %v3086_v24  ;;  %v1272_v60 = vmul.f32 %v2507_v50, %v3080_v45  ;;  %v3473_v50 = vld [vmem:[#allocation5_spill] sm:$0xff] }
 0x297   : > { %v1186_v19 = vpop.xlane.xlu0 %1185 }
 0x298   : > { %v1345_v51 = vpack.c.bf16 %v1273_v20, %v1270_v42  ;;  %2512 = vrcp.f32 %v1186_v19  ;;  %v1344_v32 = vpack.c.bf16 %v1272_v60, %v1269_v14 }
 0x29a   : > { %1566 = vmatprep.mubr.bf16.mxu1 %v1345_v51  ;;  %v1189_v33 = vpop.xlane.xlu1 %1188  ;;  %v2509_v8 = vpop.eup %2508 }
 0x29b   : > { %2514 = vrcp.f32 %v1189_v33  ;;  %v1276_v18 = vmul.f32 %v2509_v8, %v3094_v40  ;;  %v1275_v12 = vmul.f32 %v2509_v8, %v3092_v55 }
 0x29d   : > { %v2511_v46 = vpop.eup %2510 }
 0x29e   : > { %1567 = vmatmul.mubr.bf16.gmra.mrb[20].mxu1 %v1344_v32  ;;  %v1279_v7 = vmul.f32 %v2511_v46, %v3102_v39  ;;  %v1278_v34 = vmul.f32 %v2511_v46, %v3096_v27 }
 0x29f   : > { %v1192_v3 = vpop.xlane.xlu0 %1191 }
 0x2a0   : > { %v1347_v24 = vpack.c.bf16 %v1279_v7, %v1276_v18  ;;  %2516 = vrcp.f32 %v1192_v3  ;;  %v1346_v56 = vpack.c.bf16 %v1278_v34, %v1275_v12 }
 0x2a2   : > { %1574 = vmatprep.mubr.bf16.mxu1 %v1347_v24  ;;  %v1195_v45 = vpop.xlane.xlu1 %1194  ;;  %v2513_v15 = vpop.eup %2512 }
 0x2a3   : > { %2518 = vrcp.f32 %v1195_v45  ;;  %v1282_v52 = vmul.f32 %v2513_v15, %v3110_v16  ;;  %v1281_v54 = vmul.f32 %v2513_v15, %v3469_v4  ;;  %v3474_v45 = vld [vmem:[#allocation11_spill] sm:$0xff] }
 0x2a5   : > { %v2515_v28 = vpop.eup %2514 }
 0x2a6   : > { %1575 = vmatmul.mubr.bf16.gmra.mrb[24].mxu1 %v1346_v56  ;;  %v1285_v40 = vmul.f32 %v2515_v28, %v3467_v9  ;;  %v1284_v59 = vmul.f32 %v2515_v28, %v3468_v25  ;;  %v3476_v28 = vld [vmem:[#allocation9_spill] sm:$0xff] }
 0x2a7   : > { %v1198_v53 = vpop.xlane.xlu0 %1197 }
 0x2a8   : > { %v1349_v39 = vpack.c.bf16 %v1285_v40, %v1282_v52  ;;  %2520 = vrcp.f32 %v1198_v53  ;;  %v1348_v55 = vpack.c.bf16 %v1284_v59, %v1281_v54  ;;  %v3477_v40 = vld [vmem:[#allocation13_spill] sm:$0xff]  ;;  %v3479_v59 = vld [vmem:[#allocation14_spill] sm:$0xff] }
 0x2aa   : > { %1582 = vmatprep.mubr.bf16.mxu1 %v1349_v39  ;;  %v1201_v27 = vpop.xlane.xlu1 %1200  ;;  %v2517_v35 = vpop.eup %2516  ;;  %v3478_v39 = vld [vmem:[#allocation15_spill] sm:$0xff] }
 0x2ab   : > { %2522 = vrcp.f32 %v1201_v27  ;;  %v1288_v23 = vmul.f32 %v2517_v35, %v3470_v21  ;;  %v1287_v42 = vmul.f32 %v2517_v35, %v3473_v50  ;;  %v3480_v27 = vld [vmem:[#allocation12_spill] sm:$0xff] }
 0x2ad   : > { %v2519_v2 = vpop.eup %2518 }
 0x2ae   : > { %1583 = vmatmul.mubr.bf16.gmra.mrb[28].mxu1 %v1348_v55  ;;  %v1291_v16 = vmul.f32 %v2519_v2, %v3471_v47  ;;  %v1290_v63 = vmul.f32 %v2519_v2, %v3472_v58 }
 0x2af   : > { %v1204_v22 = vpop.xlane.xlu0 %1203 }
 0x2b0   : > { %2524 = vrcp.f32 %v1204_v22  ;;  %v1351_v29 = vpack.c.bf16 %v1291_v16, %v1288_v23  ;;  %v1350_v19 = vpack.c.bf16 %v1290_v63, %v1287_v42 }
 0x2b1   : > { %v1207_v11 = vpop.xlane.xlu1 %1206 }
 0x2b2   : > { %1590 = vmatprep.mubr.bf16.mxu1 %v1351_v29  ;;  %2526 = vrcp.f32 %v1207_v11  ;;  %v2521_v20 = vpop.eup %2520 }
 0x2b3   : > { %v1294_v60 = vmul.f32 %v2521_v20, %v3142_v62  ;;  %v1293_v7 = vmul.f32 %v2521_v20, %v3140_v36 }
 0x2b5   : > { %v2523_v51 = vpop.eup %2522 }
 0x2b6   : > { %1591 = vmatmul.mubr.bf16.gmra.mrb[32].mxu1 %v1350_v19  ;;  %v1297_v33 = vmul.f32 %v2523_v51, %v3150_v5  ;;  %v1296_v32 = vmul.f32 %v2523_v51, %v3144_v30  ;;  %v3475_v5 = vld [vmem:[#allocation10_spill] sm:$0xff] }
 0x2b7   : > { %v1210_v14 = vpop.xlane.xlu0 %1209 }
 0x2b8   : > { %2528 = vrcp.f32 %v1210_v14  ;;  %v1353_v8 = vpack.c.bf16 %v1297_v33, %v1294_v60  ;;  %v1352_v24 = vpack.c.bf16 %v1296_v32, %v1293_v7 }
 0x2b9   : > { %v1213_v46 = vpop.xlane.xlu1 %1212 }
 0x2ba   : > { %v2525_v18 = vpop.eup %2524  ;;  %1598 = vmatprep.mubr.bf16.mxu1 %v1353_v8  ;;  %2530 = vrcp.f32 %v1213_v46 }
 0x2bb   : > { %v1300_v34 = vmul.f32 %v2525_v18, %v3158_v17  ;;  %v1299_v30 = vmul.f32 %v2525_v18, %v3476_v28 }
 0x2bc   : > { %v2527_v3 = vpop.eup %2526 }
 0x2bd   : > { %v1303_v12 = vmul.f32 %v2527_v3, %v3474_v45  ;;  %v1302_v15 = vmul.f32 %v2527_v3, %v3475_v5 }
 0x2be   : > { %1599 = vmatmul.mubr.bf16.gmra.mrb[36].mxu1 %v1352_v24 }
 0x2bf   : > { %v1355_v62 = vpack.c.bf16 %v1303_v12, %v1300_v34  ;;  %v1354_v9 = vpack.c.bf16 %v1302_v15, %v1299_v30 }
 0x2c1   : > { %1606 = vmatprep.mubr.bf16.mxu1 %v1355_v62 }
 0x2c2   : > { %v2529_v56 = vpop.eup %2528 }
 0x2c3   : > { %v1306_v53 = vmul.f32 %v2529_v56, %v3477_v40  ;;  %v1305_v4 = vmul.f32 %v2529_v56, %v3480_v27 }
 0x2c4   : > { %v2531_v52 = vpop.eup %2530 }
 0x2c5   : > { %v1309_v36 = vmul.f32 %v2531_v52, %v3478_v39  ;;  %v1308_v17 = vmul.f32 %v2531_v52, %v3479_v59 }
 0x2c6   : > { %1607 = vmatmul.mubr.bf16.gmra.mrb[40].mxu1 %v1354_v9 }
 0x2c7   : > { %v1357_v25 = vpack.c.bf16 %v1309_v36, %v1306_v53  ;;  %v1356_v54 = vpack.c.bf16 %v1308_v17, %v1305_v4 }
 0x2c9   : > { %1614 = vmatprep.mubr.bf16.mxu1 %v1357_v25 }
 0x2ce   : > { %1615 = vmatmul.mubr.bf16.gmra.mrb[44].mxu1 %v1356_v54 }
 0x303   : > { %v1216_v35 = vpop.xlane.xlu0 %1215 }
 0x304   : > { %2532 = vrcp.f32 %v1216_v35 }
 0x307   : > { %v1219_v55 = vpop.xlane.xlu1 %1218 }
 0x308   : > { %2534 = vrcp.f32 %v1219_v55 }
 0x30b   : > { %v1222_v2 = vpop.xlane.xlu0 %1221 }
 0x30c   : > { %2536 = vrcp.f32 %v1222_v2 }
 0x30e   : > { %v2533_v23 = vpop.eup %2532 }
 0x30f   : > { %v1225_v21 = vpop.xlane.xlu1 %1224  ;;  %v1312_v22 = vmul.f32 %v2533_v23, %v3194_v44  ;;  %v1311_v58 = vmul.f32 %v2533_v23, %v3192_v6 }
 0x310   : > { %2538 = vrcp.f32 %v1225_v21 }
 0x312   : > { %v2535_v47 = vpop.eup %2534 }
 0x313   : > { %v1315_v29 = vmul.f32 %v2535_v47, %v3202_v10  ;;  %v1314_v63 = vmul.f32 %v2535_v47, %v3200_v37 }
 0x314   : > { %v1228_v16 = vpop.xlane.xlu0 %1227 }
 0x315   : > { %v1359_v11 = vpack.c.bf16 %v1315_v29, %v1312_v22  ;;  %v1358_v50 = vpack.c.bf16 %v1314_v63, %v1311_v58  ;;  %2540 = vrcp.f32 %v1228_v16 }
 0x316   : > { %v2537_v20 = vpop.eup %2536 }
 0x317   : > { %1622 = vmatprep.mubr.bf16.mxu1 %v1359_v11  ;;  %v1231_v42 = vpop.xlane.xlu1 %1230  ;;  %v1318_v60 = vmul.f32 %v2537_v20, %v3214_v31  ;;  %v1317_v10 = vmul.f32 %v2537_v20, %v3212_v1 }
 0x318   : > { %2542 = vrcp.f32 %v1231_v42  ;;  %1623 = vmatmul.mubr.bf16.gmra.mrb[48].mxu1 %v1358_v50 }
 0x31a   : > { %v2539_v19 = vpop.eup %2538 }
 0x31b   : > { %v1321_v44 = vmul.f32 %v2539_v19, %v3222_v26  ;;  %v1320_v6 = vmul.f32 %v2539_v19, %v3220_v61 }
 0x31c   : > { %v1234_v51 = vpop.xlane.xlu0 %1233 }
 0x31d   : > { %v1361_v33 = vpack.c.bf16 %v1321_v44, %v1318_v60  ;;  %v1360_v37 = vpack.c.bf16 %v1320_v6, %v1317_v10  ;;  %2544 = vrcp.f32 %v1234_v51 }
 0x31f   : > { %1630 = vmatprep.mubr.bf16.mxu1 %v1361_v33  ;;  %v1237_v14 = vpop.xlane.xlu1 %1236  ;;  %v2541_v8 = vpop.eup %2540 }
 0x320   : > { %2546 = vrcp.f32 %v1237_v14  ;;  %1631 = vmatmul.mubr.bf16.gmra.mrb[52].mxu1 %v1360_v37  ;;  %v1324_v46 = vmul.f32 %v2541_v8, %v3234_v49  ;;  %v1323_v31 = vmul.f32 %v2541_v8, %v3232_v13 }
 0x322   : > { %v2543_v32 = vpop.eup %2542 }
 0x323   : > { %v1327_v18 = vmul.f32 %v2543_v32, %v3240_v41  ;;  %v1326_v26 = vmul.f32 %v2543_v32, %v3238_v48 }
 0x325   : > { %v1363_v1 = vpack.c.bf16 %v1327_v18, %v1324_v46  ;;  %v1362_v7 = vpack.c.bf16 %v1326_v26, %v1323_v31 }
 0x327   : > { %1638 = vmatprep.mubr.bf16.mxu1 %v1363_v1  ;;  %v2545_v61 = vpop.eup %2544 }
 0x328   : > { %1639 = vmatmul.mubr.bf16.gmra.mrb[56].mxu1 %v1362_v7  ;;  %v1330_v24 = vmul.f32 %v2545_v61, %v3250_v38  ;;  %v1329_v45 = vmul.f32 %v2545_v61, %v3248_v43 }
 0x32a   : > { %v2547_v3 = vpop.eup %2546 }
 0x32b   : > { %v1333_v34 = vmul.f32 %v2547_v3, %v3256_v0  ;;  %v1332_v49 = vmul.f32 %v2547_v3, %v3254_v57 }
 0x32d   : > { %v1365_v41 = vpack.c.bf16 %v1333_v34, %v1330_v24  ;;  %v1364_v12 = vpack.c.bf16 %v1332_v49, %v1329_v45 }
 0x32f   : > { %1646 = vmatprep.mubr.bf16.mxu1 %v1365_v41 }
 0x330   : > { %1647 = vmatmul.mubr.bf16.gmra.mrb[60].mxu1 %v1364_v12 }
 0x347   : > { %v2164_v13 = vpop.f32.mrb[0].mxu1 }
 0x348   : > { %v2165_v48 = vpop.f32.mrb[1].mxu1 }
 0x349   : > { %v2166_v62 = vadd.f32 %v2165_v48, %v2164_v13  ;;  %v2167_v5 = vpop.f32.mrb[2].mxu1 }
 0x34a   : > { %v2168_v43 = vpop.f32.mrb[3].mxu1 }
 0x34b   : > { %v2068_v38 = vpack.c.bf16 %v2166_v62, %v2166_v62  ;;  %v2169_v57 = vadd.f32 %v2168_v43, %v2167_v5 }
 0x34d   : > { %1784 = vst.msk [vmem:[%s3312_s7] sm:$0xf] %vm1783_vm1, %v2068_v38  ;;  %v2069_v0 = vpack.c.bf16 %v2169_v57, %v2169_v57 }
 0x34f   : > { %1785 = vst.msk [vmem:[%s3312_s7 + $0x4] sm:$0xf] %vm1783_vm1, %v2069_v0 }
 0x351   : > { %v2170_v15 = vpop.f32.mrb[4].mxu1 }
 0x352   : > { %v2171_v56 = vpop.f32.mrb[5].mxu1 }
 0x353   : > { %v2172_v28 = vadd.f32 %v2171_v56, %v2170_v15  ;;  %v2173_v30 = vpop.f32.mrb[6].mxu1 }
 0x354   : > { %v2174_v52 = vpop.f32.mrb[7].mxu1 }
 0x355   : > { %v2070_v9 = vpack.c.bf16 %v2172_v28, %v2172_v28  ;;  %v2175_v40 = vadd.f32 %v2174_v52, %v2173_v30 }
 0x357   : > { %1786 = vst.msk [vmem:[%s3312_s7 + $0x8] sm:$0xf] %vm1783_vm1, %v2070_v9  ;;  %v2071_v53 = vpack.c.bf16 %v2175_v40, %v2175_v40 }
 0x359   : > { %1787 = vst.msk [vmem:[%s3312_s7 + $0xc] sm:$0xf] %vm1783_vm1, %v2071_v53  ;;  %v2176_v39 = vpop.f32.mrb[8].mxu1 }
 0x35a   : > { %v2177_v36 = vpop.f32.mrb[9].mxu1 }
 0x35b   : > { %v2178_v25 = vadd.f32 %v2177_v36, %v2176_v39  ;;  %v2179_v59 = vpop.f32.mrb[10].mxu1 }
 0x35c   : > { %v2180_v17 = vpop.f32.mrb[11].mxu1 }
 0x35d   : > { %v2072_v27 = vpack.c.bf16 %v2178_v25, %v2178_v25  ;;  %v2181_v4 = vadd.f32 %v2180_v17, %v2179_v59 }
 0x35f   : > { %1788 = vst.msk [vmem:[%s3312_s7 + $0x10] sm:$0xf] %vm1783_vm1, %v2072_v27  ;;  %v2073_v54 = vpack.c.bf16 %v2181_v4, %v2181_v4 }
 0x361   : > { %1789 = vst.msk [vmem:[%s3312_s7 + $0x14] sm:$0xf] %vm1783_vm1, %v2073_v54  ;;  %v2182_v35 = vpop.f32.mrb[12].mxu1 }
 0x362   : > { %v2183_v55 = vpop.f32.mrb[13].mxu1 }
 0x363   : > { %v2184_v2 = vadd.f32 %v2183_v55, %v2182_v35  ;;  %v2185_v21 = vpop.f32.mrb[14].mxu1 }
 0x364   : > { %v2186_v23 = vpop.f32.mrb[15].mxu1 }
 0x365   : > { %v2074_v47 = vpack.c.bf16 %v2184_v2, %v2184_v2  ;;  %v2187_v16 = vadd.f32 %v2186_v23, %v2185_v21 }
 0x367   : > { %1790 = vst.msk [vmem:[%s3312_s7 + $0x18] sm:$0xf] %vm1783_vm1, %v2074_v47  ;;  %v2075_v22 = vpack.c.bf16 %v2187_v16, %v2187_v16 }
 0x369   : > { %1791 = vst.msk [vmem:[%s3312_s7 + $0x1c] sm:$0xf] %vm1783_vm1, %v2075_v22  ;;  %v2188_v29 = vpop.f32.mrb[16].mxu1 }
 0x36a   : > { %v2189_v58 = vpop.f32.mrb[17].mxu1 }
 0x36b   : > { %v2190_v63 = vadd.f32 %v2189_v58, %v2188_v29  ;;  %v2191_v11 = vpop.f32.mrb[18].mxu1 }
 0x36c   : > { %v2192_v50 = vpop.f32.mrb[19].mxu1 }
 0x36d   : > { %v2076_v42 = vpack.c.bf16 %v2190_v63, %v2190_v63  ;;  %v2193_v20 = vadd.f32 %v2192_v50, %v2191_v11 }
 0x36f   : > { %1792 = vst.msk [vmem:[%s3312_s7 + $0x20] sm:$0xf] %vm1783_vm1, %v2076_v42  ;;  %v2077_v19 = vpack.c.bf16 %v2193_v20, %v2193_v20 }
 0x371   : > { %1793 = vst.msk [vmem:[%s3312_s7 + $0x24] sm:$0xf] %vm1783_vm1, %v2077_v19  ;;  %v2194_v51 = vpop.f32.mrb[20].mxu1 }
 0x372   : > { %v2195_v60 = vpop.f32.mrb[21].mxu1 }
 0x373   : > { %v2196_v44 = vadd.f32 %v2195_v60, %v2194_v51  ;;  %v2197_v10 = vpop.f32.mrb[22].mxu1 }
 0x374   : > { %v2198_v6 = vpop.f32.mrb[23].mxu1 }
 0x375   : > { %v2078_v33 = vpack.c.bf16 %v2196_v44, %v2196_v44  ;;  %v2199_v37 = vadd.f32 %v2198_v6, %v2197_v10 }
 0x377   : > { %1794 = vst.msk [vmem:[%s3312_s7 + $0x28] sm:$0xf] %vm1783_vm1, %v2078_v33  ;;  %v2079_v14 = vpack.c.bf16 %v2199_v37, %v2199_v37 }
 0x379   : > { %1795 = vst.msk [vmem:[%s3312_s7 + $0x2c] sm:$0xf] %vm1783_vm1, %v2079_v14  ;;  %v2200_v8 = vpop.f32.mrb[24].mxu1 }
 0x37a   : > { %v2201_v32 = vpop.f32.mrb[25].mxu1 }
 0x37b   : > { %v2202_v46 = vadd.f32 %v2201_v32, %v2200_v8  ;;  %v2203_v18 = vpop.f32.mrb[26].mxu1 }
 0x37c   : > { %v2204_v31 = vpop.f32.mrb[27].mxu1 }
 0x37d   : > { %v2080_v26 = vpack.c.bf16 %v2202_v46, %v2202_v46  ;;  %v2205_v1 = vadd.f32 %v2204_v31, %v2203_v18 }
 0x37f   : > { %1796 = vst.msk [vmem:[%s3312_s7 + $0x30] sm:$0xf] %vm1783_vm1, %v2080_v26  ;;  %v2081_v7 = vpack.c.bf16 %v2205_v1, %v2205_v1 }
 0x381   : > { %1797 = vst.msk [vmem:[%s3312_s7 + $0x34] sm:$0xf] %vm1783_vm1, %v2081_v7  ;;  %v2206_v61 = vpop.f32.mrb[28].mxu1 }
 0x382   : > { %v2207_v3 = vpop.f32.mrb[29].mxu1 }
 0x383   : > { %v2208_v24 = vadd.f32 %v2207_v3, %v2206_v61  ;;  %v2209_v34 = vpop.f32.mrb[30].mxu1 }
 0x384   : > { %v2210_v45 = vpop.f32.mrb[31].mxu1 }
 0x385   : > { %v2082_v49 = vpack.c.bf16 %v2208_v24, %v2208_v24  ;;  %v2211_v41 = vadd.f32 %v2210_v45, %v2209_v34 }
 0x387   : > { %1798 = vst.msk [vmem:[%s3312_s7 + $0x38] sm:$0xf] %vm1783_vm1, %v2082_v49  ;;  %v2083_v12 = vpack.c.bf16 %v2211_v41, %v2211_v41 }
 0x389   : > { %1799 = vst.msk [vmem:[%s3312_s7 + $0x3c] sm:$0xf] %vm1783_vm1, %v2083_v12  ;;  %v2212_v13 = vpop.f32.mrb[32].mxu1 }
 0x38a   : > { %v2213_v48 = vpop.f32.mrb[33].mxu1 }
 0x38b   : > { %v2214_v62 = vadd.f32 %v2213_v48, %v2212_v13  ;;  %v2215_v5 = vpop.f32.mrb[34].mxu1 }
 0x38c   : > { %v2216_v43 = vpop.f32.mrb[35].mxu1 }
 0x38d   : > { %v2084_v38 = vpack.c.bf16 %v2214_v62, %v2214_v62  ;;  %v2217_v57 = vadd.f32 %v2216_v43, %v2215_v5 }
 0x38f   : > { %1800 = vst.msk [vmem:[%s3312_s7 + $0x40] sm:$0xf] %vm1783_vm1, %v2084_v38  ;;  %v2085_v0 = vpack.c.bf16 %v2217_v57, %v2217_v57 }
 0x391   : > { %1801 = vst.msk [vmem:[%s3312_s7 + $0x44] sm:$0xf] %vm1783_vm1, %v2085_v0  ;;  %v2218_v15 = vpop.f32.mrb[36].mxu1 }
 0x392   : > { %v2219_v56 = vpop.f32.mrb[37].mxu1 }
 0x393   : > { %v2220_v28 = vadd.f32 %v2219_v56, %v2218_v15  ;;  %v2221_v30 = vpop.f32.mrb[38].mxu1 }
 0x394   : > { %v2222_v52 = vpop.f32.mrb[39].mxu1 }
 0x395   : > { %v2086_v9 = vpack.c.bf16 %v2220_v28, %v2220_v28  ;;  %v2223_v40 = vadd.f32 %v2222_v52, %v2221_v30 }
 0x397   : > { %1802 = vst.msk [vmem:[%s3312_s7 + $0x48] sm:$0xf] %vm1783_vm1, %v2086_v9  ;;  %v2087_v53 = vpack.c.bf16 %v2223_v40, %v2223_v40 }
 0x399   : > { %1803 = vst.msk [vmem:[%s3312_s7 + $0x4c] sm:$0xf] %vm1783_vm1, %v2087_v53  ;;  %v2224_v39 = vpop.f32.mrb[40].mxu1 }
 0x39a   : > { %v2225_v36 = vpop.f32.mrb[41].mxu1 }
 0x39b   : > { %v2226_v25 = vadd.f32 %v2225_v36, %v2224_v39  ;;  %v2227_v59 = vpop.f32.mrb[42].mxu1 }
 0x39c   : > { %v2228_v17 = vpop.f32.mrb[43].mxu1 }
 0x39d   : > { %v2088_v27 = vpack.c.bf16 %v2226_v25, %v2226_v25  ;;  %v2229_v4 = vadd.f32 %v2228_v17, %v2227_v59 }
 0x39f   : > { %1804 = vst.msk [vmem:[%s3312_s7 + $0x50] sm:$0xf] %vm1783_vm1, %v2088_v27  ;;  %v2089_v54 = vpack.c.bf16 %v2229_v4, %v2229_v4 }
 0x3a1   : > { %1805 = vst.msk [vmem:[%s3312_s7 + $0x54] sm:$0xf] %vm1783_vm1, %v2089_v54  ;;  %v2230_v35 = vpop.f32.mrb[44].mxu1 }
 0x3a2   : > { %v2231_v55 = vpop.f32.mrb[45].mxu1 }
 0x3a3   : > { %v2232_v2 = vadd.f32 %v2231_v55, %v2230_v35  ;;  %v2233_v21 = vpop.f32.mrb[46].mxu1 }
 0x3a4   : > { %v2234_v23 = vpop.f32.mrb[47].mxu1 }
 0x3a5   : > { %v2090_v47 = vpack.c.bf16 %v2232_v2, %v2232_v2  ;;  %v2235_v16 = vadd.f32 %v2234_v23, %v2233_v21 }
 0x3a7   : > { %1806 = vst.msk [vmem:[%s3312_s7 + $0x58] sm:$0xf] %vm1783_vm1, %v2090_v47  ;;  %v2091_v22 = vpack.c.bf16 %v2235_v16, %v2235_v16 }
 0x3a9   : > { %1807 = vst.msk [vmem:[%s3312_s7 + $0x5c] sm:$0xf] %vm1783_vm1, %v2091_v22 }
 0x3eb   : > { %v2236_v29 = vpop.f32.mrb[48].mxu1 }
 0x3ec   : > { %v2237_v58 = vpop.f32.mrb[49].mxu1 }
 0x3ed   : > { %v2238_v63 = vadd.f32 %v2237_v58, %v2236_v29  ;;  %v2239_v11 = vpop.f32.mrb[50].mxu1 }
 0x3ee   : > { %v2240_v50 = vpop.f32.mrb[51].mxu1 }
 0x3ef   : > { %v2092_v42 = vpack.c.bf16 %v2238_v63, %v2238_v63  ;;  %v2241_v20 = vadd.f32 %v2240_v50, %v2239_v11 }
 0x3f1   : > { %1808 = vst.msk [vmem:[%s3312_s7 + $0x60] sm:$0xf] %vm1783_vm1, %v2092_v42  ;;  %v2093_v19 = vpack.c.bf16 %v2241_v20, %v2241_v20 }
 0x3f3   : > { %1809 = vst.msk [vmem:[%s3312_s7 + $0x64] sm:$0xf] %vm1783_vm1, %v2093_v19  ;;  %v2242_v51 = vpop.f32.mrb[52].mxu1 }
 0x3f4   : > { %v2243_v60 = vpop.f32.mrb[53].mxu1 }
 0x3f5   : > { %v2244_v44 = vadd.f32 %v2243_v60, %v2242_v51  ;;  %v2245_v10 = vpop.f32.mrb[54].mxu1 }
 0x3f6   : > { %v2246_v6 = vpop.f32.mrb[55].mxu1 }
 0x3f7   : > { %v2094_v33 = vpack.c.bf16 %v2244_v44, %v2244_v44  ;;  %v2247_v37 = vadd.f32 %v2246_v6, %v2245_v10 }
 0x3f9   : > { %1810 = vst.msk [vmem:[%s3312_s7 + $0x68] sm:$0xf] %vm1783_vm1, %v2094_v33  ;;  %v2095_v14 = vpack.c.bf16 %v2247_v37, %v2247_v37 }
 0x3fb   : > { %1811 = vst.msk [vmem:[%s3312_s7 + $0x6c] sm:$0xf] %vm1783_vm1, %v2095_v14  ;;  %v2248_v8 = vpop.f32.mrb[56].mxu1 }
 0x3fc   : > { %v2249_v32 = vpop.f32.mrb[57].mxu1 }
 0x3fd   : > { %v2250_v46 = vadd.f32 %v2249_v32, %v2248_v8  ;;  %v2251_v18 = vpop.f32.mrb[58].mxu1 }
 0x3fe   : > { %v2252_v31 = vpop.f32.mrb[59].mxu1 }
 0x3ff   : > { %v2096_v26 = vpack.c.bf16 %v2250_v46, %v2250_v46  ;;  %v2253_v1 = vadd.f32 %v2252_v31, %v2251_v18 }
 0x401   : > { %1812 = vst.msk [vmem:[%s3312_s7 + $0x70] sm:$0xf] %vm1783_vm1, %v2096_v26  ;;  %v2097_v7 = vpack.c.bf16 %v2253_v1, %v2253_v1 }
 0x403   : > { %1813 = vst.msk [vmem:[%s3312_s7 + $0x74] sm:$0xf] %vm1783_vm1, %v2097_v7  ;;  %v2254_v61 = vpop.f32.mrb[60].mxu1 }
 0x404   : > { %v2255_v3 = vpop.f32.mrb[61].mxu1 }
 0x405   : > { %v2256_v24 = vadd.f32 %v2255_v3, %v2254_v61  ;;  %v2257_v34 = vpop.f32.mrb[62].mxu1 }
 0x406   : > { %v2258_v45 = vpop.f32.mrb[63].mxu1 }
 0x407   : > { %v2098_v49 = vpack.c.bf16 %v2256_v24, %v2256_v24  ;;  %v2259_v41 = vadd.f32 %v2258_v45, %v2257_v34 }
 0x409   : > { %1814 = vst.msk [vmem:[%s3312_s7 + $0x78] sm:$0xf] %vm1783_vm1, %v2098_v49  ;;  %v2099_v12 = vpack.c.bf16 %v2259_v41, %v2259_v41 }
 0x40b   : > { %1815 = vst.msk [vmem:[%s3312_s7 + $0x7c] sm:$0xf] %vm1783_vm1, %v2099_v12 }
 0x40c PF: > { %s13_s16 = sadd.s32 1, %s2586_s16   ;;  %s3481_s12 = smov %s2578_s14 }
 0x40d   : > { %p10_p7 = scmp.ge.s32.totalorder %s13_s16, 10   ;;  %s3482_s13 = smov %s2582_s15 }
 0x40e   : > { %s3483_s14 = smov %s3486_s17  ;;  %s3484_s15 = smov %s3490_s18 }
 0x40f   :  { %12 = sbr.rel (!%p10_p7) target bundleno = 3 (0x3), region = 68 }

// kernel: transformer_block.5
= control target key start
LH: loop header
LB: loop body
LE: loop exit
PB: predicated region body
PF: predicated region fallthrough
CT: control target
= control target key end

     0   :  { %s7903_s0 = inlined_call_operand.vmem [shape: bf16[512,128], index: 0, kind: input, shape index: {}]   ;;  %s7904_s1 = inlined_call_operand.vmem [shape: f32[512,128], index: 1, kind: input, shape index: {}]   ;;  %s7905_s2 = inlined_call_operand.vmem [shape: bf16[128,128], index: 2, kind: input, shape index: {}]   ;;  %s7906_s3 = inlined_call_operand.vmem [shape: f32[1,128], index: 3, kind: input, shape index: {}]   ;;  %s7907_s4 = inlined_call_operand.vmem [shape: f32[1,128], index: 4, kind: input, shape index: {}]   ;;  %s7908_s5 = inlined_call_operand.vmem [shape: f32[1,128], index: 5, kind: input, shape index: {}]   ;;  %s7909_s6 = inlined_call_operand.vmem [shape: bf16[128,512], index: 6, kind: input, shape index: {}]   ;;  %s7910_s7 = inlined_call_operand.vmem [shape: f32[1,512], index: 7, kind: input, shape index: {}]   ;;  %s7911_s8 = inlined_call_operand.vmem [shape: bf16[512,128], index: 8, kind: input, shape index: {}]   ;;  %s7912_s9 = inlined_call_operand.vmem [shape: f32[1,128], index: 9, kind: input, shape index: {}]   ;;  %s7913_s10 = inlined_call_operand.hbm [shape: f32[512,128], index: 10, kind: output, shape index: {}]  }
   0x1   :  { %8070 = sst [smem:[#allocation108_spill]] %s7903_s0 }
   0x2   :  { %15 = vsyncpa [#allocation3], 0 }
   0x3   :  { %17 = vsyncpa [#allocation3 + $0x1], 0  ;;  %s4816_s13 = smov 0   ;;  %s4818_s14 = smov 0  }
   0x4   :  { %s4820_s15 = smov 0   ;;  %s4822_s16 = smov 0  }
   0x5 LB: > { %s4837_s17 = sadd.s32 4294967295, %s4755_s16   ;;  %s3808_s18 = sadd.s32 4294967294, %s4755_s16   ;;  %s4755_s16 = sphi %s4822_s16, %s8472_s16   ;;  %s4751_s15 = sphi %s4820_s15, %s8471_s15   ;;  %s4747_s14 = sphi %s4818_s14, %s8470_s14   ;;  %s4743_s13 = sphi %s4816_s13, %s8469_s13  }
   0x6   : > { %s4841_s19 = sadd.s32 1, %s4755_s16   ;;  %s250_s20 = sadd.s32 1, %s4751_s15 }
   0x7   : > { %s247_s21 = ssub.s32 %s4755_s16, %s4841_s19  ;;  %p260_p0 = scmp.ne.s32.totalorder %s4751_s15, %s4747_s14 }
   0x8   : > { %p248_p1 = scmp.eq.s32.totalorder %s247_s21, 0  ;;  %p261_p2 = scmp.eq.s32.totalorder %s4837_s17, 1 }
   0x9   : > { %p266_p3 = scmp.ne.s32.totalorder %s4747_s14, %s4743_s13  ;;  %p267_p4 = scmp.eq.s32.totalorder %s3808_s18, 1 }
   0xa   : > { %s4852_s22 = scalar_select %p248_p1, %s4751_s15, %s250_s20  }
   0xb   : > { %p4854_p5 = por %p261_p2, %p260_p0  ;;  %p4858_p6 = por %p267_p4, %p266_p3 }
   0xc   : > { %p3811_p7 = scmp.ge.s32.totalorder %s4755_s16, 1  ;;  %p327_p8 = scmp.lt.s32.totalorder %s4755_s16, 3 }
   0xe   : > { %p328_p9 = pnand %p3811_p7, %p327_p8 }
  0x10   : > { %331 = sbr.rel (%p328_p9) target bundleno = 1390 (0x56e), region = 60 }
  0x17   : > { %v4269_v0 = vld [vmem:[%s7905_s2] sm:$0xff]   ;;  %s3813_s27 = sshll.u32 %s4837_s17, 5  ;;  %v4270_v1 = vld [vmem:[%s7905_s2 + $0x8] sm:$0xff]   ;;  %v4271_v2 = vld [vmem:[%s7905_s2 + $0x10] sm:$0xff]   ;;  %s8073_s0 = sld [smem:[#allocation108_spill]] }
  0x18   : > { %p371_p10 = scmp.lt.s32.totalorder %s3813_s27, 63  ;;  %4163 = vmatprep.subr.bf16.mxu0 %v4269_v0  ;;  %4211 = vmatprep.subr.bf16.mxu1 %v4269_v0  ;;  %v4272_v3 = vld [vmem:[%s7905_s2 + $0x18] sm:$0xff]   ;;  %v4273_v5 = vld [vmem:[%s7905_s2 + $0x20] sm:$0xff]   ;;  %v4274_v6 = vld [vmem:[%s7905_s2 + $0x28] sm:$0xff]  }
  0x19   : > { %4164 = vmatpush3.bf16.msra.mxu0 %v4269_v0  ;;  %4219 = vmatpush3.bf16.msra.mxu1 %v4269_v0  ;;  %v4275_v8 = vld [vmem:[%s7905_s2 + $0x30] sm:$0xff]   ;;  %v4276_v9 = vld [vmem:[%s7905_s2 + $0x38] sm:$0xff]   ;;  %v4922_v24 = vld [vmem:[%s7906_s3] ss:$0 sm:$0xff] }
  0x1a   : > { %s8474_s27 = smov (!%p371_p10, %s3813_s27), 63  ;;  %4165 = vmatprep.subr.bf16.mxu0 %v4270_v1  ;;  %4212 = vmatprep.subr.bf16.mxu1 %v4270_v1 }
  0x1b   : > { %s3814_s12 = sshll.u32 %s8474_s27, 2  ;;  %s3816_s26 = sshll.u32 %s8474_s27, 3 }
  0x1c   : > { %s4917_s30 = scalar_lea.vmem %s7904_s1, %s3816_s26  ;;  %s3914_s27 = sshll.u32 %s4837_s17, 12 }
  0x1d   : > { %s4880_s21 = scalar_lea.vmem %s8073_s0, %s3814_s12  ;;  %4166 = vmatpush3.bf16.msra.mxu0 %v4270_v1  ;;  %4220 = vmatpush3.bf16.msra.mxu1 %v4270_v1  ;;  %v746_v26 = vld [vmem:[%s4917_s30 + $0x10] sm:$0xff]  ;;  %v744_v30 = vld [vmem:[%s4917_s30] sm:$0xff]  ;;  %v747_v40 = vld [vmem:[%s4917_s30 + $0x18] sm:$0xff]  ;;  %s7853_s25 = scalar_lea.hbm %s7913_s10, %s3914_s27 }
  0x1e   : > { %4167 = vmatprep.subr.bf16.mxu0 %v4271_v2  ;;  %v4277_v4 = vld [vmem:[%s4880_s21] sm:$0xff]   ;;  %4213 = vmatprep.subr.bf16.mxu1 %v4271_v2  ;;  %v4278_v10 = vld [vmem:[%s4880_s21 + $0x8] sm:$0xff]   ;;  %v4279_v12 = vld [vmem:[%s4880_s21 + $0x10] sm:$0xff]   ;;  %s4758_s26 = smov [#allocation2]  }
  0x1f   : > { %4179 = vmatprep.mubr.bf16.mxu0 %v4277_v4  ;;  %v4285_v7 = vld [vmem:[%s4880_s21 + $0x40] sm:$0xff]   ;;  %v4286_v11 = vld [vmem:[%s4880_s21 + $0x48] sm:$0xff]   ;;  %v4287_v13 = vld [vmem:[%s4880_s21 + $0x50] sm:$0xff]   ;;  %s4697_s28 = sshll.u32 %s4758_s26, 4  ;;  %s4698_s28 = int_to_ptr.vmem [resolvable:$false] %s4697_s28 }
  0x20   : > { %4195 = vmatprep.mubr.bf16.mxu1 %v4285_v7  ;;  %v4280_v14 = vld [vmem:[%s4880_s21 + $0x18] sm:$0xff]   ;;  %v4281_v16 = vld [vmem:[%s4880_s21 + $0x20] sm:$0xff]   ;;  %v4282_v18 = vld [vmem:[%s4880_s21 + $0x28] sm:$0xff]   ;;  %s4699_s29 = scalar_lea.vmem %s4698_s28, 8192 }
  0x21   : > { %4168 = vmatpush3.bf16.msra.mxu0 %v4271_v2  ;;  %4221 = vmatpush3.bf16.msra.mxu1 %v4271_v2  ;;  %v4288_v15 = vld [vmem:[%s4880_s21 + $0x58] sm:$0xff]   ;;  %v4289_v17 = vld [vmem:[%s4880_s21 + $0x60] sm:$0xff]   ;;  %v4290_v19 = vld [vmem:[%s4880_s21 + $0x68] sm:$0xff]  }
  0x22   : > { %4169 = vmatprep.subr.bf16.mxu0 %v4272_v3  ;;  %4214 = vmatprep.subr.bf16.mxu1 %v4272_v3  ;;  %v4283_v20 = vld [vmem:[%s4880_s21 + $0x30] sm:$0xff]   ;;  %v4284_v22 = vld [vmem:[%s4880_s21 + $0x38] sm:$0xff]   ;;  %v745_v42 = vld [vmem:[%s4917_s30 + $0x8] sm:$0xff] }
  0x23   : > { %v4291_v21 = vld [vmem:[%s4880_s21 + $0x70] sm:$0xff]   ;;  %v4292_v23 = vld [vmem:[%s4880_s21 + $0x78] sm:$0xff]   ;;  %v748_v47 = vld [vmem:[%s4917_s30 + $0x20] sm:$0xff] }
  0x24   : > { %v750_v51 = vld [vmem:[%s4917_s30 + $0x30] sm:$0xff]  ;;  %v749_v53 = vld [vmem:[%s4917_s30 + $0x28] sm:$0xff]  ;;  %v751_v57 = vld [vmem:[%s4917_s30 + $0x38] sm:$0xff] }
  0x25   : > { %4170 = vmatpush3.bf16.msra.mxu0 %v4272_v3  ;;  %4222 = vmatpush3.bf16.msra.mxu1 %v4272_v3  ;;  %v752_v63 = vld [vmem:[%s4917_s30 + $0x40] sm:$0xff]  ;;  %v754_v3 = vld [vmem:[%s4917_s30 + $0x50] sm:$0xff] }
  0x26   : > { %4171 = vmatprep.subr.bf16.mxu0 %v4273_v5  ;;  %4215 = vmatprep.subr.bf16.mxu1 %v4273_v5 }
  0x29   : > { %4172 = vmatpush3.bf16.msra.mxu0 %v4273_v5  ;;  %4223 = vmatpush3.bf16.msra.mxu1 %v4273_v5  ;;  %v753_v5 = vld [vmem:[%s4917_s30 + $0x48] sm:$0xff] }
  0x2a   : > { %4173 = vmatprep.subr.bf16.mxu0 %v4274_v6  ;;  %4216 = vmatprep.subr.bf16.mxu1 %v4274_v6 }
  0x2d   : > { %4174 = vmatpush3.bf16.msra.mxu0 %v4274_v6  ;;  %4224 = vmatpush3.bf16.msra.mxu1 %v4274_v6 }
  0x2e   : > { %4175 = vmatprep.subr.bf16.mxu0 %v4275_v8  ;;  %4217 = vmatprep.subr.bf16.mxu1 %v4275_v8 }
  0x31   : > { %4176 = vmatpush3.bf16.msra.mxu0 %v4275_v8  ;;  %4225 = vmatpush3.bf16.msra.mxu1 %v4275_v8 }
  0x32   : > { %4177 = vmatprep.subr.bf16.mxu0 %v4276_v9  ;;  %4218 = vmatprep.subr.bf16.mxu1 %v4276_v9 }
  0x35   : > { %4178 = vmatpush3.bf16.msra.mxu0 %v4276_v9  ;;  %4226 = vmatpush3.bf16.msra.mxu1 %v4276_v9  ;;  %v755_v9 = vld [vmem:[%s4917_s30 + $0x58] sm:$0xff] }
  0x38   : > { %4180 = vmatmul.mubr.bf16.vlgmr.msra.gmra.mrb[0].mxu0 %v4278_v10  ;;  %4196 = vmatmul.mubr.bf16.vlgmr.msra.gmra.mrb[0].mxu1 %v4286_v11 }
  0x39   : > { %4183 = vmatprep.mubr.bf16.mxu0 %v4279_v12  ;;  %4199 = vmatprep.mubr.bf16.mxu1 %v4287_v13 }
  0x40   : > { %4184 = vmatmul.mubr.bf16.gmra.mrb[4].mxu0 %v4280_v14  ;;  %4200 = vmatmul.mubr.bf16.gmra.mrb[4].mxu1 %v4288_v15 }
  0x41   : > { %4187 = vmatprep.mubr.bf16.mxu0 %v4281_v16  ;;  %4203 = vmatprep.mubr.bf16.mxu1 %v4289_v17  ;;  %v756_v17 = vld [vmem:[%s4917_s30 + $0x60] sm:$0xff] }
  0x48   : > { %4188 = vmatmul.mubr.bf16.gmra.mrb[8].mxu0 %v4282_v18  ;;  %4204 = vmatmul.mubr.bf16.gmra.mrb[8].mxu1 %v4290_v19 }
  0x49   : > { %4191 = vmatprep.mubr.bf16.mxu0 %v4283_v20  ;;  %4207 = vmatprep.mubr.bf16.mxu1 %v4291_v21 }
  0x50   : > { %4192 = vmatmul.mubr.bf16.gmra.mrb[12].mxu0 %v4284_v22  ;;  %4208 = vmatmul.mubr.bf16.gmra.mrb[12].mxu1 %v4292_v23 }
 0x10b   : > { %v4181_v25 = vpop.f32.mrb[0].mxu0  ;;  %v4925_v27 = vpop.f32.mrb[0].mxu1 }
 0x10c   : > { %v626_v28 = vadd.f32 %v4181_v25, %v4922_v24  ;;  %v617_v29 = vpop.f32.mrb[1].mxu0  ;;  %v4929_v31 = vpop.f32.mrb[1].mxu1 }
 0x10d   : > { %v618_v32 = vadd.f32 %v4922_v24, %v617_v29  ;;  %v4182_v33 = vpop.f32.mrb[2].mxu0  ;;  %v4932_v34 = vpop.f32.mrb[2].mxu1 }
 0x10e   : > { %v4934_v35 = vadd.f32 %v746_v26, %v626_v28  ;;  %v629_v36 = vadd.f32 %v4182_v33, %v4922_v24  ;;  %v620_v37 = vpop.f32.mrb[3].mxu0  ;;  %v4937_v38 = vpop.f32.mrb[3].mxu1  ;;  %v758_v28 = vld [vmem:[%s4917_s30 + $0x70] sm:$0xff] }
 0x10f   : > { %v4939_v39 = vadd.f32 %v744_v30, %v618_v32  ;;  %v621_v41 = vadd.f32 %v4922_v24, %v620_v37  ;;  %v757_v30 = vld [vmem:[%s4917_s30 + $0x68] sm:$0xff] }
 0x110   : > { %8074 = vst [vmem:[#allocation5_spill] sm:$0xff] %v4934_v35  ;;  %814 = vadd.xlane.f32.xlu1 %v4934_v35  ;;  %v4946_v43 = vadd.f32 %v747_v40, %v629_v36  ;;  %v759_v40 = vld [vmem:[%s4917_s30 + $0x78] sm:$0xff] }
 0x111   : > { %8075 = vst [vmem:[#allocation6_spill] sm:$0xff] %v4939_v39  ;;  %810 = vadd.xlane.f32.xlu0 %v4939_v39  ;;  %v4948_v44 = vadd.f32 %v745_v42, %v621_v41 }
 0x112   : > { %8076 = vst [vmem:[#allocation7_spill] sm:$0xff] %v4946_v43 }
 0x113   : > { %8077 = vst [vmem:[#allocation8_spill] sm:$0xff] %v4948_v44  ;;  %v4185_v45 = vpop.f32.mrb[4].mxu0  ;;  %v4201_v12 = vpop.f32.mrb[4].mxu1 }
 0x114   : > { %816 = vadd.xlane.f32.xlu1 %v4946_v43  ;;  %v633_v46 = vpop.f32.mrb[5].mxu0  ;;  %v642_v48 = vadd.f32 %v4185_v45, %v4922_v24  ;;  %v697_v15 = vpop.f32.mrb[5].mxu1  ;;  %v4992_v18 = vadd.f32 %v4201_v12, %v4922_v24  ;;  %v682_v45 = vadd.f32 %v4922_v24, %v4929_v31  ;;  %v693_v31 = vadd.f32 %v4932_v34, %v4922_v24 }
 0x115   : > { %v634_v49 = vadd.f32 %v4922_v24, %v633_v46  ;;  %v4186_v50 = vpop.f32.mrb[6].mxu0  ;;  %812 = vadd.xlane.f32.xlu0 %v4948_v44  ;;  %v4202_v19 = vpop.f32.mrb[6].mxu1  ;;  %v4998_v23 = vadd.f32 %v4922_v24, %v697_v15  ;;  %v760_v46 = vld [vmem:[%s4917_s30 + $0x80] sm:$0xff] }
 0x116   : > { %v636_v52 = vpop.f32.mrb[7].mxu0  ;;  %v645_v55 = vadd.f32 %v4186_v50, %v4922_v24  ;;  %v4962_v58 = vadd.f32 %v750_v51, %v642_v48  ;;  %v5001_v25 = vadd.f32 %v4202_v19, %v4922_v24  ;;  %v700_v26 = vpop.f32.mrb[7].mxu1  ;;  %v685_v48 = vadd.f32 %v4922_v24, %v4937_v38  ;;  %v4295_v15 = vld [vmem:[%s7909_s6 + $0x4] ss:$16 sps:$4 sm:$0xff]   ;;  %v4304_v19 = vld [vmem:[%s7909_s6 + $0x2c] ss:$16 sps:$4 sm:$0xff]  }
 0x117   : > { %v4957_v54 = vadd.f32 %v748_v47, %v634_v49  ;;  %v637_v56 = vadd.f32 %v4922_v24, %v636_v52  ;;  %v5006_v32 = vadd.f32 %v4922_v24, %v700_v26  ;;  %v761_v49 = vld [vmem:[%s4917_s30 + $0x88] sm:$0xff]  ;;  %v690_v50 = vadd.f32 %v4925_v27, %v4922_v24  ;;  %v762_v52 = vld [vmem:[%s4917_s30 + $0x90] sm:$0xff]  ;;  %1469 = vmatprep.subr.bf16.mxu1 %v4295_v15  ;;  %v767_v15 = vld [vmem:[%s4917_s30 + $0xb8] sm:$0xff] }
 0x118   : > { %8079 = vst [vmem:[#allocation10_spill] sm:$0xff] %v4962_v58  ;;  %v4967_v60 = vadd.f32 %v751_v57, %v645_v55  ;;  %v5030_v51 = vadd.f32 %v760_v46, %v682_v45  ;;  %v763_v55 = vld [vmem:[%s4917_s30 + $0x98] sm:$0xff] }
 0x119   : > { %8078 = vst [vmem:[#allocation9_spill] sm:$0xff] %v4957_v54  ;;  %v4964_v59 = vadd.f32 %v749_v53, %v637_v56  ;;  %818 = vadd.xlane.f32.xlu0 %v4957_v54  ;;  %v5036_v53 = vadd.f32 %v761_v49, %v685_v48  ;;  %v5040_v56 = vadd.f32 %v762_v52, %v690_v50 }
 0x11a   : > { %8081 = vst [vmem:[#allocation12_spill] sm:$0xff] %v4967_v60  ;;  %8090 = vst [vmem:[#allocation21_spill] sm:$0xff] %v5030_v51  ;;  %v5043_v57 = vadd.f32 %v763_v55, %v693_v31  ;;  %v765_v55 = vld [vmem:[%s4917_s30 + $0xa8] sm:$0xff] }
 0x11b   : > { %8080 = vst [vmem:[#allocation11_spill] sm:$0xff] %v4964_v59  ;;  %v4189_v61 = vpop.f32.mrb[8].mxu0  ;;  %820 = vadd.xlane.f32.xlu1 %v4964_v59  ;;  %8091 = vst [vmem:[#allocation22_spill] sm:$0xff] %v5036_v53  ;;  %v4205_v38 = vpop.f32.mrb[8].mxu1 }
 0x11c   : > { %v649_v62 = vpop.f32.mrb[9].mxu0  ;;  %v658_v0 = vadd.f32 %v4189_v61, %v4922_v24  ;;  %8092 = vst [vmem:[#allocation23_spill] sm:$0xff] %v5040_v56  ;;  %8093 = vst [vmem:[#allocation24_spill] sm:$0xff] %v5043_v57  ;;  %v5047_v27 = vadd.f32 %v4205_v38, %v4922_v24  ;;  %v713_v61 = vpop.f32.mrb[9].mxu1 }
 0x11d   : > { %v650_v1 = vadd.f32 %v4922_v24, %v649_v62  ;;  %v4190_v2 = vpop.f32.mrb[10].mxu0  ;;  %822 = vadd.xlane.f32.xlu0 %v4962_v58  ;;  %v4206_v62 = vpop.f32.mrb[10].mxu1  ;;  %v5051_v34 = vadd.f32 %v4922_v24, %v713_v61 }
 0x11e   : > { %v652_v4 = vpop.f32.mrb[11].mxu0  ;;  %v661_v7 = vadd.f32 %v4190_v2, %v4922_v24  ;;  %v4982_v10 = vadd.f32 %v754_v3, %v658_v0  ;;  %v716_v0 = vpop.f32.mrb[11].mxu1 }
 0x11f   : > { %v4976_v6 = vadd.f32 %v752_v63, %v650_v1  ;;  %v653_v8 = vadd.f32 %v4922_v24, %v652_v4  ;;  %824 = vadd.xlane.f32.xlu1 %v4967_v60  ;;  %v5054_v63 = vadd.f32 %v4206_v62, %v4922_v24  ;;  %v5057_v1 = vadd.f32 %v4922_v24, %v716_v0 }
 0x120   : > { %8083 = vst [vmem:[#allocation14_spill] sm:$0xff] %v4982_v10  ;;  %v4987_v13 = vadd.f32 %v755_v9, %v661_v7 }
 0x121   : > { %8082 = vst [vmem:[#allocation13_spill] sm:$0xff] %v4976_v6  ;;  %v4984_v11 = vadd.f32 %v753_v5, %v653_v8  ;;  %826 = vadd.xlane.f32.xlu0 %v4976_v6 }
 0x122   : > { %8085 = vst [vmem:[#allocation16_spill] sm:$0xff] %v4987_v13 }
 0x123   : > { %8084 = vst [vmem:[#allocation15_spill] sm:$0xff] %v4984_v11  ;;  %v4193_v14 = vpop.f32.mrb[12].mxu0  ;;  %828 = vadd.xlane.f32.xlu1 %v4984_v11  ;;  %v4209_v2 = vpop.f32.mrb[12].mxu1 }
 0x124   : > { %v665_v16 = vpop.f32.mrb[13].mxu0  ;;  %v674_v20 = vadd.f32 %v4193_v14, %v4922_v24  ;;  %v5061_v3 = vadd.f32 %v4209_v2, %v4922_v24  ;;  %v729_v4 = vpop.f32.mrb[13].mxu1  ;;  %v4293_v14 = vld [vmem:[%s7909_s6] ss:$16 sps:$4 sm:$0xff]  }
 0x125   : > { %v666_v21 = vadd.f32 %v4922_v24, %v665_v16  ;;  %v4194_v22 = vpop.f32.mrb[14].mxu0  ;;  %830 = vadd.xlane.f32.xlu0 %v4982_v10  ;;  %v4210_v5 = vpop.f32.mrb[14].mxu1  ;;  %v5064_v7 = vadd.f32 %v4922_v24, %v729_v4  ;;  %v4296_v16 = vld [vmem:[%s7909_s6 + $0x8] ss:$16 sps:$4 sm:$0xff]   ;;  %1470 = vmatpush1.bf16.msra.mxu1 %v4293_v14  ;;  %v766_v2 = vld [vmem:[%s4917_s30 + $0xb0] sm:$0xff] }
 0x126   : > { %v668_v29 = vpop.f32.mrb[15].mxu0  ;;  %v677_v36 = vadd.f32 %v4194_v22, %v4922_v24  ;;  %v5014_v41 = vadd.f32 %v758_v28, %v674_v20  ;;  %v5067_v8 = vadd.f32 %v4210_v5, %v4922_v24  ;;  %v732_v9 = vpop.f32.mrb[15].mxu1  ;;  %v4299_v20 = vld [vmem:[%s7909_s6 + $0x20] ss:$16 sps:$4 sm:$0xff]   ;;  %v5126_v5 = vadd.f32 %v766_v2, %v4992_v18 }
 0x127   : > { %v5008_v33 = vadd.f32 %v756_v17, %v666_v21  ;;  %v669_v37 = vadd.f32 %v4922_v24, %v668_v29  ;;  %832 = vadd.xlane.f32.xlu1 %v4987_v13  ;;  %v5070_v12 = vadd.f32 %v4922_v24, %v732_v9  ;;  %v4298_v17 = vld [vmem:[%s7909_s6 + $0xc] ss:$16 sps:$4 sm:$0xff]   ;;  %v4301_v24 = vld [vmem:[%s7909_s6 + $0x24] ss:$16 sps:$4 sm:$0xff]   ;;  %v4302_v21 = vld [vmem:[%s7909_s6 + $0x28] ss:$16 sps:$4 sm:$0xff]  }
 0x128   : > { %8087 = vst [vmem:[#allocation18_spill] sm:$0xff] %v5014_v41  ;;  %v5022_v47 = vadd.f32 %v759_v40, %v677_v36  ;;  %1662 = vmatprep.subr.bf16.mxu0 %v4298_v17  ;;  %1471 = vmatprep.subr.bf16.mxu1 %v4301_v24  ;;  %v764_v36 = vld [vmem:[%s4917_s30 + $0xa0] sm:$0xff]  ;;  %8096 = vst [vmem:[#allocation27_spill] sm:$0xff] %v5126_v5  ;;  %v5137_v24 = vadd.f32 %v767_v15, %v5001_v25 }
 0x129   : > { %8086 = vst [vmem:[#allocation17_spill] sm:$0xff] %v5008_v33  ;;  %v5016_v42 = vadd.f32 %v757_v30, %v669_v37  ;;  %834 = vadd.xlane.f32.xlu0 %v5008_v33  ;;  %1663 = vmatpush1.bf16.msra.mxu0 %v4296_v16  ;;  %v5106_v49 = vadd.f32 %v764_v36, %v4998_v23  ;;  %v768_v17 = vld [vmem:[%s4917_s30 + $0xc0] sm:$0xff] }
 0x12a   : > { %8089 = vst [vmem:[#allocation20_spill] sm:$0xff] %v5022_v47  ;;  %1664 = vmatprep.subr.bf16.mxu0 %v4304_v19  ;;  %1472 = vmatpush1.bf16.msra.mxu1 %v4299_v20  ;;  %v5119_v23 = vadd.f32 %v765_v55, %v5006_v32  ;;  %8097 = vst [vmem:[#allocation28_spill] sm:$0xff] %v5137_v24  ;;  %v5151_v25 = vadd.f32 %v768_v17, %v5051_v34  ;;  %v4314_v55 = vld [vmem:[%s7909_s6 + $0x68] ss:$16 sps:$4 sm:$0xff]   ;;  %v4319_v15 = vld [vmem:[%s7909_s6 + $0x84] ss:$16 sps:$4 sm:$0xff]  }
 0x12b   : > { %8088 = vst [vmem:[#allocation19_spill] sm:$0xff] %v5016_v42  ;;  %836 = vadd.xlane.f32.xlu1 %v5016_v42  ;;  %8094 = vst [vmem:[#allocation25_spill] sm:$0xff] %v5106_v49  ;;  %v4320_v17 = vld [vmem:[%s7909_s6 + $0x88] ss:$16 sps:$4 sm:$0xff]  }
 0x12c   : > { %8095 = vst [vmem:[#allocation26_spill] sm:$0xff] %v5119_v23  ;;  %8098 = vst [vmem:[#allocation29_spill] sm:$0xff] %v5151_v25 }
 0x12d   : > { %838 = vadd.xlane.f32.xlu0 %v5014_v41  ;;  %1665 = vmatpush1.bf16.msra.mxu0 %v4302_v21 }
 0x12f   : > { %840 = vadd.xlane.f32.xlu1 %v5022_v47 }
 0x131   : > { %842 = vadd.xlane.f32.xlu0 %v5030_v51 }
 0x133   : > { %844 = vadd.xlane.f32.xlu1 %v5036_v53 }
 0x135   : > { %846 = vadd.xlane.f32.xlu0 %v5040_v56 }
 0x137   : > { %848 = vadd.xlane.f32.xlu1 %v5043_v57 }
 0x19d   : > { %v815_v22 = vpop.xlane.xlu1 %814 }
 0x19e   : > { %v811_v26 = vpop.xlane.xlu0 %810  ;;  %v877_v37 = vmul.f32 0.0078125, %v815_v22  ;;  %v4307_v22 = vld [vmem:[%s7909_s6 + $0x44] ss:$16 sps:$4 sm:$0xff]  }
 0x19f   : > { %v875_v28 = vmul.f32 0.0078125, %v811_v26  ;;  %v4310_v26 = vld [vmem:[%s7909_s6 + $0x4c] ss:$16 sps:$4 sm:$0xff]   ;;  %1473 = vmatprep.subr.bf16.mxu1 %v4307_v22 }
 0x1a0   : > { %v5109_v50 = vsub.f32 %v4934_v35, %v877_v37  ;;  %1666 = vmatprep.subr.bf16.mxu0 %v4310_v26  ;;  %v771_v26 = vld [vmem:[%s4917_s30 + $0xd8] sm:$0xff] }
 0x1a1   : > { %v5097_v29 = vsub.f32 %v4939_v39, %v875_v28  ;;  %v817_v46 = vpop.xlane.xlu1 %816  ;;  %v4305_v28 = vld [vmem:[%s7909_s6 + $0x40] ss:$16 sps:$4 sm:$0xff]  }
 0x1a2   : > { %v813_v30 = vpop.xlane.xlu0 %812  ;;  %v878_v52 = vmul.f32 0.0078125, %v817_v46  ;;  %v941_v0 = vmul.f32 %v5109_v50, %v5109_v50  ;;  %1474 = vmatpush1.bf16.msra.mxu1 %v4305_v28  ;;  %v4313_v46 = vld [vmem:[%s7909_s6 + $0x64] ss:$16 sps:$4 sm:$0xff]  }
 0x1a3   : > { %v876_v40 = vmul.f32 0.0078125, %v813_v30  ;;  %v939_v45 = vmul.f32 %v5097_v29, %v5097_v29  ;;  %v4308_v30 = vld [vmem:[%s7909_s6 + $0x48] ss:$16 sps:$4 sm:$0xff]   ;;  %1475 = vmatprep.subr.bf16.mxu1 %v4313_v46 }
 0x1a4   : > { %v5116_v61 = vsub.f32 %v4946_v43, %v878_v52  ;;  %1667 = vmatpush1.bf16.msra.mxu0 %v4308_v30  ;;  %v4316_v52 = vld [vmem:[%s7909_s6 + $0x6c] ss:$16 sps:$4 sm:$0xff]   ;;  %v4325_v30 = vld [vmem:[%s7909_s6 + $0xa4] ss:$16 sps:$4 sm:$0xff]  }
 0x1a5   : > { %v5103_v48 = vsub.f32 %v4948_v44, %v876_v40  ;;  %971 = vadd.xlane.f32.xlu0 %v939_v45  ;;  %v769_v45 = vld [vmem:[%s4917_s30 + $0xc8] sm:$0xff]  ;;  %1668 = vmatprep.subr.bf16.mxu0 %v4316_v52 }
 0x1a6   : > { %v819_v38 = vpop.xlane.xlu0 %818  ;;  %v942_v32 = vmul.f32 %v5116_v61, %v5116_v61  ;;  %v5183_v2 = vadd.f32 %v769_v45, %v5057_v1  ;;  %v4317_v1 = vld [vmem:[%s7909_s6 + $0x80] ss:$16 sps:$4 sm:$0xff]  }
 0x1a7   : > { %v940_v31 = vmul.f32 %v5103_v48, %v5103_v48  ;;  %v879_v62 = vmul.f32 0.0078125, %v819_v38  ;;  %v772_v45 = vld [vmem:[%s4917_s30 + $0xe0] sm:$0xff] }
 0x1a8   : > { %v821_v4 = vpop.xlane.xlu1 %820  ;;  %8099 = vst [vmem:[#allocation30_spill] sm:$0xff] %v5183_v2  ;;  %1669 = vmatpush1.bf16.msra.mxu0 %v4314_v55 }
 0x1a9   : > { %850 = vadd.xlane.f32.xlu0 %v5106_v49  ;;  %973 = vadd.xlane.f32.xlu1 %v940_v31  ;;  %v5129_v9 = vsub.f32 %v4957_v54, %v879_v62  ;;  %v880_v14 = vmul.f32 0.0078125, %v821_v4  ;;  %v4311_v31 = vld [vmem:[%s7909_s6 + $0x60] ss:$16 sps:$4 sm:$0xff]  }
 0x1aa   : > { %v823_v16 = vpop.xlane.xlu0 %822  ;;  %1476 = vmatpush1.bf16.msra.mxu1 %v4311_v31  ;;  %v5228_v31 = vadd.f32 %v771_v26, %v5054_v63  ;;  %v4329_v63 = vld [vmem:[%s7909_s6 + $0xc0] ss:$16 sps:$4 sm:$0xff]  }
 0x1ab   : > { %v5140_v19 = vsub.f32 %v4964_v59, %v880_v14  ;;  %v881_v18 = vmul.f32 0.0078125, %v823_v16  ;;  %v943_v20 = vmul.f32 %v5129_v9, %v5129_v9  ;;  %v770_v14 = vld [vmem:[%s4917_s30 + $0xd0] sm:$0xff]  ;;  %v4322_v16 = vld [vmem:[%s7909_s6 + $0x8c] ss:$16 sps:$4 sm:$0xff]   ;;  %1477 = vmatprep.subr.bf16.mxu1 %v4319_v15 }
 0x1ac   : > { %v825_v21 = vpop.xlane.xlu1 %824  ;;  %1670 = vmatprep.subr.bf16.mxu0 %v4322_v16  ;;  %8101 = vst [vmem:[#allocation32_spill] sm:$0xff] %v5228_v31  ;;  %v4335_v26 = vld [vmem:[%s7909_s6 + $0xe0] ss:$16 sps:$4 sm:$0xff]  }
 0x1ad   : > { %975 = vadd.xlane.f32.xlu0 %v941_v0  ;;  %852 = vadd.xlane.f32.xlu1 %v5119_v23  ;;  %v5161_v37 = vsub.f32 %v4962_v58, %v881_v18  ;;  %v882_v40 = vmul.f32 0.0078125, %v825_v21  ;;  %v944_v34 = vmul.f32 %v5140_v19, %v5140_v19  ;;  %v5205_v21 = vadd.f32 %v770_v14, %v5047_v27  ;;  %v4323_v27 = vld [vmem:[%s7909_s6 + $0xa0] ss:$16 sps:$4 sm:$0xff]   ;;  %v4332_v14 = vld [vmem:[%s7909_s6 + $0xc8] ss:$16 sps:$4 sm:$0xff]  }
 0x1ae   : > { %v827_v36 = vpop.xlane.xlu0 %826  ;;  %1478 = vmatpush1.bf16.msra.mxu1 %v4317_v1  ;;  %1671 = vmatpush1.bf16.msra.mxu0 %v4320_v17  ;;  %v773_v17 = vld [vmem:[%s4917_s30 + $0xe8] sm:$0xff] }
 0x1af   : > { %v5180_v62 = vsub.f32 %v4967_v60, %v882_v40  ;;  %v883_v0 = vmul.f32 0.0078125, %v827_v36  ;;  %v945_v4 = vmul.f32 %v5161_v37, %v5161_v37  ;;  %8100 = vst [vmem:[#allocation31_spill] sm:$0xff] %v5205_v21  ;;  %v4328_v36 = vld [vmem:[%s7909_s6 + $0xac] ss:$16 sps:$4 sm:$0xff]   ;;  %v4326_v40 = vld [vmem:[%s7909_s6 + $0xa8] ss:$16 sps:$4 sm:$0xff]   ;;  %1479 = vmatprep.subr.bf16.mxu1 %v4325_v30 }
 0x1b0   : > { %v829_v38 = vpop.xlane.xlu1 %828  ;;  %1672 = vmatprep.subr.bf16.mxu0 %v4328_v36 }
 0x1b1   : > { %854 = vadd.xlane.f32.xlu0 %v5126_v5  ;;  %977 = vadd.xlane.f32.xlu1 %v942_v32  ;;  %v5202_v18 = vsub.f32 %v4976_v6, %v883_v0  ;;  %v946_v22 = vmul.f32 %v5180_v62, %v5180_v62  ;;  %v4334_v0 = vld [vmem:[%s7909_s6 + $0xcc] ss:$16 sps:$4 sm:$0xff]  }
 0x1b2   : > { %v831_v32 = vpop.xlane.xlu0 %830  ;;  %1480 = vmatpush1.bf16.msra.mxu1 %v4323_v27  ;;  %1673 = vmatpush1.bf16.msra.mxu0 %v4326_v40  ;;  %v5271_v27 = vadd.f32 %v773_v17, %v5070_v12 }
 0x1b3   : > { %v885_v52 = vmul.f32 0.0078125, %v831_v32  ;;  %v947_v55 = vmul.f32 %v5202_v18, %v5202_v18  ;;  %1674 = vmatprep.subr.bf16.mxu0 %v4334_v0  ;;  %v7914_v0 = vmov 0  }
 0x1b4   : > { %v833_v28 = vpop.xlane.xlu1 %832  ;;  %8103 = vst [vmem:[#allocation34_spill] sm:$0xff] %v5271_v27  ;;  %1501 = vmatprep.mubr.bf16.mxu1 %v7914_v0  ;;  %1694 = vmatprep.mubr.bf16.mxu0 %v7914_v0 }
 0x1b5   : > { %856 = vadd.xlane.f32.xlu1 %v5137_v24  ;;  %979 = vadd.xlane.f32.xlu0 %v943_v20  ;;  %v884_v20 = vmul.f32 0.0078125, %v829_v38  ;;  %v4331_v38 = vld [vmem:[%s7909_s6 + $0xc4] ss:$16 sps:$4 sm:$0xff]   ;;  %v5249_v15 = vsub.f32 %v4982_v10, %v885_v52  ;;  %v886_v16 = vmul.f32 0.0078125, %v833_v28  ;;  %v4338_v28 = vld [vmem:[%s7909_s6 + $0xe8] ss:$16 sps:$4 sm:$0xff]  }
 0x1b6   : > { %1481 = vmatprep.subr.bf16.mxu1 %v4331_v38  ;;  %1675 = vmatpush1.bf16.msra.mxu0 %v4332_v14  ;;  %v774_v52 = vld [vmem:[%s4917_s30 + $0xf0] sm:$0xff] }
 0x1b7   : > { %v5225_v46 = vsub.f32 %v4984_v11, %v884_v20  ;;  %1482 = vmatpush1.bf16.msra.mxu1 %v4329_v63  ;;  %v4337_v20 = vld [vmem:[%s7909_s6 + $0xe4] ss:$16 sps:$4 sm:$0xff]   ;;  %v5268_v30 = vsub.f32 %v4987_v13, %v886_v16  ;;  %v949_v40 = vmul.f32 %v5249_v15, %v5249_v15  ;;  %v5283_v63 = vadd.f32 %v774_v52, %v5061_v3  ;;  %v775_v16 = vld [vmem:[%s4917_s30 + $0xf8] sm:$0xff]  ;;  %s367_s30 = sand.u32 1, %s4747_s14  }
 0x1b8   : > { %v837_v32 = vpop.xlane.xlu1 %836  ;;  %1483 = vmatprep.subr.bf16.mxu1 %v4337_v20  ;;  %s3812_s11 = sshll.u32 %s367_s30, 8  ;;  %s7862_s17 = scalar_lea.sflag [#allocation3], %s367_s30 }
 0x1b9   : > { %981 = vadd.xlane.f32.xlu1 %v944_v34  ;;  %858 = vadd.xlane.f32.xlu0 %v5151_v25  ;;  %v835_v34 = vpop.xlane.xlu0 %834  ;;  %8104 = vst [vmem:[#allocation35_spill] sm:$0xff] %v5283_v63  ;;  %v950_v14 = vmul.f32 %v5268_v30, %v5268_v30  ;;  %s7747_s12 = scalar_lea.vmem [#allocation2], %s3812_s11 }
 0x1ba   : > { %v887_v36 = vmul.f32 0.0078125, %v835_v34  ;;  %s3734_s21 = sshll.u32 %s7747_s12, 4  ;;  %s7855_s21 = int_to_ptr.vmem [resolvable:$true] %s3734_s21 }
 0x1bb   : > { %1484 = vmatpush1.bf16.msra.mxu1 %v4335_v26  ;;  %s4693_s0 = scalar_lea.vmem %s7855_s21, 4096  ;;  %p4700_p0 = scmp.lt.s32.totalorder %s7855_s21, %s4698_s28 }
 0x1bc   : > { %v5280_v12 = vsub.f32 %v5008_v33, %v887_v36  ;;  %p4694_p11 = scmp.ne.s32.totalorder %s7855_s21, %s4693_s0  ;;  %p4701_p1 = scmp.lt.s32.totalorder %s4699_s29, %s4693_s0 }
 0x1bd   : > { %860 = vadd.xlane.f32.xlu1 %v5183_v2  ;;  %983 = vadd.xlane.f32.xlu0 %v945_v4  ;;  %v5239_v4 = vadd.f32 %v772_v45, %v5064_v7  ;;  %v948_v7 = vmul.f32 %v5225_v46, %v5225_v46  ;;  %v839_v1 = vpop.xlane.xlu0 %838  ;;  %v841_v45 = vpop.xlane.xlu1 %840 }
 0x1be   : > { %v889_v34 = vmul.f32 0.0078125, %v839_v1  ;;  %v5296_v1 = vadd.f32 %v775_v16, %v5067_v8  ;;  %v951_v3 = vmul.f32 %v5280_v12, %v5280_v12  ;;  %p4695_p12 = pnand %p4694_p11, %p4854_p5  ;;  %p4702_p2 = por %p4701_p1, %p4700_p0 }
 0x1bf   : > { %8102 = vst [vmem:[#allocation33_spill] sm:$0xff] %v5239_v4 }
 0x1c0   : > { %v5293_v20 = vsub.f32 %v5014_v41, %v889_v34  ;;  %8105 = vst [vmem:[#allocation36_spill] sm:$0xff] %v5296_v1  ;;  %p4696_p13 = pneg %p4695_p12 }
 0x1c1   : > { %985 = vadd.xlane.f32.xlu1 %v946_v22  ;;  %862 = vadd.xlane.f32.xlu0 %v5205_v21  ;;  %v4340_v22 = vld [vmem:[%s7909_s6 + $0xec] ss:$16 sps:$4 sm:$0xff]   ;;  %v843_v38 = vpop.xlane.xlu0 %842  ;;  %v845_v17 = vpop.xlane.xlu1 %844 }
 0x1c2   : > { %1676 = vmatprep.subr.bf16.mxu0 %v4340_v22  ;;  %v891_v22 = vmul.f32 0.0078125, %v843_v38  ;;  %v953_v8 = vmul.f32 %v5293_v20, %v5293_v20  ;;  %p4703_p3 = pnand %p4702_p2, %p4696_p13 }
 0x1c3   : > { %1677 = vmatpush1.bf16.msra.mxu0 %v4338_v28 }
 0x1c5   : > { %864 = vadd.xlane.f32.xlu1 %v5228_v31  ;;  %987 = vadd.xlane.f32.xlu0 %v947_v55  ;;  %v888_v55 = vmul.f32 0.0078125, %v837_v32  ;;  %v847_v26 = vpop.xlane.xlu0 %846 }
 0x1c6   : > { %v893_v52 = vmul.f32 0.0078125, %v847_v26 }
 0x1c7   : > { %v5290_v32 = vsub.f32 %v5016_v42, %v888_v55  ;;  %v849_v55 = vpop.xlane.xlu1 %848 }
 0x1c8   : > { %v894_v16 = vmul.f32 0.0078125, %v849_v55 }
 0x1c9   : > { %989 = vadd.xlane.f32.xlu1 %v948_v7  ;;  %866 = vadd.xlane.f32.xlu0 %v5239_v4  ;;  %v890_v7 = vmul.f32 0.0078125, %v841_v45  ;;  %v952_v36 = vmul.f32 %v5290_v32, %v5290_v32  ;;  %v892_v45 = vmul.f32 0.0078125, %v845_v17 }
 0x1ca   : > { %v5322_v17 = vsub.f32 %v5043_v57, %v894_v16 }
 0x1cb   : > { %v5302_v28 = vsub.f32 %v5022_v47, %v890_v7  ;;  %v5314_v34 = vsub.f32 %v5036_v53, %v892_v45 }
 0x1cc   : > { %v958_v26 = vmul.f32 %v5322_v17, %v5322_v17 }
 0x1cd   : > { %868 = vadd.xlane.f32.xlu1 %v5271_v27  ;;  %991 = vadd.xlane.f32.xlu0 %v949_v40  ;;  %v5307_v40 = vsub.f32 %v5030_v51, %v891_v22  ;;  %v954_v38 = vmul.f32 %v5302_v28, %v5302_v28  ;;  %v956_v22 = vmul.f32 %v5314_v34, %v5314_v34 }
 0x1cf   : > { %v955_v7 = vmul.f32 %v5307_v40, %v5307_v40 }
 0x1d1   : > { %993 = vadd.xlane.f32.xlu1 %v950_v14  ;;  %870 = vadd.xlane.f32.xlu0 %v5283_v63  ;;  %v5317_v14 = vsub.f32 %v5040_v56, %v893_v52 }
 0x1d5   : > { %872 = vadd.xlane.f32.xlu1 %v5296_v1  ;;  %995 = vadd.xlane.f32.xlu0 %v951_v3  ;;  %v957_v3 = vmul.f32 %v5317_v14, %v5317_v14 }
 0x1d9   : > { %997 = vadd.xlane.f32.xlu1 %v952_v36  ;;  %999 = vadd.xlane.f32.xlu0 %v953_v8 }
 0x1dd   : > { %1001 = vadd.xlane.f32.xlu1 %v954_v38  ;;  %1003 = vadd.xlane.f32.xlu0 %v955_v7 }
 0x1e1   : > { %1005 = vadd.xlane.f32.xlu1 %v956_v22  ;;  %1007 = vadd.xlane.f32.xlu0 %v957_v3 }
 0x1e5   : > { %1009 = vadd.xlane.f32.xlu1 %v958_v26 }
 0x232   : > { %v972_v36 = vpop.xlane.xlu0 %971 }
 0x233   : > { %v1035_v45 = vmul.f32 0.0078125, %v972_v36 }
 0x235   : > { %v1067_v52 = vadd.f32 1e-05, %v1035_v45 }
 0x236   : > { %v974_v8 = vpop.xlane.xlu1 %973  ;;  %v851_v55 = vpop.xlane.xlu0 %850 }
 0x237   : > { %4373 = vrsqrt.f32 %v1067_v52  ;;  %v1036_v38 = vmul.f32 0.0078125, %v974_v8  ;;  %v895_v16 = vmul.f32 0.0078125, %v851_v55 }
 0x239   : > { %v1068_v7 = vadd.f32 1e-05, %v1036_v38  ;;  %v5331_v0 = vsub.f32 %v5106_v49, %v895_v16 }
 0x23a   : > { %v853_v57 = vpop.xlane.xlu1 %852  ;;  %v976_v56 = vpop.xlane.xlu0 %975 }
 0x23b   : > { %4375 = vrsqrt.f32 %v1068_v7  ;;  %v896_v22 = vmul.f32 0.0078125, %v853_v57  ;;  %v1037_v3 = vmul.f32 0.0078125, %v976_v56  ;;  %v959_v26 = vmul.f32 %v5331_v0, %v5331_v0 }
 0x23d   : > { %v5336_v36 = vsub.f32 %v5119_v23, %v896_v22  ;;  %v1069_v45 = vadd.f32 1e-05, %v1037_v3  ;;  %1011 = vadd.xlane.f32.xlu0 %v959_v26  ;;  %v5347_v3 = vld [vmem:[%s7907_s4] ss:$0 sm:$0xff] }
 0x23e   : > { %v978_v52 = vpop.xlane.xlu1 %977  ;;  %v855_v8 = vpop.xlane.xlu0 %854 }
 0x23f   : > { %4377 = vrsqrt.f32 %v1069_v45  ;;  %v1038_v55 = vmul.f32 0.0078125, %v978_v52  ;;  %v897_v38 = vmul.f32 0.0078125, %v855_v8  ;;  %v960_v16 = vmul.f32 %v5336_v36, %v5336_v36 }
 0x241   : > { %v4374_v49 = vpop.eup %4373  ;;  %v1070_v7 = vadd.f32 1e-05, %v1038_v55  ;;  %v5341_v56 = vsub.f32 %v5126_v5, %v897_v38  ;;  %1013 = vadd.xlane.f32.xlu1 %v960_v16 }
 0x242   : > { %v1131_v57 = vmul.f32 %v4374_v49, %v5097_v29  ;;  %v857_v22 = vpop.xlane.xlu1 %856  ;;  %v980_v23 = vpop.xlane.xlu0 %979 }
 0x243   : > { %4379 = vrsqrt.f32 %v1070_v7  ;;  %v898_v26 = vmul.f32 0.0078125, %v857_v22  ;;  %v1039_v45 = vmul.f32 0.0078125, %v980_v23  ;;  %v961_v52 = vmul.f32 %v5341_v56, %v5341_v56  ;;  %v5361_v22 = vld [vmem:[%s7908_s5] ss:$0 sm:$0xff] }
 0x244   : > { %v1169_v29 = vmul.f32 %v5347_v3, %v1131_v57 }
 0x245   : > { %v4376_v8 = vpop.eup %4375  ;;  %v5352_v55 = vsub.f32 %v5137_v24, %v898_v26  ;;  %v1071_v38 = vadd.f32 1e-05, %v1039_v45  ;;  %1015 = vadd.xlane.f32.xlu0 %v961_v52 }
 0x246   : > { %v1132_v49 = vmul.f32 %v4376_v8, %v5103_v48  ;;  %v982_v16 = vpop.xlane.xlu1 %981  ;;  %v859_v5 = vpop.xlane.xlu0 %858 }
 0x247   : > { %4381 = vrsqrt.f32 %v1071_v38  ;;  %v1040_v53 = vmul.f32 0.0078125, %v982_v16  ;;  %v899_v7 = vmul.f32 0.0078125, %v859_v5  ;;  %v962_v23 = vmul.f32 %v5352_v55, %v5352_v55 }
 0x248   : > { %v1170_v26 = vmul.f32 %v5347_v3, %v1132_v49  ;;  %v1207_v5 = vadd.f32 %v5361_v22, %v1169_v29 }
 0x249   : > { %v4378_v45 = vpop.eup %4377  ;;  %v1072_v52 = vadd.f32 1e-05, %v1040_v53  ;;  %v5365_v57 = vsub.f32 %v5151_v25, %v899_v7  ;;  %1017 = vadd.xlane.f32.xlu1 %v962_v23 }
 0x24a   : > { %v861_v48 = vpop.xlane.xlu1 %860  ;;  %v984_v8 = vpop.xlane.xlu0 %983  ;;  %v1208_v38 = vadd.f32 %v5361_v22, %v1170_v26  ;;  %v1133_v16 = vmul.f32 %v4378_v45, %v5109_v50 }
 0x24b   : > { %4383 = vrsqrt.f32 %v1072_v52  ;;  %v900_v24 = vmul.f32 0.0078125, %v861_v48  ;;  %v1041_v51 = vmul.f32 0.0078125, %v984_v8  ;;  %v963_v49 = vmul.f32 %v5365_v57, %v5365_v57 }
 0x24c   : > { %v1239_v47 = vpack.c.bf16 %v1208_v38, %v1207_v5  ;;  %v1171_v50 = vmul.f32 %v5347_v3, %v1133_v16  ;;  %v8106_v8 = vmov 0  }
 0x24d   : > { %v4380_v53 = vpop.eup %4379  ;;  %v5373_v7 = vsub.f32 %v5183_v2, %v900_v24  ;;  %v1073_v23 = vadd.f32 1e-05, %v1041_v51  ;;  %1019 = vadd.xlane.f32.xlu0 %v963_v49 }
 0x24e   : > { %v986_v25 = vpop.xlane.xlu1 %985  ;;  %1502 = vmatmul.mubr.bf16.vlgmr.msra.gmra.mrb[16].mxu1 %v1239_v47  ;;  %1695 = vmatmul.mubr.bf16.vlgmr.msra.gmra.mrb[16].mxu0 %v1239_v47  ;;  %v863_v29 = vpop.xlane.xlu0 %862  ;;  %v1134_v26 = vmul.f32 %v4380_v53, %v5116_v61 }
 0x24f   : > { %4385 = vrsqrt.f32 %v1073_v23  ;;  %v1042_v45 = vmul.f32 0.0078125, %v986_v25  ;;  %v901_v52 = vmul.f32 0.0078125, %v863_v29  ;;  %v964_v48 = vmul.f32 %v5373_v7, %v5373_v7  ;;  %1511 = vmatprep.mubr.bf16.mxu1 %v8106_v8  ;;  %1704 = vmatprep.mubr.bf16.mxu0 %v8106_v8 }
 0x250   : > { %v1172_v51 = vmul.f32 %v5347_v3, %v1134_v26  ;;  %v1209_v25 = vadd.f32 %v5361_v22, %v1171_v50 }
 0x251   : > { %v4382_v24 = vpop.eup %4381  ;;  %v1074_v5 = vadd.f32 1e-05, %v1042_v45  ;;  %v5383_v47 = vsub.f32 %v5205_v21, %v901_v52  ;;  %1021 = vadd.xlane.f32.xlu1 %v964_v48 }
 0x252   : > { %v865_v61 = vpop.xlane.xlu1 %864  ;;  %v988_v38 = vpop.xlane.xlu0 %987  ;;  %v1210_v16 = vadd.f32 %v5361_v22, %v1172_v51  ;;  %v1135_v49 = vmul.f32 %v4382_v24, %v5129_v9 }
 0x253   : > { %4387 = vrsqrt.f32 %v1074_v5  ;;  %v902_v53 = vmul.f32 0.0078125, %v865_v61  ;;  %v1043_v23 = vmul.f32 0.0078125, %v988_v38  ;;  %v965_v29 = vmul.f32 %v5383_v47, %v5383_v47 }
 0x254   : > { %v1240_v26 = vpack.c.bf16 %v1210_v16, %v1209_v25  ;;  %v1173_v9 = vmul.f32 %v5347_v3, %v1135_v49 }
 0x255   : > { %v4384_v45 = vpop.eup %4383  ;;  %v5391_v52 = vsub.f32 %v5228_v31, %v902_v53  ;;  %v1075_v48 = vadd.f32 1e-05, %v1043_v23  ;;  %1023 = vadd.xlane.f32.xlu0 %v965_v29 }
 0x256   : > { %v990_v21 = vpop.xlane.xlu1 %989  ;;  %1512 = vmatmul.mubr.bf16.gmra.mrb[20].mxu1 %v1240_v26  ;;  %1705 = vmatmul.mubr.bf16.gmra.mrb[20].mxu0 %v1240_v26  ;;  %v867_v50 = vpop.xlane.xlu0 %866  ;;  %v1136_v51 = vmul.f32 %v4384_v45, %v5140_v19 }
 0x257   : > { %4389 = vrsqrt.f32 %v1075_v48  ;;  %v1044_v24 = vmul.f32 0.0078125, %v990_v21  ;;  %v903_v5 = vmul.f32 0.0078125, %v867_v50  ;;  %v966_v61 = vmul.f32 %v5391_v52, %v5391_v52  ;;  %1521 = vmatprep.mubr.bf16.mxu1 %v8106_v8  ;;  %1714 = vmatprep.mubr.bf16.mxu0 %v8106_v8 }
 0x258   : > { %v1174_v38 = vmul.f32 %v5347_v3, %v1136_v51  ;;  %v1211_v21 = vadd.f32 %v5361_v22, %v1173_v9 }
 0x259   : > { %v4386_v25 = vpop.eup %4385  ;;  %v1076_v16 = vadd.f32 1e-05, %v1044_v24  ;;  %v5401_v53 = vsub.f32 %v5239_v4, %v903_v5  ;;  %1025 = vadd.xlane.f32.xlu1 %v966_v61 }
 0x25a   : > { %v869_v19 = vpop.xlane.xlu1 %868  ;;  %v992_v49 = vpop.xlane.xlu0 %991  ;;  %v1212_v23 = vadd.f32 %v5361_v22, %v1174_v38  ;;  %v1137_v29 = vmul.f32 %v4386_v25, %v5161_v37 }
 0x25b   : > { %4391 = vrsqrt.f32 %v1076_v16  ;;  %v904_v26 = vmul.f32 0.0078125, %v869_v19  ;;  %v1045_v45 = vmul.f32 0.0078125, %v992_v49  ;;  %v967_v48 = vmul.f32 %v5401_v53, %v5401_v53 }
 0x25c   : > { %v1241_v50 = vpack.c.bf16 %v1212_v23, %v1211_v21  ;;  %v1175_v37 = vmul.f32 %v5347_v3, %v1137_v29 }
 0x25d   : > { %v4388_v51 = vpop.eup %4387  ;;  %v5409_v24 = vsub.f32 %v5271_v27, %v904_v26  ;;  %v1077_v5 = vadd.f32 1e-05, %v1045_v45  ;;  %1027 = vadd.xlane.f32.xlu0 %v967_v48 }
 0x25e   : > { %v994_v61 = vpop.xlane.xlu1 %993  ;;  %1522 = vmatmul.mubr.bf16.gmra.mrb[24].mxu1 %v1241_v50  ;;  %1715 = vmatmul.mubr.bf16.gmra.mrb[24].mxu0 %v1241_v50  ;;  %v871_v9 = vpop.xlane.xlu0 %870  ;;  %v1138_v38 = vmul.f32 %v4388_v51, %v5180_v62  ;;  %v1213_v45 = vadd.f32 %v5361_v22, %v1175_v37 }
 0x25f   : > { %4393 = vrsqrt.f32 %v1077_v5  ;;  %v1046_v25 = vmul.f32 0.0078125, %v994_v61  ;;  %v905_v16 = vmul.f32 0.0078125, %v871_v9  ;;  %v968_v19 = vmul.f32 %v5409_v24, %v5409_v24  ;;  %1531 = vmatprep.mubr.bf16.mxu1 %v8106_v8  ;;  %1724 = vmatprep.mubr.bf16.mxu0 %v8106_v8 }
 0x260   : > { %v1176_v49 = vmul.f32 %v5347_v3, %v1138_v38 }
 0x261   : > { %v4390_v21 = vpop.eup %4389  ;;  %v1078_v23 = vadd.f32 1e-05, %v1046_v25  ;;  %v5419_v26 = vsub.f32 %v5283_v63, %v905_v16  ;;  %1029 = vadd.xlane.f32.xlu1 %v968_v19 }
 0x262   : > { %v873_v62 = vpop.xlane.xlu1 %872  ;;  %v996_v29 = vpop.xlane.xlu0 %995  ;;  %v1214_v48 = vadd.f32 %v5361_v22, %v1176_v49  ;;  %v1139_v50 = vmul.f32 %v4390_v21, %v5202_v18 }
 0x263   : > { %4395 = vrsqrt.f32 %v1078_v23  ;;  %v906_v51 = vmul.f32 0.0078125, %v873_v62  ;;  %v1047_v5 = vmul.f32 0.0078125, %v996_v29  ;;  %v969_v61 = vmul.f32 %v5419_v26, %v5419_v26 }
 0x264   : > { %v1242_v9 = vpack.c.bf16 %v1214_v48, %v1213_v45  ;;  %v1177_v18 = vmul.f32 %v5347_v3, %v1139_v50 }
 0x265   : > { %v4392_v38 = vpop.eup %4391  ;;  %v5427_v25 = vsub.f32 %v5296_v1, %v906_v51  ;;  %v1079_v16 = vadd.f32 1e-05, %v1047_v5  ;;  %1031 = vadd.xlane.f32.xlu0 %v969_v61 }
 0x266   : > { %v998_v19 = vpop.xlane.xlu1 %997  ;;  %1532 = vmatmul.mubr.bf16.gmra.mrb[28].mxu1 %v1242_v9  ;;  %1725 = vmatmul.mubr.bf16.gmra.mrb[28].mxu0 %v1242_v9  ;;  %v1000_v37 = vpop.xlane.xlu0 %999  ;;  %v1140_v49 = vmul.f32 %v4392_v38, %v5225_v46  ;;  %v1215_v50 = vadd.f32 %v5361_v22, %v1177_v18 }
 0x267   : > { %4397 = vrsqrt.f32 %v1079_v16  ;;  %v1048_v21 = vmul.f32 0.0078125, %v998_v19  ;;  %v1049_v23 = vmul.f32 0.0078125, %v1000_v37  ;;  %v970_v62 = vmul.f32 %v5427_v25, %v5427_v25  ;;  %1541 = vmatprep.mubr.bf16.mxu1 %v8106_v8  ;;  %1734 = vmatprep.mubr.bf16.mxu0 %v8106_v8 }
 0x268   : > { %v1178_v29 = vmul.f32 %v5347_v3, %v1140_v49 }
 0x269   : > { %v4394_v45 = vpop.eup %4393  ;;  %v1080_v48 = vadd.f32 1e-05, %v1048_v21  ;;  %v1081_v51 = vadd.f32 1e-05, %v1049_v23  ;;  %1033 = vadd.xlane.f32.xlu1 %v970_v62 }
 0x26a   : > { %v1002_v5 = vpop.xlane.xlu1 %1001  ;;  %v1004_v46 = vpop.xlane.xlu0 %1003  ;;  %v1216_v61 = vadd.f32 %v5361_v22, %v1178_v29  ;;  %v1141_v9 = vmul.f32 %v4394_v45, %v5249_v15 }
 0x26b   : > { %4399 = vrsqrt.f32 %v1080_v48  ;;  %v1050_v38 = vmul.f32 0.0078125, %v1002_v5  ;;  %v1051_v1 = vmul.f32 0.0078125, %v1004_v46 }
 0x26c   : > { %v1243_v16 = vpack.c.bf16 %v1216_v61, %v1215_v50  ;;  %4401 = vrsqrt.f32 %v1081_v51  ;;  %v1179_v23 = vmul.f32 %v5347_v3, %v1141_v9 }
 0x26d   : > { %v4396_v19 = vpop.eup %4395  ;;  %v1082_v37 = vadd.f32 1e-05, %v1050_v38  ;;  %v1083_v29 = vadd.f32 1e-05, %v1051_v1 }
 0x26e   : > { %v1006_v49 = vpop.xlane.xlu1 %1005  ;;  %1542 = vmatmul.mubr.bf16.gmra.mrb[32].mxu1 %v1243_v16  ;;  %1735 = vmatmul.mubr.bf16.gmra.mrb[32].mxu0 %v1243_v16  ;;  %v1142_v21 = vmul.f32 %v4396_v19, %v5268_v30  ;;  %v1008_v48 = vpop.xlane.xlu0 %1007  ;;  %v1217_v5 = vadd.f32 %v5361_v22, %v1179_v23 }
 0x26f   : > { %4403 = vrsqrt.f32 %v1082_v37  ;;  %v1052_v18 = vmul.f32 0.0078125, %v1006_v49  ;;  %1551 = vmatprep.mubr.bf16.mxu1 %v8106_v8  ;;  %1744 = vmatprep.mubr.bf16.mxu0 %v8106_v8  ;;  %v1053_v38 = vmul.f32 0.0078125, %v1008_v48 }
 0x270   : > { %v1180_v15 = vmul.f32 %v5347_v3, %v1142_v21 }
 0x271   : > { %v4398_v62 = vpop.eup %4397  ;;  %v1084_v45 = vadd.f32 1e-05, %v1052_v18  ;;  %v1085_v21 = vadd.f32 1e-05, %v1053_v38  ;;  %v4341_v38 = vld [vmem:[%s7911_s8 + $0x40] sm:$0xff]  }
 0x272   : > { %v1010_v51 = vpop.xlane.xlu1 %1009  ;;  %v1218_v46 = vadd.f32 %v5361_v22, %v1180_v15  ;;  %v1143_v30 = vmul.f32 %v4398_v62, %v5280_v12  ;;  %3939 = vmatprep.subr.bf16.mxu1 %v4341_v38  ;;  %v4359_v38 = vld [vmem:[%s7911_s8 + $0x20] sm:$0xff]  }
 0x273   : > { %4405 = vrsqrt.f32 %v1084_v45  ;;  %v1054_v50 = vmul.f32 0.0078125, %v1010_v51 }
 0x274   : > { %v1244_v61 = vpack.c.bf16 %v1218_v46, %v1217_v5  ;;  %4407 = vrsqrt.f32 %v1083_v29  ;;  %v1181_v1 = vmul.f32 %v5347_v3, %v1143_v30 }
 0x275   : > { %v4400_v9 = vpop.eup %4399  ;;  %v1086_v37 = vadd.f32 1e-05, %v1054_v50 }
 0x276   : > { %1552 = vmatmul.mubr.bf16.gmra.mrb[36].mxu1 %v1244_v61  ;;  %1745 = vmatmul.mubr.bf16.gmra.mrb[36].mxu0 %v1244_v61  ;;  %v1144_v16 = vmul.f32 %v4400_v9, %v5290_v32  ;;  %v4402_v19 = vpop.eup %4401  ;;  %v1219_v23 = vadd.f32 %v5361_v22, %v1181_v1  ;;  %v4344_v1 = vld [vmem:[%s7911_s8 + $0x80] sm:$0xff]  }
 0x277   : > { %1561 = vmatprep.mubr.bf16.mxu1 %v8106_v8  ;;  %1754 = vmatprep.mubr.bf16.mxu0 %v8106_v8  ;;  %v1145_v15 = vmul.f32 %v4402_v19, %v5293_v20  ;;  %4409 = vrsqrt.f32 %v1086_v37 }
 0x278   : > { %v1182_v12 = vmul.f32 %v5347_v3, %v1144_v16  ;;  %4411 = vrsqrt.f32 %v1085_v21 }
 0x279   : > { %v4404_v49 = vpop.eup %4403  ;;  %v1183_v48 = vmul.f32 %v5347_v3, %v1145_v15  ;;  %v4345_v15 = vld [vmem:[%s7911_s8 + $0x48] sm:$0xff]  }
 0x27a   : > { %v1220_v18 = vadd.f32 %v5361_v22, %v1182_v12  ;;  %v1146_v32 = vmul.f32 %v4404_v49, %v5302_v28 }
 0x27b   : > { %v1221_v28 = vadd.f32 %v5361_v22, %v1183_v48  ;;  %v4349_v48 = vld [vmem:[%s7911_s8 + $0x50] sm:$0xff]  }
 0x27c   : > { %v1245_v62 = vpack.c.bf16 %v1220_v18, %v1219_v23  ;;  %v1184_v29 = vmul.f32 %v5347_v3, %v1146_v32  ;;  %v4347_v32 = vld [vmem:[%s7911_s8 + $0xc8] sm:$0xff]  }
 0x27d   : > { %v4406_v45 = vpop.eup %4405 }
 0x27e   : > { %1562 = vmatmul.mubr.bf16.gmra.mrb[40].mxu1 %v1245_v62  ;;  %1755 = vmatmul.mubr.bf16.gmra.mrb[40].mxu0 %v1245_v62  ;;  %v4408_v51 = vpop.eup %4407  ;;  %v1222_v5 = vadd.f32 %v5361_v22, %v1184_v29  ;;  %v1148_v20 = vmul.f32 %v4406_v45, %v5314_v34  ;;  %v4342_v34 = vld [vmem:[%s7911_s8] sm:$0xff]  }
 0x27f   : > { %1571 = vmatprep.mubr.bf16.mxu1 %v8106_v8  ;;  %1764 = vmatprep.mubr.bf16.mxu0 %v8106_v8  ;;  %v1147_v46 = vmul.f32 %v4408_v51, %v5307_v40  ;;  %v4343_v40 = vld [vmem:[%s7911_s8 + $0xc0] sm:$0xff]   ;;  %v4351_v51 = vld [vmem:[%s7911_s8 + $0xd0] sm:$0xff]  }
 0x280   : > { %v1246_v30 = vpack.c.bf16 %v1222_v5, %v1221_v28  ;;  %v1186_v50 = vmul.f32 %v5347_v3, %v1148_v20  ;;  %4051 = vmatprep.subr.bf16.mxu0 %v4343_v40  ;;  %3940 = vmatpush3.bf16.msra.mxu1 %v4342_v34  ;;  %v4350_v5 = vld [vmem:[%s7911_s8 + $0x10] sm:$0xff]   ;;  %v4353_v28 = vld [vmem:[%s7911_s8 + $0x58] sm:$0xff]   ;;  %v4360_v34 = vld [vmem:[%s7911_s8 + $0xa0] sm:$0xff]  }
 0x281   : > { %v4410_v61 = vpop.eup %4409  ;;  %v1185_v9 = vmul.f32 %v5347_v3, %v1147_v46  ;;  %4052 = vmatpush3.bf16.msra.mxu0 %v4344_v1  ;;  %3941 = vmatprep.subr.bf16.mxu1 %v4345_v15  ;;  %v4352_v20 = vld [vmem:[%s7911_s8 + $0x90] sm:$0xff]   ;;  %v4354_v46 = vld [vmem:[%s7911_s8 + $0xd8] sm:$0xff]   ;;  %v4361_v40 = vld [vmem:[%s7911_s8 + $0x68] sm:$0xff]  }
 0x282   : > { %v4412_v16 = vpop.eup %4411  ;;  %v1224_v19 = vadd.f32 %v5361_v22, %v1186_v50  ;;  %v1150_v37 = vmul.f32 %v4410_v61, %v5322_v17  ;;  %v4346_v17 = vld [vmem:[%s7911_s8 + $0x8] sm:$0xff]   ;;  %4053 = vmatprep.subr.bf16.mxu0 %v4347_v32  ;;  %v4356_v50 = vld [vmem:[%s7911_s8 + $0x98] sm:$0xff]   ;;  %v4357_v61 = vld [vmem:[%s7911_s8 + $0x60] sm:$0xff]  }
 0x283   : > { %v1223_v12 = vadd.f32 %v5361_v22, %v1185_v9  ;;  %v1149_v49 = vmul.f32 %v4412_v16, %v5317_v14  ;;  %v4348_v14 = vld [vmem:[%s7911_s8 + $0x88] sm:$0xff]   ;;  %v4358_v9 = vld [vmem:[%s7911_s8 + $0xe0] sm:$0xff]   ;;  %v4371_v15 = vld [vmem:[%s7911_s8 + $0x38] sm:$0xff]  }
 0x284   : > { %v1188_v23 = vmul.f32 %v5347_v3, %v1150_v37  ;;  %3942 = vmatpush3.bf16.msra.mxu1 %v4346_v17  ;;  %v4362_v16 = vld [vmem:[%s7911_s8 + $0xe8] sm:$0xff]   ;;  %v4365_v37 = vld [vmem:[%s7911_s8 + $0x70] sm:$0xff]   ;;  %v4372_v17 = vld [vmem:[%s7911_s8 + $0xb8] sm:$0xff]  }
 0x285   : > { %v1247_v21 = vpack.c.bf16 %v1224_v19, %v1223_v12  ;;  %v1187_v18 = vmul.f32 %v5347_v3, %v1149_v49  ;;  %4054 = vmatpush3.bf16.msra.mxu0 %v4348_v14  ;;  %3943 = vmatprep.subr.bf16.mxu1 %v4349_v48  ;;  %v4363_v1 = vld [vmem:[%s7911_s8 + $0x28] sm:$0xff]   ;;  %v4366_v12 = vld [vmem:[%s7911_s8 + $0xf0] sm:$0xff]  }
 0x286   : > { %1572 = vmatmul.mubr.bf16.gmra.mrb[44].mxu1 %v1246_v30  ;;  %1765 = vmatmul.mubr.bf16.gmra.mrb[44].mxu0 %v1246_v30  ;;  %v1226_v62 = vadd.f32 %v5361_v22, %v1188_v23  ;;  %v4355_v30 = vld [vmem:[%s7911_s8 + $0x18] sm:$0xff]   ;;  %v4364_v19 = vld [vmem:[%s7911_s8 + $0xa8] sm:$0xff]   ;;  %v4367_v49 = vld [vmem:[%s7911_s8 + $0x30] sm:$0xff]  }
 0x287   : > { %1581 = vmatprep.mubr.bf16.mxu1 %v8106_v8  ;;  %1774 = vmatprep.mubr.bf16.mxu0 %v8106_v8  ;;  %v1225_v29 = vadd.f32 %v5361_v22, %v1187_v18  ;;  %v4369_v23 = vld [vmem:[%s7911_s8 + $0x78] sm:$0xff]  }
 0x288   : > { %4055 = vmatprep.subr.bf16.mxu0 %v4351_v51  ;;  %3944 = vmatpush3.bf16.msra.mxu1 %v4350_v5  ;;  %v4370_v18 = vld [vmem:[%s7911_s8 + $0xf8] sm:$0xff]  }
 0x289   : > { %v1248_v45 = vpack.c.bf16 %v1226_v62, %v1225_v29  ;;  %4056 = vmatpush3.bf16.msra.mxu0 %v4352_v20  ;;  %3945 = vmatprep.subr.bf16.mxu1 %v4353_v28 }
 0x28a   : > { %4057 = vmatprep.subr.bf16.mxu0 %v4354_v46 }
 0x28c   : > { %3946 = vmatpush3.bf16.msra.mxu1 %v4355_v30 }
 0x28d   : > { %4058 = vmatpush3.bf16.msra.mxu0 %v4356_v50  ;;  %3947 = vmatprep.subr.bf16.mxu1 %v4357_v61 }
 0x28e   : > { %1582 = vmatmul.mubr.bf16.gmra.mrb[48].mxu1 %v1247_v21  ;;  %1775 = vmatmul.mubr.bf16.gmra.mrb[48].mxu0 %v1247_v21  ;;  %v4368_v21 = vld [vmem:[%s7911_s8 + $0xb0] sm:$0xff]  }
 0x28f   : > { %1591 = vmatprep.mubr.bf16.mxu1 %v8106_v8  ;;  %1784 = vmatprep.mubr.bf16.mxu0 %v8106_v8 }
 0x290   : > { %4059 = vmatprep.subr.bf16.mxu0 %v4358_v9  ;;  %3948 = vmatpush3.bf16.msra.mxu1 %v4359_v38 }
 0x291   : > { %4060 = vmatpush3.bf16.msra.mxu0 %v4360_v34  ;;  %3949 = vmatprep.subr.bf16.mxu1 %v4361_v40 }
 0x292   : > { %4061 = vmatprep.subr.bf16.mxu0 %v4362_v16 }
 0x294   : > { %3950 = vmatpush3.bf16.msra.mxu1 %v4363_v1 }
 0x295   : > { %4062 = vmatpush3.bf16.msra.mxu0 %v4364_v19  ;;  %3951 = vmatprep.subr.bf16.mxu1 %v4365_v37 }
 0x296   : > { %1592 = vmatmul.mubr.bf16.gmra.mrb[52].mxu1 %v1248_v45  ;;  %1785 = vmatmul.mubr.bf16.gmra.mrb[52].mxu0 %v1248_v45 }
 0x297   : > { %1601 = vmatprep.mubr.bf16.mxu1 %v8106_v8  ;;  %1794 = vmatprep.mubr.bf16.mxu0 %v8106_v8 }
 0x298   : > { %4063 = vmatprep.subr.bf16.mxu0 %v4366_v12  ;;  %3952 = vmatpush3.bf16.msra.mxu1 %v4367_v49 }
 0x299   : > { %4064 = vmatpush3.bf16.msra.mxu0 %v4368_v21  ;;  %3953 = vmatprep.subr.bf16.mxu1 %v4369_v23 }
 0x29a   : > { %4065 = vmatprep.subr.bf16.mxu0 %v4370_v18 }
 0x29c   : > { %3954 = vmatpush3.bf16.msra.mxu1 %v4371_v15 }
 0x29d   : > { %4066 = vmatpush3.bf16.msra.mxu0 %v4372_v17 }
 0x2ca   : > { %v1012_v32 = vpop.xlane.xlu0 %1011 }
 0x2cb   : > { %v1055_v14 = vmul.f32 0.0078125, %v1012_v32 }
 0x2cd   : > { %v1087_v62 = vadd.f32 1e-05, %v1055_v14 }
 0x2ce   : > { %v1014_v29 = vpop.xlane.xlu1 %1013 }
 0x2cf   : > { %4413 = vrsqrt.f32 %v1087_v62  ;;  %v1056_v45 = vmul.f32 0.0078125, %v1014_v29 }
 0x2d1   : > { %v1088_v48 = vadd.f32 1e-05, %v1056_v45 }
 0x2d2   : > { %v1016_v51 = vpop.xlane.xlu0 %1015 }
 0x2d3   : > { %4415 = vrsqrt.f32 %v1088_v48  ;;  %v1057_v5 = vmul.f32 0.0078125, %v1016_v51 }
 0x2d5   : > { %v1089_v20 = vadd.f32 1e-05, %v1057_v5 }
 0x2d6   : > { %v1018_v28 = vpop.xlane.xlu1 %1017 }
 0x2d7   : > { %4417 = vrsqrt.f32 %v1089_v20  ;;  %v1058_v46 = vmul.f32 0.0078125, %v1018_v28 }
 0x2d9   : > { %v4414_v30 = vpop.eup %4413  ;;  %v1090_v50 = vadd.f32 1e-05, %v1058_v46 }
 0x2da   : > { %v1020_v61 = vpop.xlane.xlu0 %1019  ;;  %v1151_v9 = vmul.f32 %v4414_v30, %v5331_v0 }
 0x2db   : > { %4419 = vrsqrt.f32 %v1090_v50  ;;  %v1059_v38 = vmul.f32 0.0078125, %v1020_v61 }
 0x2dc   : > { %v1189_v19 = vmul.f32 %v5347_v3, %v1151_v9 }
 0x2dd   : > { %v4416_v34 = vpop.eup %4415  ;;  %v1091_v40 = vadd.f32 1e-05, %v1059_v38 }
 0x2de   : > { %v1022_v16 = vpop.xlane.xlu1 %1021  ;;  %v1152_v1 = vmul.f32 %v4416_v34, %v5336_v36  ;;  %v1227_v18 = vadd.f32 %v5361_v22, %v1189_v19 }
 0x2df   : > { %4421 = vrsqrt.f32 %v1091_v40  ;;  %v1060_v37 = vmul.f32 0.0078125, %v1022_v16 }
 0x2e0   : > { %v1190_v12 = vmul.f32 %v5347_v3, %v1152_v1 }
 0x2e1   : > { %v4418_v49 = vpop.eup %4417  ;;  %v1092_v21 = vadd.f32 1e-05, %v1060_v37 }
 0x2e2   : > { %v1024_v23 = vpop.xlane.xlu0 %1023  ;;  %v1228_v0 = vadd.f32 %v5361_v22, %v1190_v12  ;;  %v1153_v15 = vmul.f32 %v4418_v49, %v5341_v56 }
 0x2e3   : > { %4423 = vrsqrt.f32 %v1092_v21  ;;  %v1061_v17 = vmul.f32 0.0078125, %v1024_v23 }
 0x2e4   : > { %v1249_v32 = vpack.c.bf16 %v1228_v0, %v1227_v18  ;;  %v1191_v45 = vmul.f32 %v5347_v3, %v1153_v15 }
 0x2e5   : > { %v4420_v14 = vpop.eup %4419  ;;  %v1093_v36 = vadd.f32 1e-05, %v1061_v17 }
 0x2e6   : > { %v1026_v62 = vpop.xlane.xlu1 %1025  ;;  %1602 = vmatmul.mubr.bf16.gmra.mrb[56].mxu1 %v1249_v32  ;;  %1795 = vmatmul.mubr.bf16.gmra.mrb[56].mxu0 %v1249_v32  ;;  %v1154_v29 = vmul.f32 %v4420_v14, %v5352_v55  ;;  %v1229_v28 = vadd.f32 %v5361_v22, %v1191_v45 }
 0x2e7   : > { %4425 = vrsqrt.f32 %v1093_v36  ;;  %v1062_v48 = vmul.f32 0.0078125, %v1026_v62  ;;  %1611 = vmatprep.mubr.bf16.mxu1 %v8106_v8  ;;  %1804 = vmatprep.mubr.bf16.mxu0 %v8106_v8 }
 0x2e8   : > { %v1192_v56 = vmul.f32 %v5347_v3, %v1154_v29 }
 0x2e9   : > { %v4422_v51 = vpop.eup %4421  ;;  %v1094_v5 = vadd.f32 1e-05, %v1062_v48 }
 0x2ea   : > { %v1028_v20 = vpop.xlane.xlu0 %1027  ;;  %v1230_v46 = vadd.f32 %v5361_v22, %v1192_v56  ;;  %v1155_v30 = vmul.f32 %v4422_v51, %v5365_v57 }
 0x2eb   : > { %4427 = vrsqrt.f32 %v1094_v5  ;;  %v1063_v55 = vmul.f32 0.0078125, %v1028_v20 }
 0x2ec   : > { %v1250_v50 = vpack.c.bf16 %v1230_v46, %v1229_v28  ;;  %v1193_v40 = vmul.f32 %v5347_v3, %v1155_v30 }
 0x2ed   : > { %v4424_v61 = vpop.eup %4423  ;;  %v1095_v9 = vadd.f32 1e-05, %v1063_v55 }
 0x2ee   : > { %v1030_v38 = vpop.xlane.xlu1 %1029  ;;  %1612 = vmatmul.mubr.bf16.gmra.mrb[60].mxu1 %v1250_v50  ;;  %1805 = vmatmul.mubr.bf16.gmra.mrb[60].mxu0 %v1250_v50  ;;  %v1156_v34 = vmul.f32 %v4424_v61, %v5373_v7  ;;  %v1231_v12 = vadd.f32 %v5361_v22, %v1193_v40 }
 0x2ef   : > { %4429 = vrsqrt.f32 %v1095_v9  ;;  %v1064_v16 = vmul.f32 0.0078125, %v1030_v38  ;;  %1621 = vmatprep.mubr.bf16.mxu1 %v8106_v8  ;;  %1814 = vmatprep.mubr.bf16.mxu0 %v8106_v8 }
 0x2f0   : > { %v1194_v57 = vmul.f32 %v5347_v3, %v1156_v34 }
 0x2f1   : > { %v4426_v1 = vpop.eup %4425  ;;  %v1096_v19 = vadd.f32 1e-05, %v1064_v16 }
 0x2f2   : > { %v1032_v37 = vpop.xlane.xlu0 %1031  ;;  %v1232_v49 = vadd.f32 %v5361_v22, %v1194_v57  ;;  %v1157_v21 = vmul.f32 %v4426_v1, %v5383_v47 }
 0x2f3   : > { %4431 = vrsqrt.f32 %v1096_v19  ;;  %v1065_v7 = vmul.f32 0.0078125, %v1032_v37 }
 0x2f4   : > { %v1251_v23 = vpack.c.bf16 %v1232_v49, %v1231_v12  ;;  %v1195_v32 = vmul.f32 %v5347_v3, %v1157_v21 }
 0x2f5   : > { %v4428_v18 = vpop.eup %4427  ;;  %v1097_v0 = vadd.f32 1e-05, %v1065_v7 }
 0x2f6   : > { %v1034_v15 = vpop.xlane.xlu1 %1033  ;;  %1622 = vmatmul.mubr.bf16.gmra.mrb[64].mxu1 %v1251_v23  ;;  %1815 = vmatmul.mubr.bf16.gmra.mrb[64].mxu0 %v1251_v23  ;;  %v1158_v17 = vmul.f32 %v4428_v18, %v5391_v52  ;;  %v1233_v29 = vadd.f32 %v5361_v22, %v1195_v32 }
 0x2f7   : > { %4433 = vrsqrt.f32 %v1097_v0  ;;  %v1066_v14 = vmul.f32 0.0078125, %v1034_v15  ;;  %1631 = vmatprep.mubr.bf16.mxu1 %v8106_v8  ;;  %1824 = vmatprep.mubr.bf16.mxu0 %v8106_v8 }
 0x2f8   : > { %v1196_v47 = vmul.f32 %v5347_v3, %v1158_v17 }
 0x2f9   : > { %v4430_v36 = vpop.eup %4429  ;;  %v1098_v62 = vadd.f32 1e-05, %v1066_v14 }
 0x2fa   : > { %v1234_v45 = vadd.f32 %v5361_v22, %v1196_v47  ;;  %v1159_v48 = vmul.f32 %v4430_v36, %v5401_v53 }
 0x2fb   : > { %4435 = vrsqrt.f32 %v1098_v62 }
 0x2fc   : > { %v1252_v52 = vpack.c.bf16 %v1234_v45, %v1233_v29  ;;  %v1197_v5 = vmul.f32 %v5347_v3, %v1159_v48 }
 0x2fd   : > { %v4432_v56 = vpop.eup %4431 }
 0x2fe   : > { %1632 = vmatmul.mubr.bf16.gmra.mrb[68].mxu1 %v1252_v52  ;;  %1825 = vmatmul.mubr.bf16.gmra.mrb[68].mxu0 %v1252_v52  ;;  %v1160_v51 = vmul.f32 %v4432_v56, %v5409_v24  ;;  %v1235_v46 = vadd.f32 %v5361_v22, %v1197_v5 }
 0x2ff   : > { %1641 = vmatprep.mubr.bf16.mxu1 %v8106_v8  ;;  %1834 = vmatprep.mubr.bf16.mxu0 %v8106_v8 }
 0x300   : > { %v1198_v20 = vmul.f32 %v5347_v3, %v1160_v51 }
 0x301   : > { %v4434_v28 = vpop.eup %4433 }
 0x302   : > { %v1236_v53 = vadd.f32 %v5361_v22, %v1198_v20  ;;  %v1161_v30 = vmul.f32 %v4434_v28, %v5419_v26  ;;  %v1289_v26 = vlaneseq }
 0x304   : > { %v1253_v55 = vpack.c.bf16 %v1236_v53, %v1235_v46  ;;  %v1199_v61 = vmul.f32 %v5347_v3, %v1161_v30  ;;  %v1290_v16 = vshrl.u32 %v1289_v26, 7 }
 0x305   : > { %v4436_v50 = vpop.eup %4435 }
 0x306   : > { %1642 = vmatmul.mubr.bf16.gmra.mrb[72].mxu1 %v1253_v55  ;;  %1835 = vmatmul.mubr.bf16.gmra.mrb[72].mxu0 %v1253_v55  ;;  %v1162_v24 = vmul.f32 %v4436_v50, %v5427_v25  ;;  %v1237_v38 = vadd.f32 %v5361_v22, %v1199_v61  ;;  %v1291_v57 = vsub.s32 0, %v1290_v16  ;;  %v1299_v1 = vsub.s32 2, %v1290_v16  ;;  %v1287_v25 = vld [vmem:[%s7910_s7] sm:$0xf] }
 0x307   : > { %1651 = vmatprep.mubr.bf16.mxu1 %v8106_v8  ;;  %1844 = vmatprep.mubr.bf16.mxu0 %v8106_v8  ;;  %v1295_v19 = vsub.s32 1, %v1290_v16  ;;  %v1303_v37 = vsub.s32 3, %v1290_v16 }
 0x308   : > { %v1200_v9 = vmul.f32 %v5347_v3, %v1162_v24  ;;  %v5625_v8 = vrot.slane %v1287_v25, %v1291_v57  ;;  %v5627_v3 = vrot.slane %v1287_v25, %v1299_v1 }
 0x309   : > { %v5629_v12 = vrot.slane %v1287_v25, %v1295_v19 }
 0x30a   : > { %v1238_v34 = vadd.f32 %v5361_v22, %v1200_v9  ;;  %8107 = vst [vmem:[#allocation37_spill] sm:$0xff] %v5625_v8  ;;  %8108 = vst [vmem:[#allocation38_spill] sm:$0xff] %v5627_v3  ;;  %v5631_v22 = vrot.slane %v1287_v25, %v1303_v37 }
 0x30b   : > { %8109 = vst [vmem:[#allocation39_spill] sm:$0xff] %v5629_v12 }
 0x30c   : > { %v1254_v40 = vpack.c.bf16 %v1238_v34, %v1237_v38  ;;  %8110 = vst [vmem:[#allocation40_spill] sm:$0xff] %v5631_v22 }
 0x30e   : > { %1652 = vmatmul.mubr.bf16.gmra.mrb[76].mxu1 %v1254_v40  ;;  %1845 = vmatmul.mubr.bf16.gmra.mrb[76].mxu0 %v1254_v40 }
 0x321   : > { %v1503_v49 = vpop.f32.mrb[16].mxu1  ;;  %v1696_v21 = vpop.f32.mrb[16].mxu0 }
 0x322   : > { %v1504_v7 = vadd.f32 %v1503_v49, %v5625_v8  ;;  %v1697_v23 = vadd.f32 %v1696_v21, %v5627_v3  ;;  %v1505_v18 = vpop.f32.mrb[17].mxu1  ;;  %v1698_v0 = vpop.f32.mrb[17].mxu0 }
 0x323   : > { %v5636_v15 = vadd.f32 %v1505_v18, %v5629_v12  ;;  %v5639_v17 = vadd.f32 %v1698_v0, %v5631_v22  ;;  %v1507_v32 = vpop.f32.mrb[18].mxu1  ;;  %v1700_v14 = vpop.f32.mrb[18].mxu0 }
 0x324   : > { %v5641_v47 = vmul.f32 0.5, %v1504_v7  ;;  %v1983_v36 = vmul.f32 0.044715, %v1504_v7  ;;  %v5643_v62 = vmul.f32 0.5, %v1697_v23  ;;  %v1985_v29 = vmul.f32 0.044715, %v1697_v23 }
 0x325   : > { %v1984_v45 = vmul.f32 0.044715, %v5636_v15  ;;  %v1986_v48 = vmul.f32 0.044715, %v5639_v17  ;;  %v1508_v52 = vadd.f32 %v1507_v32, %v5625_v8  ;;  %v1701_v56 = vadd.f32 %v1700_v14, %v5627_v3  ;;  %v1509_v51 = vpop.f32.mrb[19].mxu1  ;;  %v1702_v5 = vpop.f32.mrb[19].mxu0 }
 0x326   : > { %v2111_v20 = vmul.f32 %v1983_v36, %v1504_v7  ;;  %v2113_v28 = vmul.f32 %v1985_v29, %v1697_v23  ;;  %v5650_v46 = vadd.f32 %v1509_v51, %v5629_v12  ;;  %v5653_v53 = vadd.f32 %v1702_v5, %v5631_v22 }
 0x327   : > { %v2112_v30 = vmul.f32 %v1984_v45, %v5636_v15  ;;  %v2114_v55 = vmul.f32 %v1986_v48, %v5639_v17  ;;  %v5657_v50 = vmul.f32 0.5, %v1508_v52  ;;  %v1987_v24 = vmul.f32 0.044715, %v1508_v52 }
 0x328   : > { %v2239_v61 = vmul.f32 %v2111_v20, %v1504_v7  ;;  %v2241_v9 = vmul.f32 %v2113_v28, %v1697_v23  ;;  %v5659_v38 = vmul.f32 0.5, %v1701_v56  ;;  %v1989_v34 = vmul.f32 0.044715, %v1701_v56 }
 0x329   : > { %v5662_v40 = vmul.f32 %v2112_v30, %v5636_v15  ;;  %v5665_v26 = vmul.f32 %v2114_v55, %v5639_v17  ;;  %v2115_v16 = vmul.f32 %v1987_v24, %v1508_v52  ;;  %v1988_v57 = vmul.f32 0.044715, %v5650_v46  ;;  %v1513_v1 = vpop.f32.mrb[20].mxu1  ;;  %v1706_v25 = vpop.f32.mrb[20].mxu0 }
 0x32a   : > { %v2367_v19 = vadd.f32 %v2239_v61, %v1504_v7  ;;  %v2369_v37 = vadd.f32 %v2241_v9, %v1697_v23  ;;  %v2117_v49 = vmul.f32 %v1989_v34, %v1701_v56  ;;  %v1990_v21 = vmul.f32 0.044715, %v5653_v53  ;;  %v1515_v18 = vpop.f32.mrb[21].mxu1  ;;  %v1708_v0 = vpop.f32.mrb[21].mxu0 }
 0x32b   : > { %v2243_v32 = vmul.f32 %v2115_v16, %v1508_v52  ;;  %v2116_v14 = vmul.f32 %v1988_v57, %v5650_v46  ;;  %v5671_v36 = vadd.f32 %v1513_v1, %v5625_v8  ;;  %v5674_v29 = vadd.f32 %v1706_v25, %v5627_v3  ;;  %v1517_v45 = vpop.f32.mrb[22].mxu1  ;;  %v1710_v48 = vpop.f32.mrb[22].mxu0 }
 0x32c   : > { %v2495_v51 = vmul.f32 0.7978846, %v2367_v19  ;;  %v2497_v5 = vmul.f32 0.7978846, %v2369_v37  ;;  %v2245_v7 = vmul.f32 %v2117_v49, %v1701_v56  ;;  %v2118_v23 = vmul.f32 %v1990_v21, %v5653_v53  ;;  %v1519_v20 = vpop.f32.mrb[23].mxu1  ;;  %v1712_v28 = vpop.f32.mrb[23].mxu0 }
 0x32d   : > { %v2371_v30 = vadd.f32 %v2243_v32, %v1508_v52  ;;  %v5678_v55 = vmul.f32 %v2116_v14, %v5650_v46  ;;  %v1991_v24 = vmul.f32 0.044715, %v5671_v36  ;;  %v1993_v61 = vmul.f32 0.044715, %v5674_v29 }
 0x32e   : > { %4437 = vtanh.f32 %v2495_v51  ;;  %v2373_v9 = vadd.f32 %v2245_v7, %v1701_v56  ;;  %v5683_v34 = vmul.f32 %v2118_v23, %v5653_v53  ;;  %v5686_v16 = vadd.f32 %v1515_v18, %v5629_v12 }
 0x32f   : > { %4439 = vtanh.f32 %v2497_v5  ;;  %v2499_v57 = vmul.f32 0.7978846, %v2371_v30  ;;  %v2119_v1 = vmul.f32 %v1991_v24, %v5671_v36  ;;  %v2121_v52 = vmul.f32 %v1993_v61, %v5674_v29 }
 0x330   : > { %v2501_v25 = vmul.f32 0.7978846, %v2373_v9  ;;  %v1992_v19 = vmul.f32 0.044715, %v5686_v16  ;;  %v5692_v37 = vadd.f32 %v1708_v0, %v5631_v22  ;;  %v5695_v56 = vadd.f32 %v1517_v45, %v5625_v8 }
 0x331   : > { %4441 = vtanh.f32 %v2499_v57  ;;  %v5698_v49 = vmul.f32 %v2119_v1, %v5671_v36  ;;  %v5701_v21 = vmul.f32 %v2121_v52, %v5674_v29  ;;  %v5704_v18 = vadd.f32 %v1710_v48, %v5627_v3  ;;  %v1523_v32 = vpop.f32.mrb[24].mxu1  ;;  %v1716_v14 = vpop.f32.mrb[24].mxu0 }
 0x332   : > { %4443 = vtanh.f32 %v2501_v25  ;;  %v2120_v51 = vmul.f32 %v1992_v19, %v5686_v16  ;;  %v1994_v0 = vmul.f32 0.044715, %v5692_v37  ;;  %v1995_v45 = vmul.f32 0.044715, %v5695_v56  ;;  %v1525_v5 = vpop.f32.mrb[25].mxu1  ;;  %v1718_v7 = vpop.f32.mrb[25].mxu0 }
 0x333   : > { %v1997_v23 = vmul.f32 0.044715, %v5704_v18  ;;  %v5711_v30 = vadd.f32 %v1519_v20, %v5629_v12  ;;  %v5714_v24 = vadd.f32 %v1712_v28, %v5631_v22  ;;  %v5717_v48 = vadd.f32 %v1523_v32, %v5625_v8  ;;  %v1527_v61 = vpop.f32.mrb[26].mxu1  ;;  %v1720_v9 = vpop.f32.mrb[26].mxu0 }
 0x334   : > { %v5720_v57 = vmul.f32 %v2120_v51, %v5686_v16  ;;  %v2122_v1 = vmul.f32 %v1994_v0, %v5692_v37  ;;  %v2123_v52 = vmul.f32 %v1995_v45, %v5695_v56  ;;  %v5725_v25 = vadd.f32 %v1716_v14, %v5627_v3  ;;  %v1529_v20 = vpop.f32.mrb[27].mxu1  ;;  %v1722_v19 = vpop.f32.mrb[27].mxu0 }
 0x335   : > { %8111 = vst [vmem:[#allocation41_spill] sm:$0xff] %v5717_v48  ;;  %v2125_v28 = vmul.f32 %v1997_v23, %v5704_v18  ;;  %v1996_v63 = vmul.f32 0.044715, %v5711_v30  ;;  %v1998_v32 = vmul.f32 0.044715, %v5714_v24  ;;  %v5739_v14 = vadd.f32 %v1525_v5, %v5629_v12 }
 0x336   : > { %8112 = vst [vmem:[#allocation42_spill] sm:$0xff] %v5725_v25  ;;  %v1999_v27 = vmul.f32 0.044715, %v5717_v48  ;;  %v5732_v51 = vmul.f32 %v2122_v1, %v5692_v37  ;;  %v5735_v0 = vmul.f32 %v2123_v52, %v5695_v56  ;;  %v2001_v45 = vmul.f32 0.044715, %v5725_v25 }
 0x337   : > { %v5742_v4 = vmul.f32 %v2125_v28, %v5704_v18  ;;  %v2124_v23 = vmul.f32 %v1996_v63, %v5711_v30  ;;  %v2126_v31 = vmul.f32 %v1998_v32, %v5714_v24  ;;  %v2000_v52 = vmul.f32 0.044715, %v5739_v14 }
 0x338   : > { %v2127_v2 = vmul.f32 %v1999_v27, %v5717_v48  ;;  %v5747_v41 = vpop.eup %4437  ;;  %v2129_v1 = vmul.f32 %v2001_v45, %v5725_v25  ;;  %v5752_v42 = vadd.f32 %v1718_v7, %v5631_v22  ;;  %v5755_v5 = vadd.f32 %v1527_v61, %v5625_v8 }
 0x339   : > { %v5757_v28 = vpop.eup %4439  ;;  %v5760_v63 = vmul.f32 %v2124_v23, %v5711_v30  ;;  %v5763_v32 = vmul.f32 %v2126_v31, %v5714_v24  ;;  %v5769_v45 = vadd.f32 %v1720_v9, %v5627_v3  ;;  %v1533_v33 = vpop.f32.mrb[28].mxu1  ;;  %v2128_v61 = vmul.f32 %v2000_v52, %v5739_v14 }
 0x33a   : > { %8113 = vst [vmem:[#allocation43_spill] sm:$0xff] %v5752_v42  ;;  %8114 = vst [vmem:[#allocation44_spill] sm:$0xff] %v5755_v5  ;;  %v5766_v27 = vmul.f32 %v2127_v2, %v5717_v48  ;;  %v1726_v7 = vpop.f32.mrb[28].mxu0  ;;  %v5772_v13 = vmul.f32 %v2129_v1, %v5725_v25  ;;  %v2002_v10 = vmul.f32 0.044715, %v5752_v42  ;;  %v1535_v11 = vpop.f32.mrb[29].mxu1  ;;  %v5781_v9 = vadd.f32 %v1529_v20, %v5629_v12 }
 0x33b   : > { %8116 = vst [vmem:[#allocation46_spill] sm:$0xff] %v5769_v45  ;;  %v2003_v23 = vmul.f32 0.044715, %v5755_v5  ;;  %v1728_v31 = vpop.f32.mrb[29].mxu0  ;;  %v5777_v6 = vpop.eup %4441  ;;  %v2005_v2 = vmul.f32 0.044715, %v5769_v45  ;;  %v5784_v60 = vadd.f32 %v1722_v19, %v5631_v22  ;;  %v5787_v1 = vadd.f32 %v1533_v33, %v5625_v8 }
 0x33c   : > { %8115 = vst [vmem:[#allocation45_spill] sm:$0xff] %v5766_v27  ;;  %8117 = vst [vmem:[#allocation47_spill] sm:$0xff] %v5772_v13  ;;  %v1537_v52 = vpop.f32.mrb[30].mxu1  ;;  %v1730_v58 = vpop.f32.mrb[30].mxu0  ;;  %v5792_v54 = vmul.f32 %v2128_v61, %v5739_v14  ;;  %v2130_v43 = vmul.f32 %v2002_v10, %v5752_v42  ;;  %v5797_v20 = vadd.f32 %v1726_v7, %v5627_v3  ;;  %v2004_v33 = vmul.f32 0.044715, %v5781_v9 }
 0x33d   : > { %8118 = vst [vmem:[#allocation48_spill] sm:$0xff] %v5781_v9  ;;  %8119 = vst [vmem:[#allocation49_spill] sm:$0xff] %v5784_v60  ;;  %v5789_v59 = vpop.eup %4443  ;;  %v2131_v35 = vmul.f32 %v2003_v23, %v5755_v5  ;;  %v1539_v44 = vpop.f32.mrb[31].mxu1  ;;  %v2133_v39 = vmul.f32 %v2005_v2, %v5769_v45  ;;  %v2006_v13 = vmul.f32 0.044715, %v5784_v60  ;;  %v5811_v7 = vadd.f32 %v1535_v11, %v5629_v12 }
 0x33e   : > { %8120 = vst [vmem:[#allocation50_spill] sm:$0xff] %v5787_v1  ;;  %8121 = vst [vmem:[#allocation51_spill] sm:$0xff] %v5792_v54  ;;  %v1732_v19 = vpop.f32.mrb[31].mxu0  ;;  %v2007_v25 = vmul.f32 0.044715, %v5787_v1  ;;  %v5804_v61 = vmul.f32 %v2130_v43, %v5752_v42  ;;  %v2132_v2 = vmul.f32 %v2004_v33, %v5781_v9 }
 0x33f   : > { %8122 = vst [vmem:[#allocation52_spill] sm:$0xff] %v5797_v20  ;;  %v5807_v10 = vmul.f32 %v2131_v35, %v5755_v5  ;;  %v2009_v23 = vmul.f32 0.044715, %v5797_v20  ;;  %8125 = vst [vmem:[#allocation55_spill] sm:$0xff] %v5811_v7  ;;  %v5814_v27 = vmul.f32 %v2133_v39, %v5769_v45  ;;  %v2134_v48 = vmul.f32 %v2006_v13, %v5784_v60 }
 0x340   : > { %8123 = vst [vmem:[#allocation53_spill] sm:$0xff] %v5804_v61  ;;  %v2135_v54 = vmul.f32 %v2007_v25, %v5787_v1  ;;  %v2008_v61 = vmul.f32 0.044715, %v5811_v7  ;;  %v5822_v35 = vadd.f32 %v1728_v31, %v5631_v22  ;;  %v5828_v11 = vmul.f32 %v2132_v2, %v5781_v9 }
 0x341   : > { %8124 = vst [vmem:[#allocation54_spill] sm:$0xff] %v5807_v10  ;;  %8126 = vst [vmem:[#allocation56_spill] sm:$0xff] %v5814_v27  ;;  %v2137_v43 = vmul.f32 %v2009_v23, %v5797_v20  ;;  %v5825_v10 = vadd.f32 %v1537_v52, %v5625_v8  ;;  %v5831_v39 = vmul.f32 %v2134_v48, %v5784_v60  ;;  %v1543_v33 = vpop.f32.mrb[32].mxu1  ;;  %v1736_v23 = vpop.f32.mrb[32].mxu0 }
 0x342   : > { %8127 = vst [vmem:[#allocation57_spill] sm:$0xff] %v5822_v35  ;;  %8129 = vst [vmem:[#allocation59_spill] sm:$0xff] %v5828_v11  ;;  %v5834_v13 = vmul.f32 %v2135_v54, %v5787_v1  ;;  %v5837_v25 = vadd.f32 %v1730_v58, %v5627_v3  ;;  %v2136_v52 = vmul.f32 %v2008_v61, %v5811_v7  ;;  %v2010_v27 = vmul.f32 0.044715, %v5822_v35  ;;  %v1545_v45 = vpop.f32.mrb[33].mxu1  ;;  %v1738_v48 = vpop.f32.mrb[33].mxu0 }
 0x343   : > { %8128 = vst [vmem:[#allocation58_spill] sm:$0xff] %v5825_v10  ;;  %8130 = vst [vmem:[#allocation60_spill] sm:$0xff] %v5831_v39  ;;  %v5840_v31 = vmul.f32 %v2137_v43, %v5797_v20  ;;  %v2011_v2 = vmul.f32 0.044715, %v5825_v10  ;;  %v5847_v54 = vadd.f32 %v1539_v44, %v5629_v12  ;;  %v5850_v58 = vadd.f32 %v1732_v19, %v5631_v22  ;;  %v1547_v43 = vpop.f32.mrb[34].mxu1 }
 0x344   : > { %8131 = vst [vmem:[#allocation61_spill] sm:$0xff] %v5834_v13  ;;  %8132 = vst [vmem:[#allocation62_spill] sm:$0xff] %v5837_v25  ;;  %v2013_v5 = vmul.f32 0.044715, %v5837_v25  ;;  %v5853_v13 = vadd.f32 %v1543_v33, %v5625_v8  ;;  %v5856_v61 = vmul.f32 %v2136_v52, %v5811_v7  ;;  %v2138_v20 = vmul.f32 %v2010_v27, %v5822_v35  ;;  %v5863_v44 = vpop.f32.mrb[35].mxu1 }
 0x345   : > { %8133 = vst [vmem:[#allocation63_spill] sm:$0xff] %v5840_v31  ;;  %8134 = vst [vmem:[#allocation64_spill] sm:$0xff] %v5847_v54  ;;  %v1740_v31 = vpop.f32.mrb[34].mxu0  ;;  %v2139_v1 = vmul.f32 %v2011_v2, %v5825_v10  ;;  %v5861_v39 = vadd.f32 %v1736_v23, %v5627_v3  ;;  %v2012_v33 = vmul.f32 0.044715, %v5847_v54  ;;  %v5879_v2 = vadd.f32 %v1545_v45, %v5629_v12 }
 0x346   : > { %8135 = vst [vmem:[#allocation65_spill] sm:$0xff] %v5850_v58  ;;  %8136 = vst [vmem:[#allocation66_spill] sm:$0xff] %v5853_v13  ;;  %v5865_v60 = vpop.f32.mrb[35].mxu0  ;;  %v2141_v19 = vmul.f32 %v2013_v5, %v5837_v25  ;;  %v2014_v42 = vmul.f32 0.044715, %v5850_v58 }
 0x347   : > { %8137 = vst [vmem:[#allocation67_spill] sm:$0xff] %v5856_v61  ;;  %8138 = vst [vmem:[#allocation68_spill] sm:$0xff] %v5861_v39  ;;  %v2015_v52 = vmul.f32 0.044715, %v5853_v13  ;;  %v5872_v61 = vmul.f32 %v2138_v20, %v5822_v35  ;;  %v5875_v27 = vmul.f32 %v2139_v1, %v5825_v10  ;;  %v2017_v23 = vmul.f32 0.044715, %v5861_v39 }
 0x348   : > { %8141 = vst [vmem:[#allocation71_spill] sm:$0xff] %v5879_v2  ;;  %v5882_v7 = vmul.f32 %v2141_v19, %v5837_v25  ;;  %v2140_v5 = vmul.f32 %v2012_v33, %v5847_v54  ;;  %v2142_v11 = vmul.f32 %v2014_v42, %v5850_v58  ;;  %v5890_v1 = vadd.f32 %v1738_v48, %v5631_v22 }
 0x349   : > { %8139 = vst [vmem:[#allocation69_spill] sm:$0xff] %v5872_v61  ;;  %8140 = vst [vmem:[#allocation70_spill] sm:$0xff] %v5875_v27  ;;  %v2143_v9 = vmul.f32 %v2015_v52, %v5853_v13  ;;  %v2145_v20 = vmul.f32 %v2017_v23, %v5861_v39  ;;  %v2016_v61 = vmul.f32 0.044715, %v5879_v2  ;;  %v5893_v27 = vmul.f32 0.5, %v5636_v15  ;;  %v1553_v52 = vpop.f32.mrb[36].mxu1 }
 0x34a   : > { %8142 = vst [vmem:[#allocation72_spill] sm:$0xff] %v5882_v7  ;;  %8143 = vst [vmem:[#allocation73_spill] sm:$0xff] %v5890_v1  ;;  %v5896_v45 = vmul.f32 %v2140_v5, %v5847_v54  ;;  %v5899_v19 = vmul.f32 %v2142_v11, %v5850_v58  ;;  %v5905_v33 = vmul.f32 0.5, %v5650_v46  ;;  %v1746_v23 = vpop.f32.mrb[36].mxu0  ;;  %v2018_v25 = vmul.f32 0.044715, %v5890_v1 }
 0x34b   : > { %v5902_v42 = vmul.f32 %v2143_v9, %v5853_v13  ;;  %v5908_v48 = vmul.f32 %v2145_v20, %v5861_v39  ;;  %v2144_v7 = vmul.f32 %v2016_v61, %v5879_v2  ;;  %v2368_v5 = vadd.f32 %v5662_v40, %v5636_v15  ;;  %v1555_v11 = vpop.f32.mrb[37].mxu1  ;;  %v1748_v10 = vpop.f32.mrb[37].mxu0 }
 0x34c   : > { %8144 = vst [vmem:[#allocation74_spill] sm:$0xff] %v5896_v45  ;;  %8145 = vst [vmem:[#allocation75_spill] sm:$0xff] %v5899_v19  ;;  %v2372_v9 = vadd.f32 %v5678_v55, %v5650_v46  ;;  %v5920_v13 = vmul.f32 0.5, %v5653_v53  ;;  %v2370_v20 = vadd.f32 %v5665_v26, %v5639_v17  ;;  %v5924_v61 = vpop.f32.mrb[38].mxu1  ;;  %v2146_v40 = vmul.f32 %v2018_v25, %v5890_v1 }
 0x34d   : > { %8146 = vst [vmem:[#allocation76_spill] sm:$0xff] %v5902_v42  ;;  %8147 = vst [vmem:[#allocation77_spill] sm:$0xff] %v5908_v48  ;;  %v5917_v42 = vmul.f32 0.5, %v5639_v17  ;;  %v5926_v48 = vpop.f32.mrb[38].mxu0  ;;  %v5929_v15 = vmul.f32 %v2144_v7, %v5879_v2  ;;  %v2496_v39 = vmul.f32 0.7978846, %v2368_v5  ;;  %v2374_v46 = vadd.f32 %v5683_v34, %v5653_v53 }
 0x34e   : > { %v5934_v55 = vpop.f32.mrb[39].mxu1  ;;  %v5936_v19 = vpop.f32.mrb[39].mxu0  ;;  %v2500_v58 = vmul.f32 0.7978846, %v2372_v9  ;;  %v2498_v35 = vmul.f32 0.7978846, %v2370_v20  ;;  %v5939_v17 = vadd.f32 %v1547_v43, %v5625_v8  ;;  %v5942_v26 = vadd.f32 %v1740_v31, %v5627_v3 }
 0x34f   : > { %8148 = vst [vmem:[#allocation78_spill] sm:$0xff] %v5929_v15  ;;  %v5945_v7 = vmul.f32 %v2146_v40, %v5890_v1  ;;  %4445 = vtanh.f32 %v2496_v39  ;;  %v2502_v25 = vmul.f32 0.7978846, %v2374_v46  ;;  %v2751_v5 = vadd.f32 1.0, %v5747_v41 }
 0x350   : > { %8149 = vst [vmem:[#allocation79_spill] sm:$0xff] %v5939_v17  ;;  %8150 = vst [vmem:[#allocation80_spill] sm:$0xff] %v5942_v26  ;;  %4447 = vtanh.f32 %v2500_v58  ;;  %v2019_v53 = vmul.f32 0.044715, %v5939_v17  ;;  %v2021_v34 = vmul.f32 0.044715, %v5942_v26  ;;  %v2380_v2 = vadd.f32 %v5760_v63, %v5711_v30 }
 0x351   : > { %8151 = vst [vmem:[#allocation81_spill] sm:$0xff] %v5945_v7  ;;  %v2755_v9 = vadd.f32 1.0, %v5777_v6  ;;  %4449 = vtanh.f32 %v2498_v35  ;;  %v5952_v43 = vmul.f32 %v2751_v5, %v5641_v47  ;;  %v2753_v31 = vadd.f32 1.0, %v5757_v28  ;;  %v5961_v40 = vpop.f32.mrb[40].mxu1  ;;  %v5963_v46 = vpop.f32.mrb[40].mxu0 }
 0x352   : > { %v2757_v20 = vadd.f32 1.0, %v5789_v59  ;;  %4451 = vtanh.f32 %v2502_v25  ;;  %v2147_v39 = vmul.f32 %v2019_v53, %v5939_v17  ;;  %v2149_v41 = vmul.f32 %v2021_v34, %v5942_v26  ;;  %v5981_v35 = vpop.f32.mrb[41].mxu0 }
 0x353   : > { %v5959_v58 = vmul.f32 %v2755_v9, %v5657_v50  ;;  %v5966_v6 = vmul.f32 %v2753_v31, %v5643_v62  ;;  %v5973_v59 = vadd.f32 %v5863_v44, %v5629_v12  ;;  %v5977_v28 = vadd.f32 %v5865_v60, %v5631_v22  ;;  %v5979_v50 = vpop.f32.mrb[41].mxu1  ;;  %v5996_v60 = vpop.f32.mrb[42].mxu0 }
 0x354   : > { %v5969_v47 = vmul.f32 %v2757_v20, %v5659_v38  ;;  %v5984_v25 = vmul.f32 %v2147_v39, %v5939_v17  ;;  %v5987_v62 = vmul.f32 %v2149_v41, %v5942_v26  ;;  %v5992_v44 = vadd.f32 %v1553_v52, %v5625_v8  ;;  %v5994_v5 = vpop.f32.mrb[42].mxu1  ;;  %v6007_v39 = vpop.f32.mrb[43].mxu0 }
 0x355   : > { %8152 = vst [vmem:[#allocation82_spill] sm:$0xff] %v5977_v28  ;;  %v2020_v34 = vmul.f32 0.044715, %v5973_v59  ;;  %v2022_v9 = vmul.f32 0.044715, %v5977_v28  ;;  %v6003_v31 = vadd.f32 %v1746_v23, %v5627_v3  ;;  %v6005_v20 = vpop.f32.mrb[43].mxu1  ;;  %v6011_v41 = vadd.f32 %v1555_v11, %v5629_v12 }
 0x356   : > { %8153 = vst [vmem:[#allocation83_spill] sm:$0xff] %v5984_v25  ;;  %8154 = vst [vmem:[#allocation84_spill] sm:$0xff] %v5987_v62  ;;  %v2023_v52 = vmul.f32 0.044715, %v5992_v44  ;;  %v6014_v38 = vadd.f32 %v1748_v10, %v5631_v22  ;;  %v6017_v53 = vmul.f32 0.5, %v5686_v16  ;;  %v6023_v25 = vmul.f32 0.5, %v5711_v30 }
 0x357   : > { %8155 = vst [vmem:[#allocation85_spill] sm:$0xff] %v5992_v44  ;;  %8156 = vst [vmem:[#allocation86_spill] sm:$0xff] %v6003_v31  ;;  %v2148_v62 = vmul.f32 %v2020_v34, %v5973_v59  ;;  %v2150_v23 = vmul.f32 %v2022_v9, %v5977_v28  ;;  %v2025_v26 = vmul.f32 0.044715, %v6003_v31  ;;  %v2024_v11 = vmul.f32 0.044715, %v6011_v41 }
 0x358   : > { %8157 = vst [vmem:[#allocation87_spill] sm:$0xff] %v6007_v39  ;;  %8158 = vst [vmem:[#allocation88_spill] sm:$0xff] %v6014_v38  ;;  %v2151_v17 = vmul.f32 %v2023_v52, %v5992_v44  ;;  %v2026_v7 = vmul.f32 0.044715, %v6014_v38  ;;  %v2376_v10 = vadd.f32 %v5720_v57, %v5686_v16  ;;  %v2508_v30 = vmul.f32 0.7978846, %v2380_v2 }
 0x359   : > { %v4446_v1 = vpop.eup %4445  ;;  %v6031_v15 = vmul.f32 %v2148_v62, %v5973_v59  ;;  %v6034_v34 = vmul.f32 %v2150_v23, %v5977_v28  ;;  %v2153_v9 = vmul.f32 %v2025_v26, %v6003_v31  ;;  %v2152_v39 = vmul.f32 %v2024_v11, %v6011_v41  ;;  %v6044_v57 = vpop.f32.mrb[44].mxu1 }
 0x35a   : > { %v4448_v52 = vpop.eup %4447  ;;  %v2752_v45 = vadd.f32 1.0, %v4446_v1  ;;  %v6040_v54 = vmul.f32 %v2151_v17, %v5992_v44  ;;  %v2154_v16 = vmul.f32 %v2026_v7, %v6014_v38  ;;  %v6046_v62 = vpop.f32.mrb[44].mxu0  ;;  %v2504_v28 = vmul.f32 0.7978846, %v2376_v10 }
 0x35b   : > { %8159 = vst [vmem:[#allocation89_spill] sm:$0xff] %v6034_v34  ;;  %v4450_v23 = vpop.eup %4449  ;;  %v2756_v34 = vadd.f32 1.0, %v4448_v52  ;;  %v6049_v26 = vmul.f32 %v2153_v9, %v6003_v31  ;;  %v6051_v63 = vpop.f32.mrb[45].mxu1  ;;  %v6055_v11 = vmul.f32 %v2152_v39, %v6011_v41  ;;  %v6066_v2 = vmul.f32 0.5, %v5692_v37 }
 0x35c   : > { %8160 = vst [vmem:[#allocation90_spill] sm:$0xff] %v6040_v54  ;;  %v4452_v1 = vpop.eup %4451  ;;  %v2880_v17 = vmul.f32 %v2752_v45, %v5893_v27  ;;  %v2754_v54 = vadd.f32 1.0, %v4450_v23  ;;  %v6058_v7 = vmul.f32 %v2154_v16, %v6014_v38  ;;  %v6060_v44 = vpop.f32.mrb[45].mxu0  ;;  %4453 = vtanh.f32 %v2504_v28 }
 0x35d   : > { %8161 = vst [vmem:[#allocation91_spill] sm:$0xff] %v6049_v26  ;;  %v6062_v52 = vpop.f32.mrb[46].mxu1  ;;  %v2884_v9 = vmul.f32 %v2756_v34, %v5905_v33  ;;  %v2758_v10 = vadd.f32 1.0, %v4452_v1  ;;  %v6068_v26 = vpop.f32.mrb[46].mxu0  ;;  %4455 = vtanh.f32 %v2508_v30  ;;  %v6074_v39 = vmul.f32 0.5, %v5714_v24 }
 0x35e   : > { %8162 = vst [vmem:[#allocation92_spill] sm:$0xff] %v6058_v7  ;;  %v6070_v27 = vpop.f32.mrb[47].mxu1  ;;  %v2882_v45 = vmul.f32 %v2754_v54, %v5917_v42  ;;  %v2378_v16 = vadd.f32 %v5732_v51, %v5692_v37  ;;  %v6078_v23 = vpop.f32.mrb[47].mxu0  ;;  %v2382_v34 = vadd.f32 %v5763_v32, %v5714_v24  ;;  %v6085_v1 = vadd.f32 %v5924_v61, %v5625_v8 }
 0x35f   : > { %v3008_v33 = vpack.c.bf16 %v2884_v9, %v2880_v17  ;;  %v2886_v28 = vmul.f32 %v2758_v10, %v5920_v13  ;;  %v6089_v42 = vadd.f32 %v5926_v48, %v5627_v3  ;;  %v6092_v30 = vmul.f32 0.5, %v5671_v36 }
 0x360   : > { %8163 = vst [vmem:[#allocation93_spill] sm:$0xff] %v6085_v1  ;;  %v2506_v54 = vmul.f32 0.7978846, %v2378_v16  ;;  %v6095_v37 = vmul.f32 0.5, %v5695_v56  ;;  %v2510_v13 = vmul.f32 0.7978846, %v2382_v34  ;;  %v2375_v32 = vadd.f32 %v5698_v49, %v5671_v36 }
 0x361   : > { %8164 = vst [vmem:[#allocation94_spill] sm:$0xff] %v6089_v42  ;;  %3366 = vmatprep.mubr.bf16.mxu1 %v3008_v33  ;;  %v3010_v51 = vpack.c.bf16 %v2886_v28, %v2882_v45  ;;  %v2027_v24 = vmul.f32 0.044715, %v6085_v1  ;;  %v8165_v61 = vpack.c.bf16 %v5959_v58, %v5952_v43  ;;  %v2029_v48 = vmul.f32 0.044715, %v6089_v42  ;;  %v6109_v10 = vpop.f32.mrb[48].mxu1 }
 0x362   : > { %4457 = vtanh.f32 %v2506_v54  ;;  %v2379_v17 = vadd.f32 %v5735_v0, %v5695_v56  ;;  %v6107_v9 = vmul.f32 0.5, %v5674_v29  ;;  %v6111_v45 = vpop.f32.mrb[48].mxu0  ;;  %v2503_v49 = vmul.f32 0.7978846, %v2375_v32  ;;  %v6117_v58 = vpop.f32.mrb[49].mxu1 }
 0x363   : > { %3367 = vmatmul.mubr.bf16.vlgmr.msra.gmra.mrb[80].mxu1 %v8165_v61  ;;  %3527 = vmatprep.mubr.bf16.mxu0 %v3010_v51  ;;  %4459 = vtanh.f32 %v2510_v13  ;;  %v2155_v36 = vmul.f32 %v2027_v24, %v6085_v1  ;;  %v6115_v43 = vmul.f32 0.5, %v5704_v18  ;;  %v6119_v16 = vpop.f32.mrb[49].mxu0  ;;  %v8166_v56 = vpack.c.bf16 %v5969_v47, %v5966_v6  ;;  %v6129_v54 = vpop.f32.mrb[50].mxu1 }
 0x364   : > { %v2157_v0 = vmul.f32 %v2029_v48, %v6089_v42  ;;  %v2507_v33 = vmul.f32 0.7978846, %v2379_v17  ;;  %v2377_v28 = vadd.f32 %v5701_v21, %v5674_v29  ;;  %v2381_v34 = vadd.f32 %v5742_v4, %v5704_v18  ;;  %v6131_v51 = vpop.f32.mrb[50].mxu0  ;;  %v6144_v29 = vpop.f32.mrb[51].mxu1 }
 0x365   : > { %3528 = vmatmul.mubr.bf16.vlgmr.msra.gmra.mrb[80].mxu0 %v8166_v56  ;;  %v6134_v13 = vmul.f32 %v2155_v36, %v6085_v1  ;;  %4461 = vtanh.f32 %v2503_v49  ;;  %v6138_v6 = vadd.f32 %v5934_v55, %v5629_v12  ;;  %v6142_v47 = vadd.f32 %v5936_v19, %v5631_v22  ;;  %v6146_v21 = vpop.f32.mrb[51].mxu0  ;;  %v8175_v1 = vld [vmem:[#allocation48_spill] sm:$0xff] }
 0x366   : > { %v6149_v4 = vmul.f32 %v2157_v0, %v6089_v42  ;;  %4463 = vtanh.f32 %v2507_v33  ;;  %v2505_v18 = vmul.f32 0.7978846, %v2377_v28  ;;  %v2509_v24 = vmul.f32 0.7978846, %v2381_v34  ;;  %v4454_v32 = vpop.eup %4453 }
 0x367   : > { %8167 = vst [vmem:[#allocation95_spill] sm:$0xff] %v6134_v13  ;;  %8168 = vst [vmem:[#allocation96_spill] sm:$0xff] %v6142_v47  ;;  %v2028_v61 = vmul.f32 0.044715, %v6138_v6  ;;  %v2030_v55 = vmul.f32 0.044715, %v6142_v47  ;;  %v6155_v48 = vadd.f32 %v5961_v40, %v5625_v8  ;;  %v6159_v19 = vadd.f32 %v5963_v46, %v5627_v3  ;;  %v4456_v17 = vpop.eup %4455 }
 0x368   : > { %8169 = vst [vmem:[#allocation97_spill] sm:$0xff] %v6149_v4  ;;  %v2760_v36 = vadd.f32 1.0, %v4454_v32  ;;  %4465 = vtanh.f32 %v2505_v18  ;;  %v6163_v49 = vadd.f32 %v5979_v50, %v5629_v12  ;;  %v6167_v56 = vadd.f32 %v5981_v35, %v5631_v22 }
 0x369   : > { %8170 = vst [vmem:[#allocation98_spill] sm:$0xff] %v6155_v48  ;;  %8171 = vst [vmem:[#allocation99_spill] sm:$0xff] %v6159_v19  ;;  %v2764_v0 = vadd.f32 1.0, %v4456_v17  ;;  %4467 = vtanh.f32 %v2509_v24  ;;  %v2156_v40 = vmul.f32 %v2028_v61, %v6138_v6  ;;  %v2158_v33 = vmul.f32 %v2030_v55, %v6142_v47  ;;  %v6183_v61 = vpop.f32.mrb[52].mxu1  ;;  %v6185_v55 = vpop.f32.mrb[52].mxu0 }
 0x36a   : > { %8172 = vst [vmem:[#allocation100_spill] sm:$0xff] %v6163_v49  ;;  %8173 = vst [vmem:[#allocation101_spill] sm:$0xff] %v6167_v56  ;;  %v2888_v46 = vmul.f32 %v2760_v36, %v6017_v53  ;;  %v2031_v28 = vmul.f32 0.044715, %v6155_v48  ;;  %v2033_v34 = vmul.f32 0.044715, %v6159_v19 }
 0x36b   : > { %v2032_v18 = vmul.f32 0.044715, %v6163_v49  ;;  %v2892_v50 = vmul.f32 %v2764_v0, %v6023_v25  ;;  %v6177_v32 = vmul.f32 %v2156_v40, %v6138_v6  ;;  %v6180_v35 = vmul.f32 %v2158_v33, %v6142_v47  ;;  %v6193_v0 = vpop.f32.mrb[53].mxu1  ;;  %v6195_v40 = vpop.f32.mrb[53].mxu0 }
 0x36c   : > { %v2034_v24 = vmul.f32 0.044715, %v6167_v56  ;;  %v4458_v53 = vpop.eup %4457  ;;  %v2159_v17 = vmul.f32 %v2031_v28, %v6155_v48  ;;  %v2161_v36 = vmul.f32 %v2033_v34, %v6159_v19  ;;  %v6191_v25 = vmul.f32 0.5, %v5739_v14  ;;  %v6201_v28 = vpop.f32.mrb[54].mxu1 }
 0x36d   : > { %8174 = vst [vmem:[#allocation102_spill] sm:$0xff] %v6180_v35  ;;  %v2160_v4 = vmul.f32 %v2032_v18, %v6163_v49  ;;  %v4460_v33 = vpop.eup %4459  ;;  %v3012_v42 = vpack.c.bf16 %v2892_v50, %v2888_v46  ;;  %v2762_v31 = vadd.f32 1.0, %v4458_v53  ;;  %v6199_v35 = vmul.f32 0.5, %v8175_v1  ;;  %v6203_v34 = vpop.f32.mrb[54].mxu0 }
 0x36e   : > { %v2162_v13 = vmul.f32 %v2034_v24, %v6167_v56  ;;  %8176 = vst [vmem:[#allocation48_spill] sm:$0xff] %v6203_v34  ;;  %v2766_v18 = vadd.f32 1.0, %v4460_v33  ;;  %v6206_v7 = vmul.f32 %v2159_v17, %v6155_v48  ;;  %v6209_v47 = vmul.f32 %v2161_v36, %v6159_v19  ;;  %v6214_v46 = vpop.f32.mrb[55].mxu1  ;;  %v6216_v50 = vpop.f32.mrb[55].mxu0  ;;  %v8182_v17 = vld [vmem:[#allocation51_spill] sm:$0xff] }
 0x36f   : > { %v6212_v38 = vmul.f32 %v2160_v4, %v6163_v49  ;;  %8180 = vst [vmem:[#allocation106_spill] sm:$0xff] %v6216_v50  ;;  %v4462_v24 = vpop.eup %4461  ;;  %3374 = vmatprep.mubr.bf16.mxu1 %v3012_v42  ;;  %v2890_v53 = vmul.f32 %v2762_v31, %v6066_v2  ;;  %v2384_v33 = vadd.f32 %v8182_v17, %v5739_v14  ;;  %v8183_v36 = vld [vmem:[#allocation59_spill] sm:$0xff]  ;;  %v8185_v49 = vld [vmem:[#allocation49_spill] sm:$0xff] }
 0x370   : > { %8177 = vst [vmem:[#allocation103_spill] sm:$0xff] %v6206_v7  ;;  %8178 = vst [vmem:[#allocation104_spill] sm:$0xff] %v6209_v47  ;;  %v6220_v34 = vmul.f32 %v2162_v13, %v6167_v56  ;;  %v2388_v47 = vadd.f32 %v8183_v36, %v8175_v1  ;;  %v4464_v19 = vpop.eup %4463  ;;  %v2894_v4 = vmul.f32 %v2766_v18, %v6074_v39  ;;  %v2759_v7 = vadd.f32 1.0, %v4462_v24  ;;  %v8184_v48 = vld [vmem:[#allocation43_spill] sm:$0xff]  ;;  %v8187_v36 = vld [vmem:[#allocation60_spill] sm:$0xff] }
 0x371   : > { %8179 = vst [vmem:[#allocation105_spill] sm:$0xff] %v6212_v38  ;;  %v6228_v38 = vmul.f32 0.5, %v8184_v48  ;;  %v6231_v42 = vmul.f32 0.5, %v8185_v49  ;;  %v2763_v31 = vadd.f32 1.0, %v4464_v19  ;;  %v2512_v2 = vmul.f32 0.7978846, %v2384_v33 }
 0x372   : > { %8181 = vst [vmem:[#allocation107_spill] sm:$0xff] %v6220_v34  ;;  %v2516_v13 = vmul.f32 0.7978846, %v2388_v47  ;;  %v8186_v34 = vld [vmem:[#allocation53_spill] sm:$0xff]  ;;  %v4466_v14 = vpop.eup %4465  ;;  %v3014_v17 = vpack.c.bf16 %v2894_v4, %v2890_v53  ;;  %v2887_v1 = vmul.f32 %v2759_v7, %v6092_v30  ;;  %v2390_v39 = vadd.f32 %v8187_v36, %v8185_v49  ;;  %v8194_v36 = vld [vmem:[#allocation46_spill] sm:$0xff] }
 0x373   : > { %v2386_v56 = vadd.f32 %v8186_v34, %v8184_v48  ;;  %v6240_v18 = vadd.f32 %v5994_v5, %v5625_v8  ;;  %v4468_v24 = vpop.eup %4467  ;;  %v2891_v50 = vmul.f32 %v2763_v31, %v6095_v37  ;;  %v2761_v19 = vadd.f32 1.0, %v4466_v14  ;;  %v8190_v31 = vld [vmem:[#allocation44_spill] sm:$0xff] }
 0x374   : > { %4469 = vtanh.f32 %v2512_v2  ;;  %3535 = vmatprep.mubr.bf16.mxu0 %v3014_v17  ;;  %v2765_v33 = vadd.f32 1.0, %v4468_v24  ;;  %v2518_v48 = vmul.f32 0.7978846, %v2390_v39  ;;  %v6247_v5 = vadd.f32 %v5996_v60, %v5627_v3  ;;  %v8192_v60 = vld [vmem:[#allocation54_spill] sm:$0xff] }
 0x375   : > { %v2514_v47 = vmul.f32 0.7978846, %v2386_v56  ;;  %4471 = vtanh.f32 %v2516_v13  ;;  %v2035_v34 = vmul.f32 0.044715, %v6240_v18  ;;  %v3011_v7 = vpack.c.bf16 %v2891_v50, %v2887_v1  ;;  %v8189_v56 = vld [vmem:[#allocation41_spill] sm:$0xff]  ;;  %v8193_v17 = vld [vmem:[#allocation42_spill] sm:$0xff] }
 0x376   : > { %v2889_v30 = vmul.f32 %v2761_v19, %v6107_v9  ;;  %8188 = vst [vmem:[#allocation51_spill] sm:$0xff] %v6247_v5  ;;  %v2893_v49 = vmul.f32 %v2765_v33, %v6115_v43  ;;  %v6252_v53 = vmul.f32 0.5, %v8189_v56  ;;  %v2037_v4 = vmul.f32 0.044715, %v6247_v5  ;;  %v8191_v9 = vld [vmem:[#allocation45_spill] sm:$0xff]  ;;  %v8195_v33 = vld [vmem:[#allocation47_spill] sm:$0xff] }
 0x377   : > { %4473 = vtanh.f32 %v2514_v47  ;;  %v2163_v37 = vmul.f32 %v2035_v34, %v6240_v18  ;;  %3375 = vmatmul.mubr.bf16.gmra.mrb[84].mxu1 %v3011_v7  ;;  %v6256_v50 = vmul.f32 0.5, %v8190_v31  ;;  %v2383_v2 = vadd.f32 %v8191_v9, %v8189_v56  ;;  %v8196_v34 = vld [vmem:[#allocation56_spill] sm:$0xff] }
 0x378   : > { %4475 = vtanh.f32 %v2518_v48  ;;  %v2387_v13 = vadd.f32 %v8192_v60, %v8190_v31  ;;  %v3013_v14 = vpack.c.bf16 %v2893_v49, %v2889_v30  ;;  %v6266_v1 = vmul.f32 0.5, %v8193_v17  ;;  %v8197_v49 = vld [vmem:[#allocation87_spill] sm:$0xff] }
 0x379   : > { %v6263_v43 = vmul.f32 %v2163_v37, %v6240_v18  ;;  %v6269_v39 = vmul.f32 0.5, %v8194_v36  ;;  %v2165_v24 = vmul.f32 %v2037_v4, %v6247_v5  ;;  %v2511_v19 = vmul.f32 0.7978846, %v2383_v2 }
 0x37a   : > { %v2515_v47 = vmul.f32 0.7978846, %v2387_v13  ;;  %v2385_v48 = vadd.f32 %v8195_v33, %v8193_v17  ;;  %3536 = vmatmul.mubr.bf16.gmra.mrb[84].mxu0 %v3013_v14  ;;  %v2389_v7 = vadd.f32 %v8196_v34, %v8194_v36  ;;  %v6278_v30 = vadd.f32 %v6005_v20, %v5629_v12 }
 0x37b   : > { %v6282_v37 = vadd.f32 %v8197_v49, %v5631_v22  ;;  %v6286_v56 = vadd.f32 %v6044_v57, %v5625_v8  ;;  %v6289_v4 = vmul.f32 %v2165_v24, %v6247_v5  ;;  %4477 = vtanh.f32 %v2511_v19 }
 0x37c   : > { %v2513_v31 = vmul.f32 0.7978846, %v2385_v48  ;;  %v6293_v9 = vadd.f32 %v6046_v62, %v5627_v3  ;;  %4479 = vtanh.f32 %v2515_v47  ;;  %v2517_v20 = vmul.f32 0.7978846, %v2389_v7 }
 0x37d   : > { %8198 = vst [vmem:[#allocation59_spill] sm:$0xff] %v6286_v56  ;;  %8199 = vst [vmem:[#allocation43_spill] sm:$0xff] %v6289_v4  ;;  %v2036_v2 = vmul.f32 0.044715, %v6278_v30  ;;  %v2038_v60 = vmul.f32 0.044715, %v6282_v37  ;;  %v6301_v17 = vadd.f32 %v6051_v63, %v5629_v12 }
 0x37e   : > { %8200 = vst [vmem:[#allocation49_spill] sm:$0xff] %v6293_v9  ;;  %v4470_v13 = vpop.eup %4469  ;;  %4481 = vtanh.f32 %v2513_v31  ;;  %v2039_v57 = vmul.f32 0.044715, %v6286_v56  ;;  %v2041_v14 = vmul.f32 0.044715, %v6293_v9 }
 0x37f   : > { %8201 = vst [vmem:[#allocation53_spill] sm:$0xff] %v6301_v17  ;;  %v4472_v36 = vpop.eup %4471  ;;  %v2768_v24 = vadd.f32 1.0, %v4470_v13  ;;  %4483 = vtanh.f32 %v2517_v20  ;;  %v2164_v62 = vmul.f32 %v2036_v2, %v6278_v30  ;;  %v2166_v19 = vmul.f32 %v2038_v60, %v6282_v37 }
 0x380   : > { %v2772_v33 = vadd.f32 1.0, %v4472_v36  ;;  %v2167_v48 = vmul.f32 %v2039_v57, %v6286_v56  ;;  %v2169_v34 = vmul.f32 %v2041_v14, %v6293_v9  ;;  %v2040_v7 = vmul.f32 0.044715, %v6301_v17 }
 0x381   : > { %v4474_v47 = vpop.eup %4473  ;;  %v2896_v31 = vmul.f32 %v2768_v24, %v6191_v25  ;;  %v6310_v4 = vmul.f32 %v2164_v62, %v6278_v30  ;;  %v6313_v20 = vmul.f32 %v2166_v19, %v6282_v37  ;;  %v6326_v36 = vadd.f32 %v6060_v44, %v5631_v22  ;;  %v8204_v24 = vld [vmem:[#allocation55_spill] sm:$0xff]  ;;  %v8208_v44 = vld [vmem:[#allocation74_spill] sm:$0xff] }
 0x382   : > { %v4476_v49 = vpop.eup %4475  ;;  %v2770_v63 = vadd.f32 1.0, %v4474_v47  ;;  %v2900_v2 = vmul.f32 %v2772_v33, %v6199_v35  ;;  %v6317_v13 = vmul.f32 %v2167_v48, %v6286_v56  ;;  %v6320_v57 = vmul.f32 %v2169_v34, %v6293_v9  ;;  %v8205_v47 = vld [vmem:[#allocation64_spill] sm:$0xff]  ;;  %v8206_v48 = vld [vmem:[#allocation67_spill] sm:$0xff] }
 0x383   : > { %v2774_v60 = vadd.f32 1.0, %v4476_v49  ;;  %v2168_v25 = vmul.f32 %v2040_v7, %v6301_v17  ;;  %v6329_v62 = vmul.f32 0.5, %v8204_v24  ;;  %v6333_v33 = vmul.f32 0.5, %v8205_v47 }
 0x384   : > { %8202 = vst [vmem:[#allocation60_spill] sm:$0xff] %v6317_v13  ;;  %8203 = vst [vmem:[#allocation41_spill] sm:$0xff] %v6320_v57  ;;  %v2898_v14 = vmul.f32 %v2770_v63, %v6228_v38  ;;  %v3016_v19 = vpack.c.bf16 %v2900_v2, %v2896_v31  ;;  %v2392_v34 = vadd.f32 %v8206_v48, %v8204_v24  ;;  %v2042_v7 = vmul.f32 0.044715, %v6326_v36  ;;  %v8209_v63 = vld [vmem:[#allocation57_spill] sm:$0xff] }
 0x385   : > { %v2902_v35 = vmul.f32 %v2774_v60, %v6231_v42  ;;  %v6338_v38 = vmul.f32 %v2168_v25, %v6301_v17  ;;  %v2396_v49 = vadd.f32 %v8208_v44, %v8205_v47  ;;  %v6344_v57 = vmul.f32 0.5, %v8209_v63  ;;  %v4478_v31 = vpop.eup %4477  ;;  %v8210_v60 = vld [vmem:[#allocation65_spill] sm:$0xff]  ;;  %v8212_v47 = vld [vmem:[#allocation75_spill] sm:$0xff] }
 0x386   : > { %3382 = vmatprep.mubr.bf16.mxu1 %v3016_v19  ;;  %v2520_v2 = vmul.f32 0.7978846, %v2392_v34  ;;  %v6347_v9 = vmul.f32 0.5, %v8210_v60  ;;  %v8211_v24 = vld [vmem:[#allocation69_spill] sm:$0xff]  ;;  %v4480_v25 = vpop.eup %4479  ;;  %v2767_v13 = vadd.f32 1.0, %v4478_v31  ;;  %v2170_v56 = vmul.f32 %v2042_v7, %v6326_v36 }
 0x387   : > { %8207 = vst [vmem:[#allocation44_spill] sm:$0xff] %v6338_v38  ;;  %v3018_v42 = vpack.c.bf16 %v2902_v35, %v2898_v14  ;;  %v2394_v48 = vadd.f32 %v8211_v24, %v8209_v63  ;;  %v2524_v38 = vmul.f32 0.7978846, %v2396_v49  ;;  %v2398_v44 = vadd.f32 %v8212_v47, %v8210_v60  ;;  %v8214_v24 = vld [vmem:[#allocation50_spill] sm:$0xff] }
 0x388   : > { %v4482_v17 = vpop.eup %4481  ;;  %v2771_v5 = vadd.f32 1.0, %v4480_v25  ;;  %4485 = vtanh.f32 %v2520_v2  ;;  %v6356_v19 = vadd.f32 %v6062_v52, %v5625_v8  ;;  %v2895_v34 = vmul.f32 %v2767_v13, %v6252_v53  ;;  %v8215_v13 = vld [vmem:[#allocation58_spill] sm:$0xff] }
 0x389   : > { %3543 = vmatprep.mubr.bf16.mxu0 %v3018_v42  ;;  %v2522_v14 = vmul.f32 0.7978846, %v2394_v48  ;;  %v4484_v35 = vpop.eup %4483  ;;  %v2769_v63 = vadd.f32 1.0, %v4482_v17  ;;  %v6360_v31 = vmul.f32 %v2170_v56, %v6326_v36  ;;  %4487 = vtanh.f32 %v2524_v38  ;;  %v8216_v38 = vld [vmem:[#allocation61_spill] sm:$0xff] }
 0x38a   : > { %v2899_v7 = vmul.f32 %v2771_v5, %v6256_v50  ;;  %v2773_v49 = vadd.f32 1.0, %v4484_v35  ;;  %v2526_v60 = vmul.f32 0.7978846, %v2398_v44  ;;  %v2043_v2 = vmul.f32 0.044715, %v6356_v19  ;;  %v8218_v44 = vld [vmem:[#allocation52_spill] sm:$0xff] }
 0x38b   : > { %4489 = vtanh.f32 %v2522_v14  ;;  %v2897_v42 = vmul.f32 %v2769_v63, %v6266_v1  ;;  %v6367_v52 = vadd.f32 %v6068_v26, %v5627_v3  ;;  %v6370_v53 = vmul.f32 0.5, %v8214_v24  ;;  %v8217_v26 = vld [vmem:[#allocation70_spill] sm:$0xff] }
 0x38c   : > { %v3015_v17 = vpack.c.bf16 %v2899_v7, %v2895_v34  ;;  %v2901_v56 = vmul.f32 %v2773_v49, %v6269_v39  ;;  %4491 = vtanh.f32 %v2526_v60  ;;  %v6374_v5 = vmul.f32 0.5, %v8215_v13  ;;  %v8219_v39 = vld [vmem:[#allocation62_spill] sm:$0xff]  ;;  %v8220_v34 = vld [vmem:[#allocation63_spill] sm:$0xff] }
 0x38d   : > { %8213 = vst [vmem:[#allocation45_spill] sm:$0xff] %v6367_v52  ;;  %v2171_v50 = vmul.f32 %v2043_v2, %v6356_v19  ;;  %v2045_v1 = vmul.f32 0.044715, %v6367_v52  ;;  %v2391_v48 = vadd.f32 %v8216_v38, %v8214_v24  ;;  %v2395_v25 = vadd.f32 %v8217_v26, %v8215_v13  ;;  %v8221_v24 = vld [vmem:[#allocation72_spill] sm:$0xff] }
 0x38e   : > { %3383 = vmatmul.mubr.bf16.gmra.mrb[88].mxu1 %v3015_v17  ;;  %v3017_v47 = vpack.c.bf16 %v2901_v56, %v2897_v42  ;;  %v6383_v14 = vmul.f32 0.5, %v8218_v44  ;;  %v6386_v35 = vmul.f32 0.5, %v8219_v39  ;;  %v2393_v63 = vadd.f32 %v8220_v34, %v8218_v44 }
 0x38f   : > { %v6391_v7 = vmul.f32 %v2171_v50, %v6356_v19  ;;  %v2173_v49 = vmul.f32 %v2045_v1, %v6367_v52  ;;  %v2519_v60 = vmul.f32 0.7978846, %v2391_v48  ;;  %v2523_v2 = vmul.f32 0.7978846, %v2395_v25 }
 0x390   : > { %3544 = vmatmul.mubr.bf16.gmra.mrb[88].mxu0 %v3017_v47  ;;  %v2397_v42 = vadd.f32 %v8221_v24, %v8219_v39  ;;  %v2521_v17 = vmul.f32 0.7978846, %v2393_v63  ;;  %v6398_v56 = vadd.f32 %v6070_v27, %v5629_v12  ;;  %v6402_v13 = vadd.f32 %v6078_v23, %v5631_v22 }
 0x391   : > { %v6405_v50 = vmul.f32 %v2173_v49, %v6367_v52  ;;  %4493 = vtanh.f32 %v2519_v60  ;;  %v6409_v1 = vadd.f32 %v6109_v10, %v5625_v8  ;;  %v6413_v38 = vadd.f32 %v6111_v45, %v5627_v3 }
 0x392   : > { %v4486_v48 = vpop.eup %4485  ;;  %4495 = vtanh.f32 %v2523_v2  ;;  %v2525_v27 = vmul.f32 0.7978846, %v2397_v42  ;;  %v2044_v26 = vmul.f32 0.044715, %v6398_v56  ;;  %v2046_v23 = vmul.f32 0.044715, %v6402_v13 }
 0x393   : > { %8222 = vst [vmem:[#allocation54_spill] sm:$0xff] %v6405_v50  ;;  %8223 = vst [vmem:[#allocation42_spill] sm:$0xff] %v6409_v1  ;;  %v4488_v25 = vpop.eup %4487  ;;  %v2776_v47 = vadd.f32 1.0, %v4486_v48  ;;  %4497 = vtanh.f32 %v2521_v17  ;;  %v2047_v44 = vmul.f32 0.044715, %v6409_v1 }
 0x394   : > { %8224 = vst [vmem:[#allocation46_spill] sm:$0xff] %v6413_v38  ;;  %v2049_v39 = vmul.f32 0.044715, %v6413_v38  ;;  %v2780_v34 = vadd.f32 1.0, %v4488_v25  ;;  %4499 = vtanh.f32 %v2525_v27  ;;  %v2172_v45 = vmul.f32 %v2044_v26, %v6398_v56 }
 0x395   : > { %v4490_v10 = vpop.eup %4489  ;;  %v2174_v63 = vmul.f32 %v2046_v23, %v6402_v13  ;;  %v2904_v49 = vmul.f32 %v2776_v47, %v6329_v62  ;;  %v2175_v2 = vmul.f32 %v2047_v44, %v6409_v1  ;;  %v6433_v27 = vadd.f32 %v6117_v58, %v5629_v12 }
 0x396   : > { %v2778_v60 = vadd.f32 1.0, %v4490_v10  ;;  %v2177_v24 = vmul.f32 %v2049_v39, %v6413_v38  ;;  %v4492_v42 = vpop.eup %4491  ;;  %v2908_v17 = vmul.f32 %v2780_v34, %v6333_v33  ;;  %v6426_v48 = vmul.f32 %v2172_v45, %v6398_v56  ;;  %v8227_v10 = vld [vmem:[#allocation71_spill] sm:$0xff]  ;;  %v8228_v45 = vld [vmem:[#allocation78_spill] sm:$0xff] }
 0x397   : > { %v6429_v25 = vmul.f32 %v2174_v63, %v6402_v13  ;;  %v2782_v26 = vadd.f32 1.0, %v4492_v42  ;;  %v6437_v23 = vmul.f32 %v2175_v2, %v6409_v1  ;;  %v2048_v44 = vmul.f32 0.044715, %v6433_v27  ;;  %v8229_v2 = vld [vmem:[#allocation73_spill] sm:$0xff]  ;;  %v8230_v42 = vld [vmem:[#allocation82_spill] sm:$0xff] }
 0x398   : > { %v2906_v62 = vmul.f32 %v2778_v60, %v6344_v57  ;;  %v6440_v47 = vmul.f32 %v2177_v24, %v6413_v38  ;;  %v3020_v33 = vpack.c.bf16 %v2908_v17, %v2904_v49  ;;  %v6445_v39 = vadd.f32 %v6119_v16, %v5631_v22 }
 0x399   : > { %8225 = vst [vmem:[#allocation47_spill] sm:$0xff] %v6437_v23  ;;  %v6448_v34 = vmul.f32 0.5, %v8227_v10  ;;  %v2910_v58 = vmul.f32 %v2782_v26, %v6347_v9  ;;  %v6452_v57 = vmul.f32 0.5, %v5973_v59  ;;  %v2400_v63 = vadd.f32 %v8228_v45, %v8227_v10  ;;  %v8231_v10 = vld [vmem:[#allocation81_spill] sm:$0xff] }
 0x39a   : > { %8226 = vst [vmem:[#allocation56_spill] sm:$0xff] %v6440_v47  ;;  %v2404_v49 = vadd.f32 %v6031_v15, %v5973_v59  ;;  %3390 = vmatprep.mubr.bf16.mxu1 %v3020_v33  ;;  %v2176_v60 = vmul.f32 %v2048_v44, %v6433_v27  ;;  %v2050_v16 = vmul.f32 0.044715, %v6445_v39  ;;  %v6461_v24 = vmul.f32 0.5, %v8229_v2  ;;  %v8232_v44 = vld [vmem:[#allocation89_spill] sm:$0xff] }
 0x39b   : > { %v6464_v17 = vmul.f32 0.5, %v8230_v42  ;;  %v4494_v9 = vpop.eup %4493  ;;  %v3022_v26 = vpack.c.bf16 %v2910_v58, %v2906_v62  ;;  %v2528_v47 = vmul.f32 0.7978846, %v2400_v63  ;;  %v2402_v45 = vadd.f32 %v8231_v10, %v8229_v2 }
 0x39c   : > { %v2532_v38 = vmul.f32 0.7978846, %v2404_v49  ;;  %v4496_v23 = vpop.eup %4495  ;;  %v2775_v15 = vadd.f32 1.0, %v4494_v9  ;;  %v6469_v59 = vmul.f32 %v2176_v60, %v6433_v27  ;;  %v2178_v33 = vmul.f32 %v2050_v16, %v6445_v39 }
 0x39d   : > { %v2406_v1 = vadd.f32 %v8232_v44, %v8230_v42  ;;  %v4498_v50 = vpop.eup %4497  ;;  %3551 = vmatprep.mubr.bf16.mxu0 %v3022_v26  ;;  %v2779_v52 = vadd.f32 1.0, %v4496_v23  ;;  %4501 = vtanh.f32 %v2528_v47  ;;  %v2530_v62 = vmul.f32 0.7978846, %v2402_v45  ;;  %v8233_v26 = vld [vmem:[#allocation66_spill] sm:$0xff]  ;;  %v8237_v44 = vld [vmem:[#allocation68_spill] sm:$0xff] }
 0x39e   : > { %v6476_v58 = vadd.f32 %v6129_v54, %v5625_v8  ;;  %v4500_v63 = vpop.eup %4499  ;;  %v2903_v49 = vmul.f32 %v2775_v15, %v6370_v53  ;;  %v2777_v2 = vadd.f32 1.0, %v4498_v50  ;;  %v6480_v60 = vmul.f32 %v2178_v33, %v6445_v39 }
 0x39f   : > { %4503 = vtanh.f32 %v2532_v38  ;;  %v2907_v16 = vmul.f32 %v2779_v52, %v6374_v5  ;;  %v2781_v42 = vadd.f32 1.0, %v4500_v63  ;;  %v2534_v9 = vmul.f32 0.7978846, %v2406_v1  ;;  %v8234_v38 = vld [vmem:[#allocation79_spill] sm:$0xff]  ;;  %v8235_v1 = vld [vmem:[#allocation76_spill] sm:$0xff] }
 0x3a0   : > { %4505 = vtanh.f32 %v2530_v62  ;;  %v2905_v23 = vmul.f32 %v2777_v2, %v6383_v14  ;;  %v2051_v47 = vmul.f32 0.044715, %v6476_v58  ;;  %v6487_v54 = vadd.f32 %v6131_v51, %v5627_v3  ;;  %v8236_v51 = vld [vmem:[#allocation83_spill] sm:$0xff] }
 0x3a1   : > { %v6490_v53 = vmul.f32 0.5, %v8233_v26  ;;  %v3019_v50 = vpack.c.bf16 %v2907_v16, %v2903_v49  ;;  %v2909_v10 = vmul.f32 %v2781_v42, %v6386_v35  ;;  %4507 = vtanh.f32 %v2534_v9  ;;  %v8238_v35 = vld [vmem:[#allocation80_spill] sm:$0xff]  ;;  %v8239_v49 = vld [vmem:[#allocation77_spill] sm:$0xff] }
 0x3a2   : > { %v6494_v52 = vmul.f32 0.5, %v8234_v38  ;;  %v2179_v5 = vmul.f32 %v2051_v47, %v6476_v58  ;;  %v2053_v14 = vmul.f32 0.044715, %v6487_v54  ;;  %v2399_v45 = vadd.f32 %v8235_v1, %v8233_v26  ;;  %v8240_v26 = vld [vmem:[#allocation84_spill] sm:$0xff] }
 0x3a3   : > { %v2403_v15 = vadd.f32 %v8236_v51, %v8234_v38  ;;  %3391 = vmatmul.mubr.bf16.gmra.mrb[92].mxu1 %v3019_v50  ;;  %v3021_v33 = vpack.c.bf16 %v2909_v10, %v2905_v23  ;;  %v6503_v62 = vmul.f32 0.5, %v8237_v44  ;;  %v6506_v63 = vmul.f32 0.5, %v8238_v35 }
 0x3a4   : > { %v2401_v2 = vadd.f32 %v8239_v49, %v8237_v44  ;;  %v6511_v16 = vmul.f32 %v2179_v5, %v6476_v58  ;;  %v2181_v42 = vmul.f32 %v2053_v14, %v6487_v54  ;;  %v2527_v9 = vmul.f32 0.7978846, %v2399_v45 }
 0x3a5   : > { %v2531_v47 = vmul.f32 0.7978846, %v2403_v15  ;;  %3552 = vmatmul.mubr.bf16.gmra.mrb[92].mxu0 %v3021_v33  ;;  %v2405_v23 = vadd.f32 %v8240_v26, %v8238_v35  ;;  %v6518_v10 = vadd.f32 %v6144_v29, %v5629_v12  ;;  %v6522_v38 = vadd.f32 %v6146_v21, %v5631_v22 }
 0x3a6   : > { %v2529_v50 = vmul.f32 0.7978846, %v2401_v2  ;;  %v6525_v5 = vmul.f32 %v2181_v42, %v6487_v54  ;;  %4509 = vtanh.f32 %v2527_v9  ;;  %v6529_v14 = vadd.f32 %v6183_v61, %v5625_v8 }
 0x3a7   : > { %v6533_v1 = vadd.f32 %v6185_v55, %v5627_v3  ;;  %v4502_v45 = vpop.eup %4501  ;;  %4511 = vtanh.f32 %v2531_v47  ;;  %v2533_v29 = vmul.f32 0.7978846, %v2405_v23  ;;  %v2052_v51 = vmul.f32 0.044715, %v6518_v10 }
 0x3a8   : > { %8241 = vst [vmem:[#allocation87_spill] sm:$0xff] %v6529_v14  ;;  %v2054_v21 = vmul.f32 0.044715, %v6522_v38  ;;  %v2784_v33 = vadd.f32 1.0, %v4502_v45  ;;  %4513 = vtanh.f32 %v2529_v50  ;;  %v2055_v44 = vmul.f32 0.044715, %v6529_v14 }
 0x3a9   : > { %8242 = vst [vmem:[#allocation55_spill] sm:$0xff] %v6533_v1  ;;  %v4504_v15 = vpop.eup %4503  ;;  %v2057_v35 = vmul.f32 0.044715, %v6533_v1  ;;  %4515 = vtanh.f32 %v2533_v29  ;;  %v2180_v55 = vmul.f32 %v2052_v51, %v6518_v10  ;;  %v6553_v29 = vadd.f32 %v6193_v0, %v5629_v12 }
 0x3aa   : > { %v4506_v61 = vpop.eup %4505  ;;  %v2788_v49 = vadd.f32 1.0, %v4504_v15  ;;  %v2182_v2 = vmul.f32 %v2054_v21, %v6522_v38  ;;  %v2912_v42 = vmul.f32 %v2784_v33, %v6448_v34  ;;  %v2183_v47 = vmul.f32 %v2055_v44, %v6529_v14 }
 0x3ab   : > { %v2786_v9 = vadd.f32 1.0, %v4506_v61  ;;  %v2185_v26 = vmul.f32 %v2057_v35, %v6533_v1  ;;  %v4508_v23 = vpop.eup %4507  ;;  %v6546_v45 = vmul.f32 %v2180_v55, %v6518_v10  ;;  %v2056_v44 = vmul.f32 0.044715, %v6553_v29 }
 0x3ac   : > { %v2916_v50 = vmul.f32 %v2788_v49, %v6452_v57  ;;  %v6549_v15 = vmul.f32 %v2182_v2, %v6522_v38  ;;  %v2790_v51 = vadd.f32 1.0, %v4508_v23  ;;  %v6557_v21 = vmul.f32 %v2183_v47, %v6529_v14  ;;  %v8246_v47 = vld [vmem:[#allocation96_spill] sm:$0xff] }
 0x3ad   : > { %v2914_v34 = vmul.f32 %v2786_v9, %v6461_v24  ;;  %v6560_v33 = vmul.f32 %v2185_v26, %v6533_v1  ;;  %v6565_v35 = vadd.f32 %v6195_v40, %v5631_v22  ;;  %v6568_v61 = vmul.f32 0.5, %v6011_v41 }
 0x3ae   : > { %8243 = vst [vmem:[#allocation64_spill] sm:$0xff] %v6557_v21  ;;  %v3024_v57 = vpack.c.bf16 %v2916_v50, %v2912_v42  ;;  %v2918_v0 = vmul.f32 %v2790_v51, %v6464_v17  ;;  %v6572_v24 = vmul.f32 0.5, %v6138_v6  ;;  %v2408_v49 = vadd.f32 %v6055_v11, %v6011_v41  ;;  %v8245_v42 = vld [vmem:[#allocation88_spill] sm:$0xff] }
 0x3af   : > { %8244 = vst [vmem:[#allocation67_spill] sm:$0xff] %v6560_v33  ;;  %v2412_v55 = vadd.f32 %v6177_v32, %v6138_v6  ;;  %v2184_v2 = vmul.f32 %v2056_v44, %v6553_v29  ;;  %v2058_v40 = vmul.f32 0.044715, %v6565_v35  ;;  %v6581_v9 = vmul.f32 0.5, %v8245_v42  ;;  %v8247_v41 = vld [vmem:[#allocation92_spill] sm:$0xff]  ;;  %v8248_v44 = vld [vmem:[#allocation102_spill] sm:$0xff] }
 0x3b0   : > { %3398 = vmatprep.mubr.bf16.mxu1 %v3024_v57  ;;  %v6584_v26 = vmul.f32 0.5, %v8246_v47  ;;  %v4510_v17 = vpop.eup %4509  ;;  %v3026_v23 = vpack.c.bf16 %v2918_v0, %v2914_v34  ;;  %v2536_v50 = vmul.f32 0.7978846, %v2408_v49  ;;  %v2410_v11 = vadd.f32 %v8247_v41, %v8245_v42  ;;  %v8250_v41 = vld [vmem:[#allocation85_spill] sm:$0xff] }
 0x3b1   : > { %v2540_v51 = vmul.f32 0.7978846, %v2412_v55  ;;  %v4512_v33 = vpop.eup %4511  ;;  %v2783_v6 = vadd.f32 1.0, %v4510_v17  ;;  %v6589_v32 = vmul.f32 %v2184_v2, %v6553_v29  ;;  %v2186_v57 = vmul.f32 %v2058_v40, %v6565_v35 }
 0x3b2   : > { %v2414_v1 = vadd.f32 %v8248_v44, %v8246_v47  ;;  %v4514_v21 = vpop.eup %4513  ;;  %3559 = vmatprep.mubr.bf16.mxu0 %v3026_v23  ;;  %v2787_v14 = vadd.f32 1.0, %v4512_v33  ;;  %4517 = vtanh.f32 %v2536_v50  ;;  %v2538_v34 = vmul.f32 0.7978846, %v2410_v11 }
 0x3b3   : > { %v6596_v0 = vadd.f32 %v6201_v28, %v5625_v8  ;;  %v4516_v49 = vpop.eup %4515  ;;  %v2911_v55 = vmul.f32 %v2783_v6, %v6490_v53  ;;  %v2785_v42 = vadd.f32 1.0, %v4514_v21  ;;  %v6600_v2 = vmul.f32 %v2186_v57, %v6565_v35  ;;  %v8249_v28 = vld [vmem:[#allocation48_spill] sm:$0xff]  ;;  %v8253_v57 = vld [vmem:[#allocation95_spill] sm:$0xff] }
 0x3b4   : > { %4519 = vtanh.f32 %v2540_v51  ;;  %v2915_v40 = vmul.f32 %v2787_v14, %v6494_v52  ;;  %v2789_v47 = vadd.f32 1.0, %v4516_v49  ;;  %v2542_v17 = vmul.f32 0.7978846, %v2414_v1  ;;  %v8251_v51 = vld [vmem:[#allocation93_spill] sm:$0xff]  ;;  %v8252_v1 = vld [vmem:[#allocation90_spill] sm:$0xff] }
 0x3b5   : > { %4521 = vtanh.f32 %v2538_v34  ;;  %v2913_v33 = vmul.f32 %v2785_v42, %v6503_v62  ;;  %v2059_v23 = vmul.f32 0.044715, %v6596_v0  ;;  %v6607_v50 = vadd.f32 %v8249_v28, %v5627_v3  ;;  %v8254_v49 = vld [vmem:[#allocation86_spill] sm:$0xff] }
 0x3b6   : > { %v6610_v53 = vmul.f32 0.5, %v8250_v41  ;;  %v3023_v21 = vpack.c.bf16 %v2915_v40, %v2911_v55  ;;  %v2917_v11 = vmul.f32 %v2789_v47, %v6506_v63  ;;  %4523 = vtanh.f32 %v2542_v17  ;;  %v8255_v63 = vld [vmem:[#allocation94_spill] sm:$0xff]  ;;  %v8256_v40 = vld [vmem:[#allocation91_spill] sm:$0xff] }
 0x3b7   : > { %v6614_v52 = vmul.f32 0.5, %v8251_v51  ;;  %v2187_v14 = vmul.f32 %v2059_v23, %v6596_v0  ;;  %v2061_v62 = vmul.f32 0.044715, %v6607_v50  ;;  %v2407_v6 = vadd.f32 %v8252_v1, %v8250_v41  ;;  %v8258_v1 = vld [vmem:[#allocation106_spill] sm:$0xff] }
 0x3b8   : > { %v2411_v44 = vadd.f32 %v8253_v57, %v8251_v51  ;;  %3399 = vmatmul.mubr.bf16.gmra.mrb[96].mxu1 %v3023_v21  ;;  %v3025_v34 = vpack.c.bf16 %v2917_v11, %v2913_v33  ;;  %v6623_v55 = vmul.f32 0.5, %v8254_v49  ;;  %v6626_v42 = vmul.f32 0.5, %v8255_v63  ;;  %v8257_v21 = vld [vmem:[#allocation97_spill] sm:$0xff] }
 0x3b9   : > { %v2409_v47 = vadd.f32 %v8256_v40, %v8254_v49  ;;  %v6631_v17 = vmul.f32 %v2187_v14, %v6596_v0  ;;  %v2189_v23 = vmul.f32 %v2061_v62, %v6607_v50  ;;  %v2535_v28 = vmul.f32 0.7978846, %v2407_v6  ;;  %v8260_v62 = vld [vmem:[#allocation100_spill] sm:$0xff]  ;;  %v6655_v49 = vpop.f32.mrb[56].mxu0 }
 0x3ba   : > { %v2539_v41 = vmul.f32 0.7978846, %v2411_v44  ;;  %3560 = vmatmul.mubr.bf16.gmra.mrb[96].mxu0 %v3025_v34  ;;  %v2413_v33 = vadd.f32 %v8257_v21, %v8255_v63  ;;  %v6638_v51 = vadd.f32 %v6214_v46, %v5629_v12  ;;  %v6642_v57 = vadd.f32 %v8258_v1, %v5631_v22  ;;  %v6653_v34 = vpop.f32.mrb[56].mxu1  ;;  %8262 = vst [vmem:[#allocation65_spill] sm:$0xff] %v6655_v49  ;;  %v6665_v3 = vpop.f32.mrb[57].mxu0 }
 0x3bb   : > { %v2537_v11 = vmul.f32 0.7978846, %v2409_v47  ;;  %v6645_v14 = vmul.f32 %v2189_v23, %v6607_v50  ;;  %4525 = vtanh.f32 %v2535_v28  ;;  %v6648_v6 = vmul.f32 0.5, %v8260_v62  ;;  %8261 = vst [vmem:[#allocation57_spill] sm:$0xff] %v6653_v34  ;;  %v8263_v28 = vld [vmem:[#allocation105_spill] sm:$0xff]  ;;  %v6663_v12 = vpop.f32.mrb[57].mxu1 }
 0x3bc   : > { %v6651_v44 = vmul.f32 0.5, %v6278_v30  ;;  %v4518_v46 = vpop.eup %4517  ;;  %4527 = vtanh.f32 %v2539_v41  ;;  %v2541_v63 = vmul.f32 0.7978846, %v2413_v33  ;;  %v2060_v40 = vmul.f32 0.044715, %v6638_v51  ;;  %8264 = vst [vmem:[#allocation69_spill] sm:$0xff] %v6663_v12 }
 0x3bd   : > { %8259 = vst [vmem:[#allocation74_spill] sm:$0xff] %v6645_v14  ;;  %v2062_v47 = vmul.f32 0.044715, %v6642_v57  ;;  %v2792_v21 = vadd.f32 1.0, %v4518_v46  ;;  %4529 = vtanh.f32 %v2537_v11  ;;  %v2416_v1 = vadd.f32 %v8263_v28, %v8260_v62  ;;  %8265 = vst [vmem:[#allocation75_spill] sm:$0xff] %v6665_v3  ;;  %v6669_v8 = vpop.f32.mrb[58].mxu1 }
 0x3be   : > { %v4520_v23 = vpop.eup %4519  ;;  %v2420_v22 = vadd.f32 %v6310_v4, %v6278_v30  ;;  %4531 = vtanh.f32 %v2541_v63  ;;  %v2188_v33 = vmul.f32 %v2060_v40, %v6638_v51  ;;  %8266 = vst [vmem:[#allocation50_spill] sm:$0xff] %v6669_v8  ;;  %v6671_v11 = vpop.f32.mrb[58].mxu0  ;;  %v8278_v8 = vld [vmem:[#allocation51_spill] sm:$0xff] }
 0x3bf   : > { %v4522_v49 = vpop.eup %4521  ;;  %v2796_v41 = vadd.f32 1.0, %v4520_v23  ;;  %v2190_v34 = vmul.f32 %v2062_v47, %v6642_v57  ;;  %8267 = vst [vmem:[#allocation58_spill] sm:$0xff] %v6671_v11  ;;  %v2920_v62 = vmul.f32 %v2792_v21, %v6568_v61  ;;  %v2544_v28 = vmul.f32 0.7978846, %v2416_v1  ;;  %v6674_v4 = vpop.f32.mrb[59].mxu1  ;;  %v8269_v47 = vld [vmem:[#allocation101_spill] sm:$0xff] }
 0x3c0   : > { %v2794_v46 = vadd.f32 1.0, %v4522_v49  ;;  %v2548_v30 = vmul.f32 0.7978846, %v2420_v22  ;;  %8268 = vst [vmem:[#allocation61_spill] sm:$0xff] %v6674_v4  ;;  %v4524_v12 = vpop.eup %4523  ;;  %v6678_v63 = vmul.f32 %v2188_v33, %v6638_v51  ;;  %v6684_v23 = vmul.f32 0.5, %v8269_v47  ;;  %v6686_v11 = vpop.f32.mrb[59].mxu0 }
 0x3c1   : > { %v2924_v3 = vmul.f32 %v2796_v41, %v6572_v24  ;;  %v6681_v40 = vmul.f32 %v2190_v34, %v6642_v57  ;;  %8270 = vst [vmem:[#allocation70_spill] sm:$0xff] %v6686_v11  ;;  %v2798_v61 = vadd.f32 1.0, %v4524_v12  ;;  %4533 = vtanh.f32 %v2544_v28  ;;  %v8271_v24 = vld [vmem:[#allocation107_spill] sm:$0xff]  ;;  %v8272_v33 = vld [vmem:[#allocation98_spill] sm:$0xff]  ;;  %v6705_v28 = vpop.f32.mrb[60].mxu1 }
 0x3c2   : > { %v2922_v49 = vmul.f32 %v2794_v46, %v6581_v9  ;;  %v6690_v22 = vmul.f32 0.5, %v6282_v37  ;;  %4535 = vtanh.f32 %v2548_v30  ;;  %v2418_v1 = vadd.f32 %v8271_v24, %v8269_v47  ;;  %v8273_v9 = vld [vmem:[#allocation103_spill] sm:$0xff]  ;;  %8274 = vst [vmem:[#allocation52_spill] sm:$0xff] %v6705_v28  ;;  %v6714_v47 = vpop.f32.mrb[61].mxu1 }
 0x3c3   : > { %v3028_v21 = vpack.c.bf16 %v2924_v3, %v2920_v62  ;;  %v2422_v34 = vadd.f32 %v6313_v20, %v6282_v37  ;;  %v2926_v41 = vmul.f32 %v2798_v61, %v6584_v26  ;;  %v6698_v4 = vmul.f32 0.5, %v8272_v33  ;;  %v6707_v3 = vpop.f32.mrb[60].mxu0  ;;  %v8276_v20 = vld [vmem:[#allocation99_spill] sm:$0xff]  ;;  %8277 = vst [vmem:[#allocation63_spill] sm:$0xff] %v6714_v47 }
 0x3c4   : > { %v6701_v12 = vmul.f32 0.5, %v6240_v18  ;;  %v2415_v46 = vadd.f32 %v8273_v9, %v8272_v33  ;;  %8275 = vst [vmem:[#allocation62_spill] sm:$0xff] %v6707_v3  ;;  %v2546_v62 = vmul.f32 0.7978846, %v2418_v1  ;;  %v2419_v37 = vadd.f32 %v6263_v43, %v6240_v18  ;;  %v8279_v9 = vld [vmem:[#allocation104_spill] sm:$0xff]  ;;  %v6723_v1 = vpop.f32.mrb[62].mxu1 }
 0x3c5   : > { %3406 = vmatprep.mubr.bf16.mxu1 %v3028_v21  ;;  %v2550_v30 = vmul.f32 0.7978846, %v2422_v34  ;;  %v6712_v26 = vmul.f32 0.5, %v8276_v20  ;;  %v4526_v61 = vpop.eup %4525  ;;  %v3030_v24 = vpack.c.bf16 %v2926_v41, %v2922_v49  ;;  %v6717_v33 = vmul.f32 0.5, %v8278_v8  ;;  %v6721_v21 = vpop.f32.mrb[61].mxu0  ;;  %8281 = vst [vmem:[#allocation71_spill] sm:$0xff] %v6723_v1 }
 0x3c6   : > { %v2543_v11 = vmul.f32 0.7978846, %v2415_v46  ;;  %v2417_v3 = vadd.f32 %v8279_v9, %v8276_v20  ;;  %8280 = vst [vmem:[#allocation72_spill] sm:$0xff] %v6721_v21  ;;  %v4528_v34 = vpop.eup %4527  ;;  %v2791_v18 = vadd.f32 1.0, %v4526_v61  ;;  %4537 = vtanh.f32 %v2546_v62  ;;  %v8282_v28 = vld [vmem:[#allocation43_spill] sm:$0xff]  ;;  %v6727_v14 = vpop.f32.mrb[62].mxu0 }
 0x3c7   : > { %v2547_v43 = vmul.f32 0.7978846, %v2419_v37  ;;  %v2421_v47 = vadd.f32 %v8282_v28, %v8278_v8  ;;  %8283 = vst [vmem:[#allocation78_spill] sm:$0xff] %v6727_v14  ;;  %v6729_v49 = vpop.f32.mrb[63].mxu1  ;;  %v4530_v41 = vpop.eup %4529  ;;  %3567 = vmatprep.mubr.bf16.mxu0 %v3030_v24  ;;  %v2795_v46 = vadd.f32 1.0, %v4528_v34  ;;  %4539 = vtanh.f32 %v2550_v30  ;;  %v8284_v9 = vld [vmem:[#allocation53_spill] sm:$0xff] }
 0x3c8   : > { %v2545_v20 = vmul.f32 0.7978846, %v2417_v3  ;;  %v6732_v21 = vmul.f32 0.5, %v8284_v9  ;;  %v6734_v1 = vpop.f32.mrb[63].mxu0  ;;  %v4532_v61 = vpop.eup %4531  ;;  %v2919_v62 = vmul.f32 %v2791_v18, %v6610_v53  ;;  %v2793_v37 = vadd.f32 1.0, %v4530_v41  ;;  %v8286_v30 = vld [vmem:[#allocation44_spill] sm:$0xff] }
 0x3c9   : > { %8285 = vst [vmem:[#allocation73_spill] sm:$0xff] %v6734_v1  ;;  %4541 = vtanh.f32 %v2543_v11  ;;  %v2549_v8 = vmul.f32 0.7978846, %v2421_v47  ;;  %v2923_v28 = vmul.f32 %v2795_v46, %v6614_v52  ;;  %v2797_v14 = vadd.f32 1.0, %v4532_v61  ;;  %v6750_v47 = vpop.f32.mrb[64].mxu1 }
 0x3ca   : > { %4543 = vtanh.f32 %v2547_v43  ;;  %v6739_v24 = vmul.f32 0.5, %v6398_v56  ;;  %v2921_v3 = vmul.f32 %v2793_v37, %v6623_v55  ;;  %v2424_v34 = vadd.f32 %v8286_v30, %v8284_v9  ;;  %v6752_v43 = vpop.f32.mrb[64].mxu0  ;;  %v6761_v61 = vpop.f32.mrb[65].mxu1 }
 0x3cb   : > { %4545 = vtanh.f32 %v2545_v20  ;;  %v2428_v1 = vadd.f32 %v6426_v48, %v6398_v56  ;;  %v4534_v53 = vpop.eup %4533  ;;  %v3027_v18 = vpack.c.bf16 %v2923_v28, %v2919_v62  ;;  %v2925_v11 = vmul.f32 %v2797_v14, %v6626_v42  ;;  %8287 = vst [vmem:[#allocation82_spill] sm:$0xff] %v6761_v61  ;;  %v6763_v62 = vpop.f32.mrb[65].mxu0 }
 0x3cc   : > { %4547 = vtanh.f32 %v2549_v8  ;;  %v6748_v52 = vmul.f32 0.5, %v6326_v36  ;;  %v4536_v55 = vpop.eup %4535  ;;  %v2800_v41 = vadd.f32 1.0, %v4534_v53  ;;  %v2552_v46 = vmul.f32 0.7978846, %v2424_v34  ;;  %8288 = vst [vmem:[#allocation81_spill] sm:$0xff] %v6763_v62  ;;  %v6774_v30 = vpop.f32.mrb[66].mxu0 }
 0x3cd   : > { %v2556_v20 = vmul.f32 0.7978846, %v2428_v1  ;;  %v6755_v9 = vmul.f32 0.5, %v6402_v13  ;;  %3407 = vmatmul.mubr.bf16.gmra.mrb[100].mxu1 %v3027_v18  ;;  %v3029_v56 = vpack.c.bf16 %v2925_v11, %v2921_v3  ;;  %v2804_v48 = vadd.f32 1.0, %v4536_v55  ;;  %v8289_v1 = vld [vmem:[#allocation59_spill] sm:$0xff]  ;;  %v6772_v3 = vpop.f32.mrb[66].mxu1 }
 0x3ce   : > { %v2426_v42 = vadd.f32 %v6360_v31, %v6326_v36  ;;  %v2430_v14 = vadd.f32 %v6429_v25, %v6402_v13  ;;  %v2928_v37 = vmul.f32 %v2800_v41, %v6648_v6  ;;  %4549 = vtanh.f32 %v2552_v46  ;;  %8290 = vst [vmem:[#allocation89_spill] sm:$0xff] %v6772_v3  ;;  %8291 = vst [vmem:[#allocation66_spill] sm:$0xff] %v6774_v30  ;;  %v6777_v25 = vpop.f32.mrb[67].mxu1  ;;  %v6779_v6 = vpop.f32.mrb[67].mxu0  ;;  %v8294_v53 = vld [vmem:[#allocation60_spill] sm:$0xff]  ;;  %v8295_v55 = vld [vmem:[#allocation49_spill] sm:$0xff] }
 0x3cf   : > { %v6767_v8 = vmul.f32 0.5, %v8289_v1  ;;  %v6770_v28 = vmul.f32 0.5, %v6356_v19  ;;  %3568 = vmatmul.mubr.bf16.gmra.mrb[100].mxu0 %v3029_v56  ;;  %v2932_v36 = vmul.f32 %v2804_v48, %v6651_v44  ;;  %4551 = vtanh.f32 %v2556_v20  ;;  %8292 = vst [vmem:[#allocation79_spill] sm:$0xff] %v6777_v25  ;;  %8293 = vst [vmem:[#allocation76_spill] sm:$0xff] %v6779_v6  ;;  %v8296_v46 = vld [vmem:[#allocation45_spill] sm:$0xff]  ;;  %v8298_v3 = vld [vmem:[#allocation54_spill] sm:$0xff] }
 0x3d0   : > { %v2554_v31 = vmul.f32 0.7978846, %v2426_v42  ;;  %v2558_v13 = vmul.f32 0.7978846, %v2430_v14  ;;  %v4538_v34 = vpop.eup %4537  ;;  %v2423_v18 = vadd.f32 %v8294_v53, %v8289_v1  ;;  %v2427_v11 = vadd.f32 %v6391_v7, %v6356_v19  ;;  %v8297_v42 = vld [vmem:[#allocation41_spill] sm:$0xff] }
 0x3d1   : > { %v6786_v41 = vmul.f32 0.5, %v8295_v55  ;;  %v6789_v56 = vmul.f32 0.5, %v8296_v46  ;;  %v4540_v44 = vpop.eup %4539  ;;  %v3032_v20 = vpack.c.bf16 %v2932_v36, %v2928_v37  ;;  %v2802_v48 = vadd.f32 1.0, %v4538_v34  ;;  %v6796_v37 = vpop.f32.mrb[68].mxu1 }
 0x3d2   : > { %4553 = vtanh.f32 %v2554_v31  ;;  %v2425_v14 = vadd.f32 %v8297_v42, %v8295_v55  ;;  %v2806_v25 = vadd.f32 1.0, %v4540_v44  ;;  %v2551_v1 = vmul.f32 0.7978846, %v2423_v18  ;;  %v6798_v36 = vpop.f32.mrb[68].mxu0  ;;  %v6804_v18 = vpop.f32.mrb[69].mxu1 }
 0x3d3   : > { %v4542_v6 = vpop.eup %4541  ;;  %4555 = vtanh.f32 %v2558_v13  ;;  %v2555_v53 = vmul.f32 0.7978846, %v2427_v11  ;;  %3414 = vmatprep.mubr.bf16.mxu1 %v3032_v20  ;;  %v2930_v19 = vmul.f32 %v2802_v48, %v6684_v23  ;;  %v2429_v62 = vadd.f32 %v8298_v3, %v8296_v46  ;;  %v6806_v23 = vpop.f32.mrb[69].mxu0 }
 0x3d4   : > { %v4544_v30 = vpop.eup %4543  ;;  %v2799_v7 = vadd.f32 1.0, %v4542_v6  ;;  %v2553_v61 = vmul.f32 0.7978846, %v2425_v14  ;;  %v2934_v34 = vmul.f32 %v2806_v25, %v6690_v22  ;;  %4557 = vtanh.f32 %v2551_v1  ;;  %v6809_v44 = vpop.f32.mrb[70].mxu1 }
 0x3d5   : > { %v4546_v31 = vpop.eup %4545  ;;  %v2803_v55 = vadd.f32 1.0, %v4544_v30  ;;  %v6802_v13 = vmul.f32 0.5, %v6433_v27  ;;  %4559 = vtanh.f32 %v2555_v53  ;;  %v2557_v46 = vmul.f32 0.7978846, %v2429_v62  ;;  %v6811_v20 = vpop.f32.mrb[70].mxu0 }
 0x3d6   : > { %v4548_v6 = vpop.eup %4547  ;;  %v2927_v3 = vmul.f32 %v2799_v7, %v6698_v4  ;;  %v2801_v11 = vadd.f32 1.0, %v4546_v31  ;;  %v3034_v22 = vpack.c.bf16 %v2934_v34, %v2930_v19  ;;  %4561 = vtanh.f32 %v2553_v61  ;;  %v6814_v48 = vpop.f32.mrb[71].mxu1 }
 0x3d7   : > { %v2931_v30 = vmul.f32 %v2803_v55, %v6701_v12  ;;  %v2805_v25 = vadd.f32 1.0, %v4548_v6  ;;  %v6816_v42 = vpop.f32.mrb[71].mxu0  ;;  %4563 = vtanh.f32 %v2557_v46  ;;  %v6820_v4 = vmul.f32 0.5, %v6518_v10 }
 0x3d8   : > { %v2929_v14 = vmul.f32 %v2801_v11, %v6712_v26  ;;  %v2432_v62 = vadd.f32 %v6469_v59, %v6433_v27  ;;  %v4550_v1 = vpop.eup %4549  ;;  %3575 = vmatprep.mubr.bf16.mxu0 %v3034_v22  ;;  %v2436_v61 = vadd.f32 %v6546_v45, %v6518_v10  ;;  %v6828_v19 = vmul.f32 0.5, %v6445_v39  ;;  %v8299_v11 = vld [vmem:[#allocation42_spill] sm:$0xff] }
 0x3d9   : > { %v3031_v53 = vpack.c.bf16 %v2931_v30, %v2927_v3  ;;  %v2933_v12 = vmul.f32 %v2805_v25, %v6717_v33  ;;  %v4552_v7 = vpop.eup %4551  ;;  %v2808_v26 = vadd.f32 1.0, %v4550_v1  ;;  %v6831_v34 = vmul.f32 0.5, %v6522_v38  ;;  %v6841_v22 = vpop.f32.mrb[72].mxu1  ;;  %v8300_v1 = vld [vmem:[#allocation47_spill] sm:$0xff] }
 0x3da   : > { %v2560_v31 = vmul.f32 0.7978846, %v2432_v62  ;;  %v2434_v27 = vadd.f32 %v6480_v60, %v6445_v39  ;;  %v2812_v55 = vadd.f32 1.0, %v4552_v7  ;;  %v2564_v6 = vmul.f32 0.7978846, %v2436_v61  ;;  %v6843_v30 = vpop.f32.mrb[72].mxu0 }
 0x3db   : > { %3415 = vmatmul.mubr.bf16.gmra.mrb[104].mxu1 %v3031_v53  ;;  %v3033_v59 = vpack.c.bf16 %v2933_v12, %v2929_v14  ;;  %v2438_v33 = vadd.f32 %v6549_v15, %v6522_v38  ;;  %v2936_v45 = vmul.f32 %v2808_v26, %v6732_v21  ;;  %v6839_v46 = vmul.f32 0.5, %v8299_v11  ;;  %v6846_v38 = vpop.f32.mrb[73].mxu1  ;;  %v6848_v15 = vpop.f32.mrb[73].mxu0 }
 0x3dc   : > { %v4554_v10 = vpop.eup %4553  ;;  %4565 = vtanh.f32 %v2560_v31  ;;  %v2562_v3 = vmul.f32 0.7978846, %v2434_v27  ;;  %v2940_v60 = vmul.f32 %v2812_v55, %v6739_v24  ;;  %v6851_v62 = vmul.f32 0.5, %v6476_v58  ;;  %v6855_v12 = vpop.f32.mrb[74].mxu1 }
 0x3dd   : > { %v4556_v39 = vpop.eup %4555  ;;  %3576 = vmatmul.mubr.bf16.gmra.mrb[104].mxu0 %v3033_v59  ;;  %v2810_v25 = vadd.f32 1.0, %v4554_v10  ;;  %4567 = vtanh.f32 %v2564_v6  ;;  %v2566_v14 = vmul.f32 0.7978846, %v2438_v33  ;;  %v2431_v53 = vadd.f32 %v8300_v1, %v8299_v11  ;;  %v6857_v61 = vpop.f32.mrb[74].mxu0 }
 0x3de   : > { %v2814_v21 = vadd.f32 1.0, %v4556_v39  ;;  %4569 = vtanh.f32 %v2562_v3  ;;  %v4558_v24 = vpop.eup %4557  ;;  %v3036_v7 = vpack.c.bf16 %v2940_v60, %v2936_v45  ;;  %v2435_v31 = vadd.f32 %v6511_v16, %v6476_v58  ;;  %v6862_v27 = vpop.f32.mrb[75].mxu1  ;;  %v8301_v3 = vld [vmem:[#allocation46_spill] sm:$0xff]  ;;  %v8302_v58 = vld [vmem:[#allocation56_spill] sm:$0xff] }
 0x3df   : > { %v2938_v26 = vmul.f32 %v2810_v25, %v6748_v52  ;;  %4571 = vtanh.f32 %v2566_v14  ;;  %v6864_v59 = vpop.f32.mrb[75].mxu0  ;;  %v4560_v55 = vpop.eup %4559  ;;  %v2807_v33 = vadd.f32 1.0, %v4558_v24  ;;  %v2559_v10 = vmul.f32 0.7978846, %v2431_v53 }
 0x3e0   : > { %v2942_v6 = vmul.f32 %v2814_v21, %v6755_v9  ;;  %v6868_v11 = vmul.f32 0.5, %v8301_v3  ;;  %v4562_v39 = vpop.eup %4561  ;;  %3422 = vmatprep.mubr.bf16.mxu1 %v3036_v7  ;;  %v2811_v45 = vadd.f32 1.0, %v4560_v55  ;;  %v2563_v52 = vmul.f32 0.7978846, %v2435_v31 }
 0x3e1   : > { %v6871_v60 = vmul.f32 0.5, %v6487_v54  ;;  %v2433_v16 = vadd.f32 %v8302_v58, %v8301_v3  ;;  %v4564_v25 = vpop.eup %4563  ;;  %v2935_v1 = vmul.f32 %v2807_v33, %v6767_v8  ;;  %v2809_v9 = vadd.f32 1.0, %v4562_v39  ;;  %v6886_v8 = vpop.f32.mrb[76].mxu1 }
 0x3e2   : > { %v3038_v14 = vpack.c.bf16 %v2942_v6, %v2938_v26  ;;  %4573 = vtanh.f32 %v2559_v10  ;;  %v2939_v21 = vmul.f32 %v2811_v45, %v6770_v28  ;;  %v2813_v53 = vadd.f32 1.0, %v4564_v25  ;;  %v6888_v6 = vpop.f32.mrb[76].mxu0 }
 0x3e3   : > { %4575 = vtanh.f32 %v2563_v52  ;;  %v2437_v24 = vadd.f32 %v6525_v5, %v6487_v54  ;;  %v2937_v7 = vmul.f32 %v2809_v9, %v6786_v41  ;;  %v2561_v31 = vmul.f32 0.7978846, %v2433_v16  ;;  %v6893_v5 = vpop.f32.mrb[77].mxu1  ;;  %v6895_v41 = vpop.f32.mrb[77].mxu0 }
 0x3e4   : > { %3583 = vmatprep.mubr.bf16.mxu0 %v3038_v14  ;;  %v6881_v55 = vmul.f32 0.5, %v6553_v29  ;;  %v6884_v26 = vmul.f32 0.5, %v6638_v51  ;;  %v3035_v28 = vpack.c.bf16 %v2939_v21, %v2935_v1  ;;  %v2941_v33 = vmul.f32 %v2813_v53, %v6789_v56  ;;  %v6905_v56 = vpop.f32.mrb[78].mxu1  ;;  %v6907_v58 = vpop.f32.mrb[78].mxu0 }
 0x3e5   : > { %v2565_v10 = vmul.f32 0.7978846, %v2437_v24  ;;  %v2440_v54 = vadd.f32 %v6589_v32, %v6553_v29  ;;  %4577 = vtanh.f32 %v2561_v31  ;;  %v2444_v39 = vadd.f32 %v6678_v63, %v6638_v51  ;;  %8303 = vst [vmem:[#allocation83_spill] sm:$0xff] %v6905_v56  ;;  %8304 = vst [vmem:[#allocation68_spill] sm:$0xff] %v6907_v58  ;;  %v6909_v14 = vpop.f32.mrb[79].mxu1  ;;  %v6911_v1 = vpop.f32.mrb[79].mxu0 }
 0x3e6   : > { %v4566_v3 = vpop.eup %4565  ;;  %v6900_v45 = vmul.f32 0.5, %v6565_v35  ;;  %v6903_v52 = vmul.f32 0.5, %v6642_v57  ;;  %3423 = vmatmul.mubr.bf16.gmra.mrb[108].mxu1 %v3035_v28  ;;  %v3037_v32 = vpack.c.bf16 %v2941_v33, %v2937_v7  ;;  %8305 = vst [vmem:[#allocation80_spill] sm:$0xff] %v6909_v14  ;;  %8306 = vst [vmem:[#allocation77_spill] sm:$0xff] %v6911_v1  ;;  %v2442_v21 = vadd.f32 %v6600_v2, %v6565_v35  ;;  %v8307_v28 = vld [vmem:[#allocation87_spill] sm:$0xff] }
 0x3e7   : > { %v4568_v29 = vpop.eup %4567  ;;  %v2816_v16 = vadd.f32 1.0, %v4566_v3  ;;  %4579 = vtanh.f32 %v2565_v10  ;;  %v2568_v25 = vmul.f32 0.7978846, %v2440_v54  ;;  %v2572_v9 = vmul.f32 0.7978846, %v2444_v39 }
 0x3e8   : > { %v4570_v51 = vpop.eup %4569  ;;  %v2820_v63 = vadd.f32 1.0, %v4568_v29  ;;  %v2446_v53 = vadd.f32 %v6681_v40, %v6642_v57  ;;  %3584 = vmatmul.mubr.bf16.gmra.mrb[108].mxu0 %v3037_v32  ;;  %v6919_v33 = vmul.f32 0.5, %v8307_v28  ;;  %v2570_v3 = vmul.f32 0.7978846, %v2442_v21  ;;  %v8308_v57 = vld [vmem:[#allocation64_spill] sm:$0xff] }
 0x3e9   : > { %v4572_v24 = vpop.eup %4571  ;;  %v2944_v7 = vmul.f32 %v2816_v16, %v6802_v13  ;;  %v2818_v31 = vadd.f32 1.0, %v4570_v51  ;;  %4581 = vtanh.f32 %v2568_v25  ;;  %v6924_v2 = vmul.f32 0.5, %v6596_v0 }
 0x3ea   : > { %v2948_v10 = vmul.f32 %v2820_v63, %v6820_v4  ;;  %v2822_v54 = vadd.f32 1.0, %v4572_v24  ;;  %4583 = vtanh.f32 %v2572_v9  ;;  %v2574_v35 = vmul.f32 0.7978846, %v2446_v53 }
 0x3eb   : > { %v2946_v39 = vmul.f32 %v2818_v31, %v6828_v19  ;;  %v2439_v40 = vadd.f32 %v8308_v57, %v8307_v28  ;;  %4585 = vtanh.f32 %v2570_v3  ;;  %v2443_v4 = vadd.f32 %v6631_v17, %v6596_v0  ;;  %v8309_v19 = vld [vmem:[#allocation55_spill] sm:$0xff]  ;;  %v8311_v17 = vld [vmem:[#allocation74_spill] sm:$0xff]  ;;  %v8313_v3 = vld [vmem:[#allocation57_spill] sm:$0xff] }
 0x3ec   : > { %v4574_v13 = vpop.eup %4573  ;;  %v3040_v29 = vpack.c.bf16 %v2948_v10, %v2944_v7  ;;  %v2950_v32 = vmul.f32 %v2822_v54, %v6831_v34  ;;  %4587 = vtanh.f32 %v2574_v35  ;;  %v6932_v63 = vmul.f32 0.5, %v8309_v19  ;;  %v8310_v7 = vld [vmem:[#allocation67_spill] sm:$0xff]  ;;  %v8312_v54 = vld [vmem:[#allocation37_spill] sm:$0xff]  ;;  %v8314_v35 = vld [vmem:[#allocation38_spill] sm:$0xff] }
 0x3ed   : > { %v4576_v16 = vpop.eup %4575  ;;  %v2815_v25 = vadd.f32 1.0, %v4574_v13  ;;  %v2567_v51 = vmul.f32 0.7978846, %v2439_v40  ;;  %v2571_v53 = vmul.f32 0.7978846, %v2443_v4  ;;  %v6935_v24 = vmul.f32 0.5, %v6607_v50 }
 0x3ee   : > { %3430 = vmatprep.mubr.bf16.mxu1 %v3040_v29  ;;  %v3042_v9 = vpack.c.bf16 %v2950_v32, %v2946_v39  ;;  %v2819_v21 = vadd.f32 1.0, %v4576_v16  ;;  %v2441_v0 = vadd.f32 %v8310_v7, %v8309_v19  ;;  %v2445_v31 = vadd.f32 %v8311_v17, %v6607_v50  ;;  %v8315_v57 = vld [vmem:[#allocation65_spill] sm:$0xff]  ;;  %v8316_v4 = vld [vmem:[#allocation39_spill] sm:$0xff]  ;;  %v8318_v7 = vld [vmem:[#allocation40_spill] sm:$0xff] }
 0x3ef   : > { %v2943_v34 = vmul.f32 %v2815_v25, %v6839_v46  ;;  %4589 = vtanh.f32 %v2567_v51  ;;  %v4578_v28 = vpop.eup %4577  ;;  %v6945_v39 = vadd.f32 %v8313_v3, %v8312_v54  ;;  %v6949_v40 = vadd.f32 %v8315_v57, %v8314_v35  ;;  %v8317_v16 = vld [vmem:[#allocation69_spill] sm:$0xff]  ;;  %v8319_v17 = vld [vmem:[#allocation75_spill] sm:$0xff] }
 0x3f0   : > { %3591 = vmatprep.mubr.bf16.mxu0 %v3042_v9  ;;  %v2947_v10 = vmul.f32 %v2819_v21, %v6851_v62  ;;  %4591 = vtanh.f32 %v2571_v53  ;;  %v2817_v13 = vadd.f32 1.0, %v4578_v28  ;;  %v2569_v29 = vmul.f32 0.7978846, %v2441_v0 }
 0x3f1   : > { %v4580_v46 = vpop.eup %4579  ;;  %v2573_v32 = vmul.f32 0.7978846, %v2445_v31  ;;  %v6953_v50 = vadd.f32 %v8317_v16, %v8316_v4  ;;  %v2063_v62 = vmul.f32 0.044715, %v6945_v39  ;;  %v2065_v19 = vmul.f32 0.044715, %v6949_v40 }
 0x3f2   : > { %v3039_v25 = vpack.c.bf16 %v2947_v10, %v2943_v34  ;;  %v2821_v51 = vadd.f32 1.0, %v4580_v46  ;;  %v2945_v21 = vmul.f32 %v2817_v13, %v6868_v11  ;;  %4593 = vtanh.f32 %v2569_v29 }
 0x3f3   : > { %v4582_v9 = vpop.eup %4581  ;;  %v2064_v53 = vmul.f32 0.044715, %v6953_v50  ;;  %v6961_v0 = vadd.f32 %v8319_v17, %v8318_v7  ;;  %4595 = vtanh.f32 %v2573_v32  ;;  %v2191_v10 = vmul.f32 %v2063_v62, %v6945_v39 }
 0x3f4   : > { %v4584_v31 = vpop.eup %4583  ;;  %3431 = vmatmul.mubr.bf16.gmra.mrb[112].mxu1 %v3039_v25  ;;  %v2949_v28 = vmul.f32 %v2821_v51, %v6871_v60  ;;  %v2824_v34 = vadd.f32 1.0, %v4582_v9  ;;  %v2193_v57 = vmul.f32 %v2065_v19, %v6949_v40  ;;  %v8320_v60 = vld [vmem:[#allocation50_spill] sm:$0xff] }
 0x3f5   : > { %v2828_v3 = vadd.f32 1.0, %v4584_v31  ;;  %v2192_v11 = vmul.f32 %v2064_v53, %v6953_v50  ;;  %v2066_v46 = vmul.f32 0.044715, %v6961_v0  ;;  %v4586_v13 = vpop.eup %4585  ;;  %v6970_v17 = vmul.f32 %v2191_v10, %v6945_v39  ;;  %v8321_v31 = vld [vmem:[#allocation58_spill] sm:$0xff] }
 0x3f6   : > { %v3041_v29 = vpack.c.bf16 %v2949_v28, %v2945_v21  ;;  %v2952_v16 = vmul.f32 %v2824_v34, %v6881_v55  ;;  %v6974_v25 = vadd.f32 %v8320_v60, %v8312_v54  ;;  %v4588_v32 = vpop.eup %4587  ;;  %v2826_v62 = vadd.f32 1.0, %v4586_v13 }
 0x3f7   : > { %v2956_v51 = vmul.f32 %v2828_v3, %v6884_v26  ;;  %v6978_v19 = vmul.f32 %v2193_v57, %v6949_v40  ;;  %v6981_v9 = vmul.f32 %v2192_v11, %v6953_v50  ;;  %v2830_v21 = vadd.f32 1.0, %v4588_v32  ;;  %v8322_v3 = vld [vmem:[#allocation61_spill] sm:$0xff]  ;;  %v8323_v11 = vld [vmem:[#allocation70_spill] sm:$0xff] }
 0x3f8   : > { %3592 = vmatmul.mubr.bf16.gmra.mrb[112].mxu0 %v3041_v29  ;;  %v2194_v55 = vmul.f32 %v2066_v46, %v6961_v0  ;;  %v2067_v53 = vmul.f32 0.044715, %v6974_v25  ;;  %v6987_v28 = vadd.f32 %v8321_v31, %v8314_v35  ;;  %v2954_v26 = vmul.f32 %v2826_v62, %v6900_v45  ;;  %v8324_v62 = vld [vmem:[#allocation52_spill] sm:$0xff] }
 0x3f9   : > { %v4590_v34 = vpop.eup %4589  ;;  %v3044_v10 = vpack.c.bf16 %v2956_v51, %v2952_v16  ;;  %v6992_v57 = vadd.f32 %v8322_v3, %v8316_v4  ;;  %v6996_v13 = vadd.f32 %v8323_v11, %v8318_v7  ;;  %v2958_v46 = vmul.f32 %v2830_v21, %v6903_v52 }
 0x3fa   : > { %v4592_v29 = vpop.eup %4591  ;;  %v2823_v60 = vadd.f32 1.0, %v4590_v34  ;;  %v7000_v32 = vmul.f32 %v2194_v55, %v6961_v0  ;;  %v2195_v31 = vmul.f32 %v2067_v53, %v6974_v25  ;;  %v2069_v45 = vmul.f32 0.044715, %v6987_v28 }
 0x3fb   : > { %3438 = vmatprep.mubr.bf16.mxu1 %v3044_v10  ;;  %v2827_v16 = vadd.f32 1.0, %v4592_v29  ;;  %v2068_v51 = vmul.f32 0.044715, %v6992_v57  ;;  %v7007_v3 = vadd.f32 %v8324_v62, %v8312_v54  ;;  %v3046_v11 = vpack.c.bf16 %v2958_v46, %v2954_v26 }
 0x3fc   : > { %v2951_v1 = vmul.f32 %v2823_v60, %v6919_v33  ;;  %v7011_v52 = vmul.f32 %v2195_v31, %v6974_v25  ;;  %v2070_v21 = vmul.f32 0.044715, %v6996_v13  ;;  %v4594_v55 = vpop.eup %4593  ;;  %v2197_v34 = vmul.f32 %v2069_v45, %v6987_v28  ;;  %v8326_v33 = vld [vmem:[#allocation62_spill] sm:$0xff]  ;;  %v8328_v60 = vld [vmem:[#allocation63_spill] sm:$0xff] }
 0x3fd   : > { %8325 = vst [vmem:[#allocation84_spill] sm:$0xff] %v7007_v3  ;;  %v2955_v53 = vmul.f32 %v2827_v16, %v6924_v2  ;;  %v2196_v10 = vmul.f32 %v2068_v51, %v6992_v57  ;;  %v2071_v29 = vmul.f32 0.044715, %v7007_v3  ;;  %v4596_v14 = vpop.eup %4595  ;;  %3599 = vmatprep.mubr.bf16.mxu0 %v3046_v11  ;;  %v2825_v62 = vadd.f32 1.0, %v4594_v55 }
 0x3fe   : > { %v2198_v26 = vmul.f32 %v2070_v21, %v6996_v13  ;;  %v7021_v46 = vadd.f32 %v8326_v33, %v8314_v35  ;;  %v7025_v31 = vadd.f32 %v8328_v60, %v8316_v4  ;;  %v2829_v16 = vadd.f32 1.0, %v4596_v14 }
 0x3ff   : > { %v3043_v2 = vpack.c.bf16 %v2955_v53, %v2951_v1  ;;  %v7028_v45 = vmul.f32 %v2197_v34, %v6987_v28  ;;  %v7031_v51 = vmul.f32 %v2196_v10, %v6992_v57  ;;  %v2953_v11 = vmul.f32 %v2825_v62, %v6932_v63  ;;  %v8329_v1 = vld [vmem:[#allocation72_spill] sm:$0xff]  ;;  %v8330_v34 = vld [vmem:[#allocation71_spill] sm:$0xff]  ;;  %v8333_v62 = vld [vmem:[#allocation78_spill] sm:$0xff] }
 0x400   : > { %8327 = vst [vmem:[#allocation88_spill] sm:$0xff] %v7021_v46  ;;  %v7035_v21 = vmul.f32 %v2198_v26, %v6996_v13  ;;  %v2199_v55 = vmul.f32 %v2071_v29, %v7007_v3  ;;  %v2073_v33 = vmul.f32 0.044715, %v7021_v46  ;;  %v2957_v60 = vmul.f32 %v2829_v16, %v6935_v24 }
 0x401   : > { %3439 = vmatmul.mubr.bf16.gmra.mrb[116].mxu1 %v3043_v2  ;;  %v2072_v14 = vmul.f32 0.044715, %v7025_v31  ;;  %v7043_v53 = vadd.f32 %v8329_v1, %v8318_v7  ;;  %v7047_v10 = vadd.f32 %v8330_v34, %v8312_v54  ;;  %v7055_v26 = vadd.f32 %v8333_v62, %v8314_v35  ;;  %v8336_v62 = vld [vmem:[#allocation73_spill] sm:$0xff] }
 0x402   : > { %v7050_v63 = vmul.f32 %v2199_v55, %v7007_v3  ;;  %v2201_v29 = vmul.f32 %v2073_v33, %v7021_v46  ;;  %v7059_v24 = vadd.f32 %v6729_v49, %v8316_v4  ;;  %v3045_v2 = vpack.c.bf16 %v2957_v60, %v2953_v11 }
 0x403   : > { %8331 = vst [vmem:[#allocation96_spill] sm:$0xff] %v7047_v10  ;;  %8334 = vst [vmem:[#allocation102_spill] sm:$0xff] %v7055_v26  ;;  %v2200_v16 = vmul.f32 %v2072_v14, %v7025_v31  ;;  %v2074_v1 = vmul.f32 0.044715, %v7043_v53  ;;  %v2075_v34 = vmul.f32 0.044715, %v7047_v10  ;;  %v7071_v3 = vadd.f32 %v8336_v62, %v8318_v7 }
 0x404   : > { %8332 = vst [vmem:[#allocation92_spill] sm:$0xff] %v7050_v63  ;;  %v7065_v55 = vmul.f32 %v2201_v29, %v7021_v46  ;;  %v2077_v33 = vmul.f32 0.044715, %v7055_v26  ;;  %v2076_v63 = vmul.f32 0.044715, %v7059_v24  ;;  %3600 = vmatmul.mubr.bf16.gmra.mrb[116].mxu0 %v3045_v2  ;;  %v7080_v14 = vadd.f32 %v6750_v47, %v8312_v54  ;;  %v8342_v47 = vld [vmem:[#allocation82_spill] sm:$0xff] }
 0x405   : > { %8337 = vst [vmem:[#allocation85_spill] sm:$0xff] %v7071_v3  ;;  %v7074_v49 = vmul.f32 %v2200_v16, %v7025_v31  ;;  %v2202_v11 = vmul.f32 %v2074_v1, %v7043_v53  ;;  %v2203_v60 = vmul.f32 %v2075_v34, %v7047_v10  ;;  %v2078_v46 = vmul.f32 0.044715, %v7071_v3 }
 0x406   : > { %8335 = vst [vmem:[#allocation48_spill] sm:$0xff] %v7065_v55  ;;  %8338 = vst [vmem:[#allocation93_spill] sm:$0xff] %v7080_v14  ;;  %v2205_v29 = vmul.f32 %v2077_v33, %v7055_v26  ;;  %v2204_v55 = vmul.f32 %v2076_v63, %v7059_v24  ;;  %v7087_v2 = vadd.f32 %v6752_v43, %v8314_v35  ;;  %v2079_v34 = vmul.f32 0.044715, %v7080_v14 }
 0x407   : > { %v7090_v16 = vmul.f32 %v2202_v11, %v7043_v53  ;;  %v7093_v1 = vmul.f32 %v2203_v60, %v7047_v10  ;;  %v7098_v62 = vadd.f32 %v8342_v47, %v8316_v4  ;;  %v2206_v43 = vmul.f32 %v2078_v46, %v7071_v3  ;;  %v8345_v47 = vld [vmem:[#allocation89_spill] sm:$0xff]  ;;  %v8347_v46 = vld [vmem:[#allocation66_spill] sm:$0xff] }
 0x408   : > { %8339 = vst [vmem:[#allocation90_spill] sm:$0xff] %v7087_v2  ;;  %v7101_v63 = vmul.f32 %v2205_v29, %v7055_v26  ;;  %v7104_v33 = vmul.f32 %v2204_v55, %v7059_v24  ;;  %v2081_v11 = vmul.f32 0.044715, %v7087_v2  ;;  %v2207_v58 = vmul.f32 %v2079_v34, %v7080_v14  ;;  %v8349_v34 = vld [vmem:[#allocation79_spill] sm:$0xff] }
 0x409   : > { %8340 = vst [vmem:[#allocation95_spill] sm:$0xff] %v7090_v16  ;;  %8341 = vst [vmem:[#allocation86_spill] sm:$0xff] %v7093_v1  ;;  %v2080_v60 = vmul.f32 0.044715, %v7098_v62  ;;  %v8344_v1 = vld [vmem:[#allocation81_spill] sm:$0xff]  ;;  %v7116_v56 = vadd.f32 %v8345_v47, %v8312_v54  ;;  %v7119_v29 = vmul.f32 %v2206_v43, %v7071_v3  ;;  %v7128_v26 = vadd.f32 %v8349_v34, %v8316_v4  ;;  %v8352_v3 = vld [vmem:[#allocation76_spill] sm:$0xff] }
 0x40a   : > { %8343 = vst [vmem:[#allocation94_spill] sm:$0xff] %v7101_v63  ;;  %v7112_v10 = vadd.f32 %v8344_v1, %v8318_v7  ;;  %v2209_v55 = vmul.f32 %v2081_v11, %v7087_v2  ;;  %v7124_v63 = vadd.f32 %v8347_v46, %v8314_v35  ;;  %v7131_v1 = vmul.f32 %v2207_v58, %v7080_v14 }
 0x40b   : > { %8346 = vst [vmem:[#allocation91_spill] sm:$0xff] %v7119_v29  ;;  %v2208_v16 = vmul.f32 %v2080_v60, %v7098_v62  ;;  %v2083_v43 = vmul.f32 0.044715, %v7116_v56  ;;  %v2084_v46 = vmul.f32 0.044715, %v7128_v26  ;;  %v7143_v34 = vadd.f32 %v8352_v3, %v8318_v7 }
 0x40c   : > { %8348 = vst [vmem:[#allocation97_spill] sm:$0xff] %v7124_v63  ;;  %8350 = vst [vmem:[#allocation106_spill] sm:$0xff] %v7131_v1  ;;  %v2082_v47 = vmul.f32 0.044715, %v7112_v10  ;;  %v7137_v29 = vmul.f32 %v2209_v55, %v7087_v2  ;;  %v2085_v11 = vmul.f32 0.044715, %v7124_v63  ;;  %v7152_v14 = vadd.f32 %v6796_v37, %v8312_v54 }
 0x40d   : > { %v7146_v58 = vmul.f32 %v2208_v16, %v7098_v62  ;;  %v2211_v1 = vmul.f32 %v2083_v43, %v7116_v56  ;;  %v2086_v2 = vmul.f32 0.044715, %v7143_v34  ;;  %v7159_v3 = vadd.f32 %v6798_v36, %v8314_v35 }
 0x40e   : > { %8351 = vst [vmem:[#allocation100_spill] sm:$0xff] %v7137_v29  ;;  %v2210_v60 = vmul.f32 %v2082_v47, %v7112_v10  ;;  %8353 = vst [vmem:[#allocation105_spill] sm:$0xff] %v7152_v14  ;;  %v2213_v55 = vmul.f32 %v2085_v11, %v7124_v63  ;;  %v2212_v29 = vmul.f32 %v2084_v46, %v7128_v26  ;;  %v2087_v43 = vmul.f32 0.044715, %v7152_v14 }
 0x40f   : > { %8354 = vst [vmem:[#allocation101_spill] sm:$0xff] %v7159_v3  ;;  %v7165_v47 = vmul.f32 %v2211_v1, %v7116_v56  ;;  %v7170_v37 = vadd.f32 %v6804_v18, %v8316_v4  ;;  %v2214_v36 = vmul.f32 %v2086_v2, %v7143_v34  ;;  %v7188_v18 = vadd.f32 %v6809_v44, %v8312_v54 }
 0x410   : > { %v7162_v16 = vmul.f32 %v2210_v60, %v7112_v10  ;;  %v7173_v11 = vmul.f32 %v2213_v55, %v7124_v63  ;;  %v7176_v46 = vmul.f32 %v2212_v29, %v7128_v26  ;;  %v2089_v60 = vmul.f32 0.044715, %v7159_v3 }
 0x411   : > { %8356 = vst [vmem:[#allocation98_spill] sm:$0xff] %v7165_v47  ;;  %v2088_v1 = vmul.f32 0.044715, %v7170_v37  ;;  %v7184_v47 = vadd.f32 %v6806_v23, %v8318_v7  ;;  %8358 = vst [vmem:[#allocation99_spill] sm:$0xff] %v7188_v18  ;;  %v7191_v55 = vmul.f32 %v2214_v36, %v7143_v34  ;;  %v7196_v2 = vadd.f32 %v6811_v20, %v8314_v35 }
 0x412   : > { %8355 = vst [vmem:[#allocation107_spill] sm:$0xff] %v7162_v16  ;;  %8357 = vst [vmem:[#allocation103_spill] sm:$0xff] %v7173_v11  ;;  %v2215_v16 = vmul.f32 %v2087_v43, %v7152_v14  ;;  %v2217_v29 = vmul.f32 %v2089_v60, %v7159_v3  ;;  %v7200_v43 = vadd.f32 %v6814_v48, %v8316_v4  ;;  %v2091_v36 = vmul.f32 0.044715, %v7188_v18 }
 0x413   : > { %8359 = vst [vmem:[#allocation51_spill] sm:$0xff] %v7196_v2  ;;  %v2216_v11 = vmul.f32 %v2088_v1, %v7170_v37  ;;  %v2090_v44 = vmul.f32 0.044715, %v7184_v47  ;;  %v2093_v60 = vmul.f32 0.044715, %v7196_v2  ;;  %v7215_v48 = vadd.f32 %v6816_v42, %v8318_v7 }
 0x414   : > { %v7203_v23 = vmul.f32 %v2215_v16, %v7152_v14  ;;  %v7209_v63 = vmul.f32 %v2217_v29, %v7159_v3  ;;  %v2092_v20 = vmul.f32 0.044715, %v7200_v43  ;;  %v7224_v14 = vadd.f32 %v6841_v22, %v8312_v54 }
 0x415   : > { %8362 = vst [vmem:[#allocation53_spill] sm:$0xff] %v7215_v48  ;;  %v7218_v16 = vmul.f32 %v2216_v11, %v7170_v37  ;;  %v2218_v1 = vmul.f32 %v2090_v44, %v7184_v47  ;;  %v2221_v29 = vmul.f32 %v2093_v60, %v7196_v2  ;;  %v2094_v3 = vmul.f32 0.044715, %v7215_v48 }
 0x416   : > { %8360 = vst [vmem:[#allocation104_spill] sm:$0xff] %v7203_v23  ;;  %8361 = vst [vmem:[#allocation43_spill] sm:$0xff] %v7209_v63  ;;  %v2219_v23 = vmul.f32 %v2091_v36, %v7188_v18  ;;  %v2220_v63 = vmul.f32 %v2092_v20, %v7200_v43  ;;  %v7231_v42 = vadd.f32 %v6843_v30, %v8314_v35  ;;  %v2095_v36 = vmul.f32 0.044715, %v7224_v14 }
 0x417   : > { %v7234_v11 = vmul.f32 %v2218_v1, %v7184_v47  ;;  %v7242_v22 = vadd.f32 %v6846_v38, %v8316_v4  ;;  %v7245_v60 = vmul.f32 %v2221_v29, %v7196_v2  ;;  %v2222_v30 = vmul.f32 %v2094_v3, %v7215_v48 }
 0x418   : > { %8363 = vst [vmem:[#allocation44_spill] sm:$0xff] %v7231_v42  ;;  %v7237_v44 = vmul.f32 %v2219_v23, %v7188_v18  ;;  %v7248_v20 = vmul.f32 %v2220_v63, %v7200_v43  ;;  %v2097_v1 = vmul.f32 0.044715, %v7231_v42  ;;  %v7259_v38 = vmul.f32 0.5, %v6953_v50 }
 0x419   : > { %8364 = vst [vmem:[#allocation59_spill] sm:$0xff] %v7234_v11  ;;  %8366 = vst [vmem:[#allocation49_spill] sm:$0xff] %v7245_v60  ;;  %v2223_v11 = vmul.f32 %v2095_v36, %v7224_v14  ;;  %v2096_v23 = vmul.f32 0.044715, %v7242_v22  ;;  %v7262_v29 = vmul.f32 %v2222_v30, %v7215_v48  ;;  %v7266_v3 = vmul.f32 0.5, %v6992_v57 }
 0x41a   : > { %8365 = vst [vmem:[#allocation60_spill] sm:$0xff] %v7237_v44  ;;  %v7256_v44 = vadd.f32 %v6848_v15, %v8318_v7  ;;  %v2225_v63 = vmul.f32 %v2097_v1, %v7231_v42  ;;  %v2448_v36 = vadd.f32 %v6981_v9, %v6953_v50  ;;  %v2452_v18 = vadd.f32 %v7031_v51, %v6992_v57 }
 0x41b   : > { %8367 = vst [vmem:[#allocation45_spill] sm:$0xff] %v7262_v29  ;;  %v7271_v60 = vmul.f32 %v2223_v11, %v7224_v14  ;;  %v2224_v15 = vmul.f32 %v2096_v23, %v7242_v22  ;;  %v7281_v29 = vmul.f32 0.5, %v6961_v0  ;;  %v7284_v48 = vmul.f32 0.5, %v6996_v13 }
 0x41c   : > { %v2098_v2 = vmul.f32 0.044715, %v7256_v44  ;;  %v7278_v30 = vmul.f32 %v2225_v63, %v7231_v42  ;;  %v2576_v1 = vmul.f32 0.7978846, %v2448_v36  ;;  %v2580_v11 = vmul.f32 0.7978846, %v2452_v18 }
 0x41d   : > { %v7287_v50 = vmul.f32 %v2224_v15, %v7242_v22  ;;  %v2450_v23 = vadd.f32 %v7000_v32, %v6961_v0  ;;  %v2454_v57 = vadd.f32 %v7035_v21, %v6996_v13  ;;  %v7296_v51 = vadd.f32 %v6855_v12, %v8312_v54 }
 0x41e   : > { %8368 = vst [vmem:[#allocation41_spill] sm:$0xff] %v7278_v30  ;;  %v2226_v9 = vmul.f32 %v2098_v2, %v7256_v44  ;;  %4597 = vtanh.f32 %v2576_v1  ;;  %v7300_v63 = vadd.f32 %v6857_v61, %v8314_v35  ;;  %v7306_v2 = vmul.f32 0.5, %v6945_v39 }
 0x41f   : > { %4599 = vtanh.f32 %v2580_v11  ;;  %v2578_v18 = vmul.f32 0.7978846, %v2450_v23  ;;  %v2582_v0 = vmul.f32 0.7978846, %v2454_v57  ;;  %v2099_v32 = vmul.f32 0.044715, %v7296_v51 }
 0x420   : > { %8369 = vst [vmem:[#allocation54_spill] sm:$0xff] %v7300_v63  ;;  %v7303_v36 = vmul.f32 %v2226_v9, %v7256_v44  ;;  %v2101_v13 = vmul.f32 0.044715, %v7300_v63  ;;  %v2447_v12 = vadd.f32 %v6970_v17, %v6945_v39  ;;  %v7313_v61 = vmul.f32 0.5, %v6974_v25 }
 0x421   : > { %4601 = vtanh.f32 %v2578_v18  ;;  %v2451_v21 = vadd.f32 %v7011_v52, %v6974_v25  ;;  %v7318_v15 = vmul.f32 0.5, %v6949_v40  ;;  %v2227_v1 = vmul.f32 %v2099_v32, %v7296_v51 }
 0x422   : > { %4603 = vtanh.f32 %v2582_v0  ;;  %v2229_v9 = vmul.f32 %v2101_v13, %v7300_v63  ;;  %v2575_v11 = vmul.f32 0.7978846, %v2447_v12  ;;  %v7323_v57 = vmul.f32 0.5, %v6987_v28 }
 0x423   : > { %v2579_v23 = vmul.f32 0.7978846, %v2451_v21  ;;  %v2449_v39 = vadd.f32 %v6978_v19, %v6949_v40  ;;  %v2453_v17 = vadd.f32 %v7028_v45, %v6987_v28  ;;  %v7330_v25 = vmul.f32 %v2227_v1, %v7296_v51 }
 0x424   : > { %v7333_v52 = vmul.f32 %v2229_v9, %v7300_v63  ;;  %4605 = vtanh.f32 %v2575_v11  ;;  %v7337_v18 = vadd.f32 %v6862_v27, %v8316_v4  ;;  %v7341_v40 = vadd.f32 %v6864_v59, %v8318_v7 }
 0x425   : > { %4607 = vtanh.f32 %v2579_v23  ;;  %v2577_v0 = vmul.f32 0.7978846, %v2449_v39  ;;  %v2581_v32 = vmul.f32 0.7978846, %v2453_v17  ;;  %v7346_v28 = vadd.f32 %v6886_v8, %v8312_v54 }
 0x426   : > { %8370 = vst [vmem:[#allocation42_spill] sm:$0xff] %v7333_v52  ;;  %v2100_v19 = vmul.f32 0.044715, %v7337_v18  ;;  %v7350_v45 = vadd.f32 %v6888_v6, %v8314_v35  ;;  %v7354_v27 = vadd.f32 %v6893_v5, %v8316_v4  ;;  %v2102_v13 = vmul.f32 0.044715, %v7341_v40 }
 0x427   : > { %4609 = vtanh.f32 %v2577_v0  ;;  %v7359_v59 = vadd.f32 %v6895_v41, %v8318_v7  ;;  %v7362_v12 = vmul.f32 0.5, %v7025_v31  ;;  %v2103_v6 = vmul.f32 0.044715, %v7346_v28 }
 0x428   : > { %8371 = vst [vmem:[#allocation47_spill] sm:$0xff] %v7350_v45  ;;  %v4598_v8 = vpop.eup %4597  ;;  %4611 = vtanh.f32 %v2581_v32  ;;  %v2228_v21 = vmul.f32 %v2100_v19, %v7337_v18  ;;  %v2105_v1 = vmul.f32 0.044715, %v7350_v45  ;;  %v2230_v11 = vmul.f32 %v2102_v13, %v7341_v40 }
 0x429   : > { %v4600_v5 = vpop.eup %4599  ;;  %v2832_v9 = vadd.f32 1.0, %v4598_v8  ;;  %v2104_v23 = vmul.f32 0.044715, %v7354_v27  ;;  %v2106_v41 = vmul.f32 0.044715, %v7359_v59  ;;  %v2231_v0 = vmul.f32 %v2103_v6, %v7346_v28 }
 0x42a   : > { %v2836_v39 = vadd.f32 1.0, %v4600_v5  ;;  %v7371_v17 = vmul.f32 %v2228_v21, %v7337_v18  ;;  %v2233_v32 = vmul.f32 %v2105_v1, %v7350_v45  ;;  %v7377_v30 = vmul.f32 %v2230_v11, %v7341_v40 }
 0x42b   : > { %v4602_v19 = vpop.eup %4601  ;;  %v2960_v52 = vmul.f32 %v2832_v9, %v7259_v38  ;;  %v2232_v13 = vmul.f32 %v2104_v23, %v7354_v27  ;;  %v2234_v8 = vmul.f32 %v2106_v41, %v7359_v59  ;;  %v7383_v21 = vmul.f32 %v2231_v0, %v7346_v28 }
 0x42c   : > { %v4604_v63 = vpop.eup %4603  ;;  %v2964_v5 = vmul.f32 %v2836_v39, %v7266_v3  ;;  %v2834_v42 = vadd.f32 1.0, %v4602_v19  ;;  %v7386_v6 = vmul.f32 %v2233_v32, %v7350_v45  ;;  %v7395_v11 = vmul.f32 0.5, %v7059_v24 }
 0x42d   : > { %8372 = vst [vmem:[#allocation46_spill] sm:$0xff] %v7383_v21  ;;  %v2838_v1 = vadd.f32 1.0, %v4604_v63  ;;  %v7389_v38 = vmul.f32 %v2232_v13, %v7354_v27  ;;  %v7392_v9 = vmul.f32 %v2234_v8, %v7359_v59  ;;  %v2456_v39 = vadd.f32 %v7074_v49, %v7025_v31  ;;  %v8374_v8 = vld [vmem:[#allocation85_spill] sm:$0xff] }
 0x42e   : > { %8373 = vst [vmem:[#allocation56_spill] sm:$0xff] %v7386_v6  ;;  %v4606_v23 = vpop.eup %4605  ;;  %v3048_v41 = vpack.c.bf16 %v2964_v5, %v2960_v52  ;;  %v2962_v3 = vmul.f32 %v2834_v42, %v7281_v29  ;;  %v2460_v0 = vadd.f32 %v7104_v33, %v7059_v24  ;;  %v7404_v13 = vmul.f32 0.5, %v7043_v53  ;;  %v8375_v29 = vld [vmem:[#allocation95_spill] sm:$0xff] }
 0x42f   : > { %v4608_v63 = vpop.eup %4607  ;;  %v2966_v32 = vmul.f32 %v2838_v1, %v7284_v48  ;;  %v2831_v19 = vadd.f32 1.0, %v4606_v23  ;;  %v7407_v6 = vmul.f32 0.5, %v8374_v8  ;;  %v2584_v5 = vmul.f32 0.7978846, %v2456_v39  ;;  %v8376_v33 = vld [vmem:[#allocation91_spill] sm:$0xff] }
 0x430   : > { %3446 = vmatprep.mubr.bf16.mxu1 %v3048_v41  ;;  %v2835_v52 = vadd.f32 1.0, %v4608_v63  ;;  %v2588_v42 = vmul.f32 0.7978846, %v2460_v0  ;;  %v2458_v31 = vadd.f32 %v8375_v29, %v7043_v53  ;;  %v2462_v48 = vadd.f32 %v8376_v33, %v8374_v8  ;;  %v8377_v1 = vld [vmem:[#allocation83_spill] sm:$0xff] }
 0x431   : > { %v4610_v49 = vpop.eup %4609  ;;  %v3050_v45 = vpack.c.bf16 %v2966_v32, %v2962_v3  ;;  %v2959_v24 = vmul.f32 %v2831_v19, %v7306_v2  ;;  %v7416_v23 = vadd.f32 %v8377_v1, %v8312_v54  ;;  %4613 = vtanh.f32 %v2584_v5  ;;  %v8378_v19 = vld [vmem:[#allocation68_spill] sm:$0xff] }
 0x432   : > { %v4612_v21 = vpop.eup %4611  ;;  %v2963_v41 = vmul.f32 %v2835_v52, %v7313_v61  ;;  %v2833_v63 = vadd.f32 1.0, %v4610_v49  ;;  %v2586_v39 = vmul.f32 0.7978846, %v2458_v31  ;;  %4615 = vtanh.f32 %v2588_v42  ;;  %v8379_v52 = vld [vmem:[#allocation84_spill] sm:$0xff] }
 0x433   : > { %3607 = vmatprep.mubr.bf16.mxu0 %v3050_v45  ;;  %v2837_v0 = vadd.f32 1.0, %v4612_v21  ;;  %v2590_v53 = vmul.f32 0.7978846, %v2462_v48  ;;  %v2107_v3 = vmul.f32 0.044715, %v7416_v23  ;;  %v7423_v54 = vadd.f32 %v8378_v19, %v8314_v35  ;;  %v8380_v5 = vld [vmem:[#allocation96_spill] sm:$0xff] }
 0x434   : > { %v3047_v2 = vpack.c.bf16 %v2963_v41, %v2959_v24  ;;  %v2961_v32 = vmul.f32 %v2833_v63, %v7318_v15  ;;  %4617 = vtanh.f32 %v2586_v39  ;;  %v7428_v45 = vmul.f32 0.5, %v8379_v52  ;;  %v8381_v15 = vld [vmem:[#allocation92_spill] sm:$0xff]  ;;  %v8382_v35 = vld [vmem:[#allocation86_spill] sm:$0xff] }
 0x435   : > { %v2965_v8 = vmul.f32 %v2837_v0, %v7323_v57  ;;  %4619 = vtanh.f32 %v2590_v53  ;;  %v2235_v61 = vmul.f32 %v2107_v3, %v7416_v23  ;;  %v2109_v21 = vmul.f32 0.044715, %v7423_v54  ;;  %v8383_v24 = vld [vmem:[#allocation88_spill] sm:$0xff]  ;;  %v8384_v48 = vld [vmem:[#allocation102_spill] sm:$0xff] }
 0x436   : > { %3447 = vmatmul.mubr.bf16.gmra.mrb[120].mxu1 %v3047_v2  ;;  %v7432_v42 = vmul.f32 0.5, %v8380_v5  ;;  %v2455_v29 = vadd.f32 %v8381_v15, %v8379_v52  ;;  %v2459_v31 = vadd.f32 %v8382_v35, %v8380_v5  ;;  %v7442_v33 = vmul.f32 0.5, %v8383_v24  ;;  %v7447_v41 = vpop.f32.mrb[80].mxu1  ;;  %v8386_v53 = vld [vmem:[#allocation48_spill] sm:$0xff]  ;;  %v8390_v52 = vld [vmem:[#allocation77_spill] sm:$0xff] }
 0x437   : > { %v3049_v49 = vpack.c.bf16 %v2965_v8, %v2961_v32  ;;  %v7439_v57 = vmul.f32 %v2235_v61, %v7416_v23  ;;  %v7445_v1 = vmul.f32 0.5, %v8384_v48  ;;  %8385 = vst [vmem:[#allocation87_spill] sm:$0xff] %v7447_v41  ;;  %v2237_v63 = vmul.f32 %v2109_v21, %v7423_v54  ;;  %v7452_v2 = vpop.f32.mrb[81].mxu1  ;;  %v8388_v32 = vld [vmem:[#allocation94_spill] sm:$0xff]  ;;  %v8389_v8 = vld [vmem:[#allocation80_spill] sm:$0xff] }
 0x438   : > { %v2583_v39 = vmul.f32 0.7978846, %v2455_v29  ;;  %v2587_v0 = vmul.f32 0.7978846, %v2459_v31  ;;  %v2457_v3 = vadd.f32 %v8386_v53, %v8383_v24  ;;  %8387 = vst [vmem:[#allocation64_spill] sm:$0xff] %v7452_v2  ;;  %v2461_v19 = vadd.f32 %v8388_v32, %v8384_v48  ;;  %v7467_v15 = vpop.f32.mrb[80].mxu0 }
 0x439   : > { %3608 = vmatmul.mubr.bf16.gmra.mrb[120].mxu0 %v3049_v49  ;;  %v7458_v61 = vadd.f32 %v8389_v8, %v8316_v4  ;;  %v7462_v5 = vadd.f32 %v8390_v52, %v8318_v7  ;;  %v7465_v21 = vmul.f32 0.5, %v7098_v62  ;;  %8391 = vst [vmem:[#allocation55_spill] sm:$0xff] %v7467_v15  ;;  %v7469_v29 = vpop.f32.mrb[82].mxu1  ;;  %v7472_v35 = vmul.f32 %v2237_v63, %v7423_v54  ;;  %v7477_v4 = vpop.f32.mrb[81].mxu0 }
 0x43a   : > { %8392 = vst [vmem:[#allocation67_spill] sm:$0xff] %v7469_v29  ;;  %4621 = vtanh.f32 %v2583_v39  ;;  %v2585_v31 = vmul.f32 0.7978846, %v2457_v3  ;;  %v7475_v49 = vmul.f32 0.5, %v7128_v26  ;;  %8393 = vst [vmem:[#allocation74_spill] sm:$0xff] %v7477_v4  ;;  %v7479_v24 = vpop.f32.mrb[83].mxu1  ;;  %v2464_v63 = vadd.f32 %v7146_v58, %v7098_v62 }
 0x43b   : > { %8394 = vst [vmem:[#allocation37_spill] sm:$0xff] %v7479_v24  ;;  %4623 = vtanh.f32 %v2587_v0  ;;  %v2589_v7 = vmul.f32 0.7978846, %v2461_v19  ;;  %v2108_v48 = vmul.f32 0.044715, %v7458_v61  ;;  %v4614_v32 = vpop.eup %4613  ;;  %v2468_v39 = vadd.f32 %v7176_v46, %v7128_v26  ;;  %v7490_v8 = vpop.f32.mrb[82].mxu0 }
 0x43c   : > { %v2110_v53 = vmul.f32 0.044715, %v7462_v5  ;;  %4625 = vtanh.f32 %v2585_v31  ;;  %v7488_v3 = vmul.f32 0.5, %v7112_v10  ;;  %8395 = vst [vmem:[#allocation57_spill] sm:$0xff] %v7490_v8  ;;  %v4616_v52 = vpop.eup %4615  ;;  %v2840_v0 = vadd.f32 1.0, %v4614_v32  ;;  %v7494_v29 = vpop.f32.mrb[83].mxu0 }
 0x43d   : > { %4627 = vtanh.f32 %v2589_v7  ;;  %v2236_v19 = vmul.f32 %v2108_v48, %v7458_v61  ;;  %8396 = vst [vmem:[#allocation38_spill] sm:$0xff] %v7494_v29  ;;  %v2844_v4 = vadd.f32 1.0, %v4616_v52  ;;  %v2592_v62 = vmul.f32 0.7978846, %v2464_v63  ;;  %v8397_v63 = vld [vmem:[#allocation107_spill] sm:$0xff] }
 0x43e   : > { %v2238_v24 = vmul.f32 %v2110_v53, %v7462_v5  ;;  %v4618_v31 = vpop.eup %4617  ;;  %v2596_v58 = vmul.f32 0.7978846, %v2468_v39  ;;  %v7497_v26 = vmul.f32 0.5, %v7143_v34  ;;  %v2968_v15 = vmul.f32 %v2840_v0, %v7362_v12  ;;  %v8398_v0 = vld [vmem:[#allocation93_spill] sm:$0xff] }
 0x43f   : > { %v4620_v46 = vpop.eup %4619  ;;  %v2842_v8 = vadd.f32 1.0, %v4618_v31  ;;  %v7501_v32 = vmul.f32 %v2236_v19, %v7458_v61  ;;  %v2972_v48 = vmul.f32 %v2844_v4, %v7395_v11  ;;  %4629 = vtanh.f32 %v2592_v62  ;;  %v8399_v62 = vld [vmem:[#allocation106_spill] sm:$0xff] }
 0x440   : > { %v7504_v7 = vmul.f32 %v2238_v24, %v7462_v5  ;;  %v2846_v53 = vadd.f32 1.0, %v4620_v46  ;;  %v2466_v39 = vadd.f32 %v8397_v63, %v7112_v10  ;;  %4631 = vtanh.f32 %v2596_v58  ;;  %v8401_v58 = vld [vmem:[#allocation90_spill] sm:$0xff] }
 0x441   : > { %v2970_v52 = vmul.f32 %v2842_v8, %v7404_v13  ;;  %v2470_v12 = vadd.f32 %v7191_v55, %v7143_v34  ;;  %v7513_v31 = vmul.f32 0.5, %v8398_v0  ;;  %v3052_v19 = vpack.c.bf16 %v2972_v48, %v2968_v15  ;;  %v8400_v13 = vld [vmem:[#allocation98_spill] sm:$0xff]  ;;  %v8402_v15 = vld [vmem:[#allocation97_spill] sm:$0xff]  ;;  %v8403_v48 = vld [vmem:[#allocation100_spill] sm:$0xff] }
 0x442   : > { %v2974_v24 = vmul.f32 %v2846_v53, %v7407_v6  ;;  %v2594_v29 = vmul.f32 0.7978846, %v2466_v39  ;;  %v7517_v11 = vmul.f32 0.5, %v7116_v56  ;;  %v2463_v10 = vadd.f32 %v8399_v62, %v8398_v0 }
 0x443   : > { %v2598_v4 = vmul.f32 0.7978846, %v2470_v12  ;;  %v2467_v8 = vadd.f32 %v8400_v13, %v7116_v56  ;;  %v7524_v46 = vmul.f32 0.5, %v8401_v58  ;;  %3454 = vmatprep.mubr.bf16.mxu1 %v3052_v19  ;;  %v7527_v6 = vmul.f32 0.5, %v8402_v15  ;;  %v8404_v13 = vld [vmem:[#allocation103_spill] sm:$0xff] }
 0x444   : > { %v4622_v34 = vpop.eup %4621  ;;  %v3054_v55 = vpack.c.bf16 %v2974_v24, %v2970_v52  ;;  %4633 = vtanh.f32 %v2594_v29  ;;  %v2465_v53 = vadd.f32 %v8403_v48, %v8401_v58  ;;  %v2591_v12 = vmul.f32 0.7978846, %v2463_v10 }
 0x445   : > { %v4624_v63 = vpop.eup %4623  ;;  %v2839_v39 = vadd.f32 1.0, %v4622_v34  ;;  %4635 = vtanh.f32 %v2598_v4  ;;  %v2595_v0 = vmul.f32 0.7978846, %v2467_v8  ;;  %v2469_v2 = vadd.f32 %v8404_v13, %v8402_v15  ;;  %v8408_v13 = vld [vmem:[#allocation105_spill] sm:$0xff] }
 0x446   : > { %v4626_v62 = vpop.eup %4625  ;;  %3615 = vmatprep.mubr.bf16.mxu0 %v3054_v55  ;;  %v2843_v56 = vadd.f32 1.0, %v4624_v63  ;;  %v2593_v19 = vmul.f32 0.7978846, %v2465_v53  ;;  %v7534_v29 = vmul.f32 0.5, %v7170_v37  ;;  %4637 = vtanh.f32 %v2591_v12 }
 0x447   : > { %v4628_v52 = vpop.eup %4627  ;;  %v2967_v24 = vmul.f32 %v2839_v39, %v7428_v45  ;;  %v2841_v41 = vadd.f32 1.0, %v4626_v62  ;;  %v7538_v58 = vmul.f32 0.5, %v7200_v43  ;;  %4639 = vtanh.f32 %v2595_v0  ;;  %v8407_v0 = vld [vmem:[#allocation45_spill] sm:$0xff] }
 0x448   : > { %v2971_v4 = vmul.f32 %v2843_v56, %v7432_v42  ;;  %v2845_v10 = vadd.f32 1.0, %v4628_v52  ;;  %v2597_v8 = vmul.f32 0.7978846, %v2469_v2  ;;  %4641 = vtanh.f32 %v2593_v19  ;;  %v8409_v52 = vld [vmem:[#allocation99_spill] sm:$0xff] }
 0x449   : > { %v2969_v34 = vmul.f32 %v2841_v41, %v7442_v33  ;;  %v2472_v55 = vadd.f32 %v7218_v16, %v7170_v37  ;;  %v2476_v15 = vadd.f32 %v7248_v20, %v7200_v43  ;;  %v4630_v45 = vpop.eup %4629  ;;  %v7548_v63 = vmul.f32 0.5, %v7184_v47  ;;  %v8405_v33 = vld [vmem:[#allocation53_spill] sm:$0xff]  ;;  %v8406_v43 = vld [vmem:[#allocation59_spill] sm:$0xff] }
 0x44a   : > { %v3051_v48 = vpack.c.bf16 %v2971_v4, %v2967_v24  ;;  %v2973_v53 = vmul.f32 %v2845_v10, %v7445_v1  ;;  %4643 = vtanh.f32 %v2597_v8  ;;  %v4632_v42 = vpop.eup %4631  ;;  %v2848_v39 = vadd.f32 1.0, %v4630_v45  ;;  %v7557_v62 = vpop.f32.mrb[84].mxu1  ;;  %v8411_v45 = vld [vmem:[#allocation104_spill] sm:$0xff] }
 0x44b   : > { %v2600_v2 = vmul.f32 0.7978846, %v2472_v55  ;;  %v2604_v12 = vmul.f32 0.7978846, %v2476_v15  ;;  %v7551_v41 = vmul.f32 0.5, %v8405_v33  ;;  %v2852_v16 = vadd.f32 1.0, %v4632_v42 }
 0x44c   : > { %3455 = vmatmul.mubr.bf16.gmra.mrb[124].mxu1 %v3051_v48  ;;  %v3053_v37 = vpack.c.bf16 %v2973_v53, %v2969_v34  ;;  %v2474_v20 = vadd.f32 %v8406_v43, %v7184_v47  ;;  %v2478_v1 = vadd.f32 %v8407_v0, %v8405_v33  ;;  %v2976_v56 = vmul.f32 %v2848_v39, %v7465_v21  ;;  %v7566_v4 = vpop.f32.mrb[85].mxu1  ;;  %v8412_v53 = vld [vmem:[#allocation60_spill] sm:$0xff]  ;;  %v8413_v39 = vld [vmem:[#allocation101_spill] sm:$0xff] }
 0x44d   : > { %4645 = vtanh.f32 %v2600_v2  ;;  %v7561_v19 = vmul.f32 0.5, %v8408_v13  ;;  %v7564_v24 = vmul.f32 0.5, %v8409_v52  ;;  %v2980_v47 = vmul.f32 %v2852_v16, %v7475_v49  ;;  %v7569_v55 = vpop.f32.mrb[86].mxu1  ;;  %v7578_v33 = vpop.f32.mrb[84].mxu0  ;;  %v8415_v16 = vld [vmem:[#allocation51_spill] sm:$0xff] }
 0x44e   : > { %v4634_v10 = vpop.eup %4633  ;;  %3616 = vmatmul.mubr.bf16.gmra.mrb[124].mxu0 %v3053_v37  ;;  %4647 = vtanh.f32 %v2604_v12  ;;  %v2602_v8 = vmul.f32 0.7978846, %v2474_v20  ;;  %v2606_v34 = vmul.f32 0.7978846, %v2478_v1  ;;  %8410 = vst [vmem:[#allocation65_spill] sm:$0xff] %v7569_v55  ;;  %v2471_v48 = vadd.f32 %v8411_v45, %v8408_v13  ;;  %v7580_v37 = vpop.f32.mrb[87].mxu1 }
 0x44f   : > { %v4636_v15 = vpop.eup %4635  ;;  %v2850_v21 = vadd.f32 1.0, %v4634_v10  ;;  %v2475_v42 = vadd.f32 %v8412_v53, %v8409_v52  ;;  %v7576_v2 = vmul.f32 0.5, %v8413_v39  ;;  %8414 = vst [vmem:[#allocation39_spill] sm:$0xff] %v7580_v37  ;;  %v3056_v49 = vpack.c.bf16 %v2980_v47, %v2976_v56  ;;  %v7585_v20 = vpop.f32.mrb[85].mxu0  ;;  %v8417_v47 = vld [vmem:[#allocation43_spill] sm:$0xff] }
 0x450   : > { %v2854_v12 = vadd.f32 1.0, %v4636_v15  ;;  %4649 = vtanh.f32 %v2602_v8  ;;  %v7583_v43 = vmul.f32 0.5, %v8415_v16  ;;  %8416 = vst [vmem:[#allocation69_spill] sm:$0xff] %v7585_v20  ;;  %v4638_v0 = vpop.eup %4637  ;;  %v2599_v13 = vmul.f32 0.7978846, %v2471_v48  ;;  %v7588_v10 = vpop.f32.mrb[86].mxu0 }
 0x451   : > { %v2978_v1 = vmul.f32 %v2850_v21, %v7488_v3  ;;  %4651 = vtanh.f32 %v2606_v34  ;;  %v2603_v52 = vmul.f32 0.7978846, %v2475_v42  ;;  %v4640_v45 = vpop.eup %4639  ;;  %3462 = vmatprep.mubr.bf16.mxu1 %v3056_v49  ;;  %v2847_v56 = vadd.f32 1.0, %v4638_v0  ;;  %v8418_v15 = vld [vmem:[#allocation49_spill] sm:$0xff]  ;;  %v7595_v55 = vpop.f32.mrb[87].mxu0 }
 0x452   : > { %v2982_v53 = vmul.f32 %v2854_v12, %v7497_v26  ;;  %v2473_v8 = vadd.f32 %v8417_v47, %v8413_v39  ;;  %v2477_v37 = vadd.f32 %v8418_v15, %v8415_v16  ;;  %v4642_v20 = vpop.eup %4641  ;;  %v2851_v3 = vadd.f32 1.0, %v4640_v45 }
 0x453   : > { %4653 = vtanh.f32 %v2599_v13  ;;  %v7598_v34 = vmul.f32 0.5, %v7242_v22  ;;  %v7601_v21 = vmul.f32 0.5, %v7337_v18  ;;  %v2975_v42 = vmul.f32 %v2847_v56, %v7513_v31 }
 0x454   : > { %v4644_v48 = vpop.eup %4643  ;;  %v3058_v26 = vpack.c.bf16 %v2982_v53, %v2978_v1  ;;  %v2849_v49 = vadd.f32 1.0, %v4642_v20  ;;  %4655 = vtanh.f32 %v2603_v52  ;;  %v2979_v39 = vmul.f32 %v2851_v3, %v7517_v11 }
 0x455   : > { %v2853_v12 = vadd.f32 1.0, %v4644_v48  ;;  %v2601_v16 = vmul.f32 0.7978846, %v2473_v8  ;;  %v2605_v0 = vmul.f32 0.7978846, %v2477_v37  ;;  %v2480_v45 = vadd.f32 %v7287_v50, %v7242_v22 }
 0x456   : > { %3623 = vmatprep.mubr.bf16.mxu0 %v3058_v26  ;;  %v2977_v13 = vmul.f32 %v2849_v49, %v7524_v46  ;;  %v2484_v47 = vadd.f32 %v7371_v17, %v7337_v18  ;;  %v7611_v1 = vmul.f32 0.5, %v7256_v44  ;;  %v3055_v20 = vpack.c.bf16 %v2979_v39, %v2975_v42 }
 0x457   : > { %v4646_v31 = vpop.eup %4645  ;;  %v2981_v52 = vmul.f32 %v2853_v12, %v7527_v6  ;;  %4657 = vtanh.f32 %v2601_v16  ;;  %v7615_v11 = vmul.f32 0.5, %v7341_v40  ;;  %v2608_v46 = vmul.f32 0.7978846, %v2480_v45  ;;  %v8419_v16 = vld [vmem:[#allocation44_spill] sm:$0xff] }
 0x458   : > { %v4648_v37 = vpop.eup %4647  ;;  %v2856_v53 = vadd.f32 1.0, %v4646_v31  ;;  %4659 = vtanh.f32 %v2605_v0  ;;  %v2612_v56 = vmul.f32 0.7978846, %v2484_v47  ;;  %3463 = vmatmul.mubr.bf16.gmra.mrb[128].mxu1 %v3055_v20  ;;  %v2482_v18 = vadd.f32 %v7303_v36, %v7256_v44 }
 0x459   : > { %v3057_v22 = vpack.c.bf16 %v2981_v52, %v2977_v13  ;;  %v2860_v50 = vadd.f32 1.0, %v4648_v37  ;;  %v2486_v17 = vadd.f32 %v7377_v30, %v7341_v40  ;;  %4661 = vtanh.f32 %v2608_v46  ;;  %v8422_v37 = vld [vmem:[#allocation42_spill] sm:$0xff] }
 0x45a   : > { %v4650_v8 = vpop.eup %4649  ;;  %v2984_v6 = vmul.f32 %v2856_v53, %v7534_v29  ;;  %v7623_v15 = vmul.f32 0.5, %v7224_v14  ;;  %v7626_v3 = vmul.f32 0.5, %v7296_v51  ;;  %4663 = vtanh.f32 %v2612_v56 }
 0x45b   : > { %v4652_v48 = vpop.eup %4651  ;;  %3624 = vmatmul.mubr.bf16.gmra.mrb[128].mxu0 %v3057_v22  ;;  %v2988_v26 = vmul.f32 %v2860_v50, %v7538_v58  ;;  %v2858_v42 = vadd.f32 1.0, %v4650_v8  ;;  %v2610_v44 = vmul.f32 0.7978846, %v2482_v18  ;;  %v2614_v49 = vmul.f32 0.7978846, %v2486_v17 }
 0x45c   : > { %v2862_v36 = vadd.f32 1.0, %v4652_v48  ;;  %v2479_v30 = vadd.f32 %v7271_v60, %v7224_v14  ;;  %v2483_v40 = vadd.f32 %v7330_v25, %v7296_v51  ;;  %v7635_v0 = vmul.f32 0.5, %v8419_v16  ;;  %v8420_v60 = vld [vmem:[#allocation54_spill] sm:$0xff]  ;;  %v8421_v51 = vld [vmem:[#allocation41_spill] sm:$0xff] }
 0x45d   : > { %v4654_v29 = vpop.eup %4653  ;;  %v3060_v39 = vpack.c.bf16 %v2988_v26, %v2984_v6  ;;  %v2986_v12 = vmul.f32 %v2858_v42, %v7548_v63  ;;  %4665 = vtanh.f32 %v2610_v44  ;;  %v7639_v20 = vmul.f32 0.5, %v8420_v60 }
 0x45e   : > { %v4656_v58 = vpop.eup %4655  ;;  %v2990_v13 = vmul.f32 %v2862_v36, %v7551_v41  ;;  %v2855_v45 = vadd.f32 1.0, %v4654_v29  ;;  %4667 = vtanh.f32 %v2614_v49  ;;  %v2607_v47 = vmul.f32 0.7978846, %v2479_v30 }
 0x45f   : > { %3470 = vmatprep.mubr.bf16.mxu1 %v3060_v39  ;;  %v2859_v31 = vadd.f32 1.0, %v4656_v58  ;;  %v2611_v14 = vmul.f32 0.7978846, %v2483_v40  ;;  %v2481_v25 = vadd.f32 %v8421_v51, %v8419_v16  ;;  %v2485_v53 = vadd.f32 %v8422_v37, %v8420_v60 }
 0x460   : > { %v3062_v63 = vpack.c.bf16 %v2990_v13, %v2986_v12  ;;  %v2983_v52 = vmul.f32 %v2855_v45, %v7561_v19  ;;  %4669 = vtanh.f32 %v2607_v47  ;;  %v7648_v22 = vmul.f32 0.5, %v7354_v27 }
 0x461   : > { %v4658_v41 = vpop.eup %4657  ;;  %v2987_v46 = vmul.f32 %v2859_v31, %v7564_v24  ;;  %4671 = vtanh.f32 %v2611_v14  ;;  %v2609_v56 = vmul.f32 0.7978846, %v2481_v25  ;;  %v2613_v17 = vmul.f32 0.7978846, %v2485_v53  ;;  %v7655_v6 = vpop.f32.mrb[88].mxu1 }
 0x462   : > { %v4660_v50 = vpop.eup %4659  ;;  %3631 = vmatprep.mubr.bf16.mxu0 %v3062_v63  ;;  %v2857_v18 = vadd.f32 1.0, %v4658_v41  ;;  %v7651_v8 = vmul.f32 0.5, %v7458_v61  ;;  %v2488_v19 = vadd.f32 %v7389_v38, %v7354_v27  ;;  %v2492_v24 = vadd.f32 %v7501_v32, %v7458_v61  ;;  %v7659_v42 = vpop.f32.mrb[89].mxu1 }
 0x463   : > { %v3059_v48 = vpack.c.bf16 %v2987_v46, %v2983_v52  ;;  %v2861_v26 = vadd.f32 1.0, %v4660_v50  ;;  %4673 = vtanh.f32 %v2609_v56  ;;  %v4662_v44 = vpop.eup %4661  ;;  %v7663_v30 = vmul.f32 0.5, %v7359_v59  ;;  %v7665_v40 = vpop.f32.mrb[88].mxu0  ;;  %v8423_v52 = vld [vmem:[#allocation46_spill] sm:$0xff] }
 0x464   : > { %v2985_v36 = vmul.f32 %v2857_v18, %v7576_v2  ;;  %4675 = vtanh.f32 %v2613_v17  ;;  %v2616_v49 = vmul.f32 0.7978846, %v2488_v19  ;;  %v7667_v27 = vpop.f32.mrb[90].mxu1  ;;  %v4664_v38 = vpop.eup %4663  ;;  %v2864_v39 = vadd.f32 1.0, %v4662_v44 }
 0x465   : > { %3471 = vmatmul.mubr.bf16.gmra.mrb[132].mxu1 %v3059_v48  ;;  %v2989_v29 = vmul.f32 %v2861_v26, %v7583_v43  ;;  %v2620_v61 = vmul.f32 0.7978846, %v2492_v24  ;;  %v7671_v32 = vmul.f32 0.5, %v7462_v5  ;;  %v7673_v12 = vpop.f32.mrb[89].mxu0  ;;  %v7675_v2 = vpop.f32.mrb[91].mxu1  ;;  %v2868_v16 = vadd.f32 1.0, %v4664_v38 }
 0x466   : > { %4677 = vtanh.f32 %v2616_v49  ;;  %v2490_v58 = vadd.f32 %v7392_v9, %v7359_v59  ;;  %v2494_v13 = vadd.f32 %v7504_v7, %v7462_v5  ;;  %v7681_v45 = vpop.f32.mrb[90].mxu0  ;;  %v2992_v31 = vmul.f32 %v2864_v39, %v7598_v34  ;;  %v7714_v39 = vld [vmem:[%s7912_s9] ss:$0 sm:$0xff] }
 0x467   : > { %v4666_v43 = vpop.eup %4665  ;;  %v3061_v47 = vpack.c.bf16 %v2989_v29, %v2985_v36  ;;  %4679 = vtanh.f32 %v2620_v61  ;;  %v7685_v14 = vmul.f32 0.5, %v7346_v28  ;;  %v7687_v60 = vpop.f32.mrb[91].mxu0  ;;  %v2996_v25 = vmul.f32 %v2868_v16, %v7601_v21  ;;  %v8424_v21 = vld [vmem:[#allocation47_spill] sm:$0xff] }
 0x468   : > { %v4668_v51 = vpop.eup %4667  ;;  %v2866_v63 = vadd.f32 1.0, %v4666_v43  ;;  %v2618_v59 = vmul.f32 0.7978846, %v2490_v58  ;;  %v2622_v9 = vmul.f32 0.7978846, %v2494_v13  ;;  %v7691_v7 = vmul.f32 0.5, %v7416_v23 }
 0x469   : > { %3632 = vmatmul.mubr.bf16.gmra.mrb[132].mxu0 %v3061_v47  ;;  %v2870_v5 = vadd.f32 1.0, %v4668_v51  ;;  %v2487_v34 = vadd.f32 %v8423_v52, %v7346_v28  ;;  %v2491_v37 = vadd.f32 %v7439_v57, %v7416_v23  ;;  %v3064_v41 = vpack.c.bf16 %v2996_v25, %v2992_v31  ;;  %v8425_v57 = vld [vmem:[#allocation56_spill] sm:$0xff]  ;;  %v8426_v16 = vld [vmem:[#allocation87_spill] sm:$0xff]  ;;  %v8431_v25 = vld [vmem:[#allocation37_spill] sm:$0xff] }
 0x46a   : > { %v4670_v53 = vpop.eup %4669  ;;  %v2994_v46 = vmul.f32 %v2866_v63, %v7611_v1  ;;  %4681 = vtanh.f32 %v2618_v59  ;;  %v7699_v56 = vmul.f32 0.5, %v8424_v21  ;;  %v7703_v23 = vmul.f32 0.5, %v7423_v54  ;;  %v8427_v58 = vld [vmem:[#allocation64_spill] sm:$0xff]  ;;  %v8430_v51 = vld [vmem:[#allocation67_spill] sm:$0xff] }
 0x46b   : > { %v4672_v50 = vpop.eup %4671  ;;  %v2998_v18 = vmul.f32 %v2870_v5, %v7615_v11  ;;  %v2863_v17 = vadd.f32 1.0, %v4670_v53  ;;  %4683 = vtanh.f32 %v2622_v9  ;;  %v2615_v19 = vmul.f32 0.7978846, %v2487_v34  ;;  %3478 = vmatprep.mubr.bf16.mxu1 %v3064_v41  ;;  %v8432_v53 = vld [vmem:[#allocation57_spill] sm:$0xff]  ;;  %v8433_v41 = vld [vmem:[#allocation38_spill] sm:$0xff] }
 0x46c   : > { %v2867_v28 = vadd.f32 1.0, %v4672_v50  ;;  %v2619_v48 = vmul.f32 0.7978846, %v2491_v37  ;;  %v2489_v1 = vadd.f32 %v8425_v57, %v8424_v21  ;;  %v2493_v11 = vadd.f32 %v7472_v35, %v7423_v54  ;;  %v8428_v54 = vld [vmem:[#allocation55_spill] sm:$0xff]  ;;  %v8429_v35 = vld [vmem:[#allocation74_spill] sm:$0xff] }
 0x46d   : > { %v4674_v26 = vpop.eup %4673  ;;  %v3066_v24 = vpack.c.bf16 %v2998_v18, %v2994_v46  ;;  %v2991_v44 = vmul.f32 %v2863_v17, %v7623_v15  ;;  %4685 = vtanh.f32 %v2615_v19  ;;  %v3957_v13 = vadd.f32 %v8427_v58, %v8426_v16  ;;  %v8434_v18 = vld [vmem:[#allocation69_spill] sm:$0xff] }
 0x46e   : > { %v4676_v36 = vpop.eup %4675  ;;  %v2995_v49 = vmul.f32 %v2867_v28, %v7626_v3  ;;  %v2865_v38 = vadd.f32 1.0, %v4674_v26  ;;  %4687 = vtanh.f32 %v2619_v48  ;;  %v2617_v29 = vmul.f32 0.7978846, %v2489_v1  ;;  %v8435_v1 = vld [vmem:[#allocation65_spill] sm:$0xff]  ;;  %v8436_v26 = vld [vmem:[#allocation39_spill] sm:$0xff] }
 0x46f   : > { %3639 = vmatprep.mubr.bf16.mxu0 %v3066_v24  ;;  %v2869_v61 = vadd.f32 1.0, %v4676_v36  ;;  %v2621_v15 = vmul.f32 0.7978846, %v2493_v11  ;;  %v4069_v43 = vadd.f32 %v8429_v35, %v8428_v54  ;;  %v3960_v63 = vadd.f32 %v8431_v25, %v8430_v51 }
 0x470   : > { %v4678_v3 = vpop.eup %4677  ;;  %v3063_v47 = vpack.c.bf16 %v2995_v49, %v2991_v44  ;;  %v2993_v31 = vmul.f32 %v2865_v38, %v7635_v0  ;;  %4689 = vtanh.f32 %v2617_v29  ;;  %v3369_v52 = vadd.f32 %v3957_v13, %v7714_v39 }
 0x471   : > { %v4680_v59 = vpop.eup %4679  ;;  %v2997_v9 = vmul.f32 %v2869_v61, %v7639_v20  ;;  %v2872_v5 = vadd.f32 1.0, %v4678_v3  ;;  %4691 = vtanh.f32 %v2621_v15  ;;  %v3372_v37 = vadd.f32 %v3960_v63, %v7714_v39 }
 0x472   : > { %3479 = vmatmul.mubr.bf16.gmra.mrb[136].mxu1 %v3063_v47  ;;  %v2876_v34 = vadd.f32 1.0, %v4680_v59  ;;  %v4072_v0 = vadd.f32 %v8433_v41, %v8432_v53  ;;  %v3963_v46 = vadd.f32 %v7566_v4, %v7557_v62  ;;  %v3530_v20 = vadd.f32 %v4069_v43, %v3369_v52  ;;  %v8437_v62 = vld [vmem:[#allocation6_spill] sm:$0xff] }
 0x473   : > { %v3065_v21 = vpack.c.bf16 %v2997_v9, %v2993_v31  ;;  %v3000_v50 = vmul.f32 %v2872_v5, %v7648_v22  ;;  %v4075_v17 = vadd.f32 %v8434_v18, %v7578_v33  ;;  %v3966_v24 = vadd.f32 %v8436_v26, %v8435_v1 }
 0x474   : > { %v4682_v19 = vpop.eup %4681  ;;  %v3004_v28 = vmul.f32 %v2876_v34, %v7651_v8  ;;  %v3533_v48 = vadd.f32 %v4072_v0, %v3372_v37  ;;  %v3377_v57 = vadd.f32 %v3963_v46, %v7714_v39  ;;  %v3656_v4 = vadd.f32 %v3530_v20, %v8437_v62  ;;  %v8438_v8 = vld [vmem:[#allocation8_spill] sm:$0xff]  ;;  %v8440_v37 = vld [vmem:[#allocation7_spill] sm:$0xff] }
 0x475   : > { %v4684_v44 = vpop.eup %4683  ;;  %3640 = vmatmul.mubr.bf16.gmra.mrb[136].mxu0 %v3065_v21  ;;  %v2874_v11 = vadd.f32 1.0, %v4682_v19  ;;  %v4078_v22 = vadd.f32 %v7595_v55, %v7588_v10  ;;  %v3969_v33 = vadd.f32 %v7659_v42, %v7655_v6  ;;  %v3380_v16 = vadd.f32 %v3966_v24, %v7714_v39  ;;  %v8443_v24 = vld [vmem:[#allocation10_spill] sm:$0xff]  ;;  %v8444_v62 = vld [vmem:[#allocation12_spill] sm:$0xff] }
 0x476   : > { %v3068_v36 = vpack.c.bf16 %v3004_v28, %v3000_v50  ;;  %v2878_v49 = vadd.f32 1.0, %v4684_v44  ;;  %v3657_v38 = vadd.f32 %v3533_v48, %v8438_v8  ;;  %v3538_v29 = vadd.f32 %v4075_v17, %v3377_v57  ;;  %3688 = vst [vmem:[%s7747_s12] sm:$0xff] %v3656_v4  ;;  %v3973_v6 = vpop.f32.mrb[92].mxu1  ;;  %v8442_v28 = vld [vmem:[#allocation11_spill] sm:$0xff] }
 0x477   : > { %v4686_v61 = vpop.eup %4685  ;;  %v3002_v15 = vmul.f32 %v2874_v11, %v7663_v30  ;;  %v3385_v55 = vadd.f32 %v3969_v33, %v7714_v39  ;;  %v4081_v10 = vadd.f32 %v7673_v12, %v7665_v40  ;;  %v8439_v30 = vld [vmem:[#allocation5_spill] sm:$0xff]  ;;  %v3972_v35 = vadd.f32 %v7675_v2, %v7667_v27  ;;  %v3974_v43 = vpop.f32.mrb[93].mxu1 }
 0x478   : > { %v4688_v42 = vpop.eup %4687  ;;  %3486 = vmatprep.mubr.bf16.mxu1 %v3068_v36  ;;  %v3006_v58 = vmul.f32 %v2878_v49, %v7671_v32  ;;  %v2871_v13 = vadd.f32 1.0, %v4686_v61  ;;  %3689 = vst [vmem:[%s7747_s12 + $0x8] sm:$0xff] %v3657_v38  ;;  %v3658_v54 = vadd.f32 %v3538_v29, %v8439_v30  ;;  %v3541_v47 = vadd.f32 %v4078_v22, %v3380_v16  ;;  %v4085_v12 = vpop.f32.mrb[92].mxu0  ;;  %v8446_v30 = vld [vmem:[#allocation15_spill] sm:$0xff] }
 0x479   : > { %v2875_v3 = vadd.f32 1.0, %v4688_v42  ;;  %v3546_v31 = vadd.f32 %v4081_v10, %v3385_v55  ;;  %v4084_v40 = vadd.f32 %v7687_v60, %v7681_v45  ;;  %v3976_v51 = vpop.f32.mrb[94].mxu1  ;;  %v3388_v59 = vadd.f32 %v3972_v35, %v7714_v39  ;;  %v4086_v5 = vpop.f32.mrb[93].mxu0  ;;  %v8441_v60 = vld [vmem:[#allocation9_spill] sm:$0xff] }
 0x47a   : > { %v4690_v25 = vpop.eup %4689  ;;  %v3070_v63 = vpack.c.bf16 %v3006_v58, %v3002_v15  ;;  %v2999_v32 = vmul.f32 %v2871_v13, %v7685_v14  ;;  %3690 = vst [vmem:[%s7747_s12 + $0x10] sm:$0xff] %v3658_v54  ;;  %v3975_v9 = vadd.f32 %v3974_v43, %v3973_v6  ;;  %v3977_v27 = vpop.f32.mrb[95].mxu1  ;;  %v3659_v45 = vadd.f32 %v3541_v47, %v8440_v37  ;;  %v8445_v42 = vld [vmem:[#allocation13_spill] sm:$0xff]  ;;  %v8448_v37 = vld [vmem:[#allocation16_spill] sm:$0xff] }
 0x47b   : > { %v4692_v2 = vpop.eup %4691  ;;  %v3003_v52 = vmul.f32 %v2875_v3, %v7691_v7  ;;  %v2873_v34 = vadd.f32 1.0, %v4690_v25  ;;  %v3660_v53 = vadd.f32 %v3546_v31, %v8441_v60  ;;  %v4088_v41 = vpop.f32.mrb[94].mxu0  ;;  %v3549_v14 = vadd.f32 %v4084_v40, %v3388_v59 }
 0x47c   : > { %3647 = vmatprep.mubr.bf16.mxu0 %v3070_v63  ;;  %v2877_v0 = vadd.f32 1.0, %v4692_v2  ;;  %v3393_v46 = vadd.f32 %v3975_v9, %v7714_v39  ;;  %v4087_v21 = vadd.f32 %v4086_v5, %v4085_v12  ;;  %v4089_v50 = vpop.f32.mrb[95].mxu0  ;;  %3691 = vst [vmem:[%s7747_s12 + $0x18] sm:$0xff] %v3659_v45  ;;  %v3978_v7 = vadd.f32 %v3977_v27, %v3976_v51  ;;  %v8447_v2 = vld [vmem:[#allocation14_spill] sm:$0xff] }
 0x47d   : > { %v3067_v20 = vpack.c.bf16 %v3003_v52, %v2999_v32  ;;  %3692 = vst [vmem:[%s7747_s12 + $0x20] sm:$0xff] %v3660_v53  ;;  %v4090_v18 = vadd.f32 %v4089_v50, %v4088_v41  ;;  %v3001_v17 = vmul.f32 %v2873_v34, %v7699_v56  ;;  %v3661_v48 = vadd.f32 %v3549_v14, %v8442_v28 }
 0x47e   : > { %v3005_v19 = vmul.f32 %v2877_v0, %v7703_v23  ;;  %v3554_v57 = vadd.f32 %v4087_v21, %v3393_v46  ;;  %v3396_v1 = vadd.f32 %v3978_v7, %v7714_v39 }
 0x47f   : > { %3487 = vmatmul.mubr.bf16.gmra.mrb[140].mxu1 %v3067_v20  ;;  %3693 = vst [vmem:[%s7747_s12 + $0x28] sm:$0xff] %v3661_v48 }
 0x480   : > { %v3069_v26 = vpack.c.bf16 %v3005_v19, %v3001_v17  ;;  %v3662_v44 = vadd.f32 %v3554_v57, %v8443_v24  ;;  %v3557_v11 = vadd.f32 %v4090_v18, %v3396_v1  ;;  %v8449_v57 = vld [vmem:[#allocation17_spill] sm:$0xff]  ;;  %v8450_v24 = vld [vmem:[#allocation19_spill] sm:$0xff] }
 0x482   : > { %3648 = vmatmul.mubr.bf16.gmra.mrb[140].mxu0 %v3069_v26  ;;  %3694 = vst [vmem:[%s7747_s12 + $0x30] sm:$0xff] %v3662_v44  ;;  %v3663_v4 = vadd.f32 %v3557_v11, %v8444_v62 }
 0x484   : > { %3695 = vst [vmem:[%s7747_s12 + $0x38] sm:$0xff] %v3663_v4 }
 0x48b   : > { %v3979_v22 = vpop.f32.mrb[96].mxu1 }
 0x48c   : > { %v3980_v56 = vpop.f32.mrb[97].mxu1 }
 0x48d   : > { %v4091_v23 = vpop.f32.mrb[96].mxu0  ;;  %v3981_v33 = vadd.f32 %v3980_v56, %v3979_v22  ;;  %v3982_v36 = vpop.f32.mrb[98].mxu1 }
 0x48e   : > { %v4092_v49 = vpop.f32.mrb[97].mxu0  ;;  %v3983_v8 = vpop.f32.mrb[99].mxu1 }
 0x48f   : > { %v3401_v38 = vadd.f32 %v3981_v33, %v7714_v39  ;;  %v4093_v29 = vadd.f32 %v4092_v49, %v4091_v23  ;;  %v4094_v61 = vpop.f32.mrb[98].mxu0  ;;  %v3984_v15 = vadd.f32 %v3983_v8, %v3982_v36 }
 0x490   : > { %v4095_v16 = vpop.f32.mrb[99].mxu0 }
 0x491   : > { %v3562_v55 = vadd.f32 %v4093_v29, %v3401_v38  ;;  %v3404_v10 = vadd.f32 %v3984_v15, %v7714_v39  ;;  %v4096_v6 = vadd.f32 %v4095_v16, %v4094_v61 }
 0x493   : > { %v3664_v58 = vadd.f32 %v3562_v55, %v8445_v42  ;;  %v3565_v13 = vadd.f32 %v4096_v6, %v3404_v10  ;;  %v8451_v55 = vld [vmem:[#allocation18_spill] sm:$0xff]  ;;  %v8452_v42 = vld [vmem:[#allocation20_spill] sm:$0xff] }
 0x495   : > { %3696 = vst [vmem:[%s7747_s12 + $0x40] sm:$0xff] %v3664_v58  ;;  %v3665_v54 = vadd.f32 %v3565_v13, %v8446_v30 }
 0x497   : > { %3697 = vst [vmem:[%s7747_s12 + $0x48] sm:$0xff] %v3665_v54 }
 0x4a0   : > { %v3985_v35 = vpop.f32.mrb[100].mxu1 }
 0x4a1   : > { %v3986_v43 = vpop.f32.mrb[101].mxu1 }
 0x4a2   : > { %v4097_v3 = vpop.f32.mrb[100].mxu0  ;;  %v3987_v47 = vadd.f32 %v3986_v43, %v3985_v35  ;;  %v3988_v31 = vpop.f32.mrb[102].mxu1 }
 0x4a3   : > { %v4098_v40 = vpop.f32.mrb[101].mxu0  ;;  %v3989_v12 = vpop.f32.mrb[103].mxu1 }
 0x4a4   : > { %v3409_v51 = vadd.f32 %v3987_v47, %v7714_v39  ;;  %v4099_v25 = vadd.f32 %v4098_v40, %v4097_v3  ;;  %v4100_v63 = vpop.f32.mrb[102].mxu0  ;;  %v3990_v32 = vadd.f32 %v3989_v12, %v3988_v31 }
 0x4a5   : > { %v4101_v59 = vpop.f32.mrb[103].mxu0 }
 0x4a6   : > { %v3570_v9 = vadd.f32 %v4099_v25, %v3409_v51  ;;  %v3412_v5 = vadd.f32 %v3990_v32, %v7714_v39  ;;  %v4102_v27 = vadd.f32 %v4101_v59, %v4100_v63 }
 0x4a8   : > { %v3666_v52 = vadd.f32 %v3570_v9, %v8447_v2  ;;  %v3573_v34 = vadd.f32 %v4102_v27, %v3412_v5  ;;  %v8453_v9 = vld [vmem:[#allocation21_spill] sm:$0xff]  ;;  %v8454_v2 = vld [vmem:[#allocation22_spill] sm:$0xff] }
 0x4aa   : > { %3698 = vst [vmem:[%s7747_s12 + $0x50] sm:$0xff] %v3666_v52  ;;  %v3667_v45 = vadd.f32 %v3573_v34, %v8448_v37 }
 0x4ac   : > { %3699 = vst [vmem:[%s7747_s12 + $0x58] sm:$0xff] %v3667_v45 }
 0x4ae   : > { %v3991_v60 = vpop.f32.mrb[104].mxu1 }
 0x4af   : > { %v3992_v53 = vpop.f32.mrb[105].mxu1 }
 0x4b0   : > { %v4103_v41 = vpop.f32.mrb[104].mxu0  ;;  %v3993_v0 = vadd.f32 %v3992_v53, %v3991_v60  ;;  %v3994_v14 = vpop.f32.mrb[106].mxu1 }
 0x4b1   : > { %v4104_v46 = vpop.f32.mrb[105].mxu0  ;;  %v3995_v21 = vpop.f32.mrb[107].mxu1 }
 0x4b2   : > { %v3417_v50 = vadd.f32 %v3993_v0, %v7714_v39  ;;  %v4105_v20 = vadd.f32 %v4104_v46, %v4103_v41  ;;  %v4106_v7 = vpop.f32.mrb[106].mxu0  ;;  %v3996_v18 = vadd.f32 %v3995_v21, %v3994_v14 }
 0x4b3   : > { %v4107_v17 = vpop.f32.mrb[107].mxu0 }
 0x4b4   : > { %v3578_v19 = vadd.f32 %v4105_v20, %v3417_v50  ;;  %v3420_v28 = vadd.f32 %v3996_v18, %v7714_v39  ;;  %v4108_v48 = vadd.f32 %v4107_v17, %v4106_v7 }
 0x4b6   : > { %v3668_v1 = vadd.f32 %v3578_v19, %v8449_v57  ;;  %v3581_v26 = vadd.f32 %v4108_v48, %v3420_v28  ;;  %v8455_v19 = vld [vmem:[#allocation23_spill] sm:$0xff]  ;;  %v8456_v57 = vld [vmem:[#allocation24_spill] sm:$0xff] }
 0x4b8   : > { %3700 = vst [vmem:[%s7747_s12 + $0x60] sm:$0xff] %v3668_v1  ;;  %v3669_v44 = vadd.f32 %v3581_v26, %v8450_v24 }
 0x4b9   : > { %v3997_v11 = vpop.f32.mrb[108].mxu1 }
 0x4ba   : > { %3701 = vst [vmem:[%s7747_s12 + $0x68] sm:$0xff] %v3669_v44  ;;  %v3998_v62 = vpop.f32.mrb[109].mxu1 }
 0x4bb   : > { %v4109_v4 = vpop.f32.mrb[108].mxu0  ;;  %v3999_v22 = vadd.f32 %v3998_v62, %v3997_v11  ;;  %v4000_v56 = vpop.f32.mrb[110].mxu1 }
 0x4bc   : > { %v4110_v23 = vpop.f32.mrb[109].mxu0  ;;  %v4001_v33 = vpop.f32.mrb[111].mxu1 }
 0x4bd   : > { %v3425_v36 = vadd.f32 %v3999_v22, %v7714_v39  ;;  %v4111_v49 = vadd.f32 %v4110_v23, %v4109_v4  ;;  %v4112_v8 = vpop.f32.mrb[110].mxu0  ;;  %v4002_v38 = vadd.f32 %v4001_v33, %v4000_v56 }
 0x4be   : > { %v4113_v29 = vpop.f32.mrb[111].mxu0 }
 0x4bf   : > { %v3586_v61 = vadd.f32 %v4111_v49, %v3425_v36  ;;  %v3428_v15 = vadd.f32 %v4002_v38, %v7714_v39  ;;  %v4114_v16 = vadd.f32 %v4113_v29, %v4112_v8 }
 0x4c1   : > { %v3670_v10 = vadd.f32 %v3586_v61, %v8451_v55  ;;  %v3589_v6 = vadd.f32 %v4114_v16, %v3428_v15  ;;  %v8457_v61 = vld [vmem:[#allocation25_spill] sm:$0xff]  ;;  %v8458_v55 = vld [vmem:[#allocation26_spill] sm:$0xff] }
 0x4c3   : > { %3702 = vst [vmem:[%s7747_s12 + $0x70] sm:$0xff] %v3670_v10  ;;  %v3671_v58 = vadd.f32 %v3589_v6, %v8452_v42 }
 0x4c5   : > { %3703 = vst [vmem:[%s7747_s12 + $0x78] sm:$0xff] %v3671_v58 }
 0x4c7   : > { %v4003_v13 = vpop.f32.mrb[112].mxu1 }
 0x4c8   : > { %v4004_v30 = vpop.f32.mrb[113].mxu1 }
 0x4c9   : > { %v4005_v54 = vadd.f32 %v4004_v30, %v4003_v13  ;;  %v4006_v35 = vpop.f32.mrb[114].mxu1 }
 0x4ca   : > { %v4007_v43 = vpop.f32.mrb[115].mxu1 }
 0x4cb   : > { %v4115_v3 = vpop.f32.mrb[112].mxu0  ;;  %v3433_v47 = vadd.f32 %v4005_v54, %v7714_v39  ;;  %v4008_v31 = vadd.f32 %v4007_v43, %v4006_v35 }
 0x4cc   : > { %v4116_v40 = vpop.f32.mrb[113].mxu0 }
 0x4cd   : > { %v4117_v12 = vadd.f32 %v4116_v40, %v4115_v3  ;;  %v4118_v51 = vpop.f32.mrb[114].mxu0  ;;  %v3436_v25 = vadd.f32 %v4008_v31, %v7714_v39 }
 0x4ce   : > { %v4119_v63 = vpop.f32.mrb[115].mxu0 }
 0x4cf   : > { %v3594_v32 = vadd.f32 %v4117_v12, %v3433_v47  ;;  %v4120_v59 = vadd.f32 %v4119_v63, %v4118_v51  ;;  %v8459_v63 = vld [vmem:[#allocation27_spill] sm:$0xff] }
 0x4d1   : > { %v3672_v5 = vadd.f32 %v3594_v32, %v8453_v9  ;;  %v3597_v27 = vadd.f32 %v4120_v59, %v3436_v25  ;;  %v8460_v9 = vld [vmem:[#allocation28_spill] sm:$0xff] }
 0x4d3   : > { %3704 = vst [vmem:[%s7747_s12 + $0x80] sm:$0xff] %v3672_v5  ;;  %v3673_v52 = vadd.f32 %v3597_v27, %v8454_v2 }
 0x4d4   : > { %v4009_v34 = vpop.f32.mrb[116].mxu1 }
 0x4d5   : > { %3705 = vst [vmem:[%s7747_s12 + $0x88] sm:$0xff] %v3673_v52  ;;  %v4010_v37 = vpop.f32.mrb[117].mxu1 }
 0x4d6   : > { %v4011_v45 = vadd.f32 %v4010_v37, %v4009_v34  ;;  %v4012_v60 = vpop.f32.mrb[118].mxu1 }
 0x4d7   : > { %v4013_v53 = vpop.f32.mrb[119].mxu1  ;;  %v4121_v41 = vpop.f32.mrb[116].mxu0 }
 0x4d8   : > { %v3441_v0 = vadd.f32 %v4011_v45, %v7714_v39  ;;  %v4014_v14 = vadd.f32 %v4013_v53, %v4012_v60  ;;  %v4122_v46 = vpop.f32.mrb[117].mxu0 }
 0x4d9   : > { %v4123_v21 = vadd.f32 %v4122_v46, %v4121_v41  ;;  %v4124_v50 = vpop.f32.mrb[118].mxu0 }
 0x4da   : > { %v3444_v20 = vadd.f32 %v4014_v14, %v7714_v39  ;;  %v4125_v7 = vpop.f32.mrb[119].mxu0 }
 0x4db   : > { %v3602_v18 = vadd.f32 %v4123_v21, %v3441_v0  ;;  %v4126_v17 = vadd.f32 %v4125_v7, %v4124_v50  ;;  %v8461_v7 = vld [vmem:[#allocation29_spill] sm:$0xff] }
 0x4dd   : > { %v3674_v28 = vadd.f32 %v3602_v18, %v8455_v19  ;;  %v3605_v48 = vadd.f32 %v4126_v17, %v3444_v20  ;;  %v8462_v19 = vld [vmem:[#allocation30_spill] sm:$0xff] }
 0x4df   : > { %3706 = vst [vmem:[%s7747_s12 + $0x90] sm:$0xff] %v3674_v28  ;;  %v3675_v1 = vadd.f32 %v3605_v48, %v8456_v57 }
 0x4e1   : > { %3707 = vst [vmem:[%s7747_s12 + $0x98] sm:$0xff] %v3675_v1 }
 0x509   : > { %v4015_v26 = vpop.f32.mrb[120].mxu1 }
 0x50a   : > { %v4016_v24 = vpop.f32.mrb[121].mxu1 }
 0x50b   : > { %v4017_v44 = vadd.f32 %v4016_v24, %v4015_v26  ;;  %v4018_v11 = vpop.f32.mrb[122].mxu1 }
 0x50c   : > { %v4127_v62 = vpop.f32.mrb[120].mxu0  ;;  %v4019_v4 = vpop.f32.mrb[123].mxu1 }
 0x50d   : > { %v3449_v22 = vadd.f32 %v4017_v44, %v7714_v39  ;;  %v4128_v56 = vpop.f32.mrb[121].mxu0  ;;  %v4020_v23 = vadd.f32 %v4019_v4, %v4018_v11 }
 0x50e   : > { %v4129_v33 = vadd.f32 %v4128_v56, %v4127_v62  ;;  %v4130_v36 = vpop.f32.mrb[122].mxu0 }
 0x50f   : > { %v3452_v49 = vadd.f32 %v4020_v23, %v7714_v39  ;;  %v4131_v8 = vpop.f32.mrb[123].mxu0 }
 0x510   : > { %v3610_v38 = vadd.f32 %v4129_v33, %v3449_v22  ;;  %v4132_v29 = vadd.f32 %v4131_v8, %v4130_v36  ;;  %v8463_v8 = vld [vmem:[#allocation31_spill] sm:$0xff] }
 0x512   : > { %v3676_v15 = vadd.f32 %v3610_v38, %v8457_v61  ;;  %v3613_v16 = vadd.f32 %v4132_v29, %v3452_v49  ;;  %v8464_v61 = vld [vmem:[#allocation32_spill] sm:$0xff] }
 0x514   : > { %3708 = vst [vmem:[%s7747_s12 + $0xa0] sm:$0xff] %v3676_v15  ;;  %v3677_v10 = vadd.f32 %v3613_v16, %v8458_v55 }
 0x516   : > { %3709 = vst [vmem:[%s7747_s12 + $0xa8] sm:$0xff] %v3677_v10 }
 0x51f   : > { %v4021_v6 = vpop.f32.mrb[124].mxu1 }
 0x520   : > { %v4022_v42 = vpop.f32.mrb[125].mxu1 }
 0x521   : > { %v4133_v58 = vpop.f32.mrb[124].mxu0  ;;  %v4023_v13 = vadd.f32 %v4022_v42, %v4021_v6  ;;  %v4024_v30 = vpop.f32.mrb[126].mxu1 }
 0x522   : > { %v4134_v54 = vpop.f32.mrb[125].mxu0  ;;  %v4025_v35 = vpop.f32.mrb[127].mxu1 }
 0x523   : > { %v3457_v43 = vadd.f32 %v4023_v13, %v7714_v39  ;;  %v4135_v3 = vadd.f32 %v4134_v54, %v4133_v58  ;;  %v4136_v47 = vpop.f32.mrb[126].mxu0  ;;  %v4026_v31 = vadd.f32 %v4025_v35, %v4024_v30 }
 0x524   : > { %v4137_v40 = vpop.f32.mrb[127].mxu0 }
 0x525   : > { %v3618_v12 = vadd.f32 %v4135_v3, %v3457_v43  ;;  %v3460_v51 = vadd.f32 %v4026_v31, %v7714_v39  ;;  %v4138_v25 = vadd.f32 %v4137_v40, %v4136_v47 }
 0x527   : > { %v3678_v32 = vadd.f32 %v3618_v12, %v8459_v63  ;;  %v3621_v59 = vadd.f32 %v4138_v25, %v3460_v51  ;;  %v8465_v12 = vld [vmem:[#allocation33_spill] sm:$0xff]  ;;  %v8466_v63 = vld [vmem:[#allocation34_spill] sm:$0xff] }
 0x529   : > { %3710 = vst [vmem:[%s7747_s12 + $0xb0] sm:$0xff] %v3678_v32  ;;  %v3679_v5 = vadd.f32 %v3621_v59, %v8460_v9 }
 0x52b   : > { %3711 = vst [vmem:[%s7747_s12 + $0xb8] sm:$0xff] %v3679_v5  ;;  %v4027_v27 = vpop.f32.mrb[128].mxu1 }
 0x52c   : > { %v4028_v2 = vpop.f32.mrb[129].mxu1 }
 0x52d   : > { %v4029_v34 = vadd.f32 %v4028_v2, %v4027_v27  ;;  %v4030_v37 = vpop.f32.mrb[130].mxu1 }
 0x52e   : > { %v4139_v52 = vpop.f32.mrb[128].mxu0  ;;  %v4031_v60 = vpop.f32.mrb[131].mxu1 }
 0x52f   : > { %v4140_v45 = vpop.f32.mrb[129].mxu0  ;;  %v3465_v53 = vadd.f32 %v4029_v34, %v7714_v39  ;;  %v4032_v14 = vadd.f32 %v4031_v60, %v4030_v37 }
 0x530   : > { %v4141_v41 = vadd.f32 %v4140_v45, %v4139_v52  ;;  %v4142_v0 = vpop.f32.mrb[130].mxu0 }
 0x531   : > { %v4143_v46 = vpop.f32.mrb[131].mxu0  ;;  %v3468_v50 = vadd.f32 %v4032_v14, %v7714_v39 }
 0x532   : > { %v3626_v21 = vadd.f32 %v4141_v41, %v3465_v53  ;;  %v4144_v20 = vadd.f32 %v4143_v46, %v4142_v0 }
 0x534   : > { %v3680_v18 = vadd.f32 %v3626_v21, %v8461_v7  ;;  %v3629_v17 = vadd.f32 %v4144_v20, %v3468_v50  ;;  %v8467_v21 = vld [vmem:[#allocation35_spill] sm:$0xff] }
 0x536   : > { %3712 = vst [vmem:[%s7747_s12 + $0xc0] sm:$0xff] %v3680_v18  ;;  %v3681_v28 = vadd.f32 %v3629_v17, %v8462_v19 }
 0x538   : > { %3713 = vst [vmem:[%s7747_s12 + $0xc8] sm:$0xff] %v3681_v28  ;;  %v4033_v48 = vpop.f32.mrb[132].mxu1 }
 0x539   : > { %v4034_v57 = vpop.f32.mrb[133].mxu1 }
 0x53a   : > { %v4035_v1 = vadd.f32 %v4034_v57, %v4033_v48  ;;  %v4036_v26 = vpop.f32.mrb[134].mxu1 }
 0x53b   : > { %v4037_v24 = vpop.f32.mrb[135].mxu1 }
 0x53c   : > { %v4145_v44 = vpop.f32.mrb[132].mxu0  ;;  %v3473_v11 = vadd.f32 %v4035_v1, %v7714_v39  ;;  %v4038_v62 = vadd.f32 %v4037_v24, %v4036_v26 }
 0x53d   : > { %v4146_v4 = vpop.f32.mrb[133].mxu0 }
 0x53e   : > { %v4147_v22 = vadd.f32 %v4146_v4, %v4145_v44  ;;  %v4148_v56 = vpop.f32.mrb[134].mxu0  ;;  %v3476_v23 = vadd.f32 %v4038_v62, %v7714_v39 }
 0x53f   : > { %v4149_v33 = vpop.f32.mrb[135].mxu0 }
 0x540   : > { %v3634_v36 = vadd.f32 %v4147_v22, %v3473_v11  ;;  %v4150_v49 = vadd.f32 %v4149_v33, %v4148_v56 }
 0x542   : > { %v3682_v38 = vadd.f32 %v3634_v36, %v8463_v8  ;;  %v3637_v29 = vadd.f32 %v4150_v49, %v3476_v23 }
 0x544   : > { %3714 = vst [vmem:[%s7747_s12 + $0xd0] sm:$0xff] %v3682_v38  ;;  %v3683_v15 = vadd.f32 %v3637_v29, %v8464_v61 }
 0x545   : > { %v4039_v16 = vpop.f32.mrb[136].mxu1 }
 0x546   : > { %3715 = vst [vmem:[%s7747_s12 + $0xd8] sm:$0xff] %v3683_v15  ;;  %v4040_v55 = vpop.f32.mrb[137].mxu1 }
 0x547   : > { %v4041_v10 = vadd.f32 %v4040_v55, %v4039_v16  ;;  %v4042_v6 = vpop.f32.mrb[138].mxu1 }
 0x548   : > { %v4151_v42 = vpop.f32.mrb[136].mxu0  ;;  %v4043_v58 = vpop.f32.mrb[139].mxu1 }
 0x549   : > { %v3481_v13 = vadd.f32 %v4041_v10, %v7714_v39  ;;  %v4152_v30 = vpop.f32.mrb[137].mxu0  ;;  %v4044_v54 = vadd.f32 %v4043_v58, %v4042_v6 }
 0x54a   : > { %v4153_v35 = vadd.f32 %v4152_v30, %v4151_v42  ;;  %v4154_v43 = vpop.f32.mrb[138].mxu0 }
 0x54b   : > { %v3484_v3 = vadd.f32 %v4044_v54, %v7714_v39  ;;  %v4155_v47 = vpop.f32.mrb[139].mxu0 }
 0x54c   : > { %v3642_v31 = vadd.f32 %v4153_v35, %v3481_v13  ;;  %v4156_v40 = vadd.f32 %v4155_v47, %v4154_v43 }
 0x54e   : > { %v3684_v51 = vadd.f32 %v3642_v31, %v8465_v12  ;;  %v3645_v25 = vadd.f32 %v4156_v40, %v3484_v3 }
 0x550   : > { %3716 = vst [vmem:[%s7747_s12 + $0xe0] sm:$0xff] %v3684_v51  ;;  %v3685_v32 = vadd.f32 %v3645_v25, %v8466_v63 }
 0x552   : > { %3717 = vst [vmem:[%s7747_s12 + $0xe8] sm:$0xff] %v3685_v32  ;;  %v4045_v59 = vpop.f32.mrb[140].mxu1 }
 0x553   : > { %v4046_v9 = vpop.f32.mrb[141].mxu1 }
 0x554   : > { %v4047_v5 = vadd.f32 %v4046_v9, %v4045_v59  ;;  %v4048_v27 = vpop.f32.mrb[142].mxu1 }
 0x555   : > { %v4157_v2 = vpop.f32.mrb[140].mxu0  ;;  %v4049_v52 = vpop.f32.mrb[143].mxu1 }
 0x556   : > { %v3489_v34 = vadd.f32 %v4047_v5, %v7714_v39  ;;  %v4158_v37 = vpop.f32.mrb[141].mxu0  ;;  %v4050_v45 = vadd.f32 %v4049_v52, %v4048_v27 }
 0x557   : > { %v4159_v60 = vadd.f32 %v4158_v37, %v4157_v2  ;;  %v4160_v53 = vpop.f32.mrb[142].mxu0 }
 0x558   : > { %v3492_v41 = vadd.f32 %v4050_v45, %v7714_v39  ;;  %v4161_v0 = vpop.f32.mrb[143].mxu0  ;;  %v8468_v39 = vld [vmem:[#allocation36_spill] sm:$0xff] }
 0x559   : > { %v3650_v14 = vadd.f32 %v4159_v60, %v3489_v34  ;;  %v4162_v46 = vadd.f32 %v4161_v0, %v4160_v53 }
 0x55b   : > { %v3686_v50 = vadd.f32 %v3650_v14, %v8467_v21  ;;  %v3653_v20 = vadd.f32 %v4162_v46, %v3492_v41 }
 0x55d   : > { %3718 = vst [vmem:[%s7747_s12 + $0xf0] sm:$0xff] %v3686_v50  ;;  %v3687_v7 = vadd.f32 %v3653_v20, %v8468_v39 }
 0x55f   : > { %3719 = vst [vmem:[%s7747_s12 + $0xf8] sm:$0xff] %v3687_v7 }
 0x560   : > { %4706 = shalt.err (!%p4703_p3)
}
 0x561   : > { %s4707_s30 = scalar_lea.hbm %s7853_s25, 4096  ;;  %s4711_s27 = scalar_lea.hbm %s7913_s10, 8192 }
 0x562   : > { %p4708_p4 = scmp.ne.s32.totalorder %s7853_s25, %s4707_s30  ;;  %p4712_p9 = scmp.lt.u32.totalorder %s7853_s25, %s7913_s10 }
 0x563   : > { %p4713_p10 = scmp.lt.u32.totalorder %s4711_s27, %s4707_s30  ;;  %p4715_p12 = scmp.lt.u32.totalorder %s4707_s30, %s7853_s25 }
 0x564   : > { %p4709_p7 = pnand %p4708_p4, %p4854_p5 }
 0x565   : > { %p4714_p11 = por %p4713_p10, %p4712_p9 }
 0x566   : > { %p4710_p8 = pneg %p4709_p7 }
 0x567   : > { %p4716_p13 = por %p4715_p12, %p4714_p11 }
 0x569   : > { %p4717_p0 = pnand %p4716_p13, %p4710_p8 }
 0x56b   : > { %4720 = shalt.err (!%p4717_p0)
}
 0x56c   : > { %s4759_s0 = smov 128   ;;  %s4760_s26 = smov 8  }
 0x56d   : > { %4227 = dma.vmem_to_hbm [thread:$0]  (%p4854_p5), %s7855_s21, 4096, %s7853_s25, %s7862_s17, %s4759_s0, %s4759_s0, %s4760_s26  }
 0x56e PF: > { %p4233_p1 = scmp.ge.s32.totalorder %s4755_s16, 2  ;;  %s3749_s28 = sand.u32 1, %s4743_s13  }
 0x56f   : > { %s3750_s29 = scalar_lea.sflag [#allocation3], %s3749_s28 }
 0x570   : > { %p4230_p2 = pnand %p4233_p1, %p4858_p6 }
 0x572   : > { %4738 = dma.done.wait (!%p4230_p2), %s3750_s29, 4096  }
 0x573   : > { %4740 = vsyncadd (!%p4230_p2), %s3750_s29, 4294963200  ;;  %p20_p3 = scmp.ge.s32.totalorder %s4841_s19, 4   ;;  %s8469_s13 = smov %s4747_s14 }
 0x574   : > { %s8470_s14 = smov %s4751_s15  ;;  %s8471_s15 = smov %s4852_s22 }
 0x575   : > { %s8472_s16 = smov %s4841_s19  ;;  %22 = sbr.rel (!%p20_p3) target bundleno = 5 (0x5), region = 98 }
 0x57c   :  { %3755 = vsyncpa [#allocation3], 1 }
 0x57d   :  { %3757 = vsyncpa [#allocation3 + $0x1], 1 }

</bundles_post_ra>
